<compile_context>
chip_gen: v6e
topology: v6e:2x2x1
jax: 0.10.0
libtpu: 0.0.40
codegen_flags: <defaults>
</compile_context>

<pallas_src>
from functools import partial
import math

import jax
import jax.numpy as jnp
from jax.experimental import pallas as pl
from jax.experimental.pallas import tpu as pltpu

FEATURE_SIZE = 80          # forced by the module
BN_EPS = 1e-5


def _cdiv(a, b):
    return -(-a // b)


# ---------------------------------------------------------------------------
# Static plan of the VGG3L front end
# ---------------------------------------------------------------------------

def build_plan(T, kernel_size):
    """Sequence of ('conv', H, W, Cin, Cout, wkey, bkey) and ('pool', H, W, C) steps."""
    c4, c2, c1 = kernel_size // 4, kernel_size // 2, kernel_size
    seq = [("w11", "b11", 1, c4), ("w12", "b12", c4, c4), None,
           ("w21", "b21", c4, c2), ("w22", "b22", c2, c2), None,
           ("w31", "b31", c2, c1), ("w32", "b32", c1, c1), None]
    plan = []
    H, W, C = T, FEATURE_SIZE, 1
    for item in seq:
        if item is None:                       # ceil-mode 2x2 max pool
            plan.append(("pool", H, W, C))
            H, W = _cdiv(H, 2), _cdiv(W, 2)
        else:
            wk, bk, cin, cout = item
            plan.append(("conv", H, W, cin, cout, wk, bk))
            C = cout
    return plan, (H, W, C)                     # final (T', W', C)


def _choose_bblk(B, T):
    """Pick how many examples to fold into the sublane axis per grid step.

    Targets Bblk*T >= ~128 rows (MXU row utilization) while preferring >=2 grid
    steps when that still leaves a decent fold (v7x has two TensorCores)."""
    target = max(1, _cdiv(128, T))
    divs = [d for d in range(1, B + 1) if B % d == 0]
    cands = [d for d in divs if d <= target]
    bblk = max(cands) if cands else 1
    if B // bblk < 2:
        alt = [d for d in divs if B // d >= 2 and d * T >= 64]
        if alt:
            bblk = max(alt)
    return bblk


# ---------------------------------------------------------------------------
# Host-side weight / selector preprocessing (pure XLA, one-time under jit)
# ---------------------------------------------------------------------------

def _conv_band_matrices(w, W):
    """3x3 conv (HWIO weights) as three banded matrices acting on (rows, W*Cin) tiles."""
    _, _, cin, cout = w.shape
    mats = []
    for dy in range(3):
        a = jnp.zeros((W * cin, W * cout), jnp.float32)
        for dx in range(3):
            e = jnp.eye(W, k=1 - dx, dtype=jnp.float32)   # e[ws, wo]=1 iff ws==wo+dx-1
            a = a + jnp.kron(e, w[dy, dx].astype(jnp.float32))
        mats.append(a)
    return mats


def _conv_stacked_band(w, W):
    """Stack [A0; A1; A2] along K and cast to bf16 (native MXU operand dtype)."""
    return jnp.concatenate(_conv_band_matrices(w, W), axis=0).astype(jnp.bfloat16)


def _shift_masks(H, bblk):
    """(M,1) masks zeroing the +/-1 time-shift rows that cross example boundaries."""
    r = jnp.arange(bblk * H)
    mprev = (r % H != 0).astype(jnp.float32)[:, None]
    mnext = (r % H != H - 1).astype(jnp.float32)[:, None]
    return mprev, mnext


def _pool_lane_matrices(W, C):
    """Even/odd column-pair selectors for 2x2 (ceil-mode) max pooling along W (lanes)."""
    Wo = _cdiv(W, 2)
    wi = jnp.arange(W)[:, None]
    wo = jnp.arange(Wo)[None, :]
    sel_e = (wi == 2 * wo).astype(jnp.float32)
    sel_o = (wi == 2 * wo + 1).astype(jnp.float32)        # empty column when 2w'+1 >= W
    eye_c = jnp.eye(C, dtype=jnp.float32)
    return jnp.kron(sel_e, eye_c), jnp.kron(sel_o, eye_c)


def _pool_row_matrices(H, bblk):
    """Per-example even/odd row selectors for 2x2 (ceil-mode) max pooling along time."""
    Ho = _cdiv(H, 2)
    M, Mo = bblk * H, bblk * Ho
    ro = jnp.arange(Mo)
    b, tp = ro // Ho, ro % Ho
    cols = jnp.arange(M)[None, :]
    sel_e = (cols == (b * H + 2 * tp)[:, None]).astype(jnp.float32)
    valid_o = (2 * tp + 1 < H)
    sel_o = ((cols == (b * H + 2 * tp + 1)[:, None]) & valid_o[:, None]).astype(jnp.float32)
    return sel_e, sel_o


def _perm_matrix(Wp, C):
    """Lane permutation (w-major, c-minor) -> PyTorch (c-major, w-minor) flattening."""
    i = jnp.arange(Wp * C)
    j = (i % C) * Wp + (i // C)
    return jax.nn.one_hot(j, Wp * C, dtype=jnp.float32)


def _seg_sum_matrix(Tp, bblk):
    """Per-example row-sum operator: (Bblk, Bblk*Tp) with ones over each example's rows."""
    ro = jnp.arange(bblk)[:, None]
    co = jnp.arange(bblk * Tp)[None, :]
    return ((co // Tp) == ro).astype(jnp.float32)


def _place(mat, rows, cols, r0=0, c0=0):
    """Embed a small matrix into a zero (rows, cols) f32 matrix (lane-dense FC stack)."""
    full = jnp.zeros((rows, cols), jnp.float32)
    return full.at[r0:r0 + mat.shape[0], c0:c0 + mat.shape[1]].set(mat.astype(jnp.float32))


# ---------------------------------------------------------------------------
# Fused kernel: whole forward pass for one batch block per grid step
# ---------------------------------------------------------------------------

def _fused_kernel(plan, bblk, t_pool, *refs):
    x_ref = refs[0]
    enc_ref, head_ref, shift_ref = refs[-3], refs[-2], refs[-1]
    wrefs = iter(refs[1:-3])

    h = x_ref[...]                                        # (Bblk*T, 80) f32, Cin=1

    for step in plan:
        if step[0] == "conv":
            _, H, W, cin, _, _, _ = step
            M = bblk * H
            K = W * cin
            a_ref = next(wrefs)                           # (3K, W*Cout) bf16 [A0;A1;A2]
            brow = next(wrefs)[...]                       # (1, W*Cout) f32
            if bblk > 1:
                mprev = next(wrefs)[...]                  # (M, 1) f32
                mnext = next(wrefs)[...]                  # (M, 1) f32

            # +/-1 time shifts via a zero-padded VMEM scratch (no MXU, no iota).
            zrow = jnp.zeros((1, K), jnp.float32)
            shift_ref[pl.ds(0, 1), pl.ds(0, K)] = zrow
            shift_ref[pl.ds(M + 1, 1), pl.ds(0, K)] = zrow
            shift_ref[pl.ds(1, M), pl.ds(0, K)] = h
            h_prev = shift_ref[pl.ds(0, M), pl.ds(0, K)]  # h[t-1] (0 at first row)
            h_next = shift_ref[pl.ds(2, M), pl.ds(0, K)]  # h[t+1] (0 at last row)
            if bblk > 1:                                  # zero cross-example rows
                h_prev = h_prev * mprev
                h_next = h_next * mnext

            # 3 MXU dots against the pre-stacked banded weights (bf16 operands,
            # f32 accumulation).  Elementwise bias/ReLU stay f32 (no bf16 VPU on v5e).
            y = (jnp.dot(h_prev.astype(jnp.bfloat16), a_ref[pl.ds(0, K), :],
                         preferred_element_type=jnp.float32)
                 + jnp.dot(h.astype(jnp.bfloat16), a_ref[pl.ds(K, K), :],
                           preferred_element_type=jnp.float32)
                 + jnp.dot(h_next.astype(jnp.bfloat16), a_ref[pl.ds(2 * K, K), :],
                           preferred_element_type=jnp.float32))
            h = jnp.maximum(y + brow, 0.0)
        else:                                             # ceil-mode 2x2 max pool
            pe = next(wrefs)[...]                         # lane (W) selectors
            po = next(wrefs)[...]
            se = next(wrefs)[...]                         # per-example row (time) selectors
            so = next(wrefs)[...]
            # Pool inputs are post-ReLU (>= 0), so the empty ceil-mode taps
            # (all-zero selector rows/cols) contribute 0 and max is exact.
            hw = jnp.maximum(jnp.dot(h, pe, preferred_element_type=jnp.float32),
                             jnp.dot(h, po, preferred_element_type=jnp.float32))
            h = jnp.maximum(jnp.dot(se, hw, preferred_element_type=jnp.float32),
                            jnp.dot(so, hw, preferred_element_type=jnp.float32))

    # Encoder output, flattened like torch: (Bblk*T', C*W') with w fastest.
    perm = next(wrefs)[...]
    enc = jnp.dot(h, perm, preferred_element_type=jnp.float32)
    enc_ref[...] = enc

    # Statistical pooling: per-example mean ++ unbiased std over time.
    psum = next(wrefs)[...]                               # (Bblk, Bblk*T') ones-blocks
    s1 = jnp.dot(psum, enc, preferred_element_type=jnp.float32)
    s2 = jnp.dot(psum, enc * enc, preferred_element_type=jnp.float32)
    mu = s1 * (1.0 / t_pool)
    # TODO(synk): torch.std returns NaN for T'==1; this kernel returns 0 instead.
    var = (s2 - mu * s1) * (1.0 / max(t_pool - 1, 1))
    sd = jnp.sqrt(jnp.maximum(var, 0.0))

    w1m = next(wrefs)[...]; w1s = next(wrefs)[...]; b1 = next(wrefs)[...]
    w2p = next(wrefs)[...]; b2p = next(wrefs)[...]
    wpp = next(wrefs)[...]; bpp = next(wrefs)[...]
    wqp = next(wrefs)[...]; bqp = next(wrefs)[...]

    # embedding1 = relu(fc1([mean, std]))  (fc1 weight pre-split => no concat needed)
    e1 = jnp.maximum(jnp.dot(mu, w1m, preferred_element_type=jnp.float32)
                     + jnp.dot(sd, w1s, preferred_element_type=jnp.float32) + b1, 0.0)
    # b2/b3 (eval-mode BatchNorm1d, default stats) are folded into w2p/wpp host-side.
    # wqp/bqp also PLACE the prediction into lanes [emb, emb+nspk) of the padded head.
    e2p = jnp.maximum(jnp.dot(e1, w2p, preferred_element_type=jnp.float32) + b2p, 0.0)
    e3 = jnp.maximum(jnp.dot(e2p, wpp, preferred_element_type=jnp.float32) + bpp, 0.0)
    head_ref[...] = e2p + jnp.dot(e3, wqp, preferred_element_type=jnp.float32) + bqp


# ---------------------------------------------------------------------------
# Wrapper: parameter preprocessing + single pallas_call
# ---------------------------------------------------------------------------

def speaker_classifier_forward(x, params, kernel_size=16):
    B, T, feat = x.shape
    assert feat == FEATURE_SIZE
    bblk = _choose_bblk(B, T)
    ng = B // bblk
    plan, (t_pool, w_fin, c_fin) = build_plan(T, kernel_size)
    d_enc = w_fin * c_fin
    emb = params["fc2_w"].shape[1]
    nspk = params["pred_w"].shape[1]
    PW = _cdiv(emb + nspk, 128) * 128                    # lane-dense padded head width
    # TODO(synk): eval-mode BatchNorm1d with default running stats only; trained BN
    # parameters would need per-feature scale/shift rows instead of a scalar.
    bn_scale = 1.0 / math.sqrt(1.0 + BN_EPS)

    # --- weight / selector preprocessing (host/XLA side, tiny & one-time) ---
    ops = []
    max_k = 8
    for step in plan:
        if step[0] == "conv":
            _, H, W, cin, cout, wk, bk = step
            max_k = max(max_k, W * cin)
            ops.append(_conv_stacked_band(params[wk], W))
            ops.append(jnp.tile(params[bk].astype(jnp.float32), (W,)).reshape(1, W * cout))
            if bblk > 1:
                ops.extend(_shift_masks(H, bblk))
        else:
            _, H, W, C = step
            ops.extend(_pool_lane_matrices(W, C))
            ops.extend(_pool_row_matrices(H, bblk))
    ops.append(_perm_matrix(w_fin, c_fin))
    ops.append(_seg_sum_matrix(t_pool, bblk))
    w1 = params["fc1_w"].astype(jnp.float32)
    ops += [
        _place(w1[:d_enc], d_enc, PW),                              # fc1 (mean half)
        _place(w1[d_enc:], d_enc, PW),                              # fc1 (std half)
        _place(params["fc1_b"].reshape(1, emb), 1, PW),
        _place(bn_scale * params["fc2_w"], PW, PW),                 # fc2 * BN(b2)
        _place(bn_scale * params["fc2_b"].reshape(1, emb), 1, PW),
        _place(bn_scale * params["pre_w"], PW, PW),                 # preLayer * BN(b3)
        _place(bn_scale * params["pre_b"].reshape(1, emb), 1, PW),
        _place(params["pred_w"], PW, PW, c0=emb),                   # pred placed at lanes
        _place(params["pred_b"].reshape(1, nspk), 1, PW, c0=emb),   # [emb, emb+nspk)
    ]

    x2 = x.reshape(B * T, feat).astype(jnp.float32)      # fold batch into the row axis

    in_specs = [pl.BlockSpec((bblk * T, feat), lambda g: (g, 0))]
    # All weight/selector operands are grid-invariant (constant index map => one DMA).
    in_specs += [pl.BlockSpec(o.shape, lambda g: (0, 0)) for o in ops]

    out_shape = (jax.ShapeDtypeStruct((B * t_pool, d_enc), jnp.float32),
                 jax.ShapeDtypeStruct((B, PW), jnp.float32))
    out_specs = (pl.BlockSpec((bblk * t_pool, d_enc), lambda g: (g, 0)),
                 pl.BlockSpec((bblk, PW), lambda g: (g, 0)))

    enc2d, head = pl.pallas_call(
        partial(_fused_kernel, plan, bblk, t_pool),
        out_shape=out_shape,
        grid=(ng,),                       # batch blocks; "parallel" lets v7x use both TCs
        in_specs=in_specs,
        out_specs=out_specs,
        scratch_shapes=[pltpu.VMEM((bblk * T + 2, max_k), jnp.float32)],
        compiler_params=pltpu.CompilerParams(
            dimension_semantics=("parallel",),
            vmem_limit_bytes=40 * 1024 * 1024),
    )(x2, *ops)

    encoder_output = enc2d.reshape(B, t_pool, d_enc)
    embedding2 = head[:, :emb]
    prediction = head[:, emb:emb + nspk]
    return encoder_output, embedding2, prediction


# ---------------------------------------------------------------------------
# Deterministic parameter init + driver
# ---------------------------------------------------------------------------

def init_params(key, kernel_size=16, embedding_size=32, num_spkrs=10):
    c4, c2, c1 = kernel_size // 4, kernel_size // 2, kernel_size
    w_fin = FEATURE_SIZE
    for _ in range(3):
        w_fin = _cdiv(w_fin, 2)
    vector_size = w_fin * c1 * 2          # Statistical pooling doubles the vector size

    keys = jax.random.split(key, 10)

    def conv_w(k, cin, cout):             # HWIO layout
        return 0.1 * jax.random.normal(k, (3, 3, cin, cout), jnp.float32)

    def lin_w(k, cin, cout):              # (in, out) layout
        return (1.0 / jnp.sqrt(cin)) * jax.random.normal(k, (cin, cout), jnp.float32)

    return {
        "w11": conv_w(keys[0], 1, c4),  "b11": jnp.zeros((c4,), jnp.float32),
        "w12": conv_w(keys[1], c4, c4), "b12": jnp.zeros((c4,), jnp.float32),
        "w21": conv_w(keys[2], c4, c2), "b21": jnp.zeros((c2,), jnp.float32),
        "w22": conv_w(keys[3], c2, c2), "b22": jnp.zeros((c2,), jnp.float32),
        "w31": conv_w(keys[4], c2, c1), "b31": jnp.zeros((c1,), jnp.float32),
        "w32": conv_w(keys[5], c1, c1), "b32": jnp.zeros((c1,), jnp.float32),
        "fc1_w": lin_w(keys[6], vector_size, embedding_size),
        "fc1_b": jnp.zeros((embedding_size,), jnp.float32),
        "fc2_w": lin_w(keys[7], embedding_size, embedding_size),
        "fc2_b": jnp.zeros((embedding_size,), jnp.float32),
        "pre_w": lin_w(keys[8], embedding_size, embedding_size),
        "pre_b": jnp.zeros((embedding_size,), jnp.float32),
        "pred_w": lin_w(keys[9], embedding_size, num_spkrs),
        "pred_b": jnp.zeros((num_spkrs,), jnp.float32),
    }


if __name__ == "__main__":
    key = jax.random.PRNGKey(0)
    k_x, k_p = jax.random.split(key)

    B, T = 2, 16
    x = jax.random.normal(k_x, (B, T, FEATURE_SIZE), jnp.float32)
    params = init_params(k_p)

    fwd = jax.jit(speaker_classifier_forward)
    encoder_output, embedding2, prediction = fwd(x, params)
    jax.block_until_ready((encoder_output, embedding2, prediction))

    assert encoder_output.shape == (B, 2, 160)
    assert embedding2.shape == (B, 32)
    assert prediction.shape == (B, 10)
    assert bool(jnp.all(jnp.isfinite(encoder_output)))
    assert bool(jnp.all(jnp.isfinite(embedding2)))
    assert bool(jnp.all(jnp.isfinite(prediction)))
    # TODO(synk): Attention / MHA / DoubleMHA pooling variants and the AMSoftmax head
    # are not implemented; only the Statistical + Softmax configuration is exercised.
    print("KERNEL_OK")
</pallas_src>

<mosaic_0001>
module attributes {stable_mosaic.version = 11 : i64} {
  func.func @_fused_kernel(%arg0: i32, %arg1: memref<32x80xf32, #tpu.memory_space<vmem>>, %arg2: memref<240x320xbf16, #tpu.memory_space<vmem>>, %arg3: memref<1x320xf32, #tpu.memory_space<vmem>>, %arg4: memref<32x1xf32, #tpu.memory_space<vmem>>, %arg5: memref<32x1xf32, #tpu.memory_space<vmem>>, %arg6: memref<960x320xbf16, #tpu.memory_space<vmem>>, %arg7: memref<1x320xf32, #tpu.memory_space<vmem>>, %arg8: memref<32x1xf32, #tpu.memory_space<vmem>>, %arg9: memref<32x1xf32, #tpu.memory_space<vmem>>, %arg10: memref<320x160xf32, #tpu.memory_space<vmem>>, %arg11: memref<320x160xf32, #tpu.memory_space<vmem>>, %arg12: memref<16x32xf32, #tpu.memory_space<vmem>>, %arg13: memref<16x32xf32, #tpu.memory_space<vmem>>, %arg14: memref<480x320xbf16, #tpu.memory_space<vmem>>, %arg15: memref<1x320xf32, #tpu.memory_space<vmem>>, %arg16: memref<16x1xf32, #tpu.memory_space<vmem>>, %arg17: memref<16x1xf32, #tpu.memory_space<vmem>>, %arg18: memref<960x320xbf16, #tpu.memory_space<vmem>>, %arg19: memref<1x320xf32, #tpu.memory_space<vmem>>, %arg20: memref<16x1xf32, #tpu.memory_space<vmem>>, %arg21: memref<16x1xf32, #tpu.memory_space<vmem>>, %arg22: memref<320x160xf32, #tpu.memory_space<vmem>>, %arg23: memref<320x160xf32, #tpu.memory_space<vmem>>, %arg24: memref<8x16xf32, #tpu.memory_space<vmem>>, %arg25: memref<8x16xf32, #tpu.memory_space<vmem>>, %arg26: memref<480x320xbf16, #tpu.memory_space<vmem>>, %arg27: memref<1x320xf32, #tpu.memory_space<vmem>>, %arg28: memref<8x1xf32, #tpu.memory_space<vmem>>, %arg29: memref<8x1xf32, #tpu.memory_space<vmem>>, %arg30: memref<960x320xbf16, #tpu.memory_space<vmem>>, %arg31: memref<1x320xf32, #tpu.memory_space<vmem>>, %arg32: memref<8x1xf32, #tpu.memory_space<vmem>>, %arg33: memref<8x1xf32, #tpu.memory_space<vmem>>, %arg34: memref<320x160xf32, #tpu.memory_space<vmem>>, %arg35: memref<320x160xf32, #tpu.memory_space<vmem>>, %arg36: memref<4x8xf32, #tpu.memory_space<vmem>>, %arg37: memref<4x8xf32, #tpu.memory_space<vmem>>, %arg38: memref<160x160xf32, #tpu.memory_space<vmem>>, %arg39: memref<2x4xf32, #tpu.memory_space<vmem>>, %arg40: memref<160x128xf32, #tpu.memory_space<vmem>>, %arg41: memref<160x128xf32, #tpu.memory_space<vmem>>, %arg42: memref<1x128xf32, #tpu.memory_space<vmem>>, %arg43: memref<128x128xf32, #tpu.memory_space<vmem>>, %arg44: memref<1x128xf32, #tpu.memory_space<vmem>>, %arg45: memref<128x128xf32, #tpu.memory_space<vmem>>, %arg46: memref<1x128xf32, #tpu.memory_space<vmem>>, %arg47: memref<128x128xf32, #tpu.memory_space<vmem>>, %arg48: memref<1x128xf32, #tpu.memory_space<vmem>>, %arg49: memref<4x160xf32, #tpu.memory_space<vmem>>, %arg50: memref<2x128xf32, #tpu.memory_space<vmem>>, %arg51: memref<34x320xf32, #tpu.memory_space<vmem>>) attributes {dimension_semantics = [#tpu.dimension_semantics<parallel>], iteration_bounds = array<i64: 1>, scalar_prefetch = 0 : i64, scratch_operands = 1 : i64, tpu.core_type = #tpu.core_type<tc>, window_params = [{transform_indices = @transform_0, window_bounds = array<i64: 32, 80>}, {pipeline_mode = #tpu.pipeline_mode<synchronous>, transform_indices = @transform_1, window_bounds = array<i64: 240, 320>}, {pipeline_mode = #tpu.pipeline_mode<synchronous>, transform_indices = @transform_2, window_bounds = array<i64: 1, 320>}, {pipeline_mode = #tpu.pipeline_mode<synchronous>, transform_indices = @transform_3, window_bounds = array<i64: 32, 1>}, {pipeline_mode = #tpu.pipeline_mode<synchronous>, transform_indices = @transform_4, window_bounds = array<i64: 32, 1>}, {pipeline_mode = #tpu.pipeline_mode<synchronous>, transform_indices = @transform_5, window_bounds = array<i64: 960, 320>}, {pipeline_mode = #tpu.pipeline_mode<synchronous>, transform_indices = @transform_6, window_bounds = array<i64: 1, 320>}, {pipeline_mode = #tpu.pipeline_mode<synchronous>, transform_indices = @transform_7, window_bounds = array<i64: 32, 1>}, {pipeline_mode = #tpu.pipeline_mode<synchronous>, transform_indices = @transform_8, window_bounds = array<i64: 32, 1>}, {pipeline_mode = #tpu.pipeline_mode<synchronous>, transform_indices = @transform_9, window_bounds = array<i64: 320, 160>}, {pipeline_mode = #tpu.pipeline_mode<synchronous>, transform_indices = @transform_10, window_bounds = array<i64: 320, 160>}, {pipeline_mode = #tpu.pipeline_mode<synchronous>, transform_indices = @transform_11, window_bounds = array<i64: 16, 32>}, {pipeline_mode = #tpu.pipeline_mode<synchronous>, transform_indices = @transform_12, window_bounds = array<i64: 16, 32>}, {pipeline_mode = #tpu.pipeline_mode<synchronous>, transform_indices = @transform_13, window_bounds = array<i64: 480, 320>}, {pipeline_mode = #tpu.pipeline_mode<synchronous>, transform_indices = @transform_14, window_bounds = array<i64: 1, 320>}, {pipeline_mode = #tpu.pipeline_mode<synchronous>, transform_indices = @transform_15, window_bounds = array<i64: 16, 1>}, {pipeline_mode = #tpu.pipeline_mode<synchronous>, transform_indices = @transform_16, window_bounds = array<i64: 16, 1>}, {pipeline_mode = #tpu.pipeline_mode<synchronous>, transform_indices = @transform_17, window_bounds = array<i64: 960, 320>}, {pipeline_mode = #tpu.pipeline_mode<synchronous>, transform_indices = @transform_18, window_bounds = array<i64: 1, 320>}, {pipeline_mode = #tpu.pipeline_mode<synchronous>, transform_indices = @transform_19, window_bounds = array<i64: 16, 1>}, {pipeline_mode = #tpu.pipeline_mode<synchronous>, transform_indices = @transform_20, window_bounds = array<i64: 16, 1>}, {pipeline_mode = #tpu.pipeline_mode<synchronous>, transform_indices = @transform_21, window_bounds = array<i64: 320, 160>}, {pipeline_mode = #tpu.pipeline_mode<synchronous>, transform_indices = @transform_22, window_bounds = array<i64: 320, 160>}, {pipeline_mode = #tpu.pipeline_mode<synchronous>, transform_indices = @transform_23, window_bounds = array<i64: 8, 16>}, {pipeline_mode = #tpu.pipeline_mode<synchronous>, transform_indices = @transform_24, window_bounds = array<i64: 8, 16>}, {pipeline_mode = #tpu.pipeline_mode<synchronous>, transform_indices = @transform_25, window_bounds = array<i64: 480, 320>}, {pipeline_mode = #tpu.pipeline_mode<synchronous>, transform_indices = @transform_26, window_bounds = array<i64: 1, 320>}, {pipeline_mode = #tpu.pipeline_mode<synchronous>, transform_indices = @transform_27, window_bounds = array<i64: 8, 1>}, {pipeline_mode = #tpu.pipeline_mode<synchronous>, transform_indices = @transform_28, window_bounds = array<i64: 8, 1>}, {pipeline_mode = #tpu.pipeline_mode<synchronous>, transform_indices = @transform_29, window_bounds = array<i64: 960, 320>}, {pipeline_mode = #tpu.pipeline_mode<synchronous>, transform_indices = @transform_30, window_bounds = array<i64: 1, 320>}, {pipeline_mode = #tpu.pipeline_mode<synchronous>, transform_indices = @transform_31, window_bounds = array<i64: 8, 1>}, {pipeline_mode = #tpu.pipeline_mode<synchronous>, transform_indices = @transform_32, window_bounds = array<i64: 8, 1>}, {pipeline_mode = #tpu.pipeline_mode<synchronous>, transform_indices = @transform_33, window_bounds = array<i64: 320, 160>}, {pipeline_mode = #tpu.pipeline_mode<synchronous>, transform_indices = @transform_34, window_bounds = array<i64: 320, 160>}, {pipeline_mode = #tpu.pipeline_mode<synchronous>, transform_indices = @transform_35, window_bounds = array<i64: 4, 8>}, {pipeline_mode = #tpu.pipeline_mode<synchronous>, transform_indices = @transform_36, window_bounds = array<i64: 4, 8>}, {pipeline_mode = #tpu.pipeline_mode<synchronous>, transform_indices = @transform_37, window_bounds = array<i64: 160, 160>}, {pipeline_mode = #tpu.pipeline_mode<synchronous>, transform_indices = @transform_38, window_bounds = array<i64: 2, 4>}, {pipeline_mode = #tpu.pipeline_mode<synchronous>, transform_indices = @transform_39, window_bounds = array<i64: 160, 128>}, {pipeline_mode = #tpu.pipeline_mode<synchronous>, transform_indices = @transform_40, window_bounds = array<i64: 160, 128>}, {pipeline_mode = #tpu.pipeline_mode<synchronous>, transform_indices = @transform_41, window_bounds = array<i64: 1, 128>}, {pipeline_mode = #tpu.pipeline_mode<synchronous>, transform_indices = @transform_42, window_bounds = array<i64: 128, 128>}, {pipeline_mode = #tpu.pipeline_mode<synchronous>, transform_indices = @transform_43, window_bounds = array<i64: 1, 128>}, {pipeline_mode = #tpu.pipeline_mode<synchronous>, transform_indices = @transform_44, window_bounds = array<i64: 128, 128>}, {pipeline_mode = #tpu.pipeline_mode<synchronous>, transform_indices = @transform_45, window_bounds = array<i64: 1, 128>}, {pipeline_mode = #tpu.pipeline_mode<synchronous>, transform_indices = @transform_46, window_bounds = array<i64: 128, 128>}, {pipeline_mode = #tpu.pipeline_mode<synchronous>, transform_indices = @transform_47, window_bounds = array<i64: 1, 128>}, {transform_indices = @transform_48, window_bounds = array<i64: 4, 160>}, {transform_indices = @transform_49, window_bounds = array<i64: 2, 128>}]} {
    %c0 = arith.constant 0 : index
    %c0_0 = arith.constant 0 : index
    %0 = vector.load %arg1[%c0, %c0_0] : memref<32x80xf32, #tpu.memory_space<vmem>>, vector<32x80xf32>
    %c0_1 = arith.constant 0 : index
    %c0_2 = arith.constant 0 : index
    %1 = vector.load %arg3[%c0_1, %c0_2] : memref<1x320xf32, #tpu.memory_space<vmem>>, vector<1x320xf32>
    %c0_3 = arith.constant 0 : index
    %c0_4 = arith.constant 0 : index
    %2 = vector.load %arg4[%c0_3, %c0_4] : memref<32x1xf32, #tpu.memory_space<vmem>>, vector<32x1xf32>
    %c0_5 = arith.constant 0 : index
    %c0_6 = arith.constant 0 : index
    %3 = vector.load %arg5[%c0_5, %c0_6] : memref<32x1xf32, #tpu.memory_space<vmem>>, vector<32x1xf32>
    %cst = arith.constant 0.000000e+00 : f32
    %4 = vector.broadcast %cst : f32 to vector<1x80xf32>
    %c0_7 = arith.constant 0 : index
    %c0_8 = arith.constant 0 : index
    %5 = vector.load %arg51[%c0_7, %c0_8] : memref<34x320xf32, #tpu.memory_space<vmem>>, vector<1x80xf32>
    tpu.vector_store %arg51[%c0_7, %c0_8], %4 {strides = array<i32>} : memref<34x320xf32, #tpu.memory_space<vmem>>, vector<1x80xf32>,
    %c33 = arith.constant 33 : index
    %c0_9 = arith.constant 0 : index
    %6 = vector.load %arg51[%c33, %c0_9] : memref<34x320xf32, #tpu.memory_space<vmem>>, vector<1x80xf32>
    tpu.vector_store %arg51[%c33, %c0_9], %4 {strides = array<i32>} : memref<34x320xf32, #tpu.memory_space<vmem>>, vector<1x80xf32>,
    %c1 = arith.constant 1 : index
    %c0_10 = arith.constant 0 : index
    %7 = vector.load %arg51[%c1, %c0_10] : memref<34x320xf32, #tpu.memory_space<vmem>>, vector<32x80xf32>
    tpu.vector_store %arg51[%c1, %c0_10], %0 {strides = array<i32>} : memref<34x320xf32, #tpu.memory_space<vmem>>, vector<32x80xf32>,
    %c0_11 = arith.constant 0 : index
    %c0_12 = arith.constant 0 : index
    %8 = vector.load %arg51[%c0_11, %c0_12] : memref<34x320xf32, #tpu.memory_space<vmem>>, vector<32x80xf32>
    %c2 = arith.constant 2 : index
    %c0_13 = arith.constant 0 : index
    %9 = vector.load %arg51[%c2, %c0_13] : memref<34x320xf32, #tpu.memory_space<vmem>>, vector<32x80xf32>
    %10 = vector.broadcast %2 : vector<32x1xf32> to vector<32x80xf32>
    %11 = arith.mulf %8, %10 : vector<32x80xf32>
    %12 = vector.broadcast %3 : vector<32x1xf32> to vector<32x80xf32>
    %13 = arith.mulf %9, %12 : vector<32x80xf32>
    %14 = arith.truncf %11 : vector<32x80xf32> to vector<32x80xbf16>
    %c0_14 = arith.constant 0 : index
    %c0_15 = arith.constant 0 : index
    %15 = vector.load %arg2[%c0_14, %c0_15] : memref<240x320xbf16, #tpu.memory_space<vmem>>, vector<80x320xbf16>
    %cst_16 = arith.constant dense<0.000000e+00> : vector<32x320xf32>
    %16 = tpu.matmul %14, %15, %cst_16 {dimension_numbers = #tpu.dot_dimension_numbers<[1], [0], [0], [1], [0, 0, 1, 1], [], []>} : vector<32x80xbf16>, vector<80x320xbf16>, vector<32x320xf32> -> vector<32x320xf32>
    %17 = arith.truncf %0 : vector<32x80xf32> to vector<32x80xbf16>
    %c80 = arith.constant 80 : index
    %c0_17 = arith.constant 0 : index
    %18 = vector.load %arg2[%c80, %c0_17] : memref<240x320xbf16, #tpu.memory_space<vmem>>, vector<80x320xbf16>
    %cst_18 = arith.constant dense<0.000000e+00> : vector<32x320xf32>
    %19 = tpu.matmul %17, %18, %cst_18 {dimension_numbers = #tpu.dot_dimension_numbers<[1], [0], [0], [1], [0, 0, 1, 1], [], []>} : vector<32x80xbf16>, vector<80x320xbf16>, vector<32x320xf32> -> vector<32x320xf32>
    %20 = arith.addf %16, %19 : vector<32x320xf32>
    %21 = arith.truncf %13 : vector<32x80xf32> to vector<32x80xbf16>
    %c160 = arith.constant 160 : index
    %c0_19 = arith.constant 0 : index
    %22 = vector.load %arg2[%c160, %c0_19] : memref<240x320xbf16, #tpu.memory_space<vmem>>, vector<80x320xbf16>
    %cst_20 = arith.constant dense<0.000000e+00> : vector<32x320xf32>
    %23 = tpu.matmul %21, %22, %cst_20 {dimension_numbers = #tpu.dot_dimension_numbers<[1], [0], [0], [1], [0, 0, 1, 1], [], []>} : vector<32x80xbf16>, vector<80x320xbf16>, vector<32x320xf32> -> vector<32x320xf32>
    %24 = arith.addf %20, %23 : vector<32x320xf32>
    %25 = vector.broadcast %1 : vector<1x320xf32> to vector<32x320xf32>
    %26 = arith.addf %24, %25 : vector<32x320xf32>
    %cst_21 = arith.constant 0.000000e+00 : f32
    %27 = vector.broadcast %cst_21 : f32 to vector<32x320xf32>
    %28 = arith.maximumf %26, %27 : vector<32x320xf32>
    %c0_22 = arith.constant 0 : index
    %c0_23 = arith.constant 0 : index
    %29 = vector.load %arg7[%c0_22, %c0_23] : memref<1x320xf32, #tpu.memory_space<vmem>>, vector<1x320xf32>
    %c0_24 = arith.constant 0 : index
    %c0_25 = arith.constant 0 : index
    %30 = vector.load %arg8[%c0_24, %c0_25] : memref<32x1xf32, #tpu.memory_space<vmem>>, vector<32x1xf32>
    %c0_26 = arith.constant 0 : index
    %c0_27 = arith.constant 0 : index
    %31 = vector.load %arg9[%c0_26, %c0_27] : memref<32x1xf32, #tpu.memory_space<vmem>>, vector<32x1xf32>
    %cst_28 = arith.constant 0.000000e+00 : f32
    %32 = vector.broadcast %cst_28 : f32 to vector<1x320xf32>
    %c0_29 = arith.constant 0 : index
    %c0_30 = arith.constant 0 : index
    %33 = vector.load %arg51[%c0_29, %c0_30] : memref<34x320xf32, #tpu.memory_space<vmem>>, vector<1x320xf32>
    tpu.vector_store %arg51[%c0_29, %c0_30], %32 {strides = array<i32>} : memref<34x320xf32, #tpu.memory_space<vmem>>, vector<1x320xf32>,
    %c33_31 = arith.constant 33 : index
    %c0_32 = arith.constant 0 : index
    %34 = vector.load %arg51[%c33_31, %c0_32] : memref<34x320xf32, #tpu.memory_space<vmem>>, vector<1x320xf32>
    tpu.vector_store %arg51[%c33_31, %c0_32], %32 {strides = array<i32>} : memref<34x320xf32, #tpu.memory_space<vmem>>, vector<1x320xf32>,
    %c1_33 = arith.constant 1 : index
    %c0_34 = arith.constant 0 : index
    %35 = vector.load %arg51[%c1_33, %c0_34] : memref<34x320xf32, #tpu.memory_space<vmem>>, vector<32x320xf32>
    tpu.vector_store %arg51[%c1_33, %c0_34], %28 {strides = array<i32>} : memref<34x320xf32, #tpu.memory_space<vmem>>, vector<32x320xf32>,
    %c0_35 = arith.constant 0 : index
    %c0_36 = arith.constant 0 : index
    %36 = vector.load %arg51[%c0_35, %c0_36] : memref<34x320xf32, #tpu.memory_space<vmem>>, vector<32x320xf32>
    %c2_37 = arith.constant 2 : index
    %c0_38 = arith.constant 0 : index
    %37 = vector.load %arg51[%c2_37, %c0_38] : memref<34x320xf32, #tpu.memory_space<vmem>>, vector<32x320xf32>
    %38 = vector.broadcast %30 : vector<32x1xf32> to vector<32x320xf32>
    %39 = arith.mulf %36, %38 : vector<32x320xf32>
    %40 = vector.broadcast %31 : vector<32x1xf32> to vector<32x320xf32>
    %41 = arith.mulf %37, %40 : vector<32x320xf32>
    %42 = arith.truncf %39 : vector<32x320xf32> to vector<32x320xbf16>
    %c0_39 = arith.constant 0 : index
    %c0_40 = arith.constant 0 : index
    %43 = vector.load %arg6[%c0_39, %c0_40] : memref<960x320xbf16, #tpu.memory_space<vmem>>, vector<320x320xbf16>
    %cst_41 = arith.constant dense<0.000000e+00> : vector<32x320xf32>
    %44 = tpu.matmul %42, %43, %cst_41 {dimension_numbers = #tpu.dot_dimension_numbers<[1], [0], [0], [1], [0, 0, 1, 1], [], []>} : vector<32x320xbf16>, vector<320x320xbf16>, vector<32x320xf32> -> vector<32x320xf32>
    %45 = arith.truncf %28 : vector<32x320xf32> to vector<32x320xbf16>
    %c320 = arith.constant 320 : index
    %c0_42 = arith.constant 0 : index
    %46 = vector.load %arg6[%c320, %c0_42] : memref<960x320xbf16, #tpu.memory_space<vmem>>, vector<320x320xbf16>
    %cst_43 = arith.constant dense<0.000000e+00> : vector<32x320xf32>
    %47 = tpu.matmul %45, %46, %cst_43 {dimension_numbers = #tpu.dot_dimension_numbers<[1], [0], [0], [1], [0, 0, 1, 1], [], []>} : vector<32x320xbf16>, vector<320x320xbf16>, vector<32x320xf32> -> vector<32x320xf32>
    %48 = arith.addf %44, %47 : vector<32x320xf32>
    %49 = arith.truncf %41 : vector<32x320xf32> to vector<32x320xbf16>
    %c640 = arith.constant 640 : index
    %c0_44 = arith.constant 0 : index
    %50 = vector.load %arg6[%c640, %c0_44] : memref<960x320xbf16, #tpu.memory_space<vmem>>, vector<320x320xbf16>
    %cst_45 = arith.constant dense<0.000000e+00> : vector<32x320xf32>
    %51 = tpu.matmul %49, %50, %cst_45 {dimension_numbers = #tpu.dot_dimension_numbers<[1], [0], [0], [1], [0, 0, 1, 1], [], []>} : vector<32x320xbf16>, vector<320x320xbf16>, vector<32x320xf32> -> vector<32x320xf32>
    %52 = arith.addf %48, %51 : vector<32x320xf32>
    %53 = vector.broadcast %29 : vector<1x320xf32> to vector<32x320xf32>
    %54 = arith.addf %52, %53 : vector<32x320xf32>
    %cst_46 = arith.constant 0.000000e+00 : f32
    %55 = vector.broadcast %cst_46 : f32 to vector<32x320xf32>
    %56 = arith.maximumf %54, %55 : vector<32x320xf32>
    %c0_47 = arith.constant 0 : index
    %c0_48 = arith.constant 0 : index
    %57 = vector.load %arg10[%c0_47, %c0_48] : memref<320x160xf32, #tpu.memory_space<vmem>>, vector<320x160xf32>
    %c0_49 = arith.constant 0 : index
    %c0_50 = arith.constant 0 : index
    %58 = vector.load %arg11[%c0_49, %c0_50] : memref<320x160xf32, #tpu.memory_space<vmem>>, vector<320x160xf32>
    %c0_51 = arith.constant 0 : index
    %c0_52 = arith.constant 0 : index
    %59 = vector.load %arg12[%c0_51, %c0_52] : memref<16x32xf32, #tpu.memory_space<vmem>>, vector<16x32xf32>
    %c0_53 = arith.constant 0 : index
    %c0_54 = arith.constant 0 : index
    %60 = vector.load %arg13[%c0_53, %c0_54] : memref<16x32xf32, #tpu.memory_space<vmem>>, vector<16x32xf32>
    %cst_55 = arith.constant dense<0.000000e+00> : vector<32x160xf32>
    %61 = tpu.matmul %56, %57, %cst_55 {dimension_numbers = #tpu.dot_dimension_numbers<[1], [0], [0], [1], [0, 0, 1, 1], [], []>} : vector<32x320xf32>, vector<320x160xf32>, vector<32x160xf32> -> vector<32x160xf32>
    %cst_56 = arith.constant dense<0.000000e+00> : vector<32x160xf32>
    %62 = tpu.matmul %56, %58, %cst_56 {dimension_numbers = #tpu.dot_dimension_numbers<[1], [0], [0], [1], [0, 0, 1, 1], [], []>} : vector<32x320xf32>, vector<320x160xf32>, vector<32x160xf32> -> vector<32x160xf32>
    %63 = arith.maximumf %61, %62 : vector<32x160xf32>
    %cst_57 = arith.constant dense<0.000000e+00> : vector<16x160xf32>
    %64 = tpu.matmul %59, %63, %cst_57 {dimension_numbers = #tpu.dot_dimension_numbers<[1], [0], [0], [1], [0, 0, 1, 1], [], []>} : vector<16x32xf32>, vector<32x160xf32>, vector<16x160xf32> -> vector<16x160xf32>
    %cst_58 = arith.constant dense<0.000000e+00> : vector<16x160xf32>
    %65 = tpu.matmul %60, %63, %cst_58 {dimension_numbers = #tpu.dot_dimension_numbers<[1], [0], [0], [1], [0, 0, 1, 1], [], []>} : vector<16x32xf32>, vector<32x160xf32>, vector<16x160xf32> -> vector<16x160xf32>
    %66 = arith.maximumf %64, %65 : vector<16x160xf32>
    %c0_59 = arith.constant 0 : index
    %c0_60 = arith.constant 0 : index
    %67 = vector.load %arg15[%c0_59, %c0_60] : memref<1x320xf32, #tpu.memory_space<vmem>>, vector<1x320xf32>
    %c0_61 = arith.constant 0 : index
    %c0_62 = arith.constant 0 : index
    %68 = vector.load %arg16[%c0_61, %c0_62] : memref<16x1xf32, #tpu.memory_space<vmem>>, vector<16x1xf32>
    %c0_63 = arith.constant 0 : index
    %c0_64 = arith.constant 0 : index
    %69 = vector.load %arg17[%c0_63, %c0_64] : memref<16x1xf32, #tpu.memory_space<vmem>>, vector<16x1xf32>
    %cst_65 = arith.constant 0.000000e+00 : f32
    %70 = vector.broadcast %cst_65 : f32 to vector<1x160xf32>
    %c0_66 = arith.constant 0 : index
    %c0_67 = arith.constant 0 : index
    %71 = vector.load %arg51[%c0_66, %c0_67] : memref<34x320xf32, #tpu.memory_space<vmem>>, vector<1x160xf32>
    tpu.vector_store %arg51[%c0_66, %c0_67], %70 {strides = array<i32>} : memref<34x320xf32, #tpu.memory_space<vmem>>, vector<1x160xf32>,
    %c17 = arith.constant 17 : index
    %c0_68 = arith.constant 0 : index
    %72 = vector.load %arg51[%c17, %c0_68] : memref<34x320xf32, #tpu.memory_space<vmem>>, vector<1x160xf32>
    tpu.vector_store %arg51[%c17, %c0_68], %70 {strides = array<i32>} : memref<34x320xf32, #tpu.memory_space<vmem>>, vector<1x160xf32>,
    %c1_69 = arith.constant 1 : index
    %c0_70 = arith.constant 0 : index
    %73 = vector.load %arg51[%c1_69, %c0_70] : memref<34x320xf32, #tpu.memory_space<vmem>>, vector<16x160xf32>
    tpu.vector_store %arg51[%c1_69, %c0_70], %66 {strides = array<i32>} : memref<34x320xf32, #tpu.memory_space<vmem>>, vector<16x160xf32>,
    %c0_71 = arith.constant 0 : index
    %c0_72 = arith.constant 0 : index
    %74 = vector.load %arg51[%c0_71, %c0_72] : memref<34x320xf32, #tpu.memory_space<vmem>>, vector<16x160xf32>
    %c2_73 = arith.constant 2 : index
    %c0_74 = arith.constant 0 : index
    %75 = vector.load %arg51[%c2_73, %c0_74] : memref<34x320xf32, #tpu.memory_space<vmem>>, vector<16x160xf32>
    %76 = vector.broadcast %68 : vector<16x1xf32> to vector<16x160xf32>
    %77 = arith.mulf %74, %76 : vector<16x160xf32>
    %78 = vector.broadcast %69 : vector<16x1xf32> to vector<16x160xf32>
    %79 = arith.mulf %75, %78 : vector<16x160xf32>
    %80 = arith.truncf %77 : vector<16x160xf32> to vector<16x160xbf16>
    %c0_75 = arith.constant 0 : index
    %c0_76 = arith.constant 0 : index
    %81 = vector.load %arg14[%c0_75, %c0_76] : memref<480x320xbf16, #tpu.memory_space<vmem>>, vector<160x320xbf16>
    %cst_77 = arith.constant dense<0.000000e+00> : vector<16x320xf32>
    %82 = tpu.matmul %80, %81, %cst_77 {dimension_numbers = #tpu.dot_dimension_numbers<[1], [0], [0], [1], [0, 0, 1, 1], [], []>} : vector<16x160xbf16>, vector<160x320xbf16>, vector<16x320xf32> -> vector<16x320xf32>
    %83 = arith.truncf %66 : vector<16x160xf32> to vector<16x160xbf16>
    %c160_78 = arith.constant 160 : index
    %c0_79 = arith.constant 0 : index
    %84 = vector.load %arg14[%c160_78, %c0_79] : memref<480x320xbf16, #tpu.memory_space<vmem>>, vector<160x320xbf16>
    %cst_80 = arith.constant dense<0.000000e+00> : vector<16x320xf32>
    %85 = tpu.matmul %83, %84, %cst_80 {dimension_numbers = #tpu.dot_dimension_numbers<[1], [0], [0], [1], [0, 0, 1, 1], [], []>} : vector<16x160xbf16>, vector<160x320xbf16>, vector<16x320xf32> -> vector<16x320xf32>
    %86 = arith.addf %82, %85 : vector<16x320xf32>
    %87 = arith.truncf %79 : vector<16x160xf32> to vector<16x160xbf16>
    %c320_81 = arith.constant 320 : index
    %c0_82 = arith.constant 0 : index
    %88 = vector.load %arg14[%c320_81, %c0_82] : memref<480x320xbf16, #tpu.memory_space<vmem>>, vector<160x320xbf16>
    %cst_83 = arith.constant dense<0.000000e+00> : vector<16x320xf32>
    %89 = tpu.matmul %87, %88, %cst_83 {dimension_numbers = #tpu.dot_dimension_numbers<[1], [0], [0], [1], [0, 0, 1, 1], [], []>} : vector<16x160xbf16>, vector<160x320xbf16>, vector<16x320xf32> -> vector<16x320xf32>
    %90 = arith.addf %86, %89 : vector<16x320xf32>
    %91 = vector.broadcast %67 : vector<1x320xf32> to vector<16x320xf32>
    %92 = arith.addf %90, %91 : vector<16x320xf32>
    %cst_84 = arith.constant 0.000000e+00 : f32
    %93 = vector.broadcast %cst_84 : f32 to vector<16x320xf32>
    %94 = arith.maximumf %92, %93 : vector<16x320xf32>
    %c0_85 = arith.constant 0 : index
    %c0_86 = arith.constant 0 : index
    %95 = vector.load %arg19[%c0_85, %c0_86] : memref<1x320xf32, #tpu.memory_space<vmem>>, vector<1x320xf32>
    %c0_87 = arith.constant 0 : index
    %c0_88 = arith.constant 0 : index
    %96 = vector.load %arg20[%c0_87, %c0_88] : memref<16x1xf32, #tpu.memory_space<vmem>>, vector<16x1xf32>
    %c0_89 = arith.constant 0 : index
    %c0_90 = arith.constant 0 : index
    %97 = vector.load %arg21[%c0_89, %c0_90] : memref<16x1xf32, #tpu.memory_space<vmem>>, vector<16x1xf32>
    %cst_91 = arith.constant 0.000000e+00 : f32
    %98 = vector.broadcast %cst_91 : f32 to vector<1x320xf32>
    %c0_92 = arith.constant 0 : index
    %c0_93 = arith.constant 0 : index
    %99 = vector.load %arg51[%c0_92, %c0_93] : memref<34x320xf32, #tpu.memory_space<vmem>>, vector<1x320xf32>
    tpu.vector_store %arg51[%c0_92, %c0_93], %98 {strides = array<i32>} : memref<34x320xf32, #tpu.memory_space<vmem>>, vector<1x320xf32>,
    %c17_94 = arith.constant 17 : index
    %c0_95 = arith.constant 0 : index
    %100 = vector.load %arg51[%c17_94, %c0_95] : memref<34x320xf32, #tpu.memory_space<vmem>>, vector<1x320xf32>
    tpu.vector_store %arg51[%c17_94, %c0_95], %98 {strides = array<i32>} : memref<34x320xf32, #tpu.memory_space<vmem>>, vector<1x320xf32>,
    %c1_96 = arith.constant 1 : index
    %c0_97 = arith.constant 0 : index
    %101 = vector.load %arg51[%c1_96, %c0_97] : memref<34x320xf32, #tpu.memory_space<vmem>>, vector<16x320xf32>
    tpu.vector_store %arg51[%c1_96, %c0_97], %94 {strides = array<i32>} : memref<34x320xf32, #tpu.memory_space<vmem>>, vector<16x320xf32>,
    %c0_98 = arith.constant 0 : index
    %c0_99 = arith.constant 0 : index
    %102 = vector.load %arg51[%c0_98, %c0_99] : memref<34x320xf32, #tpu.memory_space<vmem>>, vector<16x320xf32>
    %c2_100 = arith.constant 2 : index
    %c0_101 = arith.constant 0 : index
    %103 = vector.load %arg51[%c2_100, %c0_101] : memref<34x320xf32, #tpu.memory_space<vmem>>, vector<16x320xf32>
    %104 = vector.broadcast %96 : vector<16x1xf32> to vector<16x320xf32>
    %105 = arith.mulf %102, %104 : vector<16x320xf32>
    %106 = vector.broadcast %97 : vector<16x1xf32> to vector<16x320xf32>
    %107 = arith.mulf %103, %106 : vector<16x320xf32>
    %108 = arith.truncf %105 : vector<16x320xf32> to vector<16x320xbf16>
    %c0_102 = arith.constant 0 : index
    %c0_103 = arith.constant 0 : index
    %109 = vector.load %arg18[%c0_102, %c0_103] : memref<960x320xbf16, #tpu.memory_space<vmem>>, vector<320x320xbf16>
    %cst_104 = arith.constant dense<0.000000e+00> : vector<16x320xf32>
    %110 = tpu.matmul %108, %109, %cst_104 {dimension_numbers = #tpu.dot_dimension_numbers<[1], [0], [0], [1], [0, 0, 1, 1], [], []>} : vector<16x320xbf16>, vector<320x320xbf16>, vector<16x320xf32> -> vector<16x320xf32>
    %111 = arith.truncf %94 : vector<16x320xf32> to vector<16x320xbf16>
    %c320_105 = arith.constant 320 : index
    %c0_106 = arith.constant 0 : index
    %112 = vector.load %arg18[%c320_105, %c0_106] : memref<960x320xbf16, #tpu.memory_space<vmem>>, vector<320x320xbf16>
    %cst_107 = arith.constant dense<0.000000e+00> : vector<16x320xf32>
    %113 = tpu.matmul %111, %112, %cst_107 {dimension_numbers = #tpu.dot_dimension_numbers<[1], [0], [0], [1], [0, 0, 1, 1], [], []>} : vector<16x320xbf16>, vector<320x320xbf16>, vector<16x320xf32> -> vector<16x320xf32>
    %114 = arith.addf %110, %113 : vector<16x320xf32>
    %115 = arith.truncf %107 : vector<16x320xf32> to vector<16x320xbf16>
    %c640_108 = arith.constant 640 : index
    %c0_109 = arith.constant 0 : index
    %116 = vector.load %arg18[%c640_108, %c0_109] : memref<960x320xbf16, #tpu.memory_space<vmem>>, vector<320x320xbf16>
    %cst_110 = arith.constant dense<0.000000e+00> : vector<16x320xf32>
    %117 = tpu.matmul %115, %116, %cst_110 {dimension_numbers = #tpu.dot_dimension_numbers<[1], [0], [0], [1], [0, 0, 1, 1], [], []>} : vector<16x320xbf16>, vector<320x320xbf16>, vector<16x320xf32> -> vector<16x320xf32>
    %118 = arith.addf %114, %117 : vector<16x320xf32>
    %119 = vector.broadcast %95 : vector<1x320xf32> to vector<16x320xf32>
    %120 = arith.addf %118, %119 : vector<16x320xf32>
    %cst_111 = arith.constant 0.000000e+00 : f32
    %121 = vector.broadcast %cst_111 : f32 to vector<16x320xf32>
    %122 = arith.maximumf %120, %121 : vector<16x320xf32>
    %c0_112 = arith.constant 0 : index
    %c0_113 = arith.constant 0 : index
    %123 = vector.load %arg22[%c0_112, %c0_113] : memref<320x160xf32, #tpu.memory_space<vmem>>, vector<320x160xf32>
    %c0_114 = arith.constant 0 : index
    %c0_115 = arith.constant 0 : index
    %124 = vector.load %arg23[%c0_114, %c0_115] : memref<320x160xf32, #tpu.memory_space<vmem>>, vector<320x160xf32>
    %c0_116 = arith.constant 0 : index
    %c0_117 = arith.constant 0 : index
    %125 = vector.load %arg24[%c0_116, %c0_117] : memref<8x16xf32, #tpu.memory_space<vmem>>, vector<8x16xf32>
    %c0_118 = arith.constant 0 : index
    %c0_119 = arith.constant 0 : index
    %126 = vector.load %arg25[%c0_118, %c0_119] : memref<8x16xf32, #tpu.memory_space<vmem>>, vector<8x16xf32>
    %cst_120 = arith.constant dense<0.000000e+00> : vector<16x160xf32>
    %127 = tpu.matmul %122, %123, %cst_120 {dimension_numbers = #tpu.dot_dimension_numbers<[1], [0], [0], [1], [0, 0, 1, 1], [], []>} : vector<16x320xf32>, vector<320x160xf32>, vector<16x160xf32> -> vector<16x160xf32>
    %cst_121 = arith.constant dense<0.000000e+00> : vector<16x160xf32>
    %128 = tpu.matmul %122, %124, %cst_121 {dimension_numbers = #tpu.dot_dimension_numbers<[1], [0], [0], [1], [0, 0, 1, 1], [], []>} : vector<16x320xf32>, vector<320x160xf32>, vector<16x160xf32> -> vector<16x160xf32>
    %129 = arith.maximumf %127, %128 : vector<16x160xf32>
    %cst_122 = arith.constant dense<0.000000e+00> : vector<8x160xf32>
    %130 = tpu.matmul %125, %129, %cst_122 {dimension_numbers = #tpu.dot_dimension_numbers<[1], [0], [0], [1], [0, 0, 1, 1], [], []>} : vector<8x16xf32>, vector<16x160xf32>, vector<8x160xf32> -> vector<8x160xf32>
    %cst_123 = arith.constant dense<0.000000e+00> : vector<8x160xf32>
    %131 = tpu.matmul %126, %129, %cst_123 {dimension_numbers = #tpu.dot_dimension_numbers<[1], [0], [0], [1], [0, 0, 1, 1], [], []>} : vector<8x16xf32>, vector<16x160xf32>, vector<8x160xf32> -> vector<8x160xf32>
    %132 = arith.maximumf %130, %131 : vector<8x160xf32>
    %c0_124 = arith.constant 0 : index
    %c0_125 = arith.constant 0 : index
    %133 = vector.load %arg27[%c0_124, %c0_125] : memref<1x320xf32, #tpu.memory_space<vmem>>, vector<1x320xf32>
    %c0_126 = arith.constant 0 : index
    %c0_127 = arith.constant 0 : index
    %134 = vector.load %arg28[%c0_126, %c0_127] : memref<8x1xf32, #tpu.memory_space<vmem>>, vector<8x1xf32>
    %c0_128 = arith.constant 0 : index
    %c0_129 = arith.constant 0 : index
    %135 = vector.load %arg29[%c0_128, %c0_129] : memref<8x1xf32, #tpu.memory_space<vmem>>, vector<8x1xf32>
    %cst_130 = arith.constant 0.000000e+00 : f32
    %136 = vector.broadcast %cst_130 : f32 to vector<1x160xf32>
    %c0_131 = arith.constant 0 : index
    %c0_132 = arith.constant 0 : index
    %137 = vector.load %arg51[%c0_131, %c0_132] : memref<34x320xf32, #tpu.memory_space<vmem>>, vector<1x160xf32>
    tpu.vector_store %arg51[%c0_131, %c0_132], %136 {strides = array<i32>} : memref<34x320xf32, #tpu.memory_space<vmem>>, vector<1x160xf32>,
    %c9 = arith.constant 9 : index
    %c0_133 = arith.constant 0 : index
    %138 = vector.load %arg51[%c9, %c0_133] : memref<34x320xf32, #tpu.memory_space<vmem>>, vector<1x160xf32>
    tpu.vector_store %arg51[%c9, %c0_133], %136 {strides = array<i32>} : memref<34x320xf32, #tpu.memory_space<vmem>>, vector<1x160xf32>,
    %c1_134 = arith.constant 1 : index
    %c0_135 = arith.constant 0 : index
    %139 = vector.load %arg51[%c1_134, %c0_135] : memref<34x320xf32, #tpu.memory_space<vmem>>, vector<8x160xf32>
    tpu.vector_store %arg51[%c1_134, %c0_135], %132 {strides = array<i32>} : memref<34x320xf32, #tpu.memory_space<vmem>>, vector<8x160xf32>,
    %c0_136 = arith.constant 0 : index
    %c0_137 = arith.constant 0 : index
    %140 = vector.load %arg51[%c0_136, %c0_137] : memref<34x320xf32, #tpu.memory_space<vmem>>, vector<8x160xf32>
    %c2_138 = arith.constant 2 : index
    %c0_139 = arith.constant 0 : index
    %141 = vector.load %arg51[%c2_138, %c0_139] : memref<34x320xf32, #tpu.memory_space<vmem>>, vector<8x160xf32>
    %142 = vector.broadcast %134 : vector<8x1xf32> to vector<8x160xf32>
    %143 = arith.mulf %140, %142 : vector<8x160xf32>
    %144 = vector.broadcast %135 : vector<8x1xf32> to vector<8x160xf32>
    %145 = arith.mulf %141, %144 : vector<8x160xf32>
    %146 = arith.truncf %143 : vector<8x160xf32> to vector<8x160xbf16>
    %c0_140 = arith.constant 0 : index
    %c0_141 = arith.constant 0 : index
    %147 = vector.load %arg26[%c0_140, %c0_141] : memref<480x320xbf16, #tpu.memory_space<vmem>>, vector<160x320xbf16>
    %cst_142 = arith.constant dense<0.000000e+00> : vector<8x320xf32>
    %148 = tpu.matmul %146, %147, %cst_142 {dimension_numbers = #tpu.dot_dimension_numbers<[1], [0], [0], [1], [0, 0, 1, 1], [], []>} : vector<8x160xbf16>, vector<160x320xbf16>, vector<8x320xf32> -> vector<8x320xf32>
    %149 = arith.truncf %132 : vector<8x160xf32> to vector<8x160xbf16>
    %c160_143 = arith.constant 160 : index
    %c0_144 = arith.constant 0 : index
    %150 = vector.load %arg26[%c160_143, %c0_144] : memref<480x320xbf16, #tpu.memory_space<vmem>>, vector<160x320xbf16>
    %cst_145 = arith.constant dense<0.000000e+00> : vector<8x320xf32>
    %151 = tpu.matmul %149, %150, %cst_145 {dimension_numbers = #tpu.dot_dimension_numbers<[1], [0], [0], [1], [0, 0, 1, 1], [], []>} : vector<8x160xbf16>, vector<160x320xbf16>, vector<8x320xf32> -> vector<8x320xf32>
    %152 = arith.addf %148, %151 : vector<8x320xf32>
    %153 = arith.truncf %145 : vector<8x160xf32> to vector<8x160xbf16>
    %c320_146 = arith.constant 320 : index
    %c0_147 = arith.constant 0 : index
    %154 = vector.load %arg26[%c320_146, %c0_147] : memref<480x320xbf16, #tpu.memory_space<vmem>>, vector<160x320xbf16>
    %cst_148 = arith.constant dense<0.000000e+00> : vector<8x320xf32>
    %155 = tpu.matmul %153, %154, %cst_148 {dimension_numbers = #tpu.dot_dimension_numbers<[1], [0], [0], [1], [0, 0, 1, 1], [], []>} : vector<8x160xbf16>, vector<160x320xbf16>, vector<8x320xf32> -> vector<8x320xf32>
    %156 = arith.addf %152, %155 : vector<8x320xf32>
    %157 = vector.broadcast %133 : vector<1x320xf32> to vector<8x320xf32>
    %158 = arith.addf %156, %157 : vector<8x320xf32>
    %cst_149 = arith.constant 0.000000e+00 : f32
    %159 = vector.broadcast %cst_149 : f32 to vector<8x320xf32>
    %160 = arith.maximumf %158, %159 : vector<8x320xf32>
    %c0_150 = arith.constant 0 : index
    %c0_151 = arith.constant 0 : index
    %161 = vector.load %arg31[%c0_150, %c0_151] : memref<1x320xf32, #tpu.memory_space<vmem>>, vector<1x320xf32>
    %c0_152 = arith.constant 0 : index
    %c0_153 = arith.constant 0 : index
    %162 = vector.load %arg32[%c0_152, %c0_153] : memref<8x1xf32, #tpu.memory_space<vmem>>, vector<8x1xf32>
    %c0_154 = arith.constant 0 : index
    %c0_155 = arith.constant 0 : index
    %163 = vector.load %arg33[%c0_154, %c0_155] : memref<8x1xf32, #tpu.memory_space<vmem>>, vector<8x1xf32>
    %cst_156 = arith.constant 0.000000e+00 : f32
    %164 = vector.broadcast %cst_156 : f32 to vector<1x320xf32>
    %c0_157 = arith.constant 0 : index
    %c0_158 = arith.constant 0 : index
    %165 = vector.load %arg51[%c0_157, %c0_158] : memref<34x320xf32, #tpu.memory_space<vmem>>, vector<1x320xf32>
    tpu.vector_store %arg51[%c0_157, %c0_158], %164 {strides = array<i32>} : memref<34x320xf32, #tpu.memory_space<vmem>>, vector<1x320xf32>,
    %c9_159 = arith.constant 9 : index
    %c0_160 = arith.constant 0 : index
    %166 = vector.load %arg51[%c9_159, %c0_160] : memref<34x320xf32, #tpu.memory_space<vmem>>, vector<1x320xf32>
    tpu.vector_store %arg51[%c9_159, %c0_160], %164 {strides = array<i32>} : memref<34x320xf32, #tpu.memory_space<vmem>>, vector<1x320xf32>,
    %c1_161 = arith.constant 1 : index
    %c0_162 = arith.constant 0 : index
    %167 = vector.load %arg51[%c1_161, %c0_162] : memref<34x320xf32, #tpu.memory_space<vmem>>, vector<8x320xf32>
    tpu.vector_store %arg51[%c1_161, %c0_162], %160 {strides = array<i32>} : memref<34x320xf32, #tpu.memory_space<vmem>>, vector<8x320xf32>,
    %c0_163 = arith.constant 0 : index
    %c0_164 = arith.constant 0 : index
    %168 = vector.load %arg51[%c0_163, %c0_164] : memref<34x320xf32, #tpu.memory_space<vmem>>, vector<8x320xf32>
    %c2_165 = arith.constant 2 : index
    %c0_166 = arith.constant 0 : index
    %169 = vector.load %arg51[%c2_165, %c0_166] : memref<34x320xf32, #tpu.memory_space<vmem>>, vector<8x320xf32>
    %170 = vector.broadcast %162 : vector<8x1xf32> to vector<8x320xf32>
    %171 = arith.mulf %168, %170 : vector<8x320xf32>
    %172 = vector.broadcast %163 : vector<8x1xf32> to vector<8x320xf32>
    %173 = arith.mulf %169, %172 : vector<8x320xf32>
    %174 = arith.truncf %171 : vector<8x320xf32> to vector<8x320xbf16>
    %c0_167 = arith.constant 0 : index
    %c0_168 = arith.constant 0 : index
    %175 = vector.load %arg30[%c0_167, %c0_168] : memref<960x320xbf16, #tpu.memory_space<vmem>>, vector<320x320xbf16>
    %cst_169 = arith.constant dense<0.000000e+00> : vector<8x320xf32>
    %176 = tpu.matmul %174, %175, %cst_169 {dimension_numbers = #tpu.dot_dimension_numbers<[1], [0], [0], [1], [0, 0, 1, 1], [], []>} : vector<8x320xbf16>, vector<320x320xbf16>, vector<8x320xf32> -> vector<8x320xf32>
    %177 = arith.truncf %160 : vector<8x320xf32> to vector<8x320xbf16>
    %c320_170 = arith.constant 320 : index
    %c0_171 = arith.constant 0 : index
    %178 = vector.load %arg30[%c320_170, %c0_171] : memref<960x320xbf16, #tpu.memory_space<vmem>>, vector<320x320xbf16>
    %cst_172 = arith.constant dense<0.000000e+00> : vector<8x320xf32>
    %179 = tpu.matmul %177, %178, %cst_172 {dimension_numbers = #tpu.dot_dimension_numbers<[1], [0], [0], [1], [0, 0, 1, 1], [], []>} : vector<8x320xbf16>, vector<320x320xbf16>, vector<8x320xf32> -> vector<8x320xf32>
    %180 = arith.addf %176, %179 : vector<8x320xf32>
    %181 = arith.truncf %173 : vector<8x320xf32> to vector<8x320xbf16>
    %c640_173 = arith.constant 640 : index
    %c0_174 = arith.constant 0 : index
    %182 = vector.load %arg30[%c640_173, %c0_174] : memref<960x320xbf16, #tpu.memory_space<vmem>>, vector<320x320xbf16>
    %cst_175 = arith.constant dense<0.000000e+00> : vector<8x320xf32>
    %183 = tpu.matmul %181, %182, %cst_175 {dimension_numbers = #tpu.dot_dimension_numbers<[1], [0], [0], [1], [0, 0, 1, 1], [], []>} : vector<8x320xbf16>, vector<320x320xbf16>, vector<8x320xf32> -> vector<8x320xf32>
    %184 = arith.addf %180, %183 : vector<8x320xf32>
    %185 = vector.broadcast %161 : vector<1x320xf32> to vector<8x320xf32>
    %186 = arith.addf %184, %185 : vector<8x320xf32>
    %cst_176 = arith.constant 0.000000e+00 : f32
    %187 = vector.broadcast %cst_176 : f32 to vector<8x320xf32>
    %188 = arith.maximumf %186, %187 : vector<8x320xf32>
    %c0_177 = arith.constant 0 : index
    %c0_178 = arith.constant 0 : index
    %189 = vector.load %arg34[%c0_177, %c0_178] : memref<320x160xf32, #tpu.memory_space<vmem>>, vector<320x160xf32>
    %c0_179 = arith.constant 0 : index
    %c0_180 = arith.constant 0 : index
    %190 = vector.load %arg35[%c0_179, %c0_180] : memref<320x160xf32, #tpu.memory_space<vmem>>, vector<320x160xf32>
    %c0_181 = arith.constant 0 : index
    %c0_182 = arith.constant 0 : index
    %191 = vector.load %arg36[%c0_181, %c0_182] : memref<4x8xf32, #tpu.memory_space<vmem>>, vector<4x8xf32>
    %c0_183 = arith.constant 0 : index
    %c0_184 = arith.constant 0 : index
    %192 = vector.load %arg37[%c0_183, %c0_184] : memref<4x8xf32, #tpu.memory_space<vmem>>, vector<4x8xf32>
    %cst_185 = arith.constant dense<0.000000e+00> : vector<8x160xf32>
    %193 = tpu.matmul %188, %189, %cst_185 {dimension_numbers = #tpu.dot_dimension_numbers<[1], [0], [0], [1], [0, 0, 1, 1], [], []>} : vector<8x320xf32>, vector<320x160xf32>, vector<8x160xf32> -> vector<8x160xf32>
    %cst_186 = arith.constant dense<0.000000e+00> : vector<8x160xf32>
    %194 = tpu.matmul %188, %190, %cst_186 {dimension_numbers = #tpu.dot_dimension_numbers<[1], [0], [0], [1], [0, 0, 1, 1], [], []>} : vector<8x320xf32>, vector<320x160xf32>, vector<8x160xf32> -> vector<8x160xf32>
    %195 = arith.maximumf %193, %194 : vector<8x160xf32>
    %cst_187 = arith.constant dense<0.000000e+00> : vector<4x160xf32>
    %196 = tpu.matmul %191, %195, %cst_187 {dimension_numbers = #tpu.dot_dimension_numbers<[1], [0], [0], [1], [0, 0, 1, 1], [], []>} : vector<4x8xf32>, vector<8x160xf32>, vector<4x160xf32> -> vector<4x160xf32>
    %cst_188 = arith.constant dense<0.000000e+00> : vector<4x160xf32>
    %197 = tpu.matmul %192, %195, %cst_188 {dimension_numbers = #tpu.dot_dimension_numbers<[1], [0], [0], [1], [0, 0, 1, 1], [], []>} : vector<4x8xf32>, vector<8x160xf32>, vector<4x160xf32> -> vector<4x160xf32>
    %198 = arith.maximumf %196, %197 : vector<4x160xf32>
    %c0_189 = arith.constant 0 : index
    %c0_190 = arith.constant 0 : index
    %199 = vector.load %arg38[%c0_189, %c0_190] : memref<160x160xf32, #tpu.memory_space<vmem>>, vector<160x160xf32>
    %cst_191 = arith.constant dense<0.000000e+00> : vector<4x160xf32>
    %200 = tpu.matmul %198, %199, %cst_191 {dimension_numbers = #tpu.dot_dimension_numbers<[1], [0], [0], [1], [0, 0, 1, 1], [], []>} : vector<4x160xf32>, vector<160x160xf32>, vector<4x160xf32> -> vector<4x160xf32>
    %c0_192 = arith.constant 0 : index
    %c0_193 = arith.constant 0 : index
    %201 = vector.load %arg49[%c0_192, %c0_193] : memref<4x160xf32, #tpu.memory_space<vmem>>, vector<4x160xf32>
    tpu.vector_store %arg49[%c0_192, %c0_193], %200 {strides = array<i32>} : memref<4x160xf32, #tpu.memory_space<vmem>>, vector<4x160xf32>,
    %c0_194 = arith.constant 0 : index
    %c0_195 = arith.constant 0 : index
    %202 = vector.load %arg39[%c0_194, %c0_195] : memref<2x4xf32, #tpu.memory_space<vmem>>, vector<2x4xf32>
    %cst_196 = arith.constant dense<0.000000e+00> : vector<2x160xf32>
    %203 = tpu.matmul %202, %200, %cst_196 {dimension_numbers = #tpu.dot_dimension_numbers<[1], [0], [0], [1], [0, 0, 1, 1], [], []>} : vector<2x4xf32>, vector<4x160xf32>, vector<2x160xf32> -> vector<2x160xf32>
    %204 = arith.mulf %200, %200 : vector<4x160xf32>
    %cst_197 = arith.constant dense<0.000000e+00> : vector<2x160xf32>
    %205 = tpu.matmul %202, %204, %cst_197 {dimension_numbers = #tpu.dot_dimension_numbers<[1], [0], [0], [1], [0, 0, 1, 1], [], []>} : vector<2x4xf32>, vector<4x160xf32>, vector<2x160xf32> -> vector<2x160xf32>
    %cst_198 = arith.constant 5.000000e-01 : f32
    %206 = vector.broadcast %cst_198 : f32 to vector<2x160xf32>
    %207 = arith.mulf %203, %206 : vector<2x160xf32>
    %208 = arith.mulf %207, %203 : vector<2x160xf32>
    %209 = arith.subf %205, %208 : vector<2x160xf32>
    %cst_199 = arith.constant 1.000000e+00 : f32
    %210 = vector.broadcast %cst_199 : f32 to vector<2x160xf32>
    %211 = arith.mulf %209, %210 : vector<2x160xf32>
    %cst_200 = arith.constant 0.000000e+00 : f32
    %212 = vector.broadcast %cst_200 : f32 to vector<2x160xf32>
    %213 = arith.maximumf %211, %212 : vector<2x160xf32>
    %214 = math.sqrt %213 : vector<2x160xf32>
    %c0_201 = arith.constant 0 : index
    %c0_202 = arith.constant 0 : index
    %215 = vector.load %arg40[%c0_201, %c0_202] : memref<160x128xf32, #tpu.memory_space<vmem>>, vector<160x128xf32>
    %c0_203 = arith.constant 0 : index
    %c0_204 = arith.constant 0 : index
    %216 = vector.load %arg41[%c0_203, %c0_204] : memref<160x128xf32, #tpu.memory_space<vmem>>, vector<160x128xf32>
    %c0_205 = arith.constant 0 : index
    %c0_206 = arith.constant 0 : index
    %217 = vector.load %arg42[%c0_205, %c0_206] : memref<1x128xf32, #tpu.memory_space<vmem>>, vector<1x128xf32>
    %c0_207 = arith.constant 0 : index
    %c0_208 = arith.constant 0 : index
    %218 = vector.load %arg43[%c0_207, %c0_208] : memref<128x128xf32, #tpu.memory_space<vmem>>, vector<128x128xf32>
    %c0_209 = arith.constant 0 : index
    %c0_210 = arith.constant 0 : index
    %219 = vector.load %arg44[%c0_209, %c0_210] : memref<1x128xf32, #tpu.memory_space<vmem>>, vector<1x128xf32>
    %c0_211 = arith.constant 0 : index
    %c0_212 = arith.constant 0 : index
    %220 = vector.load %arg45[%c0_211, %c0_212] : memref<128x128xf32, #tpu.memory_space<vmem>>, vector<128x128xf32>
    %c0_213 = arith.constant 0 : index
    %c0_214 = arith.constant 0 : index
    %221 = vector.load %arg46[%c0_213, %c0_214] : memref<1x128xf32, #tpu.memory_space<vmem>>, vector<1x128xf32>
    %c0_215 = arith.constant 0 : index
    %c0_216 = arith.constant 0 : index
    %222 = vector.load %arg47[%c0_215, %c0_216] : memref<128x128xf32, #tpu.memory_space<vmem>>, vector<128x128xf32>
    %c0_217 = arith.constant 0 : index
    %c0_218 = arith.constant 0 : index
    %223 = vector.load %arg48[%c0_217, %c0_218] : memref<1x128xf32, #tpu.memory_space<vmem>>, vector<1x128xf32>
    %cst_219 = arith.constant dense<0.000000e+00> : vector<2x128xf32>
    %224 = tpu.matmul %207, %215, %cst_219 {dimension_numbers = #tpu.dot_dimension_numbers<[1], [0], [0], [1], [0, 0, 1, 1], [], []>} : vector<2x160xf32>, vector<160x128xf32>, vector<2x128xf32> -> vector<2x128xf32>
    %cst_220 = arith.constant dense<0.000000e+00> : vector<2x128xf32>
    %225 = tpu.matmul %214, %216, %cst_220 {dimension_numbers = #tpu.dot_dimension_numbers<[1], [0], [0], [1], [0, 0, 1, 1], [], []>} : vector<2x160xf32>, vector<160x128xf32>, vector<2x128xf32> -> vector<2x128xf32>
    %226 = arith.addf %224, %225 : vector<2x128xf32>
    %227 = vector.broadcast %217 : vector<1x128xf32> to vector<2x128xf32>
    %228 = arith.addf %226, %227 : vector<2x128xf32>
    %cst_221 = arith.constant 0.000000e+00 : f32
    %229 = vector.broadcast %cst_221 : f32 to vector<2x128xf32>
    %230 = arith.maximumf %228, %229 : vector<2x128xf32>
    %cst_222 = arith.constant dense<0.000000e+00> : vector<2x128xf32>
    %231 = tpu.matmul %230, %218, %cst_222 {dimension_numbers = #tpu.dot_dimension_numbers<[1], [0], [0], [1], [0, 0, 1, 1], [], []>} : vector<2x128xf32>, vector<128x128xf32>, vector<2x128xf32> -> vector<2x128xf32>
    %232 = vector.broadcast %219 : vector<1x128xf32> to vector<2x128xf32>
    %233 = arith.addf %231, %232 : vector<2x128xf32>
    %cst_223 = arith.constant 0.000000e+00 : f32
    %234 = vector.broadcast %cst_223 : f32 to vector<2x128xf32>
    %235 = arith.maximumf %233, %234 : vector<2x128xf32>
    %cst_224 = arith.constant dense<0.000000e+00> : vector<2x128xf32>
    %236 = tpu.matmul %235, %220, %cst_224 {dimension_numbers = #tpu.dot_dimension_numbers<[1], [0], [0], [1], [0, 0, 1, 1], [], []>} : vector<2x128xf32>, vector<128x128xf32>, vector<2x128xf32> -> vector<2x128xf32>
    %237 = vector.broadcast %221 : vector<1x128xf32> to vector<2x128xf32>
    %238 = arith.addf %236, %237 : vector<2x128xf32>
    %cst_225 = arith.constant 0.000000e+00 : f32
    %239 = vector.broadcast %cst_225 : f32 to vector<2x128xf32>
    %240 = arith.maximumf %238, %239 : vector<2x128xf32>
    %cst_226 = arith.constant dense<0.000000e+00> : vector<2x128xf32>
    %241 = tpu.matmul %240, %222, %cst_226 {dimension_numbers = #tpu.dot_dimension_numbers<[1], [0], [0], [1], [0, 0, 1, 1], [], []>} : vector<2x128xf32>, vector<128x128xf32>, vector<2x128xf32> -> vector<2x128xf32>
    %242 = arith.addf %235, %241 : vector<2x128xf32>
    %243 = vector.broadcast %223 : vector<1x128xf32> to vector<2x128xf32>
    %244 = arith.addf %242, %243 : vector<2x128xf32>
    %c0_227 = arith.constant 0 : index
    %c0_228 = arith.constant 0 : index
    %245 = vector.load %arg50[%c0_227, %c0_228] : memref<2x128xf32, #tpu.memory_space<vmem>>, vector<2x128xf32>
    tpu.vector_store %arg50[%c0_227, %c0_228], %244 {strides = array<i32>} : memref<2x128xf32, #tpu.memory_space<vmem>>, vector<2x128xf32>,
    return
  }
  func.func @transform_0(%arg0: i32) -> (i32, i32) {
    %c0_i32 = arith.constant 0 : i32
    %c0_i32_0 = arith.constant 0 : i32
    return %arg0, %c0_i32 : i32, i32
  }
  func.func @transform_1(%arg0: i32) -> (i32, i32) {
    %c0_i32 = arith.constant 0 : i32
    %c0_i32_0 = arith.constant 0 : i32
    %c0_i32_1 = arith.constant 0 : i32
    return %c0_i32, %c0_i32_0 : i32, i32
  }
  func.func @transform_2(%arg0: i32) -> (i32, i32) {
    %c0_i32 = arith.constant 0 : i32
    %c0_i32_0 = arith.constant 0 : i32
    %c0_i32_1 = arith.constant 0 : i32
    return %c0_i32, %c0_i32_0 : i32, i32
  }
  func.func @transform_3(%arg0: i32) -> (i32, i32) {
    %c0_i32 = arith.constant 0 : i32
    %c0_i32_0 = arith.constant 0 : i32
    %c0_i32_1 = arith.constant 0 : i32
    return %c0_i32, %c0_i32_0 : i32, i32
  }
  func.func @transform_4(%arg0: i32) -> (i32, i32) {
    %c0_i32 = arith.constant 0 : i32
    %c0_i32_0 = arith.constant 0 : i32
    %c0_i32_1 = arith.constant 0 : i32
    return %c0_i32, %c0_i32_0 : i32, i32
  }
  func.func @transform_5(%arg0: i32) -> (i32, i32) {
    %c0_i32 = arith.constant 0 : i32
    %c0_i32_0 = arith.constant 0 : i32
    %c0_i32_1 = arith.constant 0 : i32
    return %c0_i32, %c0_i32_0 : i32, i32
  }
  func.func @transform_6(%arg0: i32) -> (i32, i32) {
    %c0_i32 = arith.constant 0 : i32
    %c0_i32_0 = arith.constant 0 : i32
    %c0_i32_1 = arith.constant 0 : i32
    return %c0_i32, %c0_i32_0 : i32, i32
  }
  func.func @transform_7(%arg0: i32) -> (i32, i32) {
    %c0_i32 = arith.constant 0 : i32
    %c0_i32_0 = arith.constant 0 : i32
    %c0_i32_1 = arith.constant 0 : i32
    return %c0_i32, %c0_i32_0 : i32, i32
  }
  func.func @transform_8(%arg0: i32) -> (i32, i32) {
    %c0_i32 = arith.constant 0 : i32
    %c0_i32_0 = arith.constant 0 : i32
    %c0_i32_1 = arith.constant 0 : i32
    return %c0_i32, %c0_i32_0 : i32, i32
  }
  func.func @transform_9(%arg0: i32) -> (i32, i32) {
    %c0_i32 = arith.constant 0 : i32
    %c0_i32_0 = arith.constant 0 : i32
    %c0_i32_1 = arith.constant 0 : i32
    return %c0_i32, %c0_i32_0 : i32, i32
  }
  func.func @transform_10(%arg0: i32) -> (i32, i32) {
    %c0_i32 = arith.constant 0 : i32
    %c0_i32_0 = arith.constant 0 : i32
    %c0_i32_1 = arith.constant 0 : i32
    return %c0_i32, %c0_i32_0 : i32, i32
  }
  func.func @transform_11(%arg0: i32) -> (i32, i32) {
    %c0_i32 = arith.constant 0 : i32
    %c0_i32_0 = arith.constant 0 : i32
    %c0_i32_1 = arith.constant 0 : i32
    return %c0_i32, %c0_i32_0 : i32, i32
  }
  func.func @transform_12(%arg0: i32) -> (i32, i32) {
    %c0_i32 = arith.constant 0 : i32
    %c0_i32_0 = arith.constant 0 : i32
    %c0_i32_1 = arith.constant 0 : i32
    return %c0_i32, %c0_i32_0 : i32, i32
  }
  func.func @transform_13(%arg0: i32) -> (i32, i32) {
    %c0_i32 = arith.constant 0 : i32
    %c0_i32_0 = arith.constant 0 : i32
    %c0_i32_1 = arith.constant 0 : i32
    return %c0_i32, %c0_i32_0 : i32, i32
  }
  func.func @transform_14(%arg0: i32) -> (i32, i32) {
    %c0_i32 = arith.constant 0 : i32
    %c0_i32_0 = arith.constant 0 : i32
    %c0_i32_1 = arith.constant 0 : i32
    return %c0_i32, %c0_i32_0 : i32, i32
  }
  func.func @transform_15(%arg0: i32) -> (i32, i32) {
    %c0_i32 = arith.constant 0 : i32
    %c0_i32_0 = arith.constant 0 : i32
    %c0_i32_1 = arith.constant 0 : i32
    return %c0_i32, %c0_i32_0 : i32, i32
  }
  func.func @transform_16(%arg0: i32) -> (i32, i32) {
    %c0_i32 = arith.constant 0 : i32
    %c0_i32_0 = arith.constant 0 : i32
    %c0_i32_1 = arith.constant 0 : i32
    return %c0_i32, %c0_i32_0 : i32, i32
  }
  func.func @transform_17(%arg0: i32) -> (i32, i32) {
    %c0_i32 = arith.constant 0 : i32
    %c0_i32_0 = arith.constant 0 : i32
    %c0_i32_1 = arith.constant 0 : i32
    return %c0_i32, %c0_i32_0 : i32, i32
  }
  func.func @transform_18(%arg0: i32) -> (i32, i32) {
    %c0_i32 = arith.constant 0 : i32
    %c0_i32_0 = arith.constant 0 : i32
    %c0_i32_1 = arith.constant 0 : i32
    return %c0_i32, %c0_i32_0 : i32, i32
  }
  func.func @transform_19(%arg0: i32) -> (i32, i32) {
    %c0_i32 = arith.constant 0 : i32
    %c0_i32_0 = arith.constant 0 : i32
    %c0_i32_1 = arith.constant 0 : i32
    return %c0_i32, %c0_i32_0 : i32, i32
  }
  func.func @transform_20(%arg0: i32) -> (i32, i32) {
    %c0_i32 = arith.constant 0 : i32
    %c0_i32_0 = arith.constant 0 : i32
    %c0_i32_1 = arith.constant 0 : i32
    return %c0_i32, %c0_i32_0 : i32, i32
  }
  func.func @transform_21(%arg0: i32) -> (i32, i32) {
    %c0_i32 = arith.constant 0 : i32
    %c0_i32_0 = arith.constant 0 : i32
    %c0_i32_1 = arith.constant 0 : i32
    return %c0_i32, %c0_i32_0 : i32, i32
  }
  func.func @transform_22(%arg0: i32) -> (i32, i32) {
    %c0_i32 = arith.constant 0 : i32
    %c0_i32_0 = arith.constant 0 : i32
    %c0_i32_1 = arith.constant 0 : i32
    return %c0_i32, %c0_i32_0 : i32, i32
  }
  func.func @transform_23(%arg0: i32) -> (i32, i32) {
    %c0_i32 = arith.constant 0 : i32
    %c0_i32_0 = arith.constant 0 : i32
    %c0_i32_1 = arith.constant 0 : i32
    return %c0_i32, %c0_i32_0 : i32, i32
  }
  func.func @transform_24(%arg0: i32) -> (i32, i32) {
    %c0_i32 = arith.constant 0 : i32
    %c0_i32_0 = arith.constant 0 : i32
    %c0_i32_1 = arith.constant 0 : i32
    return %c0_i32, %c0_i32_0 : i32, i32
  }
  func.func @transform_25(%arg0: i32) -> (i32, i32) {
    %c0_i32 = arith.constant 0 : i32
    %c0_i32_0 = arith.constant 0 : i32
    %c0_i32_1 = arith.constant 0 : i32
    return %c0_i32, %c0_i32_0 : i32, i32
  }
  func.func @transform_26(%arg0: i32) -> (i32, i32) {
    %c0_i32 = arith.constant 0 : i32
    %c0_i32_0 = arith.constant 0 : i32
    %c0_i32_1 = arith.constant 0 : i32
    return %c0_i32, %c0_i32_0 : i32, i32
  }
  func.func @transform_27(%arg0: i32) -> (i32, i32) {
    %c0_i32 = arith.constant 0 : i32
    %c0_i32_0 = arith.constant 0 : i32
    %c0_i32_1 = arith.constant 0 : i32
    return %c0_i32, %c0_i32_0 : i32, i32
  }
  func.func @transform_28(%arg0: i32) -> (i32, i32) {
    %c0_i32 = arith.constant 0 : i32
    %c0_i32_0 = arith.constant 0 : i32
    %c0_i32_1 = arith.constant 0 : i32
    return %c0_i32, %c0_i32_0 : i32, i32
  }
  func.func @transform_29(%arg0: i32) -> (i32, i32) {
    %c0_i32 = arith.constant 0 : i32
    %c0_i32_0 = arith.constant 0 : i32
    %c0_i32_1 = arith.constant 0 : i32
    return %c0_i32, %c0_i32_0 : i32, i32
  }
  func.func @transform_30(%arg0: i32) -> (i32, i32) {
    %c0_i32 = arith.constant 0 : i32
    %c0_i32_0 = arith.constant 0 : i32
    %c0_i32_1 = arith.constant 0 : i32
    return %c0_i32, %c0_i32_0 : i32, i32
  }
  func.func @transform_31(%arg0: i32) -> (i32, i32) {
    %c0_i32 = arith.constant 0 : i32
    %c0_i32_0 = arith.constant 0 : i32
    %c0_i32_1 = arith.constant 0 : i32
    return %c0_i32, %c0_i32_0 : i32, i32
  }
  func.func @transform_32(%arg0: i32) -> (i32, i32) {
    %c0_i32 = arith.constant 0 : i32
    %c0_i32_0 = arith.constant 0 : i32
    %c0_i32_1 = arith.constant 0 : i32
    return %c0_i32, %c0_i32_0 : i32, i32
  }
  func.func @transform_33(%arg0: i32) -> (i32, i32) {
    %c0_i32 = arith.constant 0 : i32
    %c0_i32_0 = arith.constant 0 : i32
    %c0_i32_1 = arith.constant 0 : i32
    return %c0_i32, %c0_i32_0 : i32, i32
  }
  func.func @transform_34(%arg0: i32) -> (i32, i32) {
    %c0_i32 = arith.constant 0 : i32
    %c0_i32_0 = arith.constant 0 : i32
    %c0_i32_1 = arith.constant 0 : i32
    return %c0_i32, %c0_i32_0 : i32, i32
  }
  func.func @transform_35(%arg0: i32) -> (i32, i32) {
    %c0_i32 = arith.constant 0 : i32
    %c0_i32_0 = arith.constant 0 : i32
    %c0_i32_1 = arith.constant 0 : i32
    return %c0_i32, %c0_i32_0 : i32, i32
  }
  func.func @transform_36(%arg0: i32) -> (i32, i32) {
    %c0_i32 = arith.constant 0 : i32
    %c0_i32_0 = arith.constant 0 : i32
    %c0_i32_1 = arith.constant 0 : i32
    return %c0_i32, %c0_i32_0 : i32, i32
  }
  func.func @transform_37(%arg0: i32) -> (i32, i32) {
    %c0_i32 = arith.constant 0 : i32
    %c0_i32_0 = arith.constant 0 : i32
    %c0_i32_1 = arith.constant 0 : i32
    return %c0_i32, %c0_i32_0 : i32, i32
  }
  func.func @transform_38(%arg0: i32) -> (i32, i32) {
    %c0_i32 = arith.constant 0 : i32
    %c0_i32_0 = arith.constant 0 : i32
    %c0_i32_1 = arith.constant 0 : i32
    return %c0_i32, %c0_i32_0 : i32, i32
  }
  func.func @transform_39(%arg0: i32) -> (i32, i32) {
    %c0_i32 = arith.constant 0 : i32
    %c0_i32_0 = arith.constant 0 : i32
    %c0_i32_1 = arith.constant 0 : i32
    return %c0_i32, %c0_i32_0 : i32, i32
  }
  func.func @transform_40(%arg0: i32) -> (i32, i32) {
    %c0_i32 = arith.constant 0 : i32
    %c0_i32_0 = arith.constant 0 : i32
    %c0_i32_1 = arith.constant 0 : i32
    return %c0_i32, %c0_i32_0 : i32, i32
  }
  func.func @transform_41(%arg0: i32) -> (i32, i32) {
    %c0_i32 = arith.constant 0 : i32
    %c0_i32_0 = arith.constant 0 : i32
    %c0_i32_1 = arith.constant 0 : i32
    return %c0_i32, %c0_i32_0 : i32, i32
  }
  func.func @transform_42(%arg0: i32) -> (i32, i32) {
    %c0_i32 = arith.constant 0 : i32
    %c0_i32_0 = arith.constant 0 : i32
    %c0_i32_1 = arith.constant 0 : i32
    return %c0_i32, %c0_i32_0 : i32, i32
  }
  func.func @transform_43(%arg0: i32) -> (i32, i32) {
    %c0_i32 = arith.constant 0 : i32
    %c0_i32_0 = arith.constant 0 : i32
    %c0_i32_1 = arith.constant 0 : i32
    return %c0_i32, %c0_i32_0 : i32, i32
  }
  func.func @transform_44(%arg0: i32) -> (i32, i32) {
    %c0_i32 = arith.constant 0 : i32
    %c0_i32_0 = arith.constant 0 : i32
    %c0_i32_1 = arith.constant 0 : i32
    return %c0_i32, %c0_i32_0 : i32, i32
  }
  func.func @transform_45(%arg0: i32) -> (i32, i32) {
    %c0_i32 = arith.constant 0 : i32
    %c0_i32_0 = arith.constant 0 : i32
    %c0_i32_1 = arith.constant 0 : i32
    return %c0_i32, %c0_i32_0 : i32, i32
  }
  func.func @transform_46(%arg0: i32) -> (i32, i32) {
    %c0_i32 = arith.constant 0 : i32
    %c0_i32_0 = arith.constant 0 : i32
    %c0_i32_1 = arith.constant 0 : i32
    return %c0_i32, %c0_i32_0 : i32, i32
  }
  func.func @transform_47(%arg0: i32) -> (i32, i32) {
    %c0_i32 = arith.constant 0 : i32
    %c0_i32_0 = arith.constant 0 : i32
    %c0_i32_1 = arith.constant 0 : i32
    return %c0_i32, %c0_i32_0 : i32, i32
  }
  func.func @transform_48(%arg0: i32) -> (i32, i32) {
    %c0_i32 = arith.constant 0 : i32
    %c0_i32_0 = arith.constant 0 : i32
    return %arg0, %c0_i32 : i32, i32
  }
  func.func @transform_49(%arg0: i32) -> (i32, i32) {
    %c0_i32 = arith.constant 0 : i32
    %c0_i32_0 = arith.constant 0 : i32
    return %arg0, %c0_i32 : i32, i32
  }
}

</mosaic_0001>

<bundles_post_ra>
// kernel: tile.33
= control target key start
LH: loop header
LB: loop body
LE: loop exit
PB: predicated region body
PF: predicated region fallthrough
CT: control target
= control target key end

     0   :  { %2 = vsyncpa [#allocation1], 0  ;;  %s69_s6 = smov [#allocation0]   ;;  %s113_s0 = inlined_call_operand.hbm [shape: f32[4], index: 0, kind: input, shape index: {}]   ;;  %s114_s1 = inlined_call_operand.vmem [shape: f32[80,4], index: 1, kind: output, shape index: {}]  }
   0x1   :  { %s9_s7 = sshll.u32 %s69_s6, 4  ;;  %s10_s7 = int_to_ptr.vmem [resolvable:$true] %s9_s7 }
   0x2   :  { %s55_s8 = scalar_lea.vmem %s10_s7, 16  ;;  %s59_s9 = scalar_lea.vmem %s10_s7, 32 }
   0x3   :  { %p56_p0 = scmp.ne.s32.totalorder %s10_s7, %s55_s8  ;;  %p60_p1 = scmp.lt.s32.totalorder %s10_s7, %s10_s7 }
   0x4   :  { %p61_p2 = scmp.lt.s32.totalorder %s59_s9, %s55_s8 }
   0x6   :  { %p62_p3 = por %p61_p2, %p60_p1 }
   0x8   :  { %p63_p4 = pnand %p62_p3, %p56_p0 }
   0xa   :  { %66 = shalt.err (!%p63_p4)
}
   0xb   :  { %12 = dma.hbm_to_vmem [thread:$0]  %s113_s0, 16, %s10_s7, [#allocation1]  }
   0xc   :  { %67 = dma.done.wait [#allocation1], 16  }
   0xd   :  { %68 = vsyncadd [#allocation1], 4294967280  ;;  %v16_v0 = vld [vmem:[#allocation0] ss:$0 sm:$0xff] }
   0xe   :  { %17 = vst [vmem:[%s114_s1] sm:$0xff] %v16_v0  ;;  %37 = vst [vmem:[%s114_s1 + $0x8] sm:$0xff] %v16_v0 }
   0xf   :  { %38 = vst [vmem:[%s114_s1 + $0x10] sm:$0xff] %v16_v0  ;;  %39 = vst [vmem:[%s114_s1 + $0x18] sm:$0xff] %v16_v0 }
  0x10   :  { %40 = vst [vmem:[%s114_s1 + $0x20] sm:$0xff] %v16_v0  ;;  %41 = vst [vmem:[%s114_s1 + $0x28] sm:$0xff] %v16_v0 }
  0x11   :  { %42 = vst [vmem:[%s114_s1 + $0x30] sm:$0xff] %v16_v0  ;;  %43 = vst [vmem:[%s114_s1 + $0x38] sm:$0xff] %v16_v0 }
  0x12   :  { %44 = vst [vmem:[%s114_s1 + $0x40] sm:$0xff] %v16_v0  ;;  %45 = vst [vmem:[%s114_s1 + $0x48] sm:$0xff] %v16_v0 }
  0x13   :  { %36 = vsyncpa [#allocation1], 1 }

// kernel: tile.34
= control target key start
LH: loop header
LB: loop body
LE: loop exit
PB: predicated region body
PF: predicated region fallthrough
CT: control target
= control target key end

     0   :  { %vm5_vm0 = vcmask 1041409   ;;  %s517_s14 = smov 124   ;;  %s518_s21 = smov 116   ;;  %vm9_vm1 = vcmask 1042434   ;;  %vm11_vm2 = vcmask 31744   ;;  %vm21_vm3 = vcmask 1048544   ;;  %s856_s0 = inlined_call_operand.vmem [shape: f32[80,4], index: 0, kind: input, shape index: {}]   ;;  %s857_s1 = inlined_call_operand.vmem [shape: f32[1,320], index: 1, kind: output, shape index: {}]  }
   0x1   :  { %v407_v0 = vld [vmem:[%s856_s0 + $0x1f] sm:$0x1]   ;;  %v411_v3 = vld [vmem:[%s856_s0 + $0x1d] sm:$0x1]   ;;  %v409_v6 = vld [vmem:[%s856_s0 + $0x1e] sm:$0x1]  }
   0x2   :  { %v408_v1 = vld [vmem:[%s856_s0 + $0x3e] sm:$0x2]   ;;  %v412_v4 = vld [vmem:[%s856_s0 + $0x3c] sm:$0x2]   ;;  %v410_v7 = vld [vmem:[%s856_s0 + $0x3d] sm:$0x2]  }
   0x3   :  { %v18_v2 = vsel %vm5_vm0, %v408_v1, %v407_v0  ;;  %v38_v5 = vsel %vm5_vm0, %v412_v4, %v411_v3  ;;  %v413_v8 = vld [vmem:[%s856_s0 + $0x1c] sm:$0x1]   ;;  %v28_v9 = vsel %vm5_vm0, %v410_v7, %v409_v6  ;;  %v415_v12 = vld [vmem:[%s856_s0 + $0x1b] sm:$0x1]   ;;  %v417_v14 = vld [vmem:[%s856_s0 + $0x1a] sm:$0x1]  }
   0x4   :  { %19 = vrot.lane.b32.xlu0 %v18_v2, %s517_s14  ;;  %39 = vrot.lane.b32.xlu1 %v38_v5, %s518_s21  ;;  %v414_v10 = vld [vmem:[%s856_s0 + $0x3b] sm:$0x2]   ;;  %v416_v13 = vld [vmem:[%s856_s0 + $0x3a] sm:$0x2]   ;;  %s519_s3 = smov 120   ;;  %s520_s4 = smov 112  }
   0x5   :  { %v48_v11 = vsel %vm5_vm0, %v414_v10, %v413_v8  ;;  %v418_v15 = vld [vmem:[%s856_s0 + $0x39] sm:$0x2]   ;;  %v58_v16 = vsel %vm5_vm0, %v416_v13, %v415_v12  ;;  %v419_v18 = vld [vmem:[%s856_s0 + $0x19] sm:$0x1]   ;;  %v421_v20 = vld [vmem:[%s856_s0 + $0x18] sm:$0x1]  }
   0x6   :  { %v68_v17 = vsel %vm5_vm0, %v418_v15, %v417_v14  ;;  %v420_v19 = vld [vmem:[%s856_s0 + $0x38] sm:$0x2]   ;;  %v422_v21 = vld [vmem:[%s856_s0 + $0x37] sm:$0x2]   ;;  %s521_s13 = smov 108   ;;  %s522_s14 = smov 104  }
   0x7   :  { %v78_v22 = vsel %vm5_vm0, %v420_v19, %v419_v18  ;;  %v88_v23 = vsel %vm5_vm0, %v422_v21, %v421_v20  ;;  %v423_v24 = vld [vmem:[%s856_s0 + $0x17] sm:$0x1]   ;;  %v425_v26 = vld [vmem:[%s856_s0 + $0x16] sm:$0x1]   ;;  %s523_s23 = smov 100   ;;  %s524_s24 = smov 96  }
   0x8   :  { %29 = vrot.lane.b32.xlu0 %v28_v9, %s519_s3  ;;  %49 = vrot.lane.b32.xlu1 %v48_v11, %s520_s4  ;;  %v424_v25 = vld [vmem:[%s856_s0 + $0x36] sm:$0x2]   ;;  %v426_v27 = vld [vmem:[%s856_s0 + $0x35] sm:$0x2]   ;;  %s525_s4 = smov 92   ;;  %s526_s5 = smov 88  }
   0x9   :  { %v98_v28 = vsel %vm5_vm0, %v424_v25, %v423_v24  ;;  %v108_v29 = vsel %vm5_vm0, %v426_v27, %v425_v26  ;;  %v427_v30 = vld [vmem:[%s856_s0 + $0x15] sm:$0x1]   ;;  %v429_v32 = vld [vmem:[%s856_s0 + $0x14] sm:$0x1]   ;;  %v431_v36 = vld [vmem:[%s856_s0 + $0x13] sm:$0x1]  }
   0xa   :  { %v428_v31 = vld [vmem:[%s856_s0 + $0x34] sm:$0x2]   ;;  %v430_v33 = vld [vmem:[%s856_s0 + $0x33] sm:$0x2]   ;;  %v432_v37 = vld [vmem:[%s856_s0 + $0x32] sm:$0x2]  }
   0xb   :  { %v118_v34 = vsel %vm5_vm0, %v428_v31, %v427_v30  ;;  %v128_v35 = vsel %vm5_vm0, %v430_v33, %v429_v32  ;;  %v433_v38 = vld [vmem:[%s856_s0 + $0x12] sm:$0x1]   ;;  %s528_s15 = smov 80   ;;  %v138_v40 = vsel %vm5_vm0, %v432_v37, %v431_v36  ;;  %v435_v42 = vld [vmem:[%s856_s0 + $0x11] sm:$0x1]   ;;  %s529_s28 = smov 76  }
   0xc   :  { %59 = vrot.lane.b32.xlu0 %v58_v16, %s521_s13  ;;  %69 = vrot.lane.b32.xlu1 %v68_v17, %s522_s14  ;;  %v434_v39 = vld [vmem:[%s856_s0 + $0x31] sm:$0x2]   ;;  %s527_s14 = smov 84   ;;  %v436_v43 = vld [vmem:[%s856_s0 + $0x30] sm:$0x2]   ;;  %s531_s13 = smov 68  }
   0xd   :  { %v148_v41 = vsel %vm5_vm0, %v434_v39, %v433_v38  ;;  %v437_v44 = vld [vmem:[%s856_s0 + $0x10] sm:$0x1]   ;;  %v439_v46 = vld [vmem:[%s856_s0 + $0xf] sm:$0x1]   ;;  %v442_v48 = vld [vmem:[%s856_s0 + $0xe] sm:$0x1]   ;;  %v158_v50 = vsel %vm5_vm0, %v436_v43, %v435_v42 }
   0xe   :  { %v438_v45 = vld [vmem:[%s856_s0 + $0x2f] sm:$0x2]   ;;  %v440_v47 = vld [vmem:[%s856_s0 + $0x2e] sm:$0x2]   ;;  %v443_v49 = vld [vmem:[%s856_s0 + $0x2d] sm:$0x2]  }
   0xf   :  { %v168_v51 = vsel %vm5_vm0, %v438_v45, %v437_v44  ;;  %v178_v52 = vsel %vm5_vm0, %v440_v47, %v439_v46  ;;  %v441_v53 = vld [vmem:[%s856_s0 + $0x4d] sm:$0x4]   ;;  %v192_v54 = vsel %vm5_vm0, %v443_v49, %v442_v48  ;;  %v444_v55 = vld [vmem:[%s856_s0 + $0x4c] sm:$0x4]   ;;  %v445_v56 = vld [vmem:[%s856_s0 + $0xd] sm:$0x1]  }
  0x10   :  { %79 = vrot.lane.b32.xlu0 %v78_v22, %s523_s23  ;;  %89 = vrot.lane.b32.xlu1 %v88_v23, %s524_s24  ;;  %v446_v57 = vld [vmem:[%s856_s0 + $0x2c] sm:$0x2]   ;;  %v448_v58 = vld [vmem:[%s856_s0 + $0xc] sm:$0x1]   ;;  %s532_s18 = smov 64   ;;  %v182_v60 = vsel %vm9_vm1, %v441_v53, %v178_v52  ;;  %v196_v63 = vsel %vm9_vm1, %v444_v55, %v192_v54  ;;  %s534_s9 = smov 56  }
  0x11   :  { %v449_v59 = vld [vmem:[%s856_s0 + $0x2b] sm:$0x2]   ;;  %v447_v61 = vld [vmem:[%s856_s0 + $0x4b] sm:$0x4]   ;;  %v406_v62 = vld [vmem:[%s856_s0 + $0x3e] sm:$0x4]   ;;  %v206_v0 = vsel %vm5_vm0, %v446_v57, %v445_v56 }
  0x12   :  { %v2_v1 = vld [vmem:[%s856_s0] sm:$0x1]   ;;  %v220_v3 = vsel %vm5_vm0, %v449_v59, %v448_v58  ;;  %v450_v4 = vld [vmem:[%s856_s0 + $0x4a] sm:$0x4]   ;;  %v451_v5 = vld [vmem:[%s856_s0 + $0xb] sm:$0x1]   ;;  %v210_v11 = vsel %vm9_vm1, %v447_v61, %v206_v0 }
  0x13   :  { %v405_v2 = vld [vmem:[%s856_s0 + $0x1f] sm:$0x2]   ;;  %v452_v6 = vld [vmem:[%s856_s0 + $0x2a] sm:$0x2]   ;;  %v454_v8 = vld [vmem:[%s856_s0 + $0xa] sm:$0x1]   ;;  %v224_v12 = vsel %vm9_vm1, %v450_v4, %v220_v3 }
  0x14   :  { %99 = vrot.lane.b32.xlu0 %v98_v28, %s525_s4  ;;  %109 = vrot.lane.b32.xlu1 %v108_v29, %s526_s5  ;;  %s530_s4 = smov 72   ;;  %v6_v7 = vsel %vm5_vm0, %v405_v2, %v2_v1  ;;  %v455_v9 = vld [vmem:[%s856_s0 + $0x29] sm:$0x2]   ;;  %v234_v13 = vsel %vm5_vm0, %v452_v6, %v451_v5  ;;  %v453_v14 = vld [vmem:[%s856_s0 + $0x49] sm:$0x4]   ;;  %s536_s23 = smov 48  }
  0x15   :  { %v10_v10 = vsel %vm9_vm1, %v406_v62, %v6_v7  ;;  %v248_v15 = vsel %vm5_vm0, %v455_v9, %v454_v8  ;;  %v456_v16 = vld [vmem:[%s856_s0 + $0x48] sm:$0x4]   ;;  %v457_v17 = vld [vmem:[%s856_s0 + $0x9] sm:$0x1]   ;;  %v460_v19 = vld [vmem:[%s856_s0 + $0x8] sm:$0x1]   ;;  %v238_v21 = vsel %vm9_vm1, %v453_v14, %v234_v13 }
  0x16   :  { %12 = vst.msk [vmem:[#allocation0] ss:$8 sm:$0x7] %vm11_vm2, %v10_v10   ;;  %v458_v18 = vld [vmem:[%s856_s0 + $0x28] sm:$0x2]   ;;  %v252_v22 = vsel %vm9_vm1, %v456_v16, %v248_v15  ;;  %s537_s3 = smov 44  }
  0x17   :  { %v461_v20 = vld [vmem:[%s856_s0 + $0x27] sm:$0x2]   ;;  %v262_v23 = vsel %vm5_vm0, %v458_v18, %v457_v17  ;;  %v459_v24 = vld [vmem:[%s856_s0 + $0x47] sm:$0x4]   ;;  %v463_v27 = vld [vmem:[%s856_s0 + $0x7] sm:$0x1]  }
  0x18   :  { %119 = vrot.lane.b32.xlu0 %v118_v34, %s527_s14  ;;  %129 = vrot.lane.b32.xlu1 %v128_v35, %s528_s15  ;;  %v276_v25 = vsel %vm5_vm0, %v461_v20, %v460_v19  ;;  %v462_v26 = vld [vmem:[%s856_s0 + $0x46] sm:$0x4]   ;;  %v464_v28 = vld [vmem:[%s856_s0 + $0x26] sm:$0x2]   ;;  %s538_s8 = smov 40   ;;  %v266_v31 = vsel %vm9_vm1, %v459_v24, %v262_v23  ;;  %s539_s17 = smov 36  }
  0x19   :  { %v466_v29 = vld [vmem:[%s856_s0 + $0x6] sm:$0x1]   ;;  %v280_v32 = vsel %vm9_vm1, %v462_v26, %v276_v25  ;;  %v290_v33 = vsel %vm5_vm0, %v464_v28, %v463_v27  ;;  %v465_v34 = vld [vmem:[%s856_s0 + $0x45] sm:$0x4]   ;;  %v469_v37 = vld [vmem:[%s856_s0 + $0x5] sm:$0x1]  }
  0x1a   :  { %v467_v30 = vld [vmem:[%s856_s0 + $0x25] sm:$0x2]   ;;  %v470_v38 = vld [vmem:[%s856_s0 + $0x24] sm:$0x2]   ;;  %v472_v39 = vld [vmem:[%s856_s0 + $0x4] sm:$0x1]  }
  0x1b   :  { %v304_v35 = vsel %vm5_vm0, %v467_v30, %v466_v29  ;;  %v468_v36 = vld [vmem:[%s856_s0 + $0x44] sm:$0x4]   ;;  %s540_s22 = smov 32   ;;  %v318_v43 = vsel %vm5_vm0, %v470_v38, %v469_v37  ;;  %v471_v44 = vld [vmem:[%s856_s0 + $0x43] sm:$0x4]   ;;  %s541_s2 = smov 28  }
  0x1c   :  { %139 = vrot.lane.b32.xlu0 %v138_v40, %s529_s28  ;;  %149 = vrot.lane.b32.xlu1 %v148_v41, %s530_s4  ;;  %s533_s4 = smov 60   ;;  %v473_v40 = vld [vmem:[%s856_s0 + $0x23] sm:$0x2]   ;;  %v294_v41 = vsel %vm9_vm1, %v465_v34, %v290_v33  ;;  %v308_v42 = vsel %vm9_vm1, %v468_v36, %v304_v35  ;;  %v475_v47 = vld [vmem:[%s856_s0 + $0x3] sm:$0x1]   ;;  %s542_s7 = smov 24  }
  0x1d   :  { %v332_v45 = vsel %vm5_vm0, %v473_v40, %v472_v39  ;;  %v474_v46 = vld [vmem:[%s856_s0 + $0x42] sm:$0x4]   ;;  %v476_v48 = vld [vmem:[%s856_s0 + $0x22] sm:$0x2]   ;;  %v478_v49 = vld [vmem:[%s856_s0 + $0x2] sm:$0x1]  }
  0x1e   :  { %v336_v52 = vsel %vm9_vm1, %v474_v46, %v332_v45  ;;  %v346_v53 = vsel %vm5_vm0, %v476_v48, %v475_v47  ;;  %v477_v54 = vld [vmem:[%s856_s0 + $0x41] sm:$0x4]   ;;  %v480_v56 = vld [vmem:[%s856_s0 + $0x40] sm:$0x4]   ;;  %v481_v57 = vld [vmem:[%s856_s0 + $0x1] sm:$0x1]  }
  0x1f   :  { %v482_v58 = vld [vmem:[%s856_s0 + $0x20] sm:$0x2]   ;;  %s543_s16 = smov 20   ;;  %v350_v59 = vsel %vm9_vm1, %v477_v54, %v346_v53  ;;  %s546_s20 = smov 8   ;;  %vm31_vm4 = vcmask 1015744   ;;  %vm41_vm5 = vcmask 982944  }
  0x20   :  { %159 = vrot.lane.b32.xlu0 %v158_v50, %s531_s13  ;;  %169 = vrot.lane.b32.xlu1 %v168_v51, %s532_s18  ;;  %s535_s18 = smov 52   ;;  %v479_v50 = vld [vmem:[%s856_s0 + $0x21] sm:$0x2]   ;;  %v322_v51 = vsel %vm9_vm1, %v471_v44, %v318_v43  ;;  %v374_v61 = vsel %vm5_vm0, %v482_v58, %v481_v57  ;;  %v483_v62 = vld [vmem:[%s856_s0 + $0x3f] sm:$0x4]   ;;  %s545_s0 = smov 12  }
  0x21   :  { %v360_v55 = vsel %vm5_vm0, %v479_v50, %v478_v49  ;;  %s547_s21 = smov 4   ;;  %vm51_vm6 = vcmask 950144   ;;  %vm61_vm7 = vcmask 917344   ;;  %vm71_vm8 = vcmask 884544  }
  0x22   :  { %vm81_vm9 = vcmask 851744   ;;  %vm91_vm10 = vcmask 818944   ;;  %vm101_vm11 = vcmask 786144   ;;  %vm111_vm12 = vcmask 753344  }
  0x23   :  { %vm121_vm13 = vcmask 720544   ;;  %vm131_vm14 = vcmask 687744   ;;  %vm141_vm15 = vcmask 654944   ;;  %vm151_vm0 = vcmask 622144  }
  0x24   :  { %183 = vrot.lane.b32.xlu0 %v182_v60, %s533_s4  ;;  %197 = vrot.lane.b32.xlu1 %v196_v63, %s534_s9  ;;  %v364_v60 = vsel %vm9_vm1, %v480_v56, %v360_v55  ;;  %v378_v63 = vsel %vm9_vm1, %v483_v62, %v374_v61  ;;  %vm161_vm1 = vcmask 589344   ;;  %vm171_vm2 = vcmask 556544  }
  0x28   :  { %211 = vrot.lane.b32.xlu0 %v210_v11, %s535_s18  ;;  %225 = vrot.lane.b32.xlu1 %v224_v12, %s536_s23 }
  0x2c   :  { %239 = vrot.lane.b32.xlu0 %v238_v21, %s537_s3  ;;  %253 = vrot.lane.b32.xlu1 %v252_v22, %s538_s8 }
  0x30   :  { %267 = vrot.lane.b32.xlu0 %v266_v31, %s539_s17  ;;  %281 = vrot.lane.b32.xlu1 %v280_v32, %s540_s22  ;;  %s544_s17 = smov 16  }
  0x34   :  { %295 = vrot.lane.b32.xlu0 %v294_v41, %s541_s2  ;;  %309 = vrot.lane.b32.xlu1 %v308_v42, %s542_s7 }
  0x38   :  { %323 = vrot.lane.b32.xlu0 %v322_v51, %s543_s16  ;;  %337 = vrot.lane.b32.xlu1 %v336_v52, %s544_s17 }
  0x3c   :  { %351 = vrot.lane.b32.xlu0 %v350_v59, %s545_s0  ;;  %365 = vrot.lane.b32.xlu1 %v364_v60, %s546_s20 }
  0x40   :  { %379 = vrot.lane.b32.xlu0 %v378_v63, %s547_s21 }
  0x76   :  { %v20_v0 = vpop.permute.xlu0 %19   ;;  %v40_v1 = vpop.permute.xlu1 %39  }
  0x77   :  { %22 = vst.msk [vmem:[#allocation0] ss:$8 sm:$0x3] %vm21_vm3, %v20_v0   ;;  %vm185_vm3 = vcmask 523744  }
  0x7a   :  { %v30_v2 = vpop.permute.xlu0 %29   ;;  %v50_v3 = vpop.permute.xlu1 %49  }
  0x7b   :  { %32 = vst.msk [vmem:[#allocation0] ss:$8 sm:$0x3] %vm31_vm4, %v30_v2   ;;  %vm199_vm4 = vcmask 490944  }
  0x7c   :  { %42 = vst.msk [vmem:[#allocation0] ss:$8 sm:$0x3] %vm41_vm5, %v40_v1   ;;  %vm213_vm5 = vcmask 458144  }
  0x7d   :  { %52 = vst.msk [vmem:[#allocation0] ss:$8 sm:$0x3] %vm51_vm6, %v50_v3   ;;  %vm227_vm6 = vcmask 425344  }
  0x7e   :  { %v60_v4 = vpop.permute.xlu0 %59   ;;  %v70_v5 = vpop.permute.xlu1 %69  }
  0x7f   :  { %62 = vst.msk [vmem:[#allocation0] ss:$8 sm:$0x3] %vm61_vm7, %v60_v4   ;;  %vm241_vm7 = vcmask 392544  }
  0x80   :  { %72 = vst.msk [vmem:[#allocation0] ss:$8 sm:$0x3] %vm71_vm8, %v70_v5   ;;  %vm255_vm8 = vcmask 359744  }
  0x82   :  { %v80_v6 = vpop.permute.xlu0 %79   ;;  %v90_v7 = vpop.permute.xlu1 %89  }
  0x83   :  { %82 = vst.msk [vmem:[#allocation0] ss:$8 sm:$0x3] %vm81_vm9, %v80_v6   ;;  %vm269_vm9 = vcmask 326944  }
  0x84   :  { %92 = vst.msk [vmem:[#allocation0] ss:$8 sm:$0x3] %vm91_vm10, %v90_v7   ;;  %vm283_vm10 = vcmask 294144  }
  0x86   :  { %v100_v8 = vpop.permute.xlu0 %99   ;;  %v110_v9 = vpop.permute.xlu1 %109  }
  0x87   :  { %102 = vst.msk [vmem:[#allocation0] ss:$8 sm:$0x3] %vm101_vm11, %v100_v8   ;;  %vm297_vm11 = vcmask 261344  }
  0x88   :  { %112 = vst.msk [vmem:[#allocation0] ss:$8 sm:$0x3] %vm111_vm12, %v110_v9   ;;  %vm311_vm12 = vcmask 228544  }
  0x8a   :  { %v120_v10 = vpop.permute.xlu0 %119   ;;  %v130_v11 = vpop.permute.xlu1 %129  }
  0x8b   :  { %122 = vst.msk [vmem:[#allocation0] ss:$8 sm:$0x3] %vm121_vm13, %v120_v10   ;;  %vm325_vm13 = vcmask 195744  }
  0x8c   :  { %132 = vst.msk [vmem:[#allocation0] ss:$8 sm:$0x3] %vm131_vm14, %v130_v11   ;;  %vm339_vm14 = vcmask 162944  }
  0x8e   :  { %v140_v12 = vpop.permute.xlu0 %139   ;;  %v150_v13 = vpop.permute.xlu1 %149  }
  0x8f   :  { %142 = vst.msk [vmem:[#allocation0] ss:$8 sm:$0x3] %vm141_vm15, %v140_v12   ;;  %vm353_vm15 = vcmask 130144  }
  0x90   :  { %152 = vst.msk [vmem:[#allocation0] ss:$8 sm:$0x3] %vm151_vm0, %v150_v13   ;;  %vm367_vm0 = vcmask 97344  }
  0x92   :  { %v160_v14 = vpop.permute.xlu0 %159   ;;  %v170_v15 = vpop.permute.xlu1 %169  }
  0x93   :  { %162 = vst.msk [vmem:[#allocation0] ss:$8 sm:$0x3] %vm161_vm1, %v160_v14   ;;  %vm381_vm1 = vcmask 64544  }
  0x94   :  { %172 = vst.msk [vmem:[#allocation0] ss:$8 sm:$0x3] %vm171_vm2, %v170_v15  }
  0x96   :  { %v184_v16 = vpop.permute.xlu0 %183   ;;  %v198_v17 = vpop.permute.xlu1 %197  }
  0x97   :  { %186 = vst.msk [vmem:[#allocation0] ss:$8 sm:$0x7] %vm185_vm3, %v184_v16  }
  0x98   :  { %200 = vst.msk [vmem:[#allocation0] ss:$8 sm:$0x7] %vm199_vm4, %v198_v17  }
  0x9a   :  { %v212_v18 = vpop.permute.xlu0 %211   ;;  %v226_v19 = vpop.permute.xlu1 %225  }
  0x9b   :  { %214 = vst.msk [vmem:[#allocation0] ss:$8 sm:$0x7] %vm213_vm5, %v212_v18  }
  0x9c   :  { %228 = vst.msk [vmem:[#allocation0] ss:$8 sm:$0x7] %vm227_vm6, %v226_v19  }
  0x9e   :  { %v240_v20 = vpop.permute.xlu0 %239   ;;  %v254_v21 = vpop.permute.xlu1 %253  }
  0x9f   :  { %242 = vst.msk [vmem:[#allocation0] ss:$8 sm:$0x7] %vm241_vm7, %v240_v20  }
  0xa0   :  { %256 = vst.msk [vmem:[#allocation0] ss:$8 sm:$0x7] %vm255_vm8, %v254_v21  }
  0xa2   :  { %v268_v22 = vpop.permute.xlu0 %267   ;;  %v282_v23 = vpop.permute.xlu1 %281  }
  0xa3   :  { %270 = vst.msk [vmem:[#allocation0] ss:$8 sm:$0x7] %vm269_vm9, %v268_v22  }
  0xa4   :  { %284 = vst.msk [vmem:[#allocation0] ss:$8 sm:$0x7] %vm283_vm10, %v282_v23  }
  0xa6   :  { %v296_v24 = vpop.permute.xlu0 %295   ;;  %v310_v25 = vpop.permute.xlu1 %309  }
  0xa7   :  { %298 = vst.msk [vmem:[#allocation0] ss:$8 sm:$0x7] %vm297_vm11, %v296_v24  }
  0xa8   :  { %312 = vst.msk [vmem:[#allocation0] ss:$8 sm:$0x7] %vm311_vm12, %v310_v25  }
  0xaa   :  { %v324_v26 = vpop.permute.xlu0 %323   ;;  %v338_v27 = vpop.permute.xlu1 %337  }
  0xab   :  { %326 = vst.msk [vmem:[#allocation0] ss:$8 sm:$0x7] %vm325_vm13, %v324_v26  }
  0xac   :  { %340 = vst.msk [vmem:[#allocation0] ss:$8 sm:$0x7] %vm339_vm14, %v338_v27  }
  0xae   :  { %v352_v28 = vpop.permute.xlu0 %351   ;;  %v366_v29 = vpop.permute.xlu1 %365  }
  0xaf   :  { %354 = vst.msk [vmem:[#allocation0] ss:$8 sm:$0x7] %vm353_vm15, %v352_v28  }
  0xb0   :  { %368 = vst.msk [vmem:[#allocation0] ss:$8 sm:$0x7] %vm367_vm0, %v366_v29  }
  0xb2   :  { %v380_v30 = vpop.permute.xlu0 %379  }
  0xb3   :  { %382 = vst.msk [vmem:[#allocation0] ss:$8 sm:$0x7] %vm381_vm1, %v380_v30  }
  0xba   :  { %v387_v31 = vld [vmem:[#allocation0] sm:$0x1]  ;;  %v392_v32 = vld [vmem:[#allocation0 + $0x8] sm:$0x1]  ;;  %v398_v33 = vld [vmem:[#allocation0 + $0x10] sm:$0x1] }
  0xbb   :  { %390 = vst [vmem:[%s857_s1] sm:$0x1] %v387_v31  ;;  %484 = vst [vmem:[%s857_s1 + $0x1] sm:$0x1] %v392_v32 }
  0xbc   :  { %485 = vst [vmem:[%s857_s1 + $0x2] sm:$0x1] %v398_v33 }

// kernel: tile.43
= control target key start
LH: loop header
LB: loop body
LE: loop exit
PB: predicated region body
PF: predicated region fallthrough
CT: control target
= control target key end

     0   :  { %s46_s0 = inlined_call_operand.vmem [shape: f32[8], index: 0, kind: input, shape index: {}]   ;;  %s47_s1 = inlined_call_operand.vmem [shape: f32[40,8], index: 1, kind: output, shape index: {}]  }
   0x1   :  { %v4_v0 = vld [vmem:[%s46_s0] ss:$0 sm:$0xff] }
   0x2   :  { %5 = vst [vmem:[%s47_s1] sm:$0xff] %v4_v0  ;;  %14 = vst [vmem:[%s47_s1 + $0x8] sm:$0xff] %v4_v0 }
   0x3   :  { %15 = vst [vmem:[%s47_s1 + $0x10] sm:$0xff] %v4_v0  ;;  %16 = vst [vmem:[%s47_s1 + $0x18] sm:$0xff] %v4_v0 }
   0x4   :  { %17 = vst [vmem:[%s47_s1 + $0x20] sm:$0xff] %v4_v0 }

// kernel: tile.44
= control target key start
LH: loop header
LB: loop body
LE: loop exit
PB: predicated region body
PF: predicated region fallthrough
CT: control target
= control target key end

     0   :  { %s11_s6 = smov 3  ;;  %s25_s9 = smov 3  ;;  %vm6_vm0 = vcmask 1042434   ;;  %vm8_vm1 = vcmask 64512   ;;  %vm15_vm2 = vcmask 1048512   ;;  %vm22_vm3 = vcmask 982912   ;;  %s319_s0 = inlined_call_operand.vmem [shape: f32[40,8], index: 0, kind: input, shape index: {}]   ;;  %s320_s1 = inlined_call_operand.vmem [shape: f32[1,320], index: 1, kind: output, shape index: {}]  }
   0x1   :  { %v166_v0 = vld [vmem:[%s319_s0 + $0xf] ss:$16 sm:%s11_s6]   ;;  %s205_s10 = smov 120   ;;  %v168_v1 = vld [vmem:[%s319_s0 + $0xd] ss:$16 sm:%s25_s9]   ;;  %s18_s13 = smov 3 }
   0x2   :  { %13 = vrot.lane.b32.xlu0 %v166_v0, %s205_s10  ;;  %s206_s14 = smov 104   ;;  %v167_v2 = vld [vmem:[%s319_s0 + $0xe] ss:$16 sm:%s18_s13]   ;;  %s32_s17 = smov 3  ;;  %v175_v7 = vld [vmem:[%s319_s0 + $0x25] sm:$0x4]  }
   0x3   :  { %27 = vrot.lane.b32.xlu1 %v168_v1, %s206_s14  ;;  %v169_v3 = vld [vmem:[%s319_s0 + $0xc] ss:$16 sm:%s32_s17]   ;;  %s39_s20 = smov 3  ;;  %s46_s21 = smov 3  ;;  %v177_v11 = vld [vmem:[%s319_s0 + $0x24] sm:$0x4]  }
   0x4   :  { %s207_s22 = smov 112   ;;  %s208_s23 = smov 96   ;;  %v170_v4 = vld [vmem:[%s319_s0 + $0xb] ss:$16 sm:%s39_s20]   ;;  %v171_v5 = vld [vmem:[%s319_s0 + $0xa] ss:$16 sm:%s46_s21]  }
   0x5   :  { %s53_s28 = smov 3  ;;  %s60_s29 = smov 3  ;;  %v165_v12 = vld [vmem:[%s319_s0 + $0x1e] sm:$0x4]   ;;  %v179_v14 = vld [vmem:[%s319_s0 + $0x23] sm:$0x4]  }
   0x6   :  { %20 = vrot.lane.b32.xlu0 %v167_v2, %s207_s22  ;;  %s67_s30 = smov 3  ;;  %s209_s2 = smov 88   ;;  %v172_v6 = vld [vmem:[%s319_s0 + $0x9] ss:$16 sm:%s53_s28]   ;;  %v181_v19 = vld [vmem:[%s319_s0 + $0x22] sm:$0x4]  }
   0x7   :  { %34 = vrot.lane.b32.xlu1 %v169_v3, %s208_s23  ;;  %s78_s3 = smov 3  ;;  %s210_s4 = smov 80   ;;  %v173_v8 = vld [vmem:[%s319_s0 + $0x8] ss:$16 sm:%s60_s29]   ;;  %v183_v24 = vld [vmem:[%s319_s0 + $0x21] sm:$0x4]  }
   0x8   :  { %v174_v9 = vld [vmem:[%s319_s0 + $0x7] ss:$16 sm:%s67_s30]   ;;  %v176_v10 = vld [vmem:[%s319_s0 + $0x6] ss:$16 sm:%s78_s3]   ;;  %s89_s17 = smov 3  ;;  %s211_s18 = smov 72  }
   0x9   :  { %s100_s19 = smov 3  ;;  %s212_s22 = smov 64   ;;  %v72_v13 = vsel %vm6_vm0, %v175_v7, %v174_v9  ;;  %v83_v15 = vsel %vm6_vm0, %v177_v11, %v176_v10  ;;  %v178_v16 = vld [vmem:[%s319_s0 + $0x5] ss:$16 sm:%s89_s17]   ;;  %v185_v26 = vld [vmem:[%s319_s0 + $0x20] sm:$0x4]  }
   0xa   :  { %41 = vrot.lane.b32.xlu0 %v170_v4, %s209_s2  ;;  %s2_s25 = smov 3  ;;  %v180_v18 = vld [vmem:[%s319_s0 + $0x4] ss:$16 sm:%s100_s19]   ;;  %s111_s5 = smov 3  ;;  %v94_v21 = vsel %vm6_vm0, %v179_v14, %v178_v16  ;;  %v187_v30 = vld [vmem:[%s319_s0 + $0x1f] sm:$0x4]  }
   0xb   :  { %48 = vrot.lane.b32.xlu1 %v171_v5, %s210_s4  ;;  %v3_v17 = vld [vmem:[%s319_s0] ss:$16 sm:%s2_s25]   ;;  %s213_s6 = smov 56   ;;  %s122_s7 = smov 3  ;;  %v105_v22 = vsel %vm6_vm0, %v181_v19, %v180_v18  ;;  %vm29_vm4 = vcmask 917312   ;;  %vm36_vm5 = vcmask 851712  }
   0xc   :  { %v7_v20 = vsel %vm6_vm0, %v165_v12, %v3_v17  ;;  %s214_s8 = smov 48   ;;  %v182_v23 = vld [vmem:[%s319_s0 + $0x3] ss:$16 sm:%s111_s5]   ;;  %v184_v25 = vld [vmem:[%s319_s0 + $0x2] ss:$16 sm:%s122_s7]   ;;  %s133_s17 = smov 3 }
   0xd   :  { %9 = vst.msk [vmem:[#allocation0] ss:$8 sm:$0x7] %vm8_vm1, %v7_v20   ;;  %s216_s19 = smov 32   ;;  %v116_v27 = vsel %vm6_vm0, %v183_v24, %v182_v23  ;;  %v127_v28 = vsel %vm6_vm0, %v185_v26, %v184_v25  ;;  %v186_v29 = vld [vmem:[%s319_s0 + $0x1] ss:$16 sm:%s133_s17]  }
   0xe   :  { %55 = vrot.lane.b32.xlu0 %v172_v6, %s211_s18  ;;  %s215_s18 = smov 40   ;;  %s217_s0 = smov 24   ;;  %v138_v31 = vsel %vm6_vm0, %v187_v30, %v186_v29  ;;  %vm43_vm6 = vcmask 786112   ;;  %vm50_vm7 = vcmask 720512   ;;  %vm57_vm8 = vcmask 654912  }
   0xf   :  { %62 = vrot.lane.b32.xlu1 %v173_v8, %s212_s22  ;;  %s218_s24 = smov 16   ;;  %s219_s25 = smov 8   ;;  %vm64_vm9 = vcmask 589312   ;;  %vm75_vm10 = vcmask 523712   ;;  %vm86_vm11 = vcmask 458112   ;;  %vm97_vm12 = vcmask 392512  }
  0x10   :  { %vm108_vm13 = vcmask 326912   ;;  %vm119_vm14 = vcmask 261312   ;;  %vm130_vm15 = vcmask 195712   ;;  %vm141_vm0 = vcmask 130112  }
  0x12   :  { %73 = vrot.lane.b32.xlu0 %v72_v13, %s213_s6 }
  0x13   :  { %84 = vrot.lane.b32.xlu1 %v83_v15, %s214_s8 }
  0x16   :  { %95 = vrot.lane.b32.xlu0 %v94_v21, %s215_s18 }
  0x17   :  { %106 = vrot.lane.b32.xlu1 %v105_v22, %s216_s19 }
  0x1a   :  { %117 = vrot.lane.b32.xlu0 %v116_v27, %s217_s0 }
  0x1b   :  { %128 = vrot.lane.b32.xlu1 %v127_v28, %s218_s24 }
  0x1e   :  { %139 = vrot.lane.b32.xlu0 %v138_v31, %s219_s25 }
  0x74   :  { %v14_v32 = vpop.permute.xlu0 %13  }
  0x75   :  { %16 = vst.msk [vmem:[#allocation0] ss:$8 sm:$0x3] %vm15_vm2, %v14_v32   ;;  %v28_v33 = vpop.permute.xlu1 %27  }
  0x78   :  { %v21_v34 = vpop.permute.xlu0 %20  }
  0x79   :  { %23 = vst.msk [vmem:[#allocation0] ss:$8 sm:$0x3] %vm22_vm3, %v21_v34   ;;  %v35_v35 = vpop.permute.xlu1 %34  }
  0x7a   :  { %30 = vst.msk [vmem:[#allocation0] ss:$8 sm:$0x3] %vm29_vm4, %v28_v33  }
  0x7b   :  { %37 = vst.msk [vmem:[#allocation0] ss:$8 sm:$0x3] %vm36_vm5, %v35_v35  }
  0x7c   :  { %v42_v36 = vpop.permute.xlu0 %41  }
  0x7d   :  { %44 = vst.msk [vmem:[#allocation0] ss:$8 sm:$0x3] %vm43_vm6, %v42_v36   ;;  %v49_v37 = vpop.permute.xlu1 %48  }
  0x7e   :  { %51 = vst.msk [vmem:[#allocation0] ss:$8 sm:$0x3] %vm50_vm7, %v49_v37  }
  0x80   :  { %v56_v38 = vpop.permute.xlu0 %55  }
  0x81   :  { %58 = vst.msk [vmem:[#allocation0] ss:$8 sm:$0x3] %vm57_vm8, %v56_v38   ;;  %v63_v39 = vpop.permute.xlu1 %62  }
  0x82   :  { %65 = vst.msk [vmem:[#allocation0] ss:$8 sm:$0x3] %vm64_vm9, %v63_v39  }
  0x84   :  { %v74_v40 = vpop.permute.xlu0 %73  }
  0x85   :  { %76 = vst.msk [vmem:[#allocation0] ss:$8 sm:$0x7] %vm75_vm10, %v74_v40   ;;  %v85_v41 = vpop.permute.xlu1 %84  }
  0x86   :  { %87 = vst.msk [vmem:[#allocation0] ss:$8 sm:$0x7] %vm86_vm11, %v85_v41  }
  0x88   :  { %v96_v42 = vpop.permute.xlu0 %95  }
  0x89   :  { %98 = vst.msk [vmem:[#allocation0] ss:$8 sm:$0x7] %vm97_vm12, %v96_v42   ;;  %v107_v43 = vpop.permute.xlu1 %106  }
  0x8a   :  { %109 = vst.msk [vmem:[#allocation0] ss:$8 sm:$0x7] %vm108_vm13, %v107_v43  }
  0x8c   :  { %v118_v44 = vpop.permute.xlu0 %117  }
  0x8d   :  { %120 = vst.msk [vmem:[#allocation0] ss:$8 sm:$0x7] %vm119_vm14, %v118_v44   ;;  %v129_v45 = vpop.permute.xlu1 %128  }
  0x8e   :  { %131 = vst.msk [vmem:[#allocation0] ss:$8 sm:$0x7] %vm130_vm15, %v129_v45  }
  0x90   :  { %v140_v46 = vpop.permute.xlu0 %139  }
  0x91   :  { %142 = vst.msk [vmem:[#allocation0] ss:$8 sm:$0x7] %vm141_vm0, %v140_v46  }
  0x98   :  { %v147_v47 = vld [vmem:[#allocation0] sm:$0x1]  ;;  %v152_v48 = vld [vmem:[#allocation0 + $0x8] sm:$0x1]  ;;  %v158_v49 = vld [vmem:[#allocation0 + $0x10] sm:$0x1] }
  0x99   :  { %150 = vst [vmem:[%s320_s1] sm:$0x1] %v147_v47  ;;  %188 = vst [vmem:[%s320_s1 + $0x1] sm:$0x1] %v152_v48 }
  0x9a   :  { %189 = vst [vmem:[%s320_s1 + $0x2] sm:$0x1] %v158_v49 }

// kernel: tile.53
= control target key start
LH: loop header
LB: loop body
LE: loop exit
PB: predicated region body
PF: predicated region fallthrough
CT: control target
= control target key end

     0   :  { %s34_s0 = inlined_call_operand.vmem [shape: f32[16], index: 0, kind: input, shape index: {}]   ;;  %s35_s1 = inlined_call_operand.vmem [shape: f32[20,16], index: 1, kind: output, shape index: {}]  }
   0x1   :  { %v4_v0 = vld [vmem:[%s34_s0] ss:$0 sm:$0xff] }
   0x2   :  { %5 = vst [vmem:[%s35_s1] sm:$0xff] %v4_v0  ;;  %10 = vst [vmem:[%s35_s1 + $0x8] sm:$0xff] %v4_v0 }
   0x3   :  { %11 = vst [vmem:[%s35_s1 + $0x10] sm:$0xff] %v4_v0 }

// kernel: tile.54
= control target key start
LH: loop header
LB: loop body
LE: loop exit
PB: predicated region body
PF: predicated region fallthrough
CT: control target
= control target key end

     0   :  { %s6_s6 = smov 3  ;;  %s20_s9 = smov 3  ;;  %vm3_vm0 = vcmask 130048   ;;  %vm10_vm1 = vcmask 1048448   ;;  %vm17_vm2 = vcmask 917248   ;;  %vm24_vm3 = vcmask 786048   ;;  %s139_s0 = inlined_call_operand.vmem [shape: f32[20,16], index: 0, kind: input, shape index: {}]   ;;  %s140_s1 = inlined_call_operand.vmem [shape: f32[1,320], index: 1, kind: output, shape index: {}]  }
   0x1   :  { %v73_v0 = vld [vmem:[%s139_s0 + $0x7] ss:$8 sm:%s6_s6]   ;;  %s89_s10 = smov 112   ;;  %v75_v1 = vld [vmem:[%s139_s0 + $0x5] ss:$8 sm:%s20_s9]   ;;  %s13_s13 = smov 3 }
   0x2   :  { %8 = vrot.lane.b32.xlu0 %v73_v0, %s89_s10  ;;  %s90_s14 = smov 80   ;;  %v74_v2 = vld [vmem:[%s139_s0 + $0x6] ss:$8 sm:%s13_s13]   ;;  %s27_s17 = smov 3  ;;  %vm31_vm4 = vcmask 654848   ;;  %vm37_vm5 = vcmask 523648  }
   0x3   :  { %22 = vrot.lane.b32.xlu1 %v75_v1, %s90_s14  ;;  %v76_v3 = vld [vmem:[%s139_s0 + $0x4] ss:$8 sm:%s27_s17]   ;;  %s91_s20 = smov 96   ;;  %v2_v4 = vld [vmem:[%s139_s0] ss:$8 sm:$0x7]  }
   0x4   :  { %s92_s23 = smov 64   ;;  %v77_v5 = vld [vmem:[%s139_s0 + $0x3] ss:$8 sm:$0x7]   ;;  %s93_s28 = smov 48   ;;  %vm43_vm6 = vcmask 392448  }
   0x5   :  { %4 = vst.msk [vmem:[#allocation0] ss:$8 sm:$0x7] %vm3_vm0, %v2_v4   ;;  %v78_v6 = vld [vmem:[%s139_s0 + $0x2] ss:$8 sm:$0x7]  }
   0x6   :  { %15 = vrot.lane.b32.xlu0 %v74_v2, %s91_s20  ;;  %s94_s29 = smov 32   ;;  %v79_v7 = vld [vmem:[%s139_s0 + $0x1] ss:$8 sm:$0x7]   ;;  %s95_s0 = smov 16   ;;  %vm49_vm7 = vcmask 261248  }
   0x7   :  { %29 = vrot.lane.b32.xlu1 %v76_v3, %s92_s23 }
   0xa   :  { %35 = vrot.lane.b32.xlu0 %v77_v5, %s93_s28 }
   0xb   :  { %41 = vrot.lane.b32.xlu1 %v78_v6, %s94_s29 }
   0xe   :  { %47 = vrot.lane.b32.xlu0 %v79_v7, %s95_s0 }
  0x74   :  { %v9_v8 = vpop.permute.xlu0 %8  }
  0x75   :  { %11 = vst.msk [vmem:[#allocation0] ss:$8 sm:$0x3] %vm10_vm1, %v9_v8   ;;  %v23_v9 = vpop.permute.xlu1 %22  }
  0x78   :  { %v16_v10 = vpop.permute.xlu0 %15  }
  0x79   :  { %18 = vst.msk [vmem:[#allocation0] ss:$8 sm:$0x3] %vm17_vm2, %v16_v10   ;;  %v30_v11 = vpop.permute.xlu1 %29  }
  0x7a   :  { %25 = vst.msk [vmem:[#allocation0] ss:$8 sm:$0x3] %vm24_vm3, %v23_v9  }
  0x7b   :  { %32 = vst.msk [vmem:[#allocation0] ss:$8 sm:$0x3] %vm31_vm4, %v30_v11  }
  0x7c   :  { %v36_v12 = vpop.permute.xlu0 %35  }
  0x7d   :  { %38 = vst.msk [vmem:[#allocation0] ss:$8 sm:$0x7] %vm37_vm5, %v36_v12   ;;  %v42_v13 = vpop.permute.xlu1 %41  }
  0x7e   :  { %44 = vst.msk [vmem:[#allocation0] ss:$8 sm:$0x7] %vm43_vm6, %v42_v13  }
  0x80   :  { %v48_v14 = vpop.permute.xlu0 %47  }
  0x81   :  { %50 = vst.msk [vmem:[#allocation0] ss:$8 sm:$0x7] %vm49_vm7, %v48_v14  }
  0x88   :  { %v55_v15 = vld [vmem:[#allocation0] sm:$0x1]  ;;  %v60_v16 = vld [vmem:[#allocation0 + $0x8] sm:$0x1]  ;;  %v66_v17 = vld [vmem:[#allocation0 + $0x10] sm:$0x1] }
  0x89   :  { %58 = vst [vmem:[%s140_s1] sm:$0x1] %v55_v15  ;;  %80 = vst [vmem:[%s140_s1 + $0x1] sm:$0x1] %v60_v16 }
  0x8a   :  { %81 = vst [vmem:[%s140_s1 + $0x2] sm:$0x1] %v66_v17 }

// kernel: speaker_classifier_forward.1
= control target key start
LH: loop header
LB: loop body
LE: loop exit
PB: predicated region body
PF: predicated region fallthrough
CT: control target
= control target key end

     0   :  { %v13983_v0 = vmov 0   ;;  %s13984_s3 = smov 3   ;;  %vm215_vm0 = vcmask 647168   ;;  %v13985_v1 = vmov 0.0   ;;  %s13986_s7 = smov 4   ;;  %vm222_vm1 = vcmask 1040384   ;;  %s16742_s0 = inlined_call_operand.smem [shape: u32[50], index: -1, kind: input, shape index: {}] }
   0x1   :  { %12959 = vset.pattern.permute.xlu1 %v13983_v0  ;;  %12958 = vset.pattern.permute.xlu0 %v13983_v0  ;;  %s11420_s6 = sld [smem:[%s16742_s0 + %s13984_s3]]   ;;  %216 = vst.msk [vmem:[#allocation2] sm:$0x1] %vm215_vm0, %v13985_v1  ;;  %217 = vst.msk [vmem:[#allocation2 + $0x61] sm:$0x1] %vm215_vm0, %v13985_v1  ;;  %s13987_s11 = smov 7   ;;  %vm235_vm2 = vcmask 654337   ;;  %v959_v47 = vlaneseq }
   0x2   :  { %468 = vmatprep.mubr.bf16.mxu0 %v13983_v0  ;;  %s11421_s10 = sld [smem:[%s16742_s0 + %s13986_s7]]   ;;  %s13988_s15 = smov 1   ;;  %vm237_vm3 = vcmask 654336   ;;  %vm288_vm5 = vcmask 1041408   ;;  %vm752_vm6 = vcmask 1046528   ;;  %vm1066_vm7 = vcmask 523265  }
   0x3   :  { %s11424_s14 = sld [smem:[%s16742_s0 + %s13987_s11]]   ;;  %s13989_s19 = smov 8   ;;  %vm14126_vm4 = vcmp.lt.s32.totalorder %v959_v47, 320  ;;  %vm1080_vm8 = vcmask 516096   ;;  %vm1070_vm9 = vcmask 523264   ;;  %vm14334_vm10 = vcmp.lt.s32.totalorder %v959_v47, 160 }
   0x4   :  { %s14059_s18 = sld [smem:[%s16742_s0 + %s13988_s15]]   ;;  %s13990_s26 = smov 15   ;;  %vm3646_vm11 = vcmask 261120   ;;  %vm3846_vm12 = vcmask 261121   ;;  %vm3851_vm13 = vcmask 253952   ;;  %vm14008_vm14 = vmmov 0  }
   0x5   :  { %s14064_s22 = sld [smem:[%s16742_s0 + %s13989_s19]]   ;;  %s13991_s30 = smov 16   ;;  %vm7158_vm15 = vcmask 130048  }
   0x6   :  { %s14071_s25 = sld [smem:[%s16742_s0]]   ;;  %s13992_s4 = smov 19  }
   0x7   :  { %v209_v2 = vld [vmem:[%s11420_s6 + $0x10] sm:$0xff]  ;;  %v207_v3 = vld [vmem:[%s11420_s6] sm:$0xff]  ;;  %v210_v4 = vld [vmem:[%s11420_s6 + $0x18] sm:$0xff]  ;;  %s14085_s29 = sld [smem:[%s16742_s0 + %s13990_s26]]   ;;  %s13993_s8 = smov 20  }
   0x8   :  { %260 = vperm.xlu1 %12959, %v209_v2   ;;  %250 = vperm.xlu0 %12958, %v207_v3   ;;  %v208_v5 = vld [vmem:[%s11420_s6 + $0x8] sm:$0xff]  ;;  %v211_v7 = vld [vmem:[%s11421_s10] sm:$0xff]  ;;  %v214_v8 = vld [vmem:[%s11421_s10 + $0x18] sm:$0xff]  ;;  %s14105_s3 = sld [smem:[%s16742_s0 + %s13991_s30]]   ;;  %s13994_s12 = smov 28  }
   0x9   :  { %v212_v6 = vld [vmem:[%s11421_s10 + $0x8] sm:$0xff]  ;;  %v213_v9 = vld [vmem:[%s11421_s10 + $0x10] sm:$0xff]  ;;  %v999_v11 = vld [vmem:[%s11424_s14] sm:$0xff]  ;;  %s14121_s7 = sld [smem:[%s16742_s0 + %s13992_s4]]   ;;  %s13995_s16 = smov 27  }
   0xa   :  { %v1000_v10 = vld [vmem:[%s11424_s14 + $0x8] sm:$0xff]  ;;  %v12964_v15 = vld [vmem:[%s14059_s18 + $0xd8] ss:$12 sps:$4 sm:$0xff]   ;;  %v1001_v18 = vld [vmem:[%s11424_s14 + $0x10] sm:$0xff]  ;;  %s14137_s11 = sld [smem:[%s16742_s0 + %s13993_s8]]   ;;  %s13996_s21 = smov 32  }
   0xb   :  { %v12960_v12 = vld [vmem:[%s14059_s18 + $0xe0] ss:$12 sps:$4 sm:$0xff]   ;;  %v12961_v13 = vld [vmem:[%s14059_s18 + $0xdc] ss:$12 sps:$4 sm:$0xff]   ;;  %v12965_v17 = vld [vmem:[%s14059_s18 + $0xc4] ss:$12 sps:$4 sm:$0xff]   ;;  %s14153_s15 = sld [smem:[%s16742_s0 + %s13994_s12]]  }
   0xc   :  { %265 = vperm.xlu1 %12959, %v210_v4   ;;  %255 = vperm.xlu0 %12958, %v208_v5   ;;  %v12963_v14 = vld [vmem:[%s14059_s18 + $0xc8] ss:$12 sps:$4 sm:$0xff]   ;;  %v1002_v16 = vld [vmem:[%s11424_s14 + $0x18] sm:$0xff]  ;;  %v12968_v20 = vld [vmem:[%s14059_s18 + $0xc0] ss:$12 sps:$4 sm:$0xff]   ;;  %s14158_s20 = sld [smem:[%s16742_s0 + %s13995_s16]]   ;;  %s14000_s6 = smov 9  }
   0xd   :  { %12651 = vmatprep.subr.bf16.mxu1 %v12960_v12  ;;  %442 = vmatprep.subr.bf16.mxu0 %v12961_v13  ;;  %v12967_v19 = vld [vmem:[%s14059_s18 + $0xb0] ss:$12 sps:$4 sm:$0xff]   ;;  %v12969_v21 = vld [vmem:[%s14059_s18 + $0xac] ss:$12 sps:$4 sm:$0xff]   ;;  %v1003_v24 = vld [vmem:[%s14064_s22] sm:$0xff]  ;;  %s11449_s24 = sld [smem:[%s16742_s0 + %s13996_s21]]   ;;  %s14001_s10 = smov 10  }
   0xe   :  { %12652 = vmatpush3.bf16.msra.mxu1 %v12960_v12  ;;  %443 = vmatpush1.bf16.msra.mxu0 %v12964_v15  ;;  %v1004_v22 = vld [vmem:[%s14064_s22 + $0x8] sm:$0xff]  ;;  %v12971_v23 = vld [vmem:[%s14059_s18 + $0x98] ss:$12 sps:$4 sm:$0xff]   ;;  %v12973_v28 = vld [vmem:[%s14059_s18 + $0x94] ss:$12 sps:$4 sm:$0xff]   ;;  %s14698_s9 = sld [smem:[%s16742_s0 + %s14000_s6]]   ;;  %s14002_s14 = smov 6  }
   0xf   :  { %12653 = vmatprep.subr.bf16.mxu1 %v12963_v14  ;;  %444 = vmatprep.subr.bf16.mxu0 %v12965_v17  ;;  %v12972_v25 = vld [vmem:[%s14059_s18 + $0xa8] ss:$12 sps:$4 sm:$0xff]   ;;  %v202_v26 = vld [vmem:[%s14071_s25] sm:$0xff]  ;;  %v1006_v33 = vld [vmem:[%s14064_s22 + $0x18] sm:$0xff]  ;;  %s14807_s13 = sld [smem:[%s16742_s0 + %s14001_s10]]   ;;  %s14003_s19 = smov 13  }
  0x10   :  { %278 = vperm.xlu1 %12959, %v212_v6   ;;  %274 = vperm.xlu0 %12958, %v211_v7   ;;  %v203_v27 = vld [vmem:[%s14071_s25 + $0x8] sm:$0xff]  ;;  %v204_v29 = vld [vmem:[%s14071_s25 + $0x10] sm:$0xff]  ;;  %v223_v30 = vrot.slane %v202_v26, 7  ;;  %v205_v37 = vld [vmem:[%s14071_s25 + $0x18] sm:$0xff]  ;;  %s13997_s25 = smov 31   ;;  %s11423_s17 = sld [smem:[%s16742_s0 + %s14002_s14]]  }
  0x11   :  { %v224_v31 = vrot.slane %v203_v27, 7  ;;  %v14092_v32 = vpack.c.bf16 %v203_v27, %v202_v26  ;;  %v1005_v34 = vld [vmem:[%s14064_s22 + $0x10] sm:$0xff]  ;;  %v12975_v35 = vld [vmem:[%s14059_s18 + $0x80] ss:$12 sps:$4 sm:$0xff]   ;;  %v226_v36 = vrot.slane %v204_v29, 7  ;;  %v330_v40 = vld [vmem:[%s14059_s18 + $0x78] sm:$0xff]  ;;  %v329_v50 = vpack.c.bf16 %v205_v37, %v204_v29  ;;  %s11448_s28 = sld [smem:[%s16742_s0 + %s13997_s25]]  }
  0x12   :  { %12654 = vmatpush3.bf16.msra.mxu1 %v12963_v14  ;;  %445 = vmatpush1.bf16.msra.mxu0 %v12968_v20  ;;  %v12976_v38 = vld [vmem:[%s14059_s18 + $0x90] ss:$12 sps:$4 sm:$0xff]   ;;  %236 = vst.msk [vmem:[#allocation2] sm:$0xfe] %vm235_vm2, %v223_v30  ;;  %v228_v41 = vrot.slane %v205_v37, 7  ;;  %v332_v43 = vld [vmem:[%s14059_s18 + $0x84] sm:$0xff]  ;;  %s15067_s22 = sld [smem:[%s16742_s0 + %s14003_s19]]  }
  0x13   :  { %12655 = vmatprep.subr.bf16.mxu1 %v12967_v19  ;;  %446 = vmatprep.subr.bf16.mxu0 %v12969_v21  ;;  %v225_v39 = vsel %vm222_vm1, %v223_v30, %v224_v31  ;;  %v227_v42 = vsel %vm222_vm1, %v224_v31, %v226_v36  ;;  %v12977_v44 = vld [vmem:[%s14059_s18 + $0x7c] ss:$12 sps:$4 sm:$0xff]   ;;  %v3818_v49 = vld [vmem:[%s14085_s29] sm:$0xff]  ;;  %v11467_v51 = vcombine.low %v330_v40, %v332_v43  ;;  %v12985_v59 = vld [vmem:[%s14059_s18 + $0x4c] ss:$12 sps:$4 sm:$0xff]   ;;  %s14004_s23 = smov 11  }
  0x14   :  { %286 = vperm.xlu1 %12959, %v214_v8   ;;  %282 = vperm.xlu0 %12958, %v213_v9   ;;  %238 = vst.msk [vmem:[#allocation2 + $0x18] sm:$0xff] %vm237_vm3, %v225_v39  ;;  %239 = vst.msk [vmem:[#allocation2 + $0x30] sm:$0xff] %vm237_vm3, %v227_v42  ;;  %v229_v45 = vsel %vm222_vm1, %v226_v36, %v228_v41  ;;  %v12982_v46 = vld [vmem:[%s14059_s18 + $0x68] ss:$12 sps:$4 sm:$0xff]   ;;  %v12981_v53 = vld [vmem:[%s14059_s18 + $0x64] ss:$12 sps:$4 sm:$0xff]   ;;  %s15072_s26 = sld [smem:[%s16742_s0 + %s14004_s23]]  }
  0x15   :  { %12661 = vmatprep.mubr.msk.bf16.mxu1 %vm237_vm3, %v14092_v32  ;;  %241 = vst.msk [vmem:[#allocation2 + $0x60] sm:$0x1] %vm215_vm0, %v228_v41  ;;  %v3819_v48 = vld [vmem:[%s14085_s29 + $0x8] sm:$0xff]  ;;  %v12986_v54 = vld [vmem:[%s14059_s18 + $0x50] ss:$12 sps:$4 sm:$0xff]   ;;  %v3820_v57 = vld [vmem:[%s14105_s3] sm:$0xff] }
  0x16   :  { %12656 = vmatpush3.bf16.msra.mxu1 %v12967_v19  ;;  %447 = vmatpush1.bf16.msra.mxu0 %v12972_v25  ;;  %240 = vst.msk [vmem:[#allocation2 + $0x48] sm:$0xff] %vm237_vm3, %v229_v45  ;;  %v3821_v56 = vld [vmem:[%s14105_s3 + $0x8] sm:$0xff]  ;;  %v12990_v60 = vld [vmem:[%s14059_s18 + $0x38] ss:$12 sps:$4 sm:$0xff]   ;;  %v12989_v2 = vld [vmem:[%s14059_s18 + $0x34] ss:$12 sps:$4 sm:$0xff]  }
  0x17   :  { %12657 = vmatprep.subr.bf16.mxu1 %v12971_v23  ;;  %448 = vmatprep.subr.bf16.mxu0 %v12973_v28  ;;  %v12979_v58 = vld [vmem:[%s14059_s18 + $0x60] ss:$12 sps:$4 sm:$0xff]   ;;  %v12983_v63 = vld [vmem:[%s14059_s18 + $0x48] ss:$12 sps:$4 sm:$0xff]   ;;  %v12987_v7 = vld [vmem:[%s14059_s18 + $0x30] ss:$12 sps:$4 sm:$0xff]  }
  0x18   :  { %1107 = vperm.xlu1 %12959, %v1000_v10   ;;  %1102 = vperm.xlu0 %12958, %v999_v11   ;;  %v4811_v61 = vld [vmem:[%s14121_s7 + $0x8] sm:$0xff]  ;;  %v4810_v62 = vld [vmem:[%s14121_s7] sm:$0xff]  ;;  %s13998_s29 = smov 5   ;;  %v12999_v26 = vld [vmem:[%s14059_s18 + $0x150] ss:$12 sps:$4 sm:$0xff]   ;;  %s14005_s27 = smov 12  }
  0x19   :  { %v14132_v55 = vld [vmem:[#allocation2] sm:$0xff]  ;;  %v4813_v5 = vld [vmem:[%s14137_s11 + $0x8] sm:$0xff]  ;;  %s14193_s2 = sld [smem:[%s16742_s0 + %s13998_s29]]   ;;  %s14006_s1 = smov 17   ;;  %vm10477_vm0 = vcmask 64512   ;;  %vm10747_vm2 = vcmask 261124  }
  0x1a   :  { %12658 = vmatpush3.bf16.msra.mxu1 %v12971_v23  ;;  %449 = vmatpush1.bf16.msra.mxu0 %v12976_v38  ;;  %1011 = vst.msk [vmem:[#allocation2] ss:$8 sm:$0x7] %vm14126_vm4, %v13985_v1  ;;  %v12994_v3 = vld [vmem:[%s14059_s18 + $0x20] ss:$12 sps:$4 sm:$0xff]   ;;  %s15077_s30 = sld [smem:[%s16742_s0 + %s14005_s27]]   ;;  %s14007_s4 = smov 14  }
  0x1b   :  { %12659 = vmatprep.subr.bf16.mxu1 %v12975_v35  ;;  %450 = vmatprep.subr.bf16.mxu0 %v12977_v44  ;;  %v4812_v6 = vld [vmem:[%s14137_s11] sm:$0xff]  ;;  %v12993_v8 = vld [vmem:[%s14059_s18 + $0x1c] ss:$12 sps:$4 sm:$0xff]   ;;  %v244_v20 = vld [vmem:[#allocation2 + $0x30] sm:$0xff]  ;;  %s15276_s3 = sld [smem:[%s16742_s0 + %s14006_s1]]   ;;  %s14009_s8 = smov 21  }
  0x1c   :  { %1117 = vperm.xlu1 %12959, %v1002_v16   ;;  %1112 = vperm.xlu0 %12958, %v1001_v18   ;;  %v14165_v4 = vld [vmem:[#allocation2 + $0x60] sm:$0x3]  ;;  %v12998_v9 = vld [vmem:[%s14059_s18 + $0x8] ss:$12 sps:$4 sm:$0xff]   ;;  %v12991_v12 = vld [vmem:[%s14059_s18 + $0x18] ss:$12 sps:$4 sm:$0xff]   ;;  %s11431_s7 = sld [smem:[%s16742_s0 + %s14007_s4]]  }
  0x1d   :  { %1014 = vst.msk [vmem:[#allocation2 + $0x61] ss:$8 sm:$0x7] %vm14126_vm4, %v13985_v1  ;;  %v7311_v10 = vld [vmem:[%s14153_s15] sm:$0xff]  ;;  %v243_v23 = vld [vmem:[#allocation2 + $0x18] sm:$0xff]  ;;  %s15570_s11 = sld [smem:[%s16742_s0 + %s14009_s8]]   ;;  %s14010_s12 = smov 22  }
  0x1e   :  { %12660 = vmatpush3.bf16.msra.mxu1 %v12975_v35  ;;  %451 = vmatpush1.bf16.msra.mxu0 %v11467_v51  ;;  %v7310_v11 = vld [vmem:[%s14158_s20] sm:$0xff]  ;;  %v13005_v31 = vld [vmem:[%s14059_s18 + $0x13c] ss:$12 sps:$4 sm:$0xff]   ;;  %s15671_s15 = sld [smem:[%s16742_s0 + %s14010_s12]]   ;;  %s14011_s16 = smov 18  }
  0x1f   :  { %12665 = vmatprep.subr.bf16.mxu1 %v12982_v46  ;;  %630 = vmatprep.subr.bf16.mxu0 %v12981_v53  ;;  %v12997_v13 = vld [vmem:[%s14059_s18 + $0x4] ss:$12 sps:$4 sm:$0xff]   ;;  %v12995_v17 = vld [vmem:[%s14059_s18] ss:$12 sps:$4 sm:$0xff]   ;;  %v13010_v42 = vld [vmem:[%s14059_s18 + $0x128] ss:$12 sps:$4 sm:$0xff]   ;;  %s11435_s20 = sld [smem:[%s16742_s0 + %s14011_s16]]  }
  0x20   :  { %1138 = vperm.xlu1 %12959, %v1004_v22   ;;  %1134 = vperm.xlu0 %12958, %v1003_v24   ;;  %v13002_v14 = vld [vmem:[%s14059_s18 + $0x158] ss:$12 sps:$4 sm:$0xff]   ;;  %v13001_v18 = vld [vmem:[%s14059_s18 + $0x154] ss:$12 sps:$4 sm:$0xff]   ;;  %v245_v22 = vld [vmem:[#allocation2 + $0x48] sm:$0xff]  ;;  %s14012_s21 = smov 25  }
  0x21   :  { %12662 = vmatmul.mubr.msk.bf16.vlgmr.msra.gmra.mxu1 %vm237_vm3, %v329_v50  ;;  %11482 = vmatmul.mubr.msk.bf16.vlgmr.msra.gmra.mxu0 %vm237_vm3, %v14092_v32  ;;  %v8240_v15 = vld [vmem:[%s11449_s24] sm:$0xff]  ;;  %v13013_v53 = vld [vmem:[%s14059_s18 + $0x10c] ss:$12 sps:$4 sm:$0xff]   ;;  %s15827_s24 = sld [smem:[%s16742_s0 + %s14012_s21]]   ;;  %s14013_s25 = smov 23  }
  0x22   :  { %12666 = vmatpush3.bf16.msra.mxu1 %v12982_v46  ;;  %631 = vmatpush1.bf16.msra.mxu0 %v12979_v58  ;;  %v8239_v16 = vld [vmem:[%s11448_s28] sm:$0xff]  ;;  %s11440_s28 = sld [smem:[%s16742_s0 + %s14013_s25]]   ;;  %s14014_s29 = smov 24  }
  0x23   :  { %12667 = vmatprep.subr.bf16.mxu1 %v12986_v54  ;;  %632 = vmatprep.subr.bf16.mxu0 %v12985_v59  ;;  %v13006_v32 = vld [vmem:[%s14059_s18 + $0x140] ss:$12 sps:$4 sm:$0xff]   ;;  %v13003_v38 = vld [vmem:[%s14059_s18 + $0x138] ss:$12 sps:$4 sm:$0xff]   ;;  %v13011_v59 = vld [vmem:[%s14059_s18 + $0x108] ss:$12 sps:$4 sm:$0xff]  }
  0x24   :  { %1146 = vperm.xlu1 %12959, %v1006_v33   ;;  %1142 = vperm.xlu0 %12958, %v1005_v34   ;;  %v246_v35 = vld [vmem:[#allocation2] sm:$0xfc]  ;;  %s14016_s6 = smov 26   ;;  %s14017_s10 = smov 33  }
  0x25   :  { %478 = vmatprep.mubr.bf16.mxu0 %v13983_v0  ;;  %v13009_v41 = vld [vmem:[%s14059_s18 + $0x124] ss:$12 sps:$4 sm:$0xff]   ;;  %s14018_s14 = smov 34   ;;  %s14019_s19 = smov 30  }
  0x26   :  { %12668 = vmatpush3.bf16.msra.mxu1 %v12986_v54  ;;  %633 = vmatpush1.bf16.msra.mxu0 %v12983_v63  ;;  %s14020_s23 = smov 35   ;;  %s14021_s27 = smov 36  }
  0x27   :  { %12669 = vmatprep.subr.bf16.mxu1 %v12990_v60  ;;  %634 = vmatprep.subr.bf16.mxu0 %v12989_v2  ;;  %v13675_v52 = vld [vmem:[%s15827_s24 + $0x48] ss:$12 sps:$4 sm:$0xff]   ;;  %s14022_s1 = smov 37   ;;  %s14023_s4 = smov 39  }
  0x28   :  { %3868 = vperm.xlu1 %12959, %v3819_v48   ;;  %3863 = vperm.xlu0 %12958, %v3818_v49   ;;  %v13007_v49 = vld [vmem:[%s14059_s18 + $0x120] ss:$12 sps:$4 sm:$0xff]   ;;  %s14024_s8 = smov 38   ;;  %s14025_s12 = smov 48  }
  0x29   :  { %11483 = vmatmul.mubr.msk.bf16.gmra.mxu0 %vm237_vm3, %v329_v50  ;;  %s14026_s16 = smov 40   ;;  %s14027_s21 = smov 42  }
  0x2a   :  { %12670 = vmatpush3.bf16.msra.mxu1 %v12990_v60  ;;  %635 = vmatpush1.bf16.msra.mxu0 %v12987_v7  ;;  %v13014_v60 = vld [vmem:[%s14059_s18 + $0x110] ss:$12 sps:$4 sm:$0xff]   ;;  %s14028_s25 = smov 44  }
  0x2b   :  { %12671 = vmatprep.subr.bf16.mxu1 %v12994_v3  ;;  %636 = vmatprep.subr.bf16.mxu0 %v12993_v8  ;;  %v13015_v7 = vld [vmem:[%s14059_s18 + $0xf0] ss:$12 sps:$4 sm:$0xff]   ;;  %v13021_v8 = vld [vmem:[%s14193_s2 + $0x28c] ss:$12 sps:$4 sm:$0xff]  }
  0x2c   :  { %3881 = vperm.xlu1 %12959, %v3821_v56   ;;  %3877 = vperm.xlu0 %12958, %v3820_v57  }
  0x2d   :  { %656 = vmatprep.mubr.bf16.mxu0 %v13983_v0 }
  0x2e   :  { %12672 = vmatpush3.bf16.msra.mxu1 %v12994_v3  ;;  %637 = vmatpush1.bf16.msra.mxu0 %v12991_v12  ;;  %v13017_v3 = vld [vmem:[%s14059_s18 + $0xf4] ss:$12 sps:$4 sm:$0xff]  }
  0x2f   :  { %12673 = vmatprep.subr.bf16.mxu1 %v12998_v9  ;;  %638 = vmatprep.subr.bf16.mxu0 %v12997_v13  ;;  %v13022_v13 = vld [vmem:[%s14193_s2 + $0x270] ss:$12 sps:$4 sm:$0xff]  }
  0x30   :  { %4870 = vperm.xlu1 %12959, %v4811_v61   ;;  %4865 = vperm.xlu0 %12958, %v4810_v62  }
  0x32   :  { %12674 = vmatpush3.bf16.msra.mxu1 %v12998_v9  ;;  %639 = vmatpush1.bf16.msra.mxu0 %v12995_v17  ;;  %v13028_v17 = vld [vmem:[%s14193_s2 + $0x240] ss:$12 sps:$4 sm:$0xff]  }
  0x33   :  { %12679 = vmatprep.subr.bf16.mxu1 %v13002_v14  ;;  %850 = vmatprep.subr.bf16.mxu0 %v13001_v18  ;;  %v13033_v18 = vld [vmem:[%s14193_s2 + $0x22c] ss:$12 sps:$4 sm:$0xff]  }
  0x34   :  { %4885 = vperm.xlu1 %12959, %v4813_v5   ;;  %4881 = vperm.xlu0 %12958, %v4812_v6   ;;  %v13018_v5 = vld [vmem:[%s14059_s18 + $0xf8] ss:$12 sps:$4 sm:$0xff]   ;;  %s13999_s18 = smov 2  }
  0x35   :  { %s11419_s5 = sld [smem:[%s16742_s0 + %s13999_s18]]   ;;  %s14015_s18 = smov 29  }
  0x38   :  { %7342 = vperm.xlu1 %12959, %v7311_v10   ;;  %7335 = vperm.xlu0 %12958, %v7310_v11   ;;  %v13019_v10 = vld [vmem:[%s14193_s2 + $0x288] ss:$12 sps:$4 sm:$0xff]  }
  0x39   :  { %v13024_v11 = vld [vmem:[%s14193_s2 + $0x274] ss:$12 sps:$4 sm:$0xff]  }
  0x3c   :  { %8279 = vperm.xlu1 %12959, %v8240_v15   ;;  %8271 = vperm.xlu0 %12958, %v8239_v16   ;;  %v13025_v15 = vld [vmem:[%s14193_s2 + $0x258] ss:$12 sps:$4 sm:$0xff]  }
  0x3d   :  { %v13030_v16 = vld [vmem:[%s14193_s2 + $0x244] ss:$12 sps:$4 sm:$0xff]  }
  0x83   :  { %v261_v19 = vpop.permute.xlu1 %260  ;;  %v251_v21 = vpop.permute.xlu0 %250 }
  0x84   :  { %v270_v27 = vmul.f32 %v261_v19, %v244_v20  ;;  %v268_v28 = vmul.f32 %v251_v21, %v14132_v55  ;;  %v13031_v19 = vld [vmem:[%s14193_s2 + $0x228] ss:$12 sps:$4 sm:$0xff]   ;;  %v13034_v21 = vld [vmem:[%s14193_s2 + $0x210] ss:$12 sps:$4 sm:$0xff]  }
  0x87   :  { %v266_v24 = vpop.permute.xlu1 %265  ;;  %v256_v25 = vpop.permute.xlu0 %255 }
  0x88   :  { %v271_v29 = vmul.f32 %v266_v24, %v245_v22  ;;  %v269_v30 = vmul.f32 %v256_v25, %v243_v23  ;;  %v13042_v24 = vld [vmem:[%s14193_s2 + $0x1e4] ss:$12 sps:$4 sm:$0xff]   ;;  %v13040_v25 = vld [vmem:[%s14193_s2 + $0x1e0] ss:$12 sps:$4 sm:$0xff]  }
  0x8a   :  { %v307_v33 = vpack.c.bf16 %v271_v29, %v270_v27  ;;  %v306_v34 = vpack.c.bf16 %v269_v30, %v268_v28  ;;  %v13043_v27 = vld [vmem:[%s14193_s2 + $0x348] ss:$12 sps:$4 sm:$0xff]   ;;  %v13046_v29 = vld [vmem:[%s14193_s2 + $0x330] ss:$12 sps:$4 sm:$0xff]  }
  0x8b   :  { %v279_v36 = vpop.permute.xlu1 %278  ;;  %v275_v37 = vpop.permute.xlu0 %274  ;;  %v13048_v28 = vld [vmem:[%s14193_s2 + $0x334] ss:$12 sps:$4 sm:$0xff]   ;;  %v13051_v30 = vld [vmem:[%s14193_s2 + $0x31c] ss:$12 sps:$4 sm:$0xff]  }
  0x8c   :  { %v290_v39 = vrot.slane %v279_v36, 6  ;;  %v289_v40 = vrot.slane %v275_v37, 6  ;;  %11501 = vmatmul.mubr.msk.bf16.vlgmr.msra.gmra.mxu0 %vm237_vm3, %v306_v34  ;;  %12675 = vmatprep.mubr.msk.bf16.mxu1 %vm237_vm3, %v306_v34  ;;  %v13057_v34 = vld [vmem:[%s14193_s2 + $0x2ec] ss:$12 sps:$4 sm:$0xff]   ;;  %v13055_v36 = vld [vmem:[%s14193_s2 + $0x2e8] ss:$12 sps:$4 sm:$0xff]  }
  0x8d   :  { %851 = vmatpush1.bf16.msra.mxu0 %v12999_v26  ;;  %12676 = vmatmul.mubr.msk.bf16.vlgmr.msra.gmra.mxu1 %vm237_vm3, %v307_v33  ;;  %v13045_v26 = vld [vmem:[%s14193_s2 + $0x34c] ss:$12 sps:$4 sm:$0xff]  }
  0x8e   :  { %v291_v43 = vsel %vm288_vm5, %v289_v40, %v290_v39  ;;  %12680 = vmatpush3.bf16.msra.mxu1 %v13002_v14  ;;  %852 = vmatprep.subr.bf16.mxu0 %v13005_v31  ;;  %v301_v44 = vmul.f32 %v289_v40, %v246_v35  ;;  %v13027_v14 = vld [vmem:[%s14193_s2 + $0x25c] ss:$12 sps:$4 sm:$0xff]   ;;  %v13049_v31 = vld [vmem:[%s14193_s2 + $0x318] ss:$12 sps:$4 sm:$0xff]  }
  0x8f   :  { %v302_v45 = vmul.f32 %v291_v43, %v243_v23  ;;  %v287_v46 = vpop.permute.xlu1 %286  ;;  %v283_v48 = vpop.permute.xlu0 %282  ;;  %12681 = vmatprep.subr.bf16.mxu1 %v13006_v32  ;;  %666 = vmatprep.mubr.bf16.mxu0 %v13983_v0  ;;  %v13037_v23 = vld [vmem:[%s14193_s2 + $0x1f8] ss:$12 sps:$4 sm:$0xff]   ;;  %v13058_v35 = vld [vmem:[%s14193_s2 + $0x3a8] ss:$12 sps:$4 sm:$0xff]   ;;  %v13061_v40 = vld [vmem:[%s14193_s2 + $0x2d0] ss:$12 sps:$4 sm:$0xff]  }
  0x90   :  { %v294_v50 = vrot.slane %v287_v46, 6  ;;  %v292_v51 = vrot.slane %v283_v48, 6  ;;  %v13060_v37 = vld [vmem:[%s14193_s2 + $0x3ac] ss:$12 sps:$4 sm:$0xff]   ;;  %v13072_v43 = vld [vmem:[%s14193_s2 + $0x37c] ss:$12 sps:$4 sm:$0xff]  }
  0x91   :  { %853 = vmatpush1.bf16.msra.mxu0 %v13003_v38  ;;  %v726_v56 = vpack.c.bf16 %v302_v45, %v301_v44  ;;  %v13063_v38 = vld [vmem:[%s14193_s2 + $0x2d4] ss:$12 sps:$4 sm:$0xff]   ;;  %v13067_v44 = vld [vmem:[%s14193_s2 + $0x2b8] ss:$12 sps:$4 sm:$0xff]  }
  0x92   :  { %v293_v54 = vsel %vm288_vm5, %v290_v39, %v292_v51  ;;  %v295_v55 = vsel %vm288_vm5, %v292_v51, %v294_v50  ;;  %12682 = vmatpush3.bf16.msra.mxu1 %v13006_v32  ;;  %854 = vmatprep.subr.bf16.mxu0 %v13009_v41  ;;  %v305_v61 = vmul.f32 %v294_v50, %v14165_v4  ;;  %v13054_v32 = vld [vmem:[%s14193_s2 + $0x304] ss:$12 sps:$4 sm:$0xff]   ;;  %v13066_v39 = vld [vmem:[%s14193_s2 + $0x394] ss:$12 sps:$4 sm:$0xff]  }
  0x93   :  { %v303_v57 = vmul.f32 %v293_v54, %v244_v20  ;;  %v304_v58 = vmul.f32 %v295_v55, %v245_v22  ;;  %12683 = vmatprep.subr.bf16.mxu1 %v13010_v42  ;;  %v753_v63 = vrot.slane %v726_v56, 1  ;;  %v13036_v20 = vld [vmem:[%s14193_s2 + $0x214] ss:$12 sps:$4 sm:$0xff]   ;;  %v13039_v22 = vld [vmem:[%s14193_s2 + $0x1fc] ss:$12 sps:$4 sm:$0xff]  }
  0x94   :  { %11502 = vmatmul.mubr.msk.bf16.gmra.mxu0 %vm237_vm3, %v307_v33  ;;  %v728_v6 = vpack.c.bf16 %v305_v61, %v305_v61  ;;  %v13052_v33 = vld [vmem:[%s14193_s2 + $0x300] ss:$12 sps:$4 sm:$0xff]   ;;  %v13064_v41 = vld [vmem:[%s14193_s2 + $0x390] ss:$12 sps:$4 sm:$0xff]   ;;  %v13070_v45 = vld [vmem:[%s14193_s2 + $0x378] ss:$12 sps:$4 sm:$0xff]  }
  0x95   :  { %v727_v62 = vpack.c.bf16 %v304_v58, %v303_v57  ;;  %855 = vmatpush1.bf16.msra.mxu0 %v13007_v49  ;;  %876 = vmatprep.mubr.bf16.mxu0 %v13983_v0  ;;  %v13075_v46 = vld [vmem:[%s14193_s2 + $0x2a4] ss:$12 sps:$4 sm:$0xff]   ;;  %v13073_v49 = vld [vmem:[%s14193_s2 + $0x2a0] ss:$12 sps:$4 sm:$0xff]  }
  0x96   :  { %12684 = vmatpush3.bf16.msra.mxu1 %v13010_v42  ;;  %856 = vmatprep.subr.bf16.mxu0 %v13013_v53  ;;  %v756_v9 = vrot.slane %v728_v6, 1  ;;  %v13069_v42 = vld [vmem:[%s14193_s2 + $0x2bc] ss:$12 sps:$4 sm:$0xff]   ;;  %v13078_v48 = vld [vmem:[%s14193_s2 + $0x364] ss:$12 sps:$4 sm:$0xff]  }
  0x97   :  { %12685 = vmatprep.subr.bf16.mxu1 %v13014_v60  ;;  %v754_v2 = vrot.slane %v727_v62, 1  ;;  %v13076_v50 = vld [vmem:[%s14193_s2 + $0x360] ss:$12 sps:$4 sm:$0xff]   ;;  %v13079_v51 = vld [vmem:[%s14193_s2 + $0x350] ss:$12 sps:$4 sm:$0xff]  }
  0x98   :  { %v13082_v53 = vld [vmem:[%s14193_s2 + $0xac] ss:$12 sps:$4 sm:$0xff]  }
  0x99   :  { %857 = vmatpush1.bf16.msra.mxu0 %v13011_v59  ;;  %v755_v4 = vsel %vm752_vm6, %v753_v63, %v754_v2  ;;  %v757_v12 = vsel %vm752_vm6, %v754_v2, %v756_v9  ;;  %v14280_v2 = vpop.permute.xlu1 %1107 }
  0x9a   :  { %12686 = vmatpush3.bf16.msra.mxu1 %v13014_v60  ;;  %12689 = vmatprep.mubr.msk.bf16.mxu1 %vm237_vm3, %v755_v4 }
  0x9b   :  { %858 = vmatprep.subr.bf16.mxu0 %v13017_v3  ;;  %12687 = vmatprep.subr.bf16.mxu1 %v13018_v5 }
  0x9d   :  { %859 = vmatpush1.bf16.msra.mxu0 %v13015_v7  ;;  %v14284_v9 = vpop.permute.xlu1 %1117 }
  0x9e   :  { %12688 = vmatpush3.bf16.msra.mxu1 %v13018_v5  ;;  %1673 = vmatprep.subr.bf16.mxu0 %v13021_v8  ;;  %v14282_v5 = vpop.permute.xlu0 %1102 }
  0x9f   :  { %1734 = vmatprep.subr.bf16.mxu1 %v13060_v37 }
  0xa0   :  { %11520 = vmatmul.mubr.msk.bf16.vlgmr.msra.gmra.mxu0 %vm237_vm3, %v755_v4 }
  0xa1   :  { %12690 = vmatmul.mubr.msk.bf16.vlgmr.msra.gmra.mxu1 %vm237_vm3, %v757_v12  ;;  %886 = vmatprep.mubr.bf16.mxu0 %v13983_v0 }
  0xa2   :  { %1674 = vmatpush1.bf16.msra.mxu0 %v13019_v10  ;;  %1758 = vmatprep.mubr.bf16.mxu1 %v13983_v0 }
  0xa3   :  { %1675 = vmatprep.subr.bf16.mxu0 %v13024_v11  ;;  %1735 = vmatpush1.bf16.msra.mxu1 %v13058_v35  ;;  %v14286_v11 = vpop.permute.xlu0 %1112 }
  0xa4   :  { %1736 = vmatprep.subr.bf16.mxu1 %v13066_v39 }
  0xa6   :  { %1676 = vmatpush1.bf16.msra.mxu0 %v13022_v13 }
  0xa7   :  { %1677 = vmatprep.subr.bf16.mxu0 %v13027_v14  ;;  %1737 = vmatpush1.bf16.msra.mxu1 %v13064_v41 }
  0xa8   :  { %11521 = vmatmul.mubr.msk.bf16.gmra.mxu0 %vm237_vm3, %v757_v12  ;;  %1738 = vmatprep.subr.bf16.mxu1 %v13072_v43 }
  0xaa   :  { %1678 = vmatpush1.bf16.msra.mxu0 %v13025_v15  ;;  %v960_v15 = vshrl.u32 %v959_v47, 7 }
  0xab   :  { %1679 = vmatprep.subr.bf16.mxu0 %v13030_v16  ;;  %1739 = vmatpush1.bf16.msra.mxu1 %v13070_v45 }
  0xac   :  { %1740 = vmatprep.subr.bf16.mxu1 %v13078_v48 }
  0xae   :  { %1680 = vmatpush1.bf16.msra.mxu0 %v13028_v17  ;;  %v14294_v17 = vpop.permute.xlu1 %1138 }
  0xaf   :  { %1681 = vmatprep.subr.bf16.mxu0 %v13033_v18  ;;  %1741 = vmatpush1.bf16.msra.mxu1 %v13076_v50  ;;  %v1135_v18 = vpop.permute.xlu0 %1134 }
  0xb0   :  { %12336 = vmatprep.subr.bf16.mxu1 %v13079_v51 }
  0xb2   :  { %1682 = vmatpush1.bf16.msra.mxu0 %v13031_v19 }
  0xb3   :  { %1683 = vmatprep.subr.bf16.mxu0 %v13036_v20 }
  0xb6   :  { %1684 = vmatpush1.bf16.msra.mxu0 %v13034_v21  ;;  %v14298_v21 = vsub.s32 0, %v960_v15 }
  0xb7   :  { %1685 = vmatprep.subr.bf16.mxu0 %v13039_v22  ;;  %v206_v22 = vld [vmem:[%s11419_s5] sm:$0x7]  ;;  %s15985_s5 = sld [smem:[%s16742_s0 + %s14015_s18]]   ;;  %s14030_s18 = smov 46  }
  0xba   :  { %1686 = vmatpush1.bf16.msra.mxu0 %v13037_v23  ;;  %v14300_v23 = vsub.s32 2, %v960_v15 }
  0xbb   :  { %1687 = vmatprep.subr.bf16.mxu0 %v13042_v24  ;;  %v14302_v24 = vsub.s32 1, %v960_v15 }
  0xbc   :  { %v970_v35 = vrot.slane %v206_v22, %v14300_v23 }
  0xbe   :  { %1688 = vmatpush1.bf16.msra.mxu0 %v13040_v25  ;;  %v1147_v25 = vpop.permute.xlu1 %1146 }
  0xbf   :  { %1689 = vmatprep.subr.bf16.mxu0 %v13045_v26 }
  0xc2   :  { %1690 = vmatpush2.bf16.msra.mxu0 %v13043_v27  ;;  %v14304_v27 = vpop.permute.xlu0 %1142 }
  0xc3   :  { %1691 = vmatprep.subr.bf16.mxu0 %v13048_v28  ;;  %v1151_v41 = vrot.slane %v14304_v27, 6 }
  0xc6   :  { %1692 = vmatpush2.bf16.msra.mxu0 %v13046_v29 }
  0xc7   :  { %1693 = vmatprep.subr.bf16.mxu0 %v13051_v30  ;;  %v14307_v30 = vrot.slane %v206_v22, %v14298_v21 }
  0xca   :  { %1694 = vmatpush2.bf16.msra.mxu0 %v13049_v31  ;;  %v1149_v31 = vrot.slane %v14294_v17, 6 }
  0xcb   :  { %1695 = vmatprep.subr.bf16.mxu0 %v13054_v32  ;;  %v14310_v32 = vrot.slane %v1135_v18, 6 }
  0xce   :  { %1696 = vmatpush2.bf16.msra.mxu0 %v13052_v33 }
  0xcf   :  { %1697 = vmatprep.subr.bf16.mxu0 %v13057_v34 }
  0xd2   :  { %1698 = vmatpush2.bf16.msra.mxu0 %v13055_v36  ;;  %v14313_v36 = vrot.slane %v1147_v25, 6 }
  0xd3   :  { %1699 = vmatprep.subr.bf16.mxu0 %v13063_v38 }
  0xd6   :  { %1700 = vmatpush2.bf16.msra.mxu0 %v13061_v40  ;;  %v14316_v40 = vrot.slane %v206_v22, %v14302_v24  ;;  %v13455_v22 = vld [vmem:[%s15276_s3 + $0x248] ss:$12 sps:$4 sm:$0xff]  }
  0xd7   :  { %1701 = vmatprep.subr.bf16.mxu0 %v13069_v42 }
  0xda   :  { %1702 = vmatpush2.bf16.msra.mxu0 %v13067_v44 }
  0xdb   :  { %1703 = vmatprep.subr.bf16.mxu0 %v13075_v46 }
  0xde   :  { %1704 = vmatpush2.bf16.msra.mxu0 %v13073_v49 }
  0xdf   :  { %2203 = vmatprep.subr.bf16.mxu0 %v13082_v53 }
  0xe1   :  { %v470_v54 = vpop.f32.mrf.mxu0  ;;  %v12663_v61 = vpop.f32.mrf.mxu1 }
  0xe3   :  { %v472_v55 = vpop.f32.mrf.mxu0  ;;  %v523_v63 = vpop.f32.mrf.mxu1 }
  0xe5   :  { %v474_v56 = vpop.f32.mrf.mxu0  ;;  %v12664_v6 = vpop.f32.mrf.mxu1 }
  0xe7   :  { %v14270_v57 = vpop.f32.mrf.mxu0  ;;  %v526_v8 = vpop.f32.mrf.mxu1 }
  0xe9   :  { %v14272_v58 = vpop.f32.mrf.mxu0 }
  0xeb   :  { %v14274_v59 = vpop.f32.mrf.mxu0 }
  0xed   :  { %v14276_v60 = vpop.f32.mrf.mxu0 }
  0xef   :  { %v14278_v62 = vpop.f32.mrf.mxu0 }
 0x14c   :  { %v658_v3 = vpop.f32.mrf.mxu0 }
 0x14d   :  { %v12677_v12 = vpop.f32.mrf.mxu1  ;;  %v659_v28 = vadd.f32 %v658_v3, %v470_v54 }
 0x14e   :  { %v660_v4 = vpop.f32.mrf.mxu0  ;;  %v720_v33 = vadd.f32 %v12677_v12, %v12663_v61 }
 0x14f   :  { %v711_v16 = vpop.f32.mrf.mxu1  ;;  %v661_v37 = vadd.f32 %v660_v4, %v472_v55 }
 0x150   :  { %v662_v7 = vpop.f32.mrf.mxu0  ;;  %v712_v42 = vadd.f32 %v711_v16, %v523_v63 }
 0x151   :  { %v12678_v20 = vpop.f32.mrf.mxu1  ;;  %v663_v45 = vadd.f32 %v662_v7, %v474_v56 }
 0x152   :  { %v664_v10 = vpop.f32.mrf.mxu0  ;;  %v723_v50 = vadd.f32 %v12678_v20, %v12664_v6 }
 0x153   :  { %v714_v29 = vpop.f32.mrf.mxu1  ;;  %v665_v55 = vadd.f32 %v664_v10, %v14270_v57 }
 0x154   :  { %v668_v13 = vpop.f32.mrf.mxu0  ;;  %v715_v4 = vadd.f32 %v714_v29, %v526_v8 }
 0x155   :  { %v669_v7 = vadd.f32 %v668_v13, %v14272_v58 }
 0x156   :  { %v14291_v14 = vpop.f32.mrf.mxu0 }
 0x157   :  { %v671_v47 = vadd.f32 %v14291_v14, %v14274_v59 }
 0x158   :  { %v14296_v19 = vpop.f32.mrf.mxu0 }
 0x15a   :  { %v674_v26 = vpop.f32.mrf.mxu0 }
 0x160   :  { %v878_v34 = vpop.f32.mrf.mxu0 }
 0x161   :  { %v946_v38 = vadd.f32 %v878_v34, %v659_v28  ;;  %v12691_v39 = vpop.f32.mrf.mxu1 }
 0x162   :  { %v954_v43 = vadd.f32 %v12691_v39, %v720_v33  ;;  %v880_v44 = vpop.f32.mrf.mxu0 }
 0x163   :  { %v14320_v46 = vadd.f32 %v14307_v30, %v946_v38  ;;  %v947_v48 = vadd.f32 %v880_v44, %v661_v37  ;;  %v931_v49 = vpop.f32.mrf.mxu1  ;;  %v673_v44 = vadd.f32 %v14296_v19, %v14276_v60 }
 0x164   :  { %v14322_v51 = vadd.f32 %v970_v35, %v954_v43  ;;  %v948_v53 = vadd.f32 %v931_v49, %v712_v42  ;;  %v882_v54 = vpop.f32.mrf.mxu0 }
 0x165   :  { %v986_v61 = vmax.f32 %v14320_v46, 0.0  ;;  %v975_v63 = vadd.f32 %v14316_v40, %v947_v48  ;;  %v949_v3 = vadd.f32 %v882_v54, %v663_v45  ;;  %v12692_v56 = vpop.f32.mrf.mxu1  ;;  %v675_v45 = vadd.f32 %v674_v26, %v14278_v62  ;;  %v13083_v54 = vld [vmem:[%s14193_s2 + $0x290] ss:$12 sps:$4 sm:$0xff]  }
 0x166   :  { %v976_v12 = vadd.f32 %v970_v35, %v948_v53  ;;  %v957_v15 = vadd.f32 %v12692_v56, %v723_v50  ;;  %v884_v16 = vpop.f32.mrf.mxu0  ;;  %v994_v8 = vmax.f32 %v14322_v51, 0.0 }
 0x167   :  { %v14330_v6 = vrot.slane %v986_v61, 7  ;;  %v987_v18 = vmax.f32 %v975_v63, 0.0  ;;  %v977_v20 = vadd.f32 %v14307_v30, %v949_v3  ;;  %v950_v57 = vadd.f32 %v884_v16, %v665_v55  ;;  %v934_v10 = vpop.f32.mrf.mxu1 }
 0x168   :  { %v988_v58 = vmax.f32 %v976_v12, 0.0  ;;  %v14339_v13 = vadd.f32 %v970_v35, %v957_v15  ;;  %v951_v25 = vadd.f32 %v934_v10, %v715_v4  ;;  %v888_v28 = vpop.f32.mrf.mxu0  ;;  %v1041_v50 = vrot.slane %v994_v8, 7 }
 0x169   :  { %1064 = vst [vmem:[#allocation2] sm:$0xfe] %v14330_v6  ;;  %v1029_v29 = vrot.slane %v987_v18, 7  ;;  %v989_v33 = vmax.f32 %v977_v20, 0.0  ;;  %v978_v34 = vadd.f32 %v14316_v40, %v950_v57  ;;  %v952_v37 = vadd.f32 %v888_v28, %v669_v7  ;;  %v13084_v7 = vld [vmem:[%s14193_s2 + $0x338] ss:$12 sps:$4 sm:$0xff]  }
 0x16a   :  { %v1030_v38 = vrot.slane %v988_v58, 7  ;;  %v997_v39 = vmax.f32 %v14339_v13, 0.0  ;;  %v979_v42 = vadd.f32 %v970_v35, %v951_v25  ;;  %v890_v43 = vpop.f32.mrf.mxu0  ;;  %v13080_v28 = vld [vmem:[%s14193_s2 + $0xa8] ss:$12 sps:$4 sm:$0xff]   ;;  %v13093_v13 = vld [vmem:[%s14193_s2 + $0x260] ss:$12 sps:$4 sm:$0xff]  }
 0x16b   :  { %1065 = vst [vmem:[#allocation2 + $0x8] sm:$0xfe] %v1029_v29  ;;  %v990_v48 = vmax.f32 %v978_v34, 0.0  ;;  %v14350_v49 = vadd.f32 %v14307_v30, %v952_v37  ;;  %v953_v35 = vadd.f32 %v890_v43, %v671_v47  ;;  %v14357_v60 = vrot.slane %v989_v33, 7  ;;  %v13087_v37 = vld [vmem:[%s14193_s2 + $0x94] ss:$12 sps:$4 sm:$0xff]  }
 0x16c   :  { %1067 = vst.msk [vmem:[#allocation2 + $0x10] sm:$0xfe] %vm1066_vm7, %v1030_v38  ;;  %v1047_v59 = vrot.slane %v997_v39, 7  ;;  %v991_v14 = vmax.f32 %v979_v42, 0.0  ;;  %v892_v53 = vpop.f32.mrf.mxu0  ;;  %v13088_v47 = vld [vmem:[%s14193_s2 + $0x278] ss:$12 sps:$4 sm:$0xff]   ;;  %v14412_v42 = vsel %vm288_vm5, %v1149_v31, %v1151_v41  ;;  %v14428_v17 = vpack.c.bf16 %v997_v39, %v994_v8 }
 0x16d   :  { %v1033_v62 = vrot.slane %v990_v48, 7  ;;  %v992_v19 = vmax.f32 %v14350_v49, 0.0  ;;  %v955_v26 = vadd.f32 %v892_v53, %v673_v44  ;;  %v981_v56 = vadd.f32 %v14316_v40, %v953_v35  ;;  %v13092_v8 = vld [vmem:[%s14193_s2 + $0x7c] ss:$12 sps:$4 sm:$0xff]  }
 0x16e   :  { %v1048_v55 = vsel %vm222_vm1, %v1041_v50, %v1047_v59  ;;  %1081 = vst.msk [vmem:[#allocation2 + $0x70] sm:$0x1] %vm1080_vm8, %v1047_v59  ;;  %v1035_v63 = vrot.slane %v991_v14, 7  ;;  %v14363_v3 = vpack.c.bf16 %v991_v14, %v988_v58  ;;  %v894_v4 = vpop.f32.mrf.mxu0  ;;  %v14379_v25 = vpack.c.bf16 %v990_v48, %v987_v18  ;;  %v13094_v14 = vld [vmem:[%s14193_s2 + $0x308] ss:$12 sps:$4 sm:$0xff]  }
 0x16f   :  { %1077 = vst.msk [vmem:[#allocation2 + $0x58] sm:$0xff] %vm1070_vm9, %v1048_v55  ;;  %v14369_v12 = vsel %vm222_vm1, %v1029_v29, %v1033_v62  ;;  %v1037_v15 = vrot.slane %v992_v19, 7  ;;  %v14374_v16 = vadd.f32 %v14307_v30, %v955_v26  ;;  %v956_v20 = vadd.f32 %v894_v4, %v675_v45 }
 0x170   :  { %1069 = vst [vmem:[#allocation2 + $0x20] sm:$0xff] %v14369_v12  ;;  %v1036_v57 = vsel %vm222_vm1, %v1030_v38, %v1035_v63  ;;  %v1042_v10 = vsel %vm222_vm1, %v1035_v63, %v1041_v50  ;;  %v993_v58 = vmax.f32 %v981_v56, 0.0  ;;  %11584 = vmatmul.mubr.msk.bf16.vlgmr.msra.gmra.mxu1 %vm1070_vm9, %v14363_v3  ;;  %v14386_v30 = vpack.c.bf16 %v989_v33, %v986_v61  ;;  %v13089_v61 = vld [vmem:[%s14193_s2 + $0x320] ss:$12 sps:$4 sm:$0xff]   ;;  %v13085_v50 = vld [vmem:[%s14193_s2 + $0x90] ss:$12 sps:$4 sm:$0xff]  }
 0x171   :  { %1071 = vst.msk [vmem:[#allocation2 + $0x28] sm:$0xff] %vm1070_vm9, %v1036_v57  ;;  %1074 = vst.msk [vmem:[#allocation2 + $0x40] sm:$0xff] %vm1070_vm9, %v1042_v10  ;;  %v1038_v29 = vsel %vm222_vm1, %v14357_v60, %v1037_v15  ;;  %v995_v34 = vmax.f32 %v14374_v16, 0.0  ;;  %v984_v18 = vadd.f32 %v14316_v40, %v956_v20  ;;  %12337 = vmatpush3.bf16.msra.mxu1 %v13083_v54  ;;  %1768 = vmatprep.mubr.bf16.mxu1 %v13983_v0  ;;  %v14399_v38 = vld [vmem:[#allocation2] sm:$0xff]  ;;  %v13098_v20 = vld [vmem:[%s14193_s2 + $0x248] ss:$12 sps:$4 sm:$0xff]  }
 0x172   :  { %1072 = vst [vmem:[#allocation2 + $0x30] sm:$0xff] %v1038_v29  ;;  %v1039_v46 = vrot.slane %v993_v58, 7  ;;  %1705 = vmatprep.mubr.bf16.mxu0 %v14379_v25  ;;  %12338 = vmatprep.subr.bf16.mxu1 %v13084_v7  ;;  %v1083_v33 = vld [vmem:[#allocation2 + $0x8] sm:$0xff]  ;;  %v14405_v40 = vsel %vm288_vm5, %v14310_v32, %v1149_v31  ;;  %v14422_v48 = vsel %vm288_vm5, %v1151_v41, %v14313_v36  ;;  %v13090_v56 = vld [vmem:[%s14193_s2 + $0x78] ss:$12 sps:$4 sm:$0xff]  }
 0x173   :  { %v1043_v43 = vrot.slane %v995_v34, 7  ;;  %v996_v44 = vmax.f32 %v984_v18, 0.0  ;;  %1706 = vmatmul.mubr.bf16.vlgmr.msra.gmra.mxu0 %v14386_v30  ;;  %3824 = vst.msk [vmem:[#allocation2] ss:$8 sm:$0x3] %vm14334_vm10, %v13985_v1  ;;  %v1166_v59 = vmul.f32 %v14412_v42, %v1038_v29  ;;  %v1126_v39 = vmul.f32 %v14286_v11, %v1038_v29 }
 0x174   :  { %v1095_v45 = vld [vmem:[#allocation2 + $0x8] sm:$0xfc]  ;;  %v14431_v31 = vsel %vm222_vm1, %v1033_v62, %v1039_v46  ;;  %2204 = vmatpush1.bf16.msra.mxu0 %v13080_v28  ;;  %v1121_v35 = vmul.f32 %v14282_v5, %v1083_v33  ;;  %v14453_v54 = vsel %vm222_vm1, %v14330_v6, %v14357_v60  ;;  %v1164_v63 = vmul.f32 %v14405_v40, %v14369_v12  ;;  %v1094_v7 = vld [vmem:[#allocation2] sm:$0xfc]  ;;  %v13099_v10 = vld [vmem:[%s14193_s2 + $0x2f0] ss:$12 sps:$4 sm:$0xff]  }
 0x175   :  { %1073 = vst [vmem:[#allocation2 + $0x38] sm:$0xff] %v14431_v31  ;;  %v1044_v27 = vsel %vm222_vm1, %v1037_v15, %v1043_v43  ;;  %1078 = vst [vmem:[#allocation2 + $0x60] sm:$0x1] %v1043_v43  ;;  %v1045_v41 = vrot.slane %v996_v44, 7  ;;  %2205 = vmatprep.subr.bf16.mxu0 %v13087_v37  ;;  %12339 = vmatpush3.bf16.msra.mxu1 %v13088_v47  ;;  %v14437_v51 = vpack.c.bf16 %v996_v44, %v993_v58  ;;  %v13097_v16 = vld [vmem:[%s14193_s2 + $0x64] ss:$12 sps:$4 sm:$0xff]  }
 0x176   :  { %1075 = vst [vmem:[#allocation2 + $0x48] sm:$0xff] %v1044_v27  ;;  %12340 = vmatprep.subr.bf16.mxu1 %v13089_v61  ;;  %v1129_v53 = vmul.f32 %v14284_v9, %v1044_v27  ;;  %v1169_v62 = vmul.f32 %v14422_v48, %v1044_v27  ;;  %3827 = vst.msk [vmem:[#allocation2 + $0x31] ss:$8 sm:$0x3] %vm14334_vm10, %v13985_v1  ;;  %v1161_v26 = vmul.f32 %v14310_v32, %v1095_v45  ;;  %v13102_v18 = vld [vmem:[%s14193_s2 + $0x4c] ss:$12 sps:$4 sm:$0xff]  }
 0x177   :  { %v14456_v55 = vsel %vm222_vm1, %v1039_v46, %v1045_v41  ;;  %1079 = vst [vmem:[#allocation2 + $0x68] sm:$0x1] %v1045_v41  ;;  %1715 = vmatprep.mubr.bf16.mxu0 %v14437_v51  ;;  %v1124_v6 = vmul.f32 %v14280_v2, %v14369_v12  ;;  %v14472_v15 = vpack.c.bf16 %v995_v34, %v992_v19  ;;  %v13103_v37 = vld [vmem:[%s14193_s2 + $0x230] ss:$12 sps:$4 sm:$0xff]   ;;  %v13104_v61 = vld [vmem:[%s14193_s2 + $0x2d8] ss:$12 sps:$4 sm:$0xff]  }
 0x178   :  { %2206 = vmatpush1.bf16.msra.mxu0 %v13085_v50  ;;  %11585 = vmatmul.mubr.msk.bf16.gmra.mxu1 %vm1070_vm9, %v14428_v17  ;;  %v1170_v60 = vmul.f32 %v14422_v48, %v14456_v55  ;;  %v14468_v4 = vpack.c.bf16 %v1129_v53, %v1126_v39  ;;  %v2410_v57 = vpack.c.bf16 %v1169_v62, %v1166_v59  ;;  %v13100_v50 = vld [vmem:[%s14193_s2 + $0x48] ss:$12 sps:$4 sm:$0xff]   ;;  %v13109_v39 = vld [vmem:[%s14193_s2 + $0x2c0] ss:$12 sps:$4 sm:$0xff]  }
 0x179   :  { %2207 = vmatprep.subr.bf16.mxu0 %v13092_v8  ;;  %12341 = vmatpush3.bf16.msra.mxu1 %v13093_v13  ;;  %v14477_v12 = vpack.c.bf16 %v1124_v6, %v1121_v35  ;;  %v1167_v58 = vmul.f32 %v14412_v42, %v14431_v31  ;;  %v2408_v28 = vpack.c.bf16 %v1164_v63, %v1161_v26  ;;  %v13107_v41 = vld [vmem:[%s14193_s2 + $0x34] ss:$12 sps:$4 sm:$0xff]   ;;  %v13108_v8 = vld [vmem:[%s14193_s2 + $0x218] ss:$12 sps:$4 sm:$0xff]   ;;  %v13105_v35 = vld [vmem:[%s14193_s2 + $0x30] ss:$12 sps:$4 sm:$0xff]  }
 0x17a   :  { %1811 = vmatprep.mubr.bf16.mxu1 %v14379_v25  ;;  %12342 = vmatprep.subr.bf16.mxu1 %v13094_v14  ;;  %v1160_v49 = vmul.f32 %v14310_v32, %v1094_v7  ;;  %v1163_v19 = vmul.f32 %v14405_v40, %v14453_v54  ;;  %v13095_v25 = vld [vmem:[%s14193_s2 + $0x60] ss:$12 sps:$4 sm:$0xff]   ;;  %v2506_v46 = vrot.slane %v2410_v57, 1  ;;  %v13112_v62 = vld [vmem:[%s14193_s2 + $0x1c] ss:$12 sps:$4 sm:$0xff]  }
 0x17b   :  { %1716 = vmatmul.mubr.bf16.gmra.mxu0 %v14472_v15  ;;  %v2411_v29 = vpack.c.bf16 %v1170_v60, %v1167_v58  ;;  %v2508_v33 = vrot.slane %v2408_v28, 1  ;;  %v13113_v26 = vld [vmem:[%s14193_s2 + $0x200] ss:$12 sps:$4 sm:$0xff]   ;;  %v13114_v63 = vld [vmem:[%s14193_s2 + $0x2a8] ss:$12 sps:$4 sm:$0xff]  }
 0x17c   :  { %2208 = vmatpush1.bf16.msra.mxu0 %v13090_v56  ;;  %2235 = vmatprep.mubr.bf16.mxu0 %v14477_v12  ;;  %v1097_v34 = vld [vmem:[#allocation2 + $0x60] sm:$0x3]  ;;  %v2407_v47 = vpack.c.bf16 %v1163_v19, %v1160_v49  ;;  %v13110_v56 = vld [vmem:[%s14193_s2 + $0x18] ss:$12 sps:$4 sm:$0xff]   ;;  %v13118_v60 = vld [vmem:[%s14193_s2 + $0x1e8] ss:$12 sps:$4 sm:$0xff]  }
 0x17d   :  { %2209 = vmatprep.subr.bf16.mxu0 %v13097_v16  ;;  %12343 = vmatpush3.bf16.msra.mxu1 %v13098_v20  ;;  %v14491_v43 = vrot.slane %v2411_v29, 1  ;;  %v1172_v44 = vmul.f32 %v14313_v36, %v1097_v34  ;;  %v13117_v6 = vld [vmem:[%s14193_s2 + $0x4] ss:$12 sps:$4 sm:$0xff]   ;;  %v13115_v16 = vld [vmem:[%s14193_s2] ss:$12 sps:$4 sm:$0xff]  }
 0x17e   :  { %12344 = vmatprep.subr.bf16.mxu1 %v13099_v10  ;;  %v2505_v45 = vrot.slane %v2407_v47, 1  ;;  %v13119_v7 = vld [vmem:[%s14193_s2 + $0x3b0] ss:$12 sps:$4 sm:$0xff]   ;;  %v13122_v20 = vld [vmem:[%s14193_s2 + $0x16c] ss:$12 sps:$4 sm:$0xff]  }
 0x17f   :  { %v14497_v59 = vsel %vm752_vm6, %v2508_v33, %v14491_v43  ;;  %v2413_v27 = vpack.c.bf16 %v1172_v44, %v1172_v44  ;;  %v13123_v57 = vld [vmem:[%s14193_s2 + $0x398] ss:$12 sps:$4 sm:$0xff]   ;;  %v13120_v10 = vld [vmem:[%s14193_s2 + $0x168] ss:$12 sps:$4 sm:$0xff]   ;;  %v13127_v28 = vld [vmem:[%s14193_s2 + $0x380] ss:$12 sps:$4 sm:$0xff]  }
 0x180   :  { %2210 = vmatpush1.bf16.msra.mxu0 %v13095_v25  ;;  %v14502_v13 = vsel %vm752_vm6, %v2505_v45, %v2506_v46  ;;  %v13126_v58 = vld [vmem:[%s14193_s2 + $0x154] ss:$12 sps:$4 sm:$0xff]   ;;  %v13124_v49 = vld [vmem:[%s14193_s2 + $0x150] ss:$12 sps:$4 sm:$0xff]   ;;  %v13140_v29 = vld [vmem:[%s14193_s2 + $0x1cc] ss:$12 sps:$4 sm:$0xff]  }
 0x181   :  { %2211 = vmatprep.subr.bf16.mxu0 %v13102_v18  ;;  %12345 = vmatpush3.bf16.msra.mxu1 %v13103_v37  ;;  %v2514_v14 = vrot.slane %v2413_v27, 1  ;;  %v13130_v19 = vld [vmem:[%s14193_s2 + $0x13c] ss:$12 sps:$4 sm:$0xff]   ;;  %v13134_v25 = vld [vmem:[%s14193_s2 + $0x124] ss:$12 sps:$4 sm:$0xff]  }
 0x182   :  { %12346 = vmatprep.subr.bf16.mxu1 %v13104_v61  ;;  %v13132_v34 = vld [vmem:[%s14193_s2 + $0x120] ss:$12 sps:$4 sm:$0xff]   ;;  %v13152_v61 = vld [vmem:[%s14193_s2 + $0x19c] ss:$12 sps:$4 sm:$0xff]   ;;  %v13150_v45 = vld [vmem:[%s14193_s2 + $0x198] ss:$12 sps:$4 sm:$0xff]  }
 0x183   :  { %v14507_v53 = vsel %vm752_vm6, %v2506_v46, %v2514_v14  ;;  %v13137_v18 = vld [vmem:[%s14193_s2 + $0x10c] ss:$12 sps:$4 sm:$0xff]   ;;  %v13146_v37 = vld [vmem:[%s14193_s2 + $0x1b4] ss:$12 sps:$4 sm:$0xff]   ;;  %v13144_v46 = vld [vmem:[%s14193_s2 + $0x1b0] ss:$12 sps:$4 sm:$0xff]  }
 0x184   :  { %2212 = vmatpush1.bf16.msra.mxu0 %v13100_v50  ;;  %v13143_v47 = vld [vmem:[%s14193_s2 + $0xf4] ss:$12 sps:$4 sm:$0xff]   ;;  %v13141_v33 = vld [vmem:[%s14193_s2 + $0xf0] ss:$12 sps:$4 sm:$0xff]   ;;  %v13147_v50 = vld [vmem:[%s14193_s2 + $0xd8] ss:$12 sps:$4 sm:$0xff]  }
 0x185   :  { %2213 = vmatprep.subr.bf16.mxu0 %v13107_v41  ;;  %12347 = vmatpush3.bf16.msra.mxu1 %v13108_v8  ;;  %v13149_v44 = vld [vmem:[%s14193_s2 + $0xdc] ss:$12 sps:$4 sm:$0xff]   ;;  %v13155_v41 = vld [vmem:[%s14193_s2 + $0xc4] ss:$12 sps:$4 sm:$0xff]   ;;  %v13156_v8 = vld [vmem:[%s14193_s2 + $0x180] ss:$12 sps:$4 sm:$0xff]  }
 0x186   :  { %12348 = vmatprep.subr.bf16.mxu1 %v13109_v39  ;;  %v14549_v27 = vld [vmem:[#allocation2 + $0x28] sm:$0xff]  ;;  %v1084_v39 = vld [vmem:[#allocation2 + $0x10] sm:$0xff] }
 0x187   :  { %v1125_v14 = vmul.f32 %v14280_v2, %v14549_v27 }
 0x188   :  { %2214 = vmatpush1.bf16.msra.mxu0 %v13105_v35  ;;  %v13159_v35 = vld [vmem:[%s14193_s2 + $0x170] ss:$12 sps:$4 sm:$0xff]  }
 0x189   :  { %2215 = vmatprep.subr.bf16.mxu0 %v13112_v62  ;;  %12349 = vmatpush3.bf16.msra.mxu1 %v13113_v26  ;;  %v13153_v62 = vld [vmem:[%s14193_s2 + $0xc0] ss:$12 sps:$4 sm:$0xff]   ;;  %v1120_v26 = vmul.f32 %v14282_v5, %v14399_v38  ;;  %v13160_v38 = vld [vmem:[%s14193_s2 + $0x468] ss:$12 sps:$4 sm:$0xff]  }
 0x18a   :  { %12350 = vmatprep.subr.bf16.mxu1 %v13114_v63  ;;  %v1122_v63 = vmul.f32 %v14282_v5, %v1084_v39  ;;  %v1127_v5 = vmul.f32 %v14286_v11, %v14431_v31  ;;  %v14583_v31 = vld [vmem:[#allocation2 + $0x58] sm:$0xff]  ;;  %v13198_v39 = vld [vmem:[%s14193_s2 + $0x8] ss:$12 sps:$4 sm:$0xff]  }
 0x18c   :  { %2216 = vmatpush1.bf16.msra.mxu0 %v13110_v56  ;;  %v13162_v56 = vld [vmem:[%s14193_s2 + $0x46c] ss:$12 sps:$4 sm:$0xff]  }
 0x18d   :  { %2217 = vmatprep.subr.bf16.mxu0 %v13117_v6  ;;  %12351 = vmatpush3.bf16.msra.mxu1 %v13118_v60  ;;  %v1130_v6 = vmul.f32 %v14284_v9, %v14456_v55  ;;  %v13163_v60 = vld [vmem:[%s14193_s2 + $0xb0] ss:$12 sps:$4 sm:$0xff]   ;;  %v13168_v55 = vld [vmem:[%s14193_s2 + $0x98] ss:$12 sps:$4 sm:$0xff]  }
 0x18e   :  { %12693 = vmatprep.subr.bf16.mxu1 %v13119_v7 }
 0x190   :  { %2218 = vmatpush1.bf16.msra.mxu0 %v13115_v16  ;;  %1812 = vmatmul.mubr.bf16.vlgmr.msra.gmra.mxu1 %v14386_v30  ;;  %v13131_v30 = vld [vmem:[%s14193_s2 + $0x368] ss:$12 sps:$4 sm:$0xff]   ;;  %v14566_v16 = vpack.c.bf16 %v1125_v14, %v1122_v63  ;;  %v13199_v14 = vld [vmem:[%s14193_s2 + $0x1d0] ss:$12 sps:$4 sm:$0xff]  }
 0x191   :  { %2219 = vmatprep.subr.bf16.mxu0 %v13122_v20  ;;  %1819 = vmatprep.mubr.bf16.mxu1 %v14437_v51  ;;  %v13128_v51 = vld [vmem:[%s14193_s2 + $0x138] ss:$12 sps:$4 sm:$0xff]   ;;  %v13200_v63 = vld [vmem:[%s14193_s2 + $0x528] ss:$12 sps:$4 sm:$0xff]  }
 0x192   :  { %12694 = vmatpush3.bf16.msra.mxu1 %v13119_v7  ;;  %v1123_v7 = vmul.f32 %v14280_v2, %v14453_v54  ;;  %v13164_v20 = vld [vmem:[%s14193_s2 + $0x158] ss:$12 sps:$4 sm:$0xff]   ;;  %v13167_v2 = vld [vmem:[%s14193_s2 + $0x454] ss:$12 sps:$4 sm:$0xff]   ;;  %v14579_v54 = vpack.c.bf16 %v1130_v6, %v1127_v5 }
 0x193   :  { %12695 = vmatprep.subr.bf16.mxu1 %v13123_v57  ;;  %v13207_v6 = vld [vmem:[%s14193_s2 + $0x1a0] ss:$12 sps:$4 sm:$0xff]   ;;  %v13214_v5 = vld [vmem:[%s14193_s2 + $0x4e4] ss:$12 sps:$4 sm:$0xff]  }
 0x194   :  { %2220 = vmatpush2.bf16.msra.mxu0 %v13120_v10  ;;  %v14574_v10 = vpack.c.bf16 %v1123_v7, %v1120_v26  ;;  %v13203_v26 = vld [vmem:[%s14193_s2 + $0x1b8] ss:$12 sps:$4 sm:$0xff]   ;;  %v13210_v7 = vld [vmem:[%s14193_s2 + $0x4fc] ss:$12 sps:$4 sm:$0xff]  }
 0x195   :  { %2221 = vmatprep.subr.bf16.mxu0 %v13126_v58 }
 0x196   :  { %12696 = vmatpush3.bf16.msra.mxu1 %v13123_v57  ;;  %v14572_v57 = vld [vmem:[#allocation2 + $0x40] sm:$0xff] }
 0x197   :  { %12697 = vmatprep.subr.bf16.mxu1 %v13127_v28  ;;  %v1128_v58 = vmul.f32 %v14286_v11, %v14572_v57  ;;  %v13174_v11 = vld [vmem:[%s14193_s2 + $0x128] ss:$12 sps:$4 sm:$0xff]  }
 0x198   :  { %2222 = vmatpush2.bf16.msra.mxu0 %v13124_v49  ;;  %1820 = vmatmul.mubr.bf16.gmra.mxu1 %v14472_v15  ;;  %v13138_v15 = vld [vmem:[%s14193_s2 + $0x1c8] ss:$12 sps:$4 sm:$0xff]   ;;  %v13165_v49 = vld [vmem:[%s14193_s2 + $0x450] ss:$12 sps:$4 sm:$0xff]  }
 0x199   :  { %2223 = vmatprep.subr.bf16.mxu0 %v13130_v19  ;;  %12701 = vmatprep.mubr.msk.bf16.mxu1 %vm1070_vm9, %v14363_v3  ;;  %v13135_v3 = vld [vmem:[%s14193_s2 + $0x108] ss:$12 sps:$4 sm:$0xff]   ;;  %v1131_v19 = vmul.f32 %v14284_v9, %v14583_v31 }
 0x19a   :  { %12698 = vmatpush3.bf16.msra.mxu1 %v13127_v28  ;;  %v13169_v28 = vld [vmem:[%s14193_s2 + $0x140] ss:$12 sps:$4 sm:$0xff]   ;;  %v13178_v9 = vld [vmem:[%s14193_s2 + $0x68] ss:$12 sps:$4 sm:$0xff]  }
 0x19b   :  { %12699 = vmatprep.subr.bf16.mxu1 %v13131_v30 }
 0x19c   :  { %2224 = vmatpush2.bf16.msra.mxu0 %v13128_v51  ;;  %v13173_v51 = vld [vmem:[%s14193_s2 + $0x80] ss:$12 sps:$4 sm:$0xff]  }
 0x19d   :  { %2225 = vmatprep.subr.bf16.mxu0 %v13134_v25  ;;  %v14595_v25 = vpack.c.bf16 %v1131_v19, %v1128_v58  ;;  %v13215_v58 = vld [vmem:[%s14193_s2 + $0x4c8] ss:$12 sps:$4 sm:$0xff]  }
 0x19e   :  { %12700 = vmatpush3.bf16.msra.mxu1 %v13131_v30  ;;  %v13172_v30 = vld [vmem:[%s14193_s2 + $0x43c] ss:$12 sps:$4 sm:$0xff]   ;;  %v1096_v19 = vld [vmem:[#allocation2 + $0x10] sm:$0xfc] }
 0x19f   :  { %2264 = vmatprep.subr.bf16.mxu1 %v13140_v29  ;;  %v13170_v29 = vld [vmem:[%s14193_s2 + $0x438] ss:$12 sps:$4 sm:$0xff]  }
 0x1a0   :  { %2226 = vmatpush2.bf16.msra.mxu0 %v13132_v34  ;;  %v13177_v34 = vld [vmem:[%s14193_s2 + $0x424] ss:$12 sps:$4 sm:$0xff]  }
 0x1a1   :  { %12702 = vmatmul.mubr.msk.bf16.vlgmr.msra.gmra.mxu1 %vm1070_vm9, %v14428_v17  ;;  %2227 = vmatprep.subr.bf16.mxu0 %v13137_v18  ;;  %v13158_v17 = vld [vmem:[%s14193_s2 + $0x184] ss:$12 sps:$4 sm:$0xff]  }
 0x1a2   :  { %2265 = vmatpush1.bf16.msra.mxu1 %v13138_v15  ;;  %2288 = vmatprep.mubr.bf16.mxu1 %v13983_v0  ;;  %v13179_v18 = vld [vmem:[%s14193_s2 + $0x110] ss:$12 sps:$4 sm:$0xff]   ;;  %v13175_v15 = vld [vmem:[%s14193_s2 + $0x420] ss:$12 sps:$4 sm:$0xff]  }
 0x1a3   :  { %2266 = vmatprep.subr.bf16.mxu1 %v13146_v37  ;;  %v13182_v37 = vld [vmem:[%s14193_s2 + $0x40c] ss:$12 sps:$4 sm:$0xff]  }
 0x1a4   :  { %2228 = vmatpush2.bf16.msra.mxu0 %v13135_v3  ;;  %v13183_v3 = vld [vmem:[%s14193_s2 + $0x50] ss:$12 sps:$4 sm:$0xff]  }
 0x1a5   :  { %2229 = vmatprep.subr.bf16.mxu0 %v13143_v47  ;;  %v13180_v47 = vld [vmem:[%s14193_s2 + $0x408] ss:$12 sps:$4 sm:$0xff]  }
 0x1a6   :  { %2267 = vmatpush1.bf16.msra.mxu1 %v13144_v46  ;;  %v13187_v46 = vld [vmem:[%s14193_s2 + $0x3f4] ss:$12 sps:$4 sm:$0xff]  }
 0x1a7   :  { %2268 = vmatprep.subr.bf16.mxu1 %v13152_v61  ;;  %v13188_v61 = vld [vmem:[%s14193_s2 + $0x38] ss:$12 sps:$4 sm:$0xff]  }
 0x1a8   :  { %2230 = vmatpush2.bf16.msra.mxu0 %v13141_v33  ;;  %v13189_v33 = vld [vmem:[%s14193_s2 + $0xe0] ss:$12 sps:$4 sm:$0xff]  }
 0x1a9   :  { %2231 = vmatprep.subr.bf16.mxu0 %v13149_v44  ;;  %v13185_v44 = vld [vmem:[%s14193_s2 + $0x3f0] ss:$12 sps:$4 sm:$0xff]  }
 0x1aa   :  { %2269 = vmatpush1.bf16.msra.mxu1 %v13150_v45  ;;  %v13192_v45 = vld [vmem:[%s14193_s2 + $0x3dc] ss:$12 sps:$4 sm:$0xff]  }
 0x1ab   :  { %2270 = vmatprep.subr.bf16.mxu1 %v13158_v17  ;;  %v13193_v17 = vld [vmem:[%s14193_s2 + $0x20] ss:$12 sps:$4 sm:$0xff]  }
 0x1ac   :  { %2232 = vmatpush2.bf16.msra.mxu0 %v13147_v50  ;;  %v13194_v50 = vld [vmem:[%s14193_s2 + $0xc8] ss:$12 sps:$4 sm:$0xff]  }
 0x1ad   :  { %2233 = vmatprep.subr.bf16.mxu0 %v13155_v41  ;;  %v13190_v41 = vld [vmem:[%s14193_s2 + $0x3d8] ss:$12 sps:$4 sm:$0xff]  }
 0x1ae   :  { %2271 = vmatpush1.bf16.msra.mxu1 %v13156_v8  ;;  %v13197_v8 = vld [vmem:[%s14193_s2 + $0x3c4] ss:$12 sps:$4 sm:$0xff]  }
 0x1af   :  { %12370 = vmatprep.subr.bf16.mxu1 %v13159_v35  ;;  %v13195_v35 = vld [vmem:[%s14193_s2 + $0x3c0] ss:$12 sps:$4 sm:$0xff]  }
 0x1b0   :  { %2234 = vmatpush2.bf16.msra.mxu0 %v13153_v62  ;;  %v13202_v62 = vld [vmem:[%s14193_s2 + $0x52c] ss:$12 sps:$4 sm:$0xff]  }
 0x1b1   :  { %11648 = vmatmul.mubr.msk.bf16.vlgmr.msra.gmra.mxu1 %vm1070_vm9, %v14566_v16  ;;  %2850 = vmatprep.subr.bf16.mxu0 %v13162_v56  ;;  %v13206_v56 = vld [vmem:[%s14193_s2 + $0x514] ss:$12 sps:$4 sm:$0xff]  }
 0x1b2   :  { %12371 = vmatpush3.bf16.msra.mxu1 %v13163_v60  ;;  %2298 = vmatprep.mubr.bf16.mxu1 %v13983_v0  ;;  %v13204_v60 = vld [vmem:[%s14193_s2 + $0x510] ss:$12 sps:$4 sm:$0xff]  }
 0x1b3   :  { %2236 = vmatmul.mubr.bf16.vlgmr.msra.gmra.mxu0 %v14574_v10  ;;  %12372 = vmatprep.subr.bf16.mxu1 %v13164_v20  ;;  %v13211_v20 = vld [vmem:[%s14193_s2 + $0x188] ss:$12 sps:$4 sm:$0xff]  }
 0x1b4   :  { %2245 = vmatprep.mubr.bf16.mxu0 %v14579_v54  ;;  %2851 = vmatpush1.bf16.msra.mxu0 %v13160_v38  ;;  %v13208_v38 = vld [vmem:[%s14193_s2 + $0x4f8] ss:$12 sps:$4 sm:$0xff]  }
 0x1b5   :  { %2852 = vmatprep.subr.bf16.mxu0 %v13167_v2  ;;  %v13212_v2 = vld [vmem:[%s14193_s2 + $0x4e0] ss:$12 sps:$4 sm:$0xff]  }
 0x1b6   :  { %12373 = vmatpush3.bf16.msra.mxu1 %v13168_v55  ;;  %v13218_v55 = vld [vmem:[%s14193_s2 + $0x588] ss:$12 sps:$4 sm:$0xff]  }
 0x1b7   :  { %12374 = vmatprep.subr.bf16.mxu1 %v13169_v28  ;;  %v13224_v28 = vld [vmem:[%s14193_s2 + $0x570] ss:$12 sps:$4 sm:$0xff]  }
 0x1b8   :  { %2853 = vmatpush1.bf16.msra.mxu0 %v13165_v49  ;;  %v13232_v49 = vld [vmem:[%s14193_s2 + $0x55c] ss:$12 sps:$4 sm:$0xff]  }
 0x1b9   :  { %11649 = vmatmul.mubr.msk.bf16.gmra.mxu1 %vm1070_vm9, %v14595_v25  ;;  %2854 = vmatprep.subr.bf16.mxu0 %v13172_v30  ;;  %v13221_v30 = vld [vmem:[%s14193_s2 + $0x4b0] ss:$12 sps:$4 sm:$0xff]  }
 0x1ba   :  { %12375 = vmatpush3.bf16.msra.mxu1 %v13173_v51  ;;  %2341 = vmatprep.mubr.bf16.mxu1 %v14477_v12  ;;  %v13184_v12 = vld [vmem:[%s14193_s2 + $0xf8] ss:$12 sps:$4 sm:$0xff]   ;;  %v1165_v51 = vmul.f32 %v14405_v40, %v14549_v27 }
 0x1bb   :  { %2246 = vmatmul.mubr.bf16.gmra.mxu0 %v14468_v4  ;;  %12376 = vmatprep.subr.bf16.mxu1 %v13174_v11  ;;  %v1098_v11 = vld [vmem:[#allocation2 + $0x68] sm:$0x3] }
 0x1bc   :  { %2855 = vmatpush1.bf16.msra.mxu0 %v13170_v29  ;;  %2882 = vmatprep.mubr.bf16.mxu0 %v14497_v59  ;;  %v13229_v29 = vld [vmem:[%s14193_s2 + $0x49c] ss:$12 sps:$4 sm:$0xff]   ;;  %v1173_v40 = vmul.f32 %v14313_v36, %v1098_v11  ;;  %v13257_v11 = vld [vmem:[%s14193_s2 + $0x560] ss:$12 sps:$4 sm:$0xff]  }
 0x1bd   :  { %2856 = vmatprep.subr.bf16.mxu0 %v13177_v34  ;;  %v1171_v34 = vmul.f32 %v14422_v48, %v14583_v31  ;;  %v13236_v48 = vld [vmem:[%s14193_s2 + $0x540] ss:$12 sps:$4 sm:$0xff]   ;;  %v13239_v31 = vld [vmem:[%s14193_s2 + $0x530] ss:$12 sps:$4 sm:$0xff]  }
 0x1be   :  { %12377 = vmatpush3.bf16.msra.mxu1 %v13178_v9  ;;  %v13230_v9 = vld [vmem:[%s14193_s2 + $0x558] ss:$12 sps:$4 sm:$0xff]  }
 0x1bf   :  { %12378 = vmatprep.subr.bf16.mxu1 %v13179_v18  ;;  %v1162_v18 = vmul.f32 %v14310_v32, %v1096_v19  ;;  %v13233_v32 = vld [vmem:[%s14193_s2 + $0x480] ss:$12 sps:$4 sm:$0xff]   ;;  %v13256_v19 = vld [vmem:[%s14193_s2 + $0x578] ss:$12 sps:$4 sm:$0xff]  }
 0x1c0   :  { %2857 = vmatpush1.bf16.msra.mxu0 %v13175_v15  ;;  %v13238_v15 = vld [vmem:[%s14193_s2 + $0x544] ss:$12 sps:$4 sm:$0xff]  }
 0x1c1   :  { %2858 = vmatprep.subr.bf16.mxu0 %v13182_v37  ;;  %v2409_v27 = vpack.c.bf16 %v1165_v51, %v1162_v18  ;;  %v13235_v37 = vld [vmem:[%s14193_s2 + $0x484] ss:$12 sps:$4 sm:$0xff]   ;;  %v13258_v18 = vld [vmem:[%s14193_s2 + $0x548] ss:$12 sps:$4 sm:$0xff]  }
 0x1c2   :  { %12379 = vmatpush3.bf16.msra.mxu1 %v13183_v3  ;;  %v2414_v3 = vpack.c.bf16 %v1173_v40, %v1173_v40  ;;  %v3126_v51 = vld [vmem:[%s14698_s9 + $0xa0] sm:$0xff]  ;;  %v3119_v40 = vld [vmem:[%s14698_s9 + $0x68] sm:$0xff] }
 0x1c3   :  { %12380 = vmatprep.subr.bf16.mxu1 %v13184_v12  ;;  %v1099_v12 = vld [vmem:[#allocation2 + $0x70] sm:$0x3] }
 0x1c4   :  { %2859 = vmatpush1.bf16.msra.mxu0 %v13180_v47  ;;  %v2511_v47 = vrot.slane %v2409_v27, 1  ;;  %v3117_v27 = vld [vmem:[%s14698_s9 + $0x58] sm:$0xff] }
 0x1c5   :  { %2860 = vmatprep.subr.bf16.mxu0 %v13187_v46 }
 0x1c6   :  { %12381 = vmatpush3.bf16.msra.mxu1 %v13188_v61  ;;  %v13240_v61 = vld [vmem:[%s14193_s2 + $0x470] ss:$12 sps:$4 sm:$0xff]  }
 0x1c7   :  { %12382 = vmatprep.subr.bf16.mxu1 %v13189_v33  ;;  %v1174_v33 = vmul.f32 %v14313_v36, %v1099_v12  ;;  %v3110_v12 = vld [vmem:[%s14698_s9 + $0x20] sm:$0xff] }
 0x1c8   :  { %2861 = vmatpush1.bf16.msra.mxu0 %v13185_v44  ;;  %v2516_v44 = vrot.slane %v2414_v3, 1  ;;  %v3111_v3 = vld [vmem:[%s14698_s9 + $0x28] sm:$0xff] }
 0x1c9   :  { %2862 = vmatprep.subr.bf16.mxu0 %v13192_v45  ;;  %v13241_v45 = vld [vmem:[%s14193_s2 + $0x518] ss:$12 sps:$4 sm:$0xff]  }
 0x1ca   :  { %12383 = vmatpush3.bf16.msra.mxu1 %v13193_v17  ;;  %v2517_v36 = vsel %vm752_vm6, %v14491_v43, %v2516_v44  ;;  %v13246_v43 = vld [vmem:[%s14193_s2 + $0x428] ss:$12 sps:$4 sm:$0xff]  }
 0x1cb   :  { %12384 = vmatprep.subr.bf16.mxu1 %v13194_v50  ;;  %v13242_v50 = vld [vmem:[%s14193_s2 + $0x458] ss:$12 sps:$4 sm:$0xff]   ;;  %v3168_v44 = vld [vmem:[%s14698_s9 + $0x1f0] sm:$0xff] }
 0x1cc   :  { %2863 = vmatpush1.bf16.msra.mxu0 %v13190_v41  ;;  %v2415_v41 = vpack.c.bf16 %v1174_v33, %v1174_v33  ;;  %v3169_v33 = vld [vmem:[%s14698_s9 + $0x1f8] sm:$0xff] }
 0x1cd   :  { %2864 = vmatprep.subr.bf16.mxu0 %v13197_v8  ;;  %v13243_v8 = vld [vmem:[%s14193_s2 + $0x500] ss:$12 sps:$4 sm:$0xff]  }
 0x1ce   :  { %12385 = vmatpush3.bf16.msra.mxu1 %v13198_v39  ;;  %v2518_v39 = vrot.slane %v2415_v41, 1  ;;  %v3164_v41 = vld [vmem:[%s14698_s9 + $0x1d0] sm:$0xff] }
 0x1cf   :  { %12705 = vmatprep.subr.bf16.mxu1 %v13199_v14 }
 0x1d0   :  { %2865 = vmatpush1.bf16.msra.mxu0 %v13195_v35  ;;  %v13245_v35 = vld [vmem:[%s14193_s2 + $0x4e8] ss:$12 sps:$4 sm:$0xff]  }
 0x1d1   :  { %2342 = vmatmul.mubr.bf16.vlgmr.msra.gmra.mxu1 %v14574_v10  ;;  %2866 = vmatprep.subr.bf16.mxu0 %v13202_v62  ;;  %v13220_v10 = vld [vmem:[%s14193_s2 + $0x58c] ss:$12 sps:$4 sm:$0xff]  }
 0x1d2   :  { %2349 = vmatprep.mubr.bf16.mxu1 %v14579_v54  ;;  %12706 = vmatpush3.bf16.msra.mxu1 %v13199_v14  ;;  %v13217_v54 = vld [vmem:[%s14193_s2 + $0x4cc] ss:$12 sps:$4 sm:$0xff]  }
 0x1d3   :  { %12707 = vmatprep.subr.bf16.mxu1 %v13203_v26  ;;  %v13244_v14 = vld [vmem:[%s14193_s2 + $0x440] ss:$12 sps:$4 sm:$0xff]  }
 0x1d4   :  { %2867 = vmatpush2.bf16.msra.mxu0 %v13200_v63  ;;  %v13248_v63 = vld [vmem:[%s14193_s2 + $0x410] ss:$12 sps:$4 sm:$0xff]  }
 0x1d5   :  { %2868 = vmatprep.subr.bf16.mxu0 %v13206_v56  ;;  %v13249_v56 = vld [vmem:[%s14193_s2 + $0x4b8] ss:$12 sps:$4 sm:$0xff]  }
 0x1d6   :  { %12708 = vmatpush3.bf16.msra.mxu1 %v13203_v26  ;;  %v13247_v26 = vld [vmem:[%s14193_s2 + $0x4d0] ss:$12 sps:$4 sm:$0xff]  }
 0x1d7   :  { %12709 = vmatprep.subr.bf16.mxu1 %v13207_v6 }
 0x1d8   :  { %2869 = vmatpush2.bf16.msra.mxu0 %v13204_v60  ;;  %v13252_v60 = vld [vmem:[%s14193_s2 + $0x3e0] ss:$12 sps:$4 sm:$0xff]  }
 0x1d9   :  { %2350 = vmatmul.mubr.bf16.gmra.mxu1 %v14468_v4  ;;  %2870 = vmatprep.subr.bf16.mxu0 %v13210_v7  ;;  %v13226_v4 = vld [vmem:[%s14193_s2 + $0x574] ss:$12 sps:$4 sm:$0xff]  }
 0x1da   :  { %12710 = vmatpush3.bf16.msra.mxu1 %v13207_v6  ;;  %12713 = vmatprep.mubr.msk.bf16.mxu1 %vm1070_vm9, %v14566_v16  ;;  %v13223_v16 = vld [vmem:[%s14193_s2 + $0x4b4] ss:$12 sps:$4 sm:$0xff]  }
 0x1db   :  { %12711 = vmatprep.subr.bf16.mxu1 %v13211_v20  ;;  %v13251_v6 = vld [vmem:[%s14193_s2 + $0x4a0] ss:$12 sps:$4 sm:$0xff]   ;;  %v13253_v7 = vld [vmem:[%s14193_s2 + $0x488] ss:$12 sps:$4 sm:$0xff]  }
 0x1dc   :  { %2871 = vmatpush2.bf16.msra.mxu0 %v13208_v38  ;;  %v3136_v38 = vld [vmem:[%s14698_s9 + $0xf0] sm:$0xff] }
 0x1dd   :  { %2872 = vmatprep.subr.bf16.mxu0 %v13214_v5  ;;  %v3135_v5 = vld [vmem:[%s14698_s9 + $0xe8] sm:$0xff] }
 0x1de   :  { %12712 = vmatpush3.bf16.msra.mxu1 %v13211_v20  ;;  %v3137_v20 = vld [vmem:[%s14698_s9 + $0xf8] sm:$0xff] }
 0x1df   :  { %2911 = vmatprep.subr.bf16.mxu1 %v13220_v10  ;;  %v3134_v10 = vld [vmem:[%s14698_s9 + $0xe0] sm:$0xff] }
 0x1e0   :  { %2873 = vmatpush2.bf16.msra.mxu0 %v13212_v2  ;;  %v3133_v2 = vld [vmem:[%s14698_s9 + $0xd8] sm:$0xff] }
 0x1e1   :  { %12714 = vmatmul.mubr.msk.bf16.vlgmr.msra.gmra.mxu1 %vm1070_vm9, %v14595_v25  ;;  %2874 = vmatprep.subr.bf16.mxu0 %v13217_v54  ;;  %v1168_v25 = vmul.f32 %v14412_v42, %v14572_v57  ;;  %v13227_v42 = vld [vmem:[%s14193_s2 + $0x498] ss:$12 sps:$4 sm:$0xff]   ;;  %v13254_v54 = vld [vmem:[%s14193_s2 + $0x3c8] ss:$12 sps:$4 sm:$0xff]  }
 0x1e2   :  { %2912 = vmatpush1.bf16.msra.mxu1 %v13218_v55  ;;  %2935 = vmatprep.mubr.bf16.mxu1 %v13983_v0  ;;  %v3132_v55 = vld [vmem:[%s14698_s9 + $0xd0] sm:$0xff] }
 0x1e3   :  { %2913 = vmatprep.subr.bf16.mxu1 %v13226_v4  ;;  %v2412_v57 = vpack.c.bf16 %v1171_v34, %v1168_v25  ;;  %v13255_v4 = vld [vmem:[%s14193_s2 + $0x590] ss:$12 sps:$4 sm:$0xff]   ;;  %v3123_v34 = vld [vmem:[%s14698_s9 + $0x88] sm:$0xff] }
 0x1e4   :  { %2875 = vmatpush2.bf16.msra.mxu0 %v13215_v58  ;;  %v3131_v58 = vld [vmem:[%s14698_s9 + $0xc8] sm:$0xff]  ;;  %v3125_v25 = vld [vmem:[%s14698_s9 + $0x98] sm:$0xff] }
 0x1e5   :  { %2876 = vmatprep.subr.bf16.mxu0 %v13223_v16  ;;  %v2512_v46 = vrot.slane %v2412_v57, 1  ;;  %v3130_v16 = vld [vmem:[%s14698_s9 + $0xc0] sm:$0xff]  ;;  %v3116_v57 = vld [vmem:[%s14698_s9 + $0x50] sm:$0xff] }
 0x1e6   :  { %2914 = vmatpush1.bf16.msra.mxu1 %v13224_v28  ;;  %v3129_v28 = vld [vmem:[%s14698_s9 + $0xb8] sm:$0xff] }
 0x1e7   :  { %2915 = vmatprep.subr.bf16.mxu1 %v13232_v49  ;;  %v14672_v17 = vsel %vm752_vm6, %v2511_v47, %v2512_v46  ;;  %v14685_v62 = vsel %vm752_vm6, %v2512_v46, %v2518_v39  ;;  %v3128_v49 = vld [vmem:[%s14698_s9 + $0xb0] sm:$0xff]  ;;  %v3107_v46 = vld [vmem:[%s14698_s9 + $0x8] sm:$0xff]  ;;  %v3161_v39 = vld [vmem:[%s14698_s9 + $0x1b8] sm:$0xff] }
 0x1e8   :  { %2877 = vmatpush2.bf16.msra.mxu0 %v13221_v30  ;;  %v3127_v30 = vld [vmem:[%s14698_s9 + $0xa8] sm:$0xff]  ;;  %v3108_v47 = vld [vmem:[%s14698_s9 + $0x10] sm:$0xff] }
 0x1e9   :  { %2878 = vmatprep.subr.bf16.mxu0 %v13229_v29  ;;  %v3124_v29 = vld [vmem:[%s14698_s9 + $0x90] sm:$0xff] }
 0x1ea   :  { %2916 = vmatpush1.bf16.msra.mxu1 %v13230_v9  ;;  %v3122_v9 = vld [vmem:[%s14698_s9 + $0x80] sm:$0xff] }
 0x1eb   :  { %2917 = vmatprep.subr.bf16.mxu1 %v13238_v15  ;;  %v3120_v15 = vld [vmem:[%s14698_s9 + $0x70] sm:$0xff] }
 0x1ec   :  { %2879 = vmatpush2.bf16.msra.mxu0 %v13227_v42  ;;  %v3118_v42 = vld [vmem:[%s14698_s9 + $0x60] sm:$0xff] }
 0x1ed   :  { %2880 = vmatprep.subr.bf16.mxu0 %v13235_v37  ;;  %v3115_v37 = vld [vmem:[%s14698_s9 + $0x48] sm:$0xff] }
 0x1ee   :  { %2918 = vmatpush1.bf16.msra.mxu1 %v13236_v48  ;;  %v3113_v48 = vld [vmem:[%s14698_s9 + $0x38] sm:$0xff] }
 0x1ef   :  { %12404 = vmatprep.subr.bf16.mxu1 %v13239_v31  ;;  %v3112_v31 = vld [vmem:[%s14698_s9 + $0x30] sm:$0xff] }
 0x1f0   :  { %2881 = vmatpush2.bf16.msra.mxu0 %v13233_v32  ;;  %v3109_v32 = vld [vmem:[%s14698_s9 + $0x18] sm:$0xff] }
 0x1f1   :  { %11712 = vmatmul.mubr.msk.bf16.vlgmr.msra.gmra.mxu1 %vm1070_vm9, %v14672_v17  ;;  %3282 = vmatprep.subr.mxu0 %v3137_v20  ;;  %v3151_v20 = vld [vmem:[%s14698_s9 + $0x168] sm:$0xff] }
 0x1f2   :  { %12405 = vmatpush3.bf16.msra.mxu1 %v13240_v61  ;;  %2945 = vmatprep.mubr.bf16.mxu1 %v13983_v0  ;;  %v3106_v61 = vld [vmem:[%s14698_s9] sm:$0xff] }
 0x1f3   :  { %2883 = vmatmul.mubr.bf16.vlgmr.msra.gmra.mxu0 %v14502_v13  ;;  %12406 = vmatprep.subr.bf16.mxu1 %v13241_v45  ;;  %v3167_v45 = vld [vmem:[%s14698_s9 + $0x1e8] sm:$0xff] }
 0x1f4   :  { %2892 = vmatprep.mubr.bf16.mxu0 %v2517_v36  ;;  %3283 = vmatpush1.msra.mxu0 %v3136_v38 }
 0x1f5   :  { %3284 = vmatprep.subr.mxu0 %v3135_v5  ;;  %v3150_v5 = vld [vmem:[%s14698_s9 + $0x160] sm:$0xff] }
 0x1f6   :  { %12407 = vmatpush3.bf16.msra.mxu1 %v13242_v50  ;;  %3285 = vmatpush1.msra.mxu0 %v3134_v10  ;;  %v3165_v50 = vld [vmem:[%s14698_s9 + $0x1d8] sm:$0xff] }
 0x1f7   :  { %12408 = vmatprep.subr.bf16.mxu1 %v13243_v8  ;;  %3286 = vmatprep.subr.mxu0 %v3133_v2  ;;  %v3162_v8 = vld [vmem:[%s14698_s9 + $0x1c0] sm:$0xff]  ;;  %v3149_v10 = vld [vmem:[%s14698_s9 + $0x158] sm:$0xff]  ;;  %v3148_v2 = vld [vmem:[%s14698_s9 + $0x150] sm:$0xff] }
 0x1f8   :  { %3287 = vmatpush1.msra.mxu0 %v3132_v55 }
 0x1f9   :  { %11713 = vmatmul.mubr.msk.bf16.gmra.mxu1 %vm1070_vm9, %v14685_v62  ;;  %3288 = vmatprep.subr.mxu0 %v3131_v58  ;;  %v3145_v58 = vld [vmem:[%s14698_s9 + $0x138] sm:$0xff] }
 0x1fa   :  { %12409 = vmatpush3.bf16.msra.mxu1 %v13244_v14  ;;  %2988 = vmatprep.mubr.bf16.mxu1 %v14497_v59  ;;  %v13250_v59 = vld [vmem:[%s14193_s2 + $0x3f8] ss:$12 sps:$4 sm:$0xff]   ;;  %v3160_v14 = vld [vmem:[%s14698_s9 + $0x1b0] sm:$0xff]  ;;  %s11441_s2 = sld [smem:[%s16742_s0 + %s14014_s29]]   ;;  %s14029_s29 = smov 41  }
 0x1fb   :  { %2893 = vmatmul.mubr.bf16.gmra.mxu0 %v14507_v53  ;;  %12410 = vmatprep.subr.bf16.mxu1 %v13245_v35  ;;  %v3159_v35 = vld [vmem:[%s14698_s9 + $0x1a8] sm:$0xff] }
 0x1fc   :  { %3289 = vmatpush1.msra.mxu0 %v3130_v16  ;;  %v3144_v16 = vld [vmem:[%s14698_s9 + $0x130] sm:$0xff] }
 0x1fd   :  { %3290 = vmatprep.subr.mxu0 %v3129_v28  ;;  %v3143_v28 = vld [vmem:[%s14698_s9 + $0x128] sm:$0xff] }
 0x1fe   :  { %12411 = vmatpush3.bf16.msra.mxu1 %v13246_v43  ;;  %3291 = vmatpush1.msra.mxu0 %v3128_v49  ;;  %v3158_v43 = vld [vmem:[%s14698_s9 + $0x1a0] sm:$0xff] }
 0x1ff   :  { %12412 = vmatprep.subr.bf16.mxu1 %v13247_v26  ;;  %3292 = vmatprep.subr.mxu0 %v3127_v30  ;;  %v3157_v26 = vld [vmem:[%s14698_s9 + $0x198] sm:$0xff] }
 0x200   :  { %3293 = vmatpush1.msra.mxu0 %v3126_v51  ;;  %v3141_v30 = vld [vmem:[%s14698_s9 + $0x118] sm:$0xff]  ;;  %v3140_v51 = vld [vmem:[%s14698_s9 + $0x110] sm:$0xff] }
 0x201   :  { %3294 = vmatprep.subr.mxu0 %v3125_v25  ;;  %v3139_v25 = vld [vmem:[%s14698_s9 + $0x108] sm:$0xff] }
 0x202   :  { %12413 = vmatpush3.bf16.msra.mxu1 %v13248_v63  ;;  %3295 = vmatpush1.msra.mxu0 %v3124_v29  ;;  %v3156_v63 = vld [vmem:[%s14698_s9 + $0x190] sm:$0xff]  ;;  %v3138_v29 = vld [vmem:[%s14698_s9 + $0x100] sm:$0xff] }
 0x203   :  { %12414 = vmatprep.subr.bf16.mxu1 %v13249_v56  ;;  %3296 = vmatprep.subr.mxu0 %v3123_v34  ;;  %v3155_v56 = vld [vmem:[%s14698_s9 + $0x188] sm:$0xff] }
 0x204   :  { %3297 = vmatpush1.msra.mxu0 %v3122_v9 }
 0x206   :  { %12415 = vmatpush3.bf16.msra.mxu1 %v13250_v59 }
 0x207   :  { %12416 = vmatprep.subr.bf16.mxu1 %v13251_v6  ;;  %v3154_v6 = vld [vmem:[%s14698_s9 + $0x180] sm:$0xff] }
 0x20a   :  { %12417 = vmatpush3.bf16.msra.mxu1 %v13252_v60  ;;  %v3153_v60 = vld [vmem:[%s14698_s9 + $0x178] sm:$0xff] }
 0x20b   :  { %12418 = vmatprep.subr.bf16.mxu1 %v13253_v7  ;;  %v3152_v7 = vld [vmem:[%s14698_s9 + $0x170] sm:$0xff] }
 0x20e   :  { %12419 = vmatpush3.bf16.msra.mxu1 %v13254_v54  ;;  %v3147_v54 = vld [vmem:[%s14698_s9 + $0x148] sm:$0xff] }
 0x20f   :  { %12717 = vmatprep.subr.bf16.mxu1 %v13255_v4 }
 0x211   :  { %2989 = vmatmul.mubr.bf16.vlgmr.msra.gmra.mxu1 %v14502_v13  ;;  %v3121_v13 = vld [vmem:[%s14698_s9 + $0x78] sm:$0xff] }
 0x212   :  { %2996 = vmatprep.mubr.bf16.mxu1 %v2517_v36  ;;  %12718 = vmatpush3.bf16.msra.mxu1 %v13255_v4  ;;  %v3163_v36 = vld [vmem:[%s14698_s9 + $0x1c8] sm:$0xff]  ;;  %v3146_v4 = vld [vmem:[%s14698_s9 + $0x140] sm:$0xff] }
 0x213   :  { %12719 = vmatprep.subr.bf16.mxu1 %v13256_v19  ;;  %3298 = vmatprep.subr.mxu0 %v3121_v13 }
 0x214   :  { %3299 = vmatpush1.msra.mxu0 %v3120_v15 }
 0x215   :  { %3300 = vmatprep.subr.mxu0 %v3119_v40 }
 0x216   :  { %12720 = vmatpush3.bf16.msra.mxu1 %v13256_v19  ;;  %3301 = vmatpush1.msra.mxu0 %v3118_v42  ;;  %v3142_v19 = vld [vmem:[%s14698_s9 + $0x120] sm:$0xff] }
 0x217   :  { %12721 = vmatprep.subr.bf16.mxu1 %v13257_v11  ;;  %3302 = vmatprep.subr.mxu0 %v3117_v27 }
 0x218   :  { %3303 = vmatpush1.msra.mxu0 %v3116_v57 }
 0x219   :  { %2997 = vmatmul.mubr.bf16.gmra.mxu1 %v14507_v53  ;;  %v3114_v53 = vld [vmem:[%s14698_s9 + $0x40] sm:$0xff]  ;;  %3304 = vmatprep.subr.mxu0 %v3115_v37 }
 0x21a   :  { %12722 = vmatpush3.bf16.msra.mxu1 %v13257_v11  ;;  %12725 = vmatprep.mubr.msk.bf16.mxu1 %vm1070_vm9, %v14672_v17  ;;  %v3166_v17 = vld [vmem:[%s14698_s9 + $0x1e0] sm:$0xff] }
 0x21b   :  { %12723 = vmatprep.subr.bf16.mxu1 %v13258_v18  ;;  %3305 = vmatpush1.msra.mxu0 %v3114_v53 }
 0x21c   :  { %3306 = vmatprep.subr.mxu0 %v3113_v48  ;;  %v3185_v48 = vld [vmem:[%s14698_s9 + $0x278] sm:$0xff] }
 0x21d   :  { %3307 = vmatpush1.msra.mxu0 %v3112_v31  ;;  %v3184_v31 = vld [vmem:[%s14698_s9 + $0x270] sm:$0xff] }
 0x21e   :  { %12724 = vmatpush3.bf16.msra.mxu1 %v13258_v18  ;;  %3308 = vmatprep.subr.mxu0 %v3111_v3  ;;  %v3183_v3 = vld [vmem:[%s14698_s9 + $0x268] sm:$0xff] }
 0x21f   :  { %3309 = vmatpush1.msra.mxu0 %v3110_v12  ;;  %3387 = vmatprep.subr.mxu1 %v3185_v48  ;;  %v3182_v12 = vld [vmem:[%s14698_s9 + $0x260] sm:$0xff] }
 0x220   :  { %3310 = vmatprep.subr.mxu0 %v3109_v32 }
 0x221   :  { %12726 = vmatmul.mubr.msk.bf16.vlgmr.msra.gmra.mxu1 %vm1070_vm9, %v14685_v62  ;;  %3311 = vmatpush1.msra.mxu0 %v3108_v47  ;;  %v3181_v47 = vld [vmem:[%s14698_s9 + $0x258] sm:$0xff] }
 0x222   :  { %3435 = vmatprep.mubr.f32.mxu1 %v13985_v1  ;;  %3312 = vmatprep.subr.mxu0 %v3107_v46  ;;  %v3180_v46 = vld [vmem:[%s14698_s9 + $0x250] sm:$0xff] }
 0x223   :  { %3313 = vmatpush1.msra.mxu0 %v3106_v61  ;;  %3388 = vmatpush1.msra.mxu1 %v3184_v31 }
 0x224   :  { %3314 = vmatprep.subr.mxu0 %v3169_v33  ;;  %3389 = vmatprep.subr.mxu1 %v3183_v3 }
 0x225   :  { %3315 = vmatpush2.msra.mxu0 %v3168_v44  ;;  %3390 = vmatpush1.msra.mxu1 %v3182_v12 }
 0x226   :  { %3316 = vmatprep.subr.mxu0 %v3167_v45  ;;  %3391 = vmatprep.subr.mxu1 %v3181_v47  ;;  %v3265_v45 = vld [vmem:[%s14807_s13 + $0x278] sm:$0xff] }
 0x227   :  { %3317 = vmatpush2.msra.mxu0 %v3166_v17  ;;  %3392 = vmatpush1.msra.mxu1 %v3180_v46 }
 0x228   :  { %3318 = vmatprep.subr.mxu0 %v3165_v50 }
 0x229   :  { %3319 = vmatpush2.msra.mxu0 %v3164_v41 }
 0x22a   :  { %3320 = vmatprep.subr.mxu0 %v3163_v36  ;;  %v3179_v36 = vld [vmem:[%s14698_s9 + $0x248] sm:$0xff] }
 0x22b   :  { %3321 = vmatpush2.msra.mxu0 %v3162_v8  ;;  %v3178_v8 = vld [vmem:[%s14698_s9 + $0x240] sm:$0xff]  ;;  %3393 = vmatprep.subr.mxu1 %v3179_v36 }
 0x22c   :  { %3322 = vmatprep.subr.mxu0 %v3161_v39  ;;  %3394 = vmatpush1.msra.mxu1 %v3178_v8  ;;  %v3177_v39 = vld [vmem:[%s14698_s9 + $0x238] sm:$0xff] }
 0x22d   :  { %3323 = vmatpush2.msra.mxu0 %v3160_v14  ;;  %v3176_v14 = vld [vmem:[%s14698_s9 + $0x230] sm:$0xff]  ;;  %3395 = vmatprep.subr.mxu1 %v3177_v39 }
 0x22e   :  { %3324 = vmatprep.subr.mxu0 %v3159_v35  ;;  %3396 = vmatpush1.msra.mxu1 %v3176_v14  ;;  %v3175_v35 = vld [vmem:[%s14698_s9 + $0x228] sm:$0xff] }
 0x22f   :  { %3325 = vmatpush2.msra.mxu0 %v3158_v43  ;;  %v3174_v43 = vld [vmem:[%s14698_s9 + $0x220] sm:$0xff]  ;;  %3397 = vmatprep.subr.mxu1 %v3175_v35 }
 0x230   :  { %v14759_v62 = vpop.f32.mrf.mxu1  ;;  %3326 = vmatprep.subr.mxu0 %v3157_v26  ;;  %3398 = vmatpush1.msra.mxu1 %v3174_v43  ;;  %v3173_v26 = vld [vmem:[%s14698_s9 + $0x218] sm:$0xff] }
 0x231   :  { %3327 = vmatpush2.msra.mxu0 %v3156_v63  ;;  %v3172_v63 = vld [vmem:[%s14698_s9 + $0x210] sm:$0xff]  ;;  %3399 = vmatprep.subr.mxu1 %v3173_v26 }
 0x232   :  { %v14765_v59 = vpop.f32.mrf.mxu1  ;;  %3328 = vmatprep.subr.mxu0 %v3155_v56  ;;  %v3171_v56 = vld [vmem:[%s14698_s9 + $0x208] sm:$0xff]  ;;  %3400 = vmatpush1.msra.mxu1 %v3172_v63 }
 0x233   :  { %3329 = vmatpush2.msra.mxu0 %v3154_v6  ;;  %v3170_v6 = vld [vmem:[%s14698_s9 + $0x200] sm:$0xff]  ;;  %3401 = vmatprep.subr.mxu1 %v3171_v56  ;;  %s11443_s9 = sld [smem:[%s16742_s0 + %s14016_s6]]   ;;  %s14031_s6 = smov 43  }
 0x234   :  { %v14771_v38 = vpop.f32.mrf.mxu1  ;;  %3330 = vmatprep.subr.mxu0 %v3153_v60  ;;  %v3217_v60 = vld [vmem:[%s14807_s13 + $0xf8] sm:$0xff]  ;;  %3402 = vmatpush1.msra.mxu1 %v3170_v6 }
 0x235   :  { %3331 = vmatpush2.msra.mxu0 %v3152_v7  ;;  %3460 = vmatprep.subr.mxu1 %v3217_v60 }
 0x236   :  { %3332 = vmatprep.subr.mxu0 %v3151_v20  ;;  %v14777_v55 = vpop.f32.mrf.mxu1 }
 0x237   :  { %3333 = vmatpush2.msra.mxu0 %v3150_v5  ;;  %v1707_v5 = vpop.f32.mrf.mxu0 }
 0x238   :  { %3334 = vmatprep.subr.mxu0 %v3149_v10  ;;  %v14783_v49 = vpop.f32.mrf.mxu1 }
 0x239   :  { %3335 = vmatpush2.msra.mxu0 %v3148_v2  ;;  %v1709_v2 = vpop.f32.mrf.mxu0 }
 0x23a   :  { %3336 = vmatprep.subr.mxu0 %v3147_v54  ;;  %v14789_v11 = vpop.f32.mrf.mxu1 }
 0x23b   :  { %3337 = vmatpush2.msra.mxu0 %v3146_v4  ;;  %v1711_v4 = vpop.f32.mrf.mxu0 }
 0x23c   :  { %3338 = vmatprep.subr.mxu0 %v3145_v58  ;;  %v14792_v34 = vpop.f32.mrf.mxu1 }
 0x23d   :  { %3339 = vmatpush2.msra.mxu0 %v3144_v16  ;;  %v1713_v16 = vpop.f32.mrf.mxu0 }
 0x23e   :  { %3340 = vmatprep.subr.mxu0 %v3143_v28  ;;  %v14794_v9 = vpop.f32.mrf.mxu1 }
 0x23f   :  { %3341 = vmatpush2.msra.mxu0 %v3142_v19  ;;  %v1717_v19 = vpop.f32.mrf.mxu0 }
 0x240   :  { %3342 = vmatprep.subr.mxu0 %v3141_v30 }
 0x241   :  { %3343 = vmatpush2.msra.mxu0 %v3140_v51  ;;  %v14839_v51 = vpop.f32.mrf.mxu0 }
 0x242   :  { %3344 = vmatprep.subr.mxu0 %v3139_v25 }
 0x243   :  { %3345 = vmatpush2.msra.mxu0 %v3138_v29  ;;  %v14843_v29 = vpop.f32.mrf.mxu0 }
 0x244   :  { %3565 = vmatprep.subr.mxu0 %v3265_v45 }
 0x250   :  { %v12352_v13 = vpop.f32.mrf.mxu1 }
 0x252   :  { %v12353_v18 = vpop.f32.mrf.mxu1 }
 0x253   :  { %v14796_v15 = vadd.f32 %v12353_v18, %v12352_v13 }
 0x254   :  { %v14798_v40 = vpop.f32.mrf.mxu1 }
 0x256   :  { %v14800_v42 = vpop.f32.mrf.mxu1 }
 0x257   :  { %v12357_v3 = vadd.f32 %v14800_v42, %v14798_v40 }
 0x258   :  { %v12358_v27 = vpop.f32.mrf.mxu1 }
 0x25a   :  { %v12359_v57 = vpop.f32.mrf.mxu1 }
 0x25b   :  { %v12360_v37 = vadd.f32 %v12359_v57, %v12358_v27  ;;  %v14847_v27 = vpop.f32.mrf.mxu0 }
 0x25c   :  { %v12361_v53 = vpop.f32.mrf.mxu1 }
 0x25e   :  { %v12362_v32 = vpop.f32.mrf.mxu1 }
 0x25f   :  { %v12363_v17 = vadd.f32 %v12362_v32, %v12361_v53 }
 0x261   :  { %v12703_v61 = vpop.f32.mrf.mxu1 }
 0x262   :  { %v14813_v33 = vadd.f32 %v12703_v61, %v12360_v37 }
 0x263   :  { %v1862_v44 = vpop.f32.mrf.mxu1 }
 0x264   :  { %v1863_v37 = vadd.f32 %v14796_v15, %v1862_v44 }
 0x265   :  { %v12704_v50 = vpop.f32.mrf.mxu1 }
 0x266   :  { %v14816_v41 = vadd.f32 %v12704_v50, %v12363_v17 }
 0x267   :  { %v1865_v7 = vpop.f32.mrf.mxu1 }
 0x268   :  { %v1866_v47 = vadd.f32 %v12357_v3, %v1865_v7  ;;  %v1761_v7 = vadd.f32 %v14759_v62, %v1707_v5  ;;  %v1771_v62 = vadd.f32 %v14783_v49, %v1717_v19  ;;  %v1773_v49 = vadd.f32 %v14789_v11, %v14839_v51 }
 0x271   :  { %v2290_v20 = vpop.f32.mrf.mxu1 }
 0x273   :  { %v14829_v10 = vpop.f32.mrf.mxu1  ;;  %v2237_v48 = vpop.f32.mrf.mxu0 }
 0x275   :  { %v14831_v54 = vpop.f32.mrf.mxu1  ;;  %v2239_v61 = vpop.f32.mrf.mxu0 }
 0x277   :  { %v14833_v58 = vpop.f32.mrf.mxu1  ;;  %v2241_v8 = vpop.f32.mrf.mxu0 }
 0x279   :  { %v14835_v28 = vpop.f32.mrf.mxu1  ;;  %v2243_v35 = vpop.f32.mrf.mxu0 }
 0x27b   :  { %v14837_v30 = vpop.f32.mrf.mxu1  ;;  %v2247_v63 = vpop.f32.mrf.mxu0 }
 0x27d   :  { %v14841_v25 = vpop.f32.mrf.mxu1  ;;  %v2249_v60 = vpop.f32.mrf.mxu0 }
 0x27f   :  { %v14845_v13 = vpop.f32.mrf.mxu1 }
 0x291   :  { %v12386_v18 = vpop.f32.mrf.mxu1 }
 0x293   :  { %v12387_v57 = vpop.f32.mrf.mxu1 }
 0x294   :  { %v12388_v53 = vadd.f32 %v12387_v57, %v12386_v18  ;;  %v1763_v57 = vadd.f32 %v14765_v59, %v1709_v2 }
 0x295   :  { %v12389_v31 = vpop.f32.mrf.mxu1 }
 0x296   :  { %v14852_v12 = vadd.f32 %v12388_v53, %v1863_v37  ;;  %v2240_v3 = vadd.f32 %v2239_v61, %v1763_v57 }
 0x297   :  { %v12390_v32 = vpop.f32.mrf.mxu1 }
 0x298   :  { %v12391_v46 = vadd.f32 %v12390_v32, %v12389_v31  ;;  %v1765_v31 = vadd.f32 %v14771_v38, %v1711_v4  ;;  %v14872_v32 = vld [vmem:[%s11423_s17] sm:$0x7]  ;;  %v2293_v38 = vadd.f32 %v14829_v10, %v2240_v3  ;;  %s16327_s17 = sld [smem:[%s16742_s0 + %s14018_s14]]   ;;  %s14033_s14 = smov 47  }
 0x299   :  { %v12392_v45 = vpop.f32.mrf.mxu1  ;;  %v14878_v59 = vrot.slane %v14872_v32, %v14298_v21 }
 0x29a   :  { %v14854_v17 = vadd.f32 %v12391_v46, %v1866_v47  ;;  %v1767_v47 = vadd.f32 %v14777_v55, %v1713_v16  ;;  %v14883_v55 = vrot.slane %v14872_v32, %v14302_v24 }
 0x29b   :  { %v12393_v50 = vpop.f32.mrf.mxu1 }
 0x29c   :  { %v12394_v36 = vadd.f32 %v12393_v50, %v12392_v45  ;;  %v2244_v5 = vadd.f32 %v2243_v35, %v1767_v47 }
 0x29d   :  { %v12395_v39 = vpop.f32.mrf.mxu1 }
 0x29e   :  { %v2352_v15 = vadd.f32 %v12394_v36, %v14813_v33  ;;  %v2251_v33 = vpop.f32.mrf.mxu0  ;;  %v2242_v36 = vadd.f32 %v2241_v8, %v1765_v31  ;;  %v2297_v10 = vadd.f32 %v14833_v58, %v2244_v5 }
 0x29f   :  { %v12396_v44 = vpop.f32.mrf.mxu1 }
 0x2a0   :  { %v12397_v14 = vadd.f32 %v12396_v44, %v12395_v39  ;;  %v2253_v37 = vpop.f32.mrf.mxu0  ;;  %v2295_v19 = vadd.f32 %v14831_v54, %v2242_v36  ;;  %v1777_v54 = vadd.f32 %v14794_v9, %v14847_v27  ;;  %v3264_v9 = vld [vmem:[%s14807_s13 + $0x270] sm:$0xff] }
 0x2a1   :  { %v12715_v43 = vpop.f32.mrf.mxu1 }
 0x2a2   :  { %v14857_v40 = vadd.f32 %v12715_v43, %v2352_v15  ;;  %v2355_v42 = vadd.f32 %v12397_v14, %v14816_v41  ;;  %v2238_v41 = vadd.f32 %v2237_v48, %v1761_v7  ;;  %v1775_v14 = vadd.f32 %v14792_v34, %v14843_v29 }
 0x2a3   :  { %v14860_v26 = vpop.f32.mrf.mxu1 }
 0x2a4   :  { %v2291_v50 = vadd.f32 %v2290_v20, %v2238_v41  ;;  %v2248_v20 = vadd.f32 %v2247_v63, %v1771_v62  ;;  %v2250_v63 = vadd.f32 %v2249_v60, %v1773_v49  ;;  %v2252_v58 = vadd.f32 %v2251_v33, %v1775_v14  ;;  %v3257_v14 = vld [vmem:[%s14807_s13 + $0x238] sm:$0xff] }
 0x2a5   :  { %v12716_v56 = vpop.f32.mrf.mxu1  ;;  %v2254_v60 = vadd.f32 %v2253_v37, %v1777_v54  ;;  %v3263_v37 = vld [vmem:[%s14807_s13 + $0x268] sm:$0xff]  ;;  %v3253_v54 = vld [vmem:[%s14807_s13 + $0x218] sm:$0xff] }
 0x2a6   :  { %v14862_v6 = vadd.f32 %v12716_v56, %v2355_v42  ;;  %v2301_v51 = vadd.f32 %v14835_v28, %v2248_v20  ;;  %v2303_v28 = vadd.f32 %v14837_v30, %v2250_v63  ;;  %v2305_v62 = vadd.f32 %v14841_v25, %v2252_v58 }
 0x2a7   :  { %v14868_v18 = vpop.f32.mrf.mxu1 }
 0x2b1   :  { %v2937_v53 = vpop.f32.mrf.mxu1 }
 0x2b3   :  { %v2884_v46 = vpop.f32.mrf.mxu0  ;;  %v2939_v45 = vpop.f32.mrf.mxu1 }
 0x2b4   :  { %v2938_v39 = vadd.f32 %v2937_v53, %v2884_v46 }
 0x2b5   :  { %v2886_v2 = vpop.f32.mrf.mxu0  ;;  %v2941_v48 = vpop.f32.mrf.mxu1 }
 0x2b6   :  { %v3054_v4 = vadd.f32 %v2938_v39, %v2291_v50  ;;  %v2940_v61 = vadd.f32 %v2939_v45, %v2886_v2  ;;  %v3262_v39 = vld [vmem:[%s14807_s13 + $0x260] sm:$0xff] }
 0x2b7   :  { %v2888_v16 = vpop.f32.mrf.mxu0  ;;  %v2943_v8 = vpop.f32.mrf.mxu1 }
 0x2b8   :  { %v3055_v15 = vadd.f32 %v2940_v61, %v2293_v38  ;;  %v2942_v44 = vadd.f32 %v2941_v48, %v2888_v16  ;;  %v14892_v35 = vadd.f32 %v14878_v59, %v3054_v4  ;;  %v3261_v48 = vld [vmem:[%s14807_s13 + $0x258] sm:$0xff]  ;;  %v2307_v38 = vadd.f32 %v14845_v13, %v2254_v60  ;;  %v3260_v16 = vld [vmem:[%s14807_s13 + $0x250] sm:$0xff]  ;;  %v3259_v13 = vld [vmem:[%s14807_s13 + $0x248] sm:$0xff] }
 0x2b9   :  { %v2890_v43 = vpop.f32.mrf.mxu0  ;;  %v2947_v42 = vpop.f32.mrf.mxu1 }
 0x2ba   :  { %v3057_v56 = vadd.f32 %v2942_v44, %v2295_v19  ;;  %v2944_v7 = vadd.f32 %v2943_v8, %v2890_v43  ;;  %v14895_v11 = vadd.f32 %v14883_v55, %v3055_v15  ;;  %v3094_v31 = vmax.f32 %v14892_v35, 0.0  ;;  %v3258_v19 = vld [vmem:[%s14807_s13 + $0x240] sm:$0xff] }
 0x2bb   :  { %v2894_v34 = vpop.f32.mrf.mxu0  ;;  %v2949_v29 = vpop.f32.mrf.mxu1 }
 0x2bc   :  { %v3058_v57 = vadd.f32 %v2944_v7, %v2297_v10  ;;  %v2948_v41 = vadd.f32 %v2947_v42, %v2894_v34  ;;  %v3095_v53 = vmax.f32 %v14895_v11, 0.0  ;;  %v14903_v46 = vadd.f32 %v14878_v59, %v3057_v56  ;;  %v3256_v42 = vld [vmem:[%s14807_s13 + $0x230] sm:$0xff]  ;;  %v3255_v56 = vld [vmem:[%s14807_s13 + $0x228] sm:$0xff]  ;;  %v3254_v7 = vld [vmem:[%s14807_s13 + $0x220] sm:$0xff] }
 0x2bd   :  { %v2896_v3 = vpop.f32.mrf.mxu0  ;;  %v2951_v47 = vpop.f32.mrf.mxu1  ;;  %v3252_v34 = vld [vmem:[%s14807_s13 + $0x210] sm:$0xff]  ;;  %v3195_v11 = vld [vmem:[%s14807_s13 + $0x48] sm:$0xff] }
 0x2be   :  { %v3060_v27 = vadd.f32 %v2948_v41, %v2301_v51  ;;  %v2950_v45 = vadd.f32 %v2949_v29, %v2896_v3  ;;  %3346 = vmatprep.mubr.f32.mxu0 %v3095_v53  ;;  %v14910_v33 = vadd.f32 %v14883_v55, %v3058_v57  ;;  %v3097_v61 = vmax.f32 %v14903_v46, 0.0  ;;  %v3250_v29 = vld [vmem:[%s14807_s13 + $0x200] sm:$0xff] }
 0x2bf   :  { %v2898_v50 = vpop.f32.mrf.mxu0  ;;  %3347 = vmatmul.mubr.f32.vlgmr.msra.gmra.mxu0 %v3094_v31  ;;  %v2953_v36 = vpop.f32.mrf.mxu1 }
 0x2c0   :  { %v3061_v5 = vadd.f32 %v2950_v45, %v2303_v28  ;;  %v2952_v30 = vadd.f32 %v2951_v47, %v2898_v50  ;;  %v3098_v2 = vmax.f32 %v14910_v33, 0.0  ;;  %3566 = vmatpush1.msra.mxu0 %v3264_v9  ;;  %v14922_v20 = vadd.f32 %v14878_v59, %v3060_v27 }
 0x2c1   :  { %v2900_v4 = vpop.f32.mrf.mxu0  ;;  %3567 = vmatprep.subr.mxu0 %v3263_v37  ;;  %v2393_v50 = vadd.f32 %v14860_v26, %v14852_v12 }
 0x2c2   :  { %v3063_v25 = vadd.f32 %v2952_v30, %v2305_v62  ;;  %v2954_v8 = vadd.f32 %v2953_v36, %v2900_v4  ;;  %3352 = vmatprep.mubr.f32.mxu0 %v3098_v2  ;;  %v14928_v49 = vadd.f32 %v14883_v55, %v3061_v5  ;;  %3568 = vmatpush1.msra.mxu0 %v3262_v39  ;;  %v3100_v10 = vmax.f32 %v14922_v20, 0.0 }
 0x2c3   :  { %3353 = vmatmul.mubr.f32.gmra.mxu0 %v3097_v61  ;;  %3569 = vmatprep.subr.mxu0 %v3261_v48  ;;  %v3078_v48 = vrot.slane %v14872_v32, %v14300_v23 }
 0x2c4   :  { %v3064_v15 = vadd.f32 %v2954_v8, %v2307_v38  ;;  %v3101_v44 = vmax.f32 %v14928_v49, 0.0  ;;  %3570 = vmatpush1.msra.mxu0 %v3260_v16  ;;  %v14938_v43 = vadd.f32 %v14878_v59, %v3063_v25  ;;  %v2396_v16 = vadd.f32 %v14868_v18, %v14854_v17  ;;  %v3214_v17 = vld [vmem:[%s14807_s13 + $0xe0] sm:$0xff]  ;;  %v3213_v18 = vld [vmem:[%s14807_s13 + $0xd8] sm:$0xff] }
 0x2c5   :  { %3571 = vmatprep.subr.mxu0 %v3259_v13 }
 0x2c6   :  { %3358 = vmatprep.mubr.f32.mxu0 %v3101_v44  ;;  %v14944_v63 = vadd.f32 %v14883_v55, %v3064_v15  ;;  %3572 = vmatpush1.msra.mxu0 %v3258_v19  ;;  %v3103_v51 = vmax.f32 %v14938_v43, 0.0  ;;  %v3251_v55 = vld [vmem:[%s14807_s13 + $0x208] sm:$0xff] }
 0x2c7   :  { %3359 = vmatmul.mubr.f32.gmra.mxu0 %v3100_v10  ;;  %3573 = vmatprep.subr.mxu0 %v3257_v14  ;;  %v3216_v14 = vld [vmem:[%s14807_s13 + $0xf0] sm:$0xff] }
 0x2c8   :  { %v3104_v59 = vmax.f32 %v14944_v63, 0.0  ;;  %3574 = vmatpush1.msra.mxu0 %v3256_v42  ;;  %v3215_v42 = vld [vmem:[%s14807_s13 + $0xe8] sm:$0xff] }
 0x2c9   :  { %3575 = vmatprep.subr.mxu0 %v3255_v56 }
 0x2ca   :  { %3364 = vmatprep.mubr.f32.mxu0 %v3104_v59  ;;  %3576 = vmatpush1.msra.mxu0 %v3254_v7 }
 0x2cb   :  { %3365 = vmatmul.mubr.f32.gmra.mxu0 %v3103_v51  ;;  %3577 = vmatprep.subr.mxu0 %v3253_v54  ;;  %v3212_v54 = vld [vmem:[%s14807_s13 + $0xd0] sm:$0xff] }
 0x2cc   :  { %3578 = vmatpush1.msra.mxu0 %v3252_v34  ;;  %3613 = vmatprep.mubr.f32.mxu0 %v13985_v1  ;;  %v3211_v34 = vld [vmem:[%s14807_s13 + $0xc8] sm:$0xff] }
 0x2cd   :  { %3579 = vmatprep.subr.mxu0 %v3251_v55  ;;  %v3210_v55 = vld [vmem:[%s14807_s13 + $0xc0] sm:$0xff] }
 0x2ce   :  { %3580 = vmatpush1.msra.mxu0 %v3250_v29  ;;  %v3209_v29 = vld [vmem:[%s14807_s13 + $0xb8] sm:$0xff] }
 0x2d1   :  { %v12420_v58 = vpop.f32.mrf.mxu1 }
 0x2d3   :  { %v12421_v57 = vpop.f32.mrf.mxu1 }
 0x2d4   :  { %v12422_v45 = vadd.f32 %v12421_v57, %v12420_v58  ;;  %v3208_v57 = vld [vmem:[%s14807_s13 + $0xb0] sm:$0xff] }
 0x2d5   :  { %v12423_v41 = vpop.f32.mrf.mxu1 }
 0x2d7   :  { %v12424_v60 = vpop.f32.mrf.mxu1 }
 0x2d8   :  { %v12425_v5 = vadd.f32 %v12424_v60, %v12423_v41  ;;  %v3207_v41 = vld [vmem:[%s14807_s13 + $0xa8] sm:$0xff]  ;;  %v3206_v60 = vld [vmem:[%s14807_s13 + $0xa0] sm:$0xff] }
 0x2d9   :  { %v12426_v3 = vpop.f32.mrf.mxu1 }
 0x2db   :  { %v12427_v47 = vpop.f32.mrf.mxu1 }
 0x2dc   :  { %v12428_v36 = vadd.f32 %v12427_v47, %v12426_v3  ;;  %v3205_v3 = vld [vmem:[%s14807_s13 + $0x98] sm:$0xff] }
 0x2dd   :  { %v12429_v9 = vpop.f32.mrf.mxu1 }
 0x2df   :  { %v12430_v28 = vpop.f32.mrf.mxu1 }
 0x2e0   :  { %v12431_v25 = vadd.f32 %v12430_v28, %v12429_v9  ;;  %v3204_v9 = vld [vmem:[%s14807_s13 + $0x90] sm:$0xff]  ;;  %v3203_v28 = vld [vmem:[%s14807_s13 + $0x88] sm:$0xff] }
 0x2e1   :  { %v12727_v27 = vpop.f32.mrf.mxu1 }
 0x2e2   :  { %v3048_v30 = vadd.f32 %v12727_v27, %v12428_v36  ;;  %v3202_v27 = vld [vmem:[%s14807_s13 + $0x80] sm:$0xff] }
 0x2e3   :  { %v3039_v37 = vpop.f32.mrf.mxu1  ;;  %v3198_v36 = vld [vmem:[%s14807_s13 + $0x60] sm:$0xff] }
 0x2e4   :  { %v3040_v39 = vadd.f32 %v12422_v45, %v3039_v37  ;;  %v3062_v26 = vadd.f32 %v3048_v30, %v14857_v40  ;;  %v3201_v45 = vld [vmem:[%s14807_s13 + $0x78] sm:$0xff]  ;;  %v3200_v37 = vld [vmem:[%s14807_s13 + $0x70] sm:$0xff] }
 0x2e5   :  { %v12728_v62 = vpop.f32.mrf.mxu1  ;;  %v3192_v30 = vld [vmem:[%s14807_s13 + $0x30] sm:$0xff] }
 0x2e6   :  { %v3056_v38 = vadd.f32 %v3040_v39, %v2393_v50  ;;  %v3051_v19 = vadd.f32 %v12728_v62, %v12431_v25  ;;  %v3090_v40 = vadd.f32 %v3078_v48, %v3062_v26  ;;  %v3199_v50 = vld [vmem:[%s14807_s13 + $0x68] sm:$0xff]  ;;  %v3197_v39 = vld [vmem:[%s14807_s13 + $0x58] sm:$0xff]  ;;  %v3196_v62 = vld [vmem:[%s14807_s13 + $0x50] sm:$0xff] }
 0x2e7   :  { %v3042_v4 = vpop.f32.mrf.mxu1  ;;  %v3187_v25 = vld [vmem:[%s14807_s13 + $0x8] sm:$0xff]  ;;  %v3248_v26 = vld [vmem:[%s14807_s13 + $0x1f0] sm:$0xff] }
 0x2e8   :  { %v3084_v8 = vadd.f32 %v3078_v48, %v3056_v38  ;;  %v3043_v12 = vadd.f32 %v12425_v5, %v3042_v4  ;;  %v3065_v56 = vadd.f32 %v3051_v19, %v14862_v6  ;;  %v3102_v6 = vmax.f32 %v3090_v40, 0.0  ;;  %v3193_v5 = vld [vmem:[%s14807_s13 + $0x38] sm:$0xff]  ;;  %v3190_v38 = vld [vmem:[%s14807_s13 + $0x20] sm:$0xff]  ;;  %v3239_v40 = vld [vmem:[%s14807_s13 + $0x1a8] sm:$0xff] }
 0x2e9   :  { %v3189_v4 = vld [vmem:[%s14807_s13 + $0x18] sm:$0xff]  ;;  %v3246_v19 = vld [vmem:[%s14807_s13 + $0x1e0] sm:$0xff] }
 0x2ea   :  { %v3096_v13 = vmax.f32 %v3084_v8, 0.0  ;;  %v3059_v15 = vadd.f32 %v3043_v12, %v2396_v16  ;;  %v3093_v58 = vadd.f32 %v3078_v48, %v3065_v56  ;;  %v3188_v16 = vld [vmem:[%s14807_s13 + $0x10] sm:$0xff]  ;;  %v3186_v8 = vld [vmem:[%s14807_s13] sm:$0xff]  ;;  %v3249_v12 = vld [vmem:[%s14807_s13 + $0x1f8] sm:$0xff] }
 0x2eb   :  { %v3238_v56 = vld [vmem:[%s14807_s13 + $0x1a0] sm:$0xff] }
 0x2ec   :  { %v3087_v32 = vadd.f32 %v3078_v48, %v3059_v15  ;;  %11716 = vmatmul.mubr.msk.f32.vlgmr.msra.gmra.mxu1 %vm1070_vm9, %v3096_v13  ;;  %11720 = vmatmul.mubr.msk.f32.vlgmr.msra.gmra.mxu0 %vm1070_vm9, %v3096_v13  ;;  %v3105_v47 = vmax.f32 %v3093_v58, 0.0  ;;  %v3191_v48 = vld [vmem:[%s14807_s13 + $0x28] sm:$0xff]  ;;  %v3245_v15 = vld [vmem:[%s14807_s13 + $0x1d8] sm:$0xff] }
 0x2ed   :  { %3461 = vmatpush1.msra.mxu1 %v3216_v14  ;;  %3441 = vmatprep.mubr.f32.mxu1 %v13985_v1  ;;  %v3247_v13 = vld [vmem:[%s14807_s13 + $0x1e8] sm:$0xff]  ;;  %v3244_v14 = vld [vmem:[%s14807_s13 + $0x1d0] sm:$0xff] }
 0x2ee   :  { %v3099_v7 = vmax.f32 %v3087_v32, 0.0  ;;  %3462 = vmatprep.subr.mxu1 %v3215_v42  ;;  %3619 = vmatprep.mubr.f32.mxu0 %v13985_v1  ;;  %v3243_v42 = vld [vmem:[%s14807_s13 + $0x1c8] sm:$0xff]  ;;  %v3242_v32 = vld [vmem:[%s14807_s13 + $0x1c0] sm:$0xff] }
 0x2ef   :  { %3463 = vmatpush1.msra.mxu1 %v3214_v17  ;;  %v3241_v17 = vld [vmem:[%s14807_s13 + $0x1b8] sm:$0xff]  ;;  %v3231_v58 = vld [vmem:[%s14807_s13 + $0x168] sm:$0xff] }
 0x2f0   :  { %3464 = vmatprep.subr.mxu1 %v3213_v18  ;;  %11717 = vmatmul.mubr.msk.f32.gmra.mxu1 %vm1070_vm9, %v3099_v7  ;;  %v3240_v18 = vld [vmem:[%s14807_s13 + $0x1b0] sm:$0xff] }
 0x2f1   :  { %3465 = vmatpush1.msra.mxu1 %v3212_v54  ;;  %11721 = vmatmul.mubr.msk.f32.gmra.mxu0 %vm1070_vm9, %v3099_v7  ;;  %v3237_v7 = vld [vmem:[%s14807_s13 + $0x198] sm:$0xff]  ;;  %v3236_v54 = vld [vmem:[%s14807_s13 + $0x190] sm:$0xff] }
 0x2f2   :  { %3466 = vmatprep.subr.mxu1 %v3211_v34  ;;  %3447 = vmatprep.mubr.f32.mxu1 %v13985_v1  ;;  %v3235_v34 = vld [vmem:[%s14807_s13 + $0x188] sm:$0xff] }
 0x2f3   :  { %3467 = vmatpush1.msra.mxu1 %v3210_v55  ;;  %3625 = vmatprep.mubr.f32.mxu0 %v13985_v1  ;;  %v3234_v55 = vld [vmem:[%s14807_s13 + $0x180] sm:$0xff] }
 0x2f4   :  { %3468 = vmatprep.subr.mxu1 %v3209_v29  ;;  %11718 = vmatmul.mubr.msk.f32.gmra.mxu1 %vm1070_vm9, %v3102_v6  ;;  %v3233_v29 = vld [vmem:[%s14807_s13 + $0x178] sm:$0xff] }
 0x2f5   :  { %3469 = vmatpush1.msra.mxu1 %v3208_v57  ;;  %11722 = vmatmul.mubr.msk.f32.gmra.mxu0 %vm1070_vm9, %v3102_v6  ;;  %v3232_v6 = vld [vmem:[%s14807_s13 + $0x170] sm:$0xff]  ;;  %v3230_v57 = vld [vmem:[%s14807_s13 + $0x160] sm:$0xff] }
 0x2f6   :  { %3470 = vmatprep.subr.mxu1 %v3207_v41  ;;  %3453 = vmatprep.mubr.f32.mxu1 %v13985_v1  ;;  %v3229_v41 = vld [vmem:[%s14807_s13 + $0x158] sm:$0xff] }
 0x2f7   :  { %3471 = vmatpush1.msra.mxu1 %v3206_v60  ;;  %3631 = vmatprep.mubr.f32.mxu0 %v13985_v1  ;;  %v3228_v60 = vld [vmem:[%s14807_s13 + $0x150] sm:$0xff] }
 0x2f8   :  { %3472 = vmatprep.subr.mxu1 %v3205_v3  ;;  %11719 = vmatmul.mubr.msk.f32.gmra.mxu1 %vm1070_vm9, %v3105_v47  ;;  %v3227_v3 = vld [vmem:[%s14807_s13 + $0x148] sm:$0xff] }
 0x2f9   :  { %3473 = vmatpush1.msra.mxu1 %v3204_v9  ;;  %11723 = vmatmul.mubr.msk.f32.gmra.mxu0 %vm1070_vm9, %v3105_v47  ;;  %v3226_v47 = vld [vmem:[%s14807_s13 + $0x140] sm:$0xff]  ;;  %v3225_v9 = vld [vmem:[%s14807_s13 + $0x138] sm:$0xff] }
 0x2fa   :  { %3474 = vmatprep.subr.mxu1 %v3203_v28  ;;  %3524 = vmatprep.mubr.f32.mxu1 %v3095_v53  ;;  %v3194_v53 = vld [vmem:[%s14807_s13 + $0x40] sm:$0xff]  ;;  %v3224_v28 = vld [vmem:[%s14807_s13 + $0x130] sm:$0xff] }
 0x2fb   :  { %3475 = vmatpush1.msra.mxu1 %v3202_v27  ;;  %3717 = vmatprep.mubr.f32.mxu0 %v13985_v1  ;;  %v3223_v27 = vld [vmem:[%s14807_s13 + $0x128] sm:$0xff] }
 0x2fc   :  { %3476 = vmatprep.subr.mxu1 %v3201_v45  ;;  %v3222_v45 = vld [vmem:[%s14807_s13 + $0x120] sm:$0xff] }
 0x2fd   :  { %3477 = vmatpush1.msra.mxu1 %v3200_v37  ;;  %v3221_v37 = vld [vmem:[%s14807_s13 + $0x118] sm:$0xff] }
 0x2fe   :  { %3478 = vmatprep.subr.mxu1 %v3199_v50  ;;  %v3220_v50 = vld [vmem:[%s14807_s13 + $0x110] sm:$0xff] }
 0x2ff   :  { %3479 = vmatpush1.msra.mxu1 %v3198_v36  ;;  %v3219_v36 = vld [vmem:[%s14807_s13 + $0x108] sm:$0xff] }
 0x300   :  { %3480 = vmatprep.subr.mxu1 %v3197_v39  ;;  %v3218_v39 = vld [vmem:[%s14807_s13 + $0x100] sm:$0xff]  ;;  %s16232_s13 = sld [smem:[%s16742_s0 + %s14017_s10]]   ;;  %s14032_s10 = smov 45  }
 0x301   :  { %3481 = vmatpush1.msra.mxu1 %v3196_v62 }
 0x302   :  { %3482 = vmatprep.subr.mxu1 %v3195_v11 }
 0x303   :  { %3483 = vmatpush1.msra.mxu1 %v3194_v53 }
 0x304   :  { %3484 = vmatprep.subr.mxu1 %v3193_v5 }
 0x305   :  { %3485 = vmatpush1.msra.mxu1 %v3192_v30 }
 0x306   :  { %3486 = vmatprep.subr.mxu1 %v3191_v48 }
 0x307   :  { %3487 = vmatpush1.msra.mxu1 %v3190_v38 }
 0x308   :  { %3488 = vmatprep.subr.mxu1 %v3189_v4 }
 0x309   :  { %3489 = vmatpush1.msra.mxu1 %v3188_v16 }
 0x30a   :  { %3490 = vmatprep.subr.mxu1 %v3187_v25 }
 0x30b   :  { %3491 = vmatpush1.msra.mxu1 %v3186_v8 }
 0x30c   :  { %3492 = vmatprep.subr.mxu1 %v3249_v12 }
 0x30d   :  { %3493 = vmatpush2.msra.mxu1 %v3248_v26 }
 0x30e   :  { %3494 = vmatprep.subr.mxu1 %v3247_v13 }
 0x30f   :  { %3495 = vmatpush2.msra.mxu1 %v3246_v19 }
 0x310   :  { %3496 = vmatprep.subr.mxu1 %v3245_v15 }
 0x311   :  { %3497 = vmatpush2.msra.mxu1 %v3244_v14 }
 0x312   :  { %3498 = vmatprep.subr.mxu1 %v3243_v42 }
 0x313   :  { %3499 = vmatpush2.msra.mxu1 %v3242_v32 }
 0x314   :  { %3500 = vmatprep.subr.mxu1 %v3241_v17 }
 0x315   :  { %3501 = vmatpush2.msra.mxu1 %v3240_v18 }
 0x316   :  { %3502 = vmatprep.subr.mxu1 %v3239_v40 }
 0x317   :  { %3503 = vmatpush2.msra.mxu1 %v3238_v56 }
 0x318   :  { %3504 = vmatprep.subr.mxu1 %v3237_v7 }
 0x319   :  { %3505 = vmatpush2.msra.mxu1 %v3236_v54 }
 0x31a   :  { %3506 = vmatprep.subr.mxu1 %v3235_v34 }
 0x31b   :  { %3507 = vmatpush2.msra.mxu1 %v3234_v55 }
 0x31c   :  { %3508 = vmatprep.subr.mxu1 %v3233_v29 }
 0x31d   :  { %3509 = vmatpush2.msra.mxu1 %v3232_v6 }
 0x31e   :  { %3510 = vmatprep.subr.mxu1 %v3231_v58 }
 0x31f   :  { %3511 = vmatpush2.msra.mxu1 %v3230_v57 }
 0x320   :  { %3512 = vmatprep.subr.mxu1 %v3229_v41 }
 0x321   :  { %3513 = vmatpush2.msra.mxu1 %v3228_v60 }
 0x322   :  { %3514 = vmatprep.subr.mxu1 %v3227_v3 }
 0x323   :  { %3515 = vmatpush2.msra.mxu1 %v3226_v47 }
 0x324   :  { %3516 = vmatprep.subr.mxu1 %v3225_v9 }
 0x325   :  { %3517 = vmatpush2.msra.mxu1 %v3224_v28 }
 0x326   :  { %3518 = vmatprep.subr.mxu1 %v3223_v27 }
 0x327   :  { %3519 = vmatpush2.msra.mxu1 %v3222_v45 }
 0x328   :  { %3520 = vmatprep.subr.mxu1 %v3221_v37 }
 0x329   :  { %3521 = vmatpush2.msra.mxu1 %v3220_v50 }
 0x32a   :  { %3522 = vmatprep.subr.mxu1 %v3219_v36 }
 0x32b   :  { %3523 = vmatpush2.msra.mxu1 %v3218_v39  ;;  %v3266_v39 = vld [vmem:[%s15072_s26] sm:$0xff] }
 0x32c   :  { %3525 = vmatmul.mubr.f32.vlgmr.msra.gmra.mxu1 %v3094_v31 }
 0x32d   :  { %3530 = vmatprep.mubr.f32.mxu1 %v3098_v2 }
 0x330   :  { %3531 = vmatmul.mubr.f32.gmra.mxu1 %v3097_v61 }
 0x331   :  { %3536 = vmatprep.mubr.f32.mxu1 %v3101_v44 }
 0x334   :  { %3537 = vmatmul.mubr.f32.gmra.mxu1 %v3100_v10 }
 0x335   :  { %3542 = vmatprep.mubr.f32.mxu1 %v3104_v59 }
 0x338   :  { %3543 = vmatmul.mubr.f32.gmra.mxu1 %v3103_v51 }
 0x339   :  { %3800 = vmatprep.mubr.f32.mxu1 %v13985_v1 }
 0x37f   :  { %v3348_v35 = vpop.f32.mrf.mxu0 }
 0x381   :  { %v3350_v31 = vpop.f32.mrf.mxu0 }
 0x383   :  { %v3354_v46 = vpop.f32.mrf.mxu0 }
 0x385   :  { %v3356_v33 = vpop.f32.mrf.mxu0 }
 0x387   :  { %v3360_v61 = vpop.f32.mrf.mxu0 }
 0x389   :  { %v3362_v49 = vpop.f32.mrf.mxu0 }
 0x38b   :  { %v3366_v10 = vpop.f32.mrf.mxu0 }
 0x38d   :  { %v3368_v63 = vpop.f32.mrf.mxu0 }
 0x3ac   :  { %v3437_v2 = vpop.f32.mrf.mxu1  ;;  %v3615_v59 = vpop.f32.mrf.mxu0 }
 0x3ad   :  { %v3438_v45 = vadd.f32 %v3437_v2, %v3348_v35  ;;  %v13261_v35 = vld [vmem:[%s15067_s22 + $0x19c] ss:$12 sps:$4 sm:$0xff]  }
 0x3ae   :  { %v3439_v20 = vpop.f32.mrf.mxu1  ;;  %v3617_v62 = vpop.f32.mrf.mxu0  ;;  %v3267_v2 = vld [vmem:[%s15072_s26 + $0x8] sm:$0xff]  ;;  %s11452_s26 = sld [smem:[%s16742_s0 + %s14020_s23]]  }
 0x3af   :  { %v3440_v28 = vadd.f32 %v3439_v20, %v3350_v31  ;;  %v3268_v31 = vld [vmem:[%s15077_s30] sm:$0xff] }
 0x3b0   :  { %v3443_v44 = vpop.f32.mrf.mxu1  ;;  %v13265_v20 = vld [vmem:[%s15067_s22 + $0x184] ss:$12 sps:$4 sm:$0xff]  }
 0x3b1   :  { %v3621_v53 = vpop.f32.mrf.mxu0  ;;  %v3444_v3 = vadd.f32 %v3443_v44, %v3354_v46  ;;  %v13259_v46 = vld [vmem:[%s15067_s22 + $0x198] ss:$12 sps:$4 sm:$0xff]   ;;  %v13266_v44 = vld [vmem:[%s15067_s22 + $0x188] ss:$12 sps:$4 sm:$0xff]  }
 0x3b2   :  { %v3445_v43 = vpop.f32.mrf.mxu1 }
 0x3b3   :  { %v3623_v30 = vpop.f32.mrf.mxu0  ;;  %v3446_v57 = vadd.f32 %v3445_v43, %v3356_v33  ;;  %v13262_v33 = vld [vmem:[%s15067_s22 + $0x1a0] ss:$12 sps:$4 sm:$0xff]   ;;  %v13267_v43 = vld [vmem:[%s15067_s22 + $0x168] ss:$12 sps:$4 sm:$0xff]  }
 0x3b4   :  { %v3449_v51 = vpop.f32.mrf.mxu1 }
 0x3b5   :  { %v3627_v4 = vpop.f32.mrf.mxu0  ;;  %v3450_v29 = vadd.f32 %v3449_v51, %v3360_v61  ;;  %v3269_v61 = vld [vmem:[%s15077_s30 + $0x8] sm:$0xff]  ;;  %v13271_v51 = vld [vmem:[%s15067_s22 + $0x150] ss:$12 sps:$4 sm:$0xff]   ;;  %s11453_s30 = sld [smem:[%s16742_s0 + %s14021_s27]]  }
 0x3b6   :  { %v3451_v11 = vpop.f32.mrf.mxu1 }
 0x3b7   :  { %v3629_v8 = vpop.f32.mrf.mxu0  ;;  %v3452_v54 = vadd.f32 %v3451_v11, %v3362_v49  ;;  %v13263_v49 = vld [vmem:[%s15067_s22 + $0x180] ss:$12 sps:$4 sm:$0xff]   ;;  %v13277_v11 = vld [vmem:[%s15067_s22 + $0x13c] ss:$12 sps:$4 sm:$0xff]  }
 0x3b8   :  { %v3455_v5 = vpop.f32.mrf.mxu1 }
 0x3b9   :  { %v3633_v13 = vpop.f32.mrf.mxu0  ;;  %v3456_v56 = vadd.f32 %v3455_v5, %v3366_v10  ;;  %v13269_v10 = vld [vmem:[%s15067_s22 + $0x16c] ss:$12 sps:$4 sm:$0xff]  }
 0x3ba   :  { %v3457_v48 = vpop.f32.mrf.mxu1  ;;  %v13278_v5 = vld [vmem:[%s15067_s22 + $0x140] ss:$12 sps:$4 sm:$0xff]  }
 0x3bb   :  { %v3635_v14 = vpop.f32.mrf.mxu0  ;;  %v3458_v17 = vadd.f32 %v3457_v48, %v3368_v63  ;;  %v13270_v63 = vld [vmem:[%s15067_s22 + $0x170] ss:$12 sps:$4 sm:$0xff]   ;;  %v13279_v48 = vld [vmem:[%s15067_s22 + $0x120] ss:$12 sps:$4 sm:$0xff]  }
 0x3ec   :  { %v3526_v38 = vpop.f32.mrf.mxu1 }
 0x3ed   :  { %v3616_v47 = vadd.f32 %v3615_v59, %v3526_v38  ;;  %v13273_v59 = vld [vmem:[%s15067_s22 + $0x154] ss:$12 sps:$4 sm:$0xff]  }
 0x3ee   :  { %v3528_v16 = vpop.f32.mrf.mxu1  ;;  %v13282_v38 = vld [vmem:[%s15067_s22 + $0x128] ss:$12 sps:$4 sm:$0xff]  }
 0x3ef   :  { %v3618_v41 = vadd.f32 %v3617_v62, %v3528_v16  ;;  %v3638_v36 = vmax.f32 %v3438_v45, %v3616_v47  ;;  %v13274_v62 = vld [vmem:[%s15067_s22 + $0x158] ss:$12 sps:$4 sm:$0xff]   ;;  %v13283_v16 = vld [vmem:[%s15067_s22 + $0x108] ss:$12 sps:$4 sm:$0xff]   ;;  %v13302_v45 = vld [vmem:[%s15067_s22 + $0xb0] ss:$12 sps:$4 sm:$0xff]  }
 0x3f0   :  { %v3532_v25 = vpop.f32.mrf.mxu1 }
 0x3f1   :  { %v3622_v6 = vadd.f32 %v3621_v53, %v3532_v25  ;;  %v3639_v50 = vmax.f32 %v3440_v28, %v3618_v41  ;;  %v13275_v53 = vld [vmem:[%s15067_s22 + $0x138] ss:$12 sps:$4 sm:$0xff]   ;;  %v13286_v25 = vld [vmem:[%s15067_s22 + $0x110] ss:$12 sps:$4 sm:$0xff]  }
 0x3f2   :  { %v3534_v12 = vpop.f32.mrf.mxu1 }
 0x3f3   :  { %v3624_v34 = vadd.f32 %v3623_v30, %v3534_v12  ;;  %v3640_v37 = vmax.f32 %v3444_v3, %v3622_v6  ;;  %v13281_v30 = vld [vmem:[%s15067_s22 + $0x124] ss:$12 sps:$4 sm:$0xff]  }
 0x3f4   :  { %v3538_v26 = vpop.f32.mrf.mxu1  ;;  %v13287_v12 = vld [vmem:[%s15067_s22 + $0xf0] ss:$12 sps:$4 sm:$0xff]  }
 0x3f5   :  { %v3628_v7 = vadd.f32 %v3627_v4, %v3538_v26  ;;  %v3641_v27 = vmax.f32 %v3446_v57, %v3624_v34  ;;  %v13285_v4 = vld [vmem:[%s15067_s22 + $0x10c] ss:$12 sps:$4 sm:$0xff]  }
 0x3f6   :  { %v3540_v19 = vpop.f32.mrf.mxu1  ;;  %v13290_v26 = vld [vmem:[%s15067_s22 + $0xf8] ss:$12 sps:$4 sm:$0xff]  }
 0x3f7   :  { %v3630_v18 = vadd.f32 %v3629_v8, %v3540_v19  ;;  %v3642_v9 = vmax.f32 %v3450_v29, %v3628_v7  ;;  %v13289_v8 = vld [vmem:[%s15067_s22 + $0xf4] ss:$12 sps:$4 sm:$0xff]   ;;  %v13293_v19 = vld [vmem:[%s15067_s22 + $0x1cc] ss:$12 sps:$4 sm:$0xff]  }
 0x3f8   :  { %v3544_v15 = vpop.f32.mrf.mxu1 }
 0x3f9   :  { %v3634_v42 = vadd.f32 %v3633_v13, %v3544_v15  ;;  %v3643_v60 = vmax.f32 %v3452_v54, %v3630_v18  ;;  %v13291_v13 = vld [vmem:[%s15067_s22 + $0x1c8] ss:$12 sps:$4 sm:$0xff]   ;;  %v13294_v15 = vld [vmem:[%s15067_s22 + $0x1d0] ss:$12 sps:$4 sm:$0xff]  }
 0x3fa   :  { %v3546_v32 = vpop.f32.mrf.mxu1 }
 0x3fb   :  { %v3636_v40 = vadd.f32 %v3635_v14, %v3546_v32  ;;  %v3644_v58 = vmax.f32 %v3456_v56, %v3634_v42  ;;  %v13295_v14 = vld [vmem:[%s15067_s22 + $0x1b0] ss:$12 sps:$4 sm:$0xff]   ;;  %v13297_v42 = vld [vmem:[%s15067_s22 + $0x1b4] ss:$12 sps:$4 sm:$0xff]   ;;  %v13298_v32 = vld [vmem:[%s15067_s22 + $0x1b8] ss:$12 sps:$4 sm:$0xff]  }
 0x3fd   :  { %v3645_v55 = vmax.f32 %v3458_v17, %v3636_v40  ;;  %v13301_v17 = vld [vmem:[%s15067_s22 + $0xac] ss:$12 sps:$4 sm:$0xff]  }
 0x3ff   :  { %3677 = vmatprep.subr.mxu0 %v3645_v55  ;;  %3760 = vmatprep.subr.mxu1 %v3645_v55 }
 0x400   :  { %3678 = vmatpush1.msra.mxu0 %v3644_v58  ;;  %3761 = vmatpush1.msra.mxu1 %v3644_v58 }
 0x401   :  { %3679 = vmatprep.subr.mxu0 %v3643_v60  ;;  %3762 = vmatprep.subr.mxu1 %v3643_v60 }
 0x402   :  { %3680 = vmatpush1.msra.mxu0 %v3642_v9  ;;  %3763 = vmatpush1.msra.mxu1 %v3642_v9 }
 0x403   :  { %3681 = vmatprep.subr.mxu0 %v3641_v27  ;;  %3764 = vmatprep.subr.mxu1 %v3641_v27  ;;  %v13299_v27 = vld [vmem:[%s15067_s22 + $0xa8] ss:$12 sps:$4 sm:$0xff]  }
 0x404   :  { %3682 = vmatpush1.msra.mxu0 %v3640_v37  ;;  %3765 = vmatpush1.msra.mxu1 %v3640_v37 }
 0x405   :  { %3683 = vmatprep.subr.mxu0 %v3639_v50  ;;  %3766 = vmatprep.subr.mxu1 %v3639_v50  ;;  %v13305_v50 = vld [vmem:[%s15067_s22 + $0x94] ss:$12 sps:$4 sm:$0xff]  }
 0x406   :  { %3684 = vmatpush1.msra.mxu0 %v3638_v36  ;;  %3767 = vmatpush1.msra.mxu1 %v3638_v36 }
 0x407   :  { %11724 = vmatmul.mubr.msk.f32.vlgmr.msra.gmra.mxu0 %vm3646_vm11, %v3266_v39  ;;  %11726 = vmatmul.mubr.msk.f32.vlgmr.msra.gmra.mxu1 %vm3646_vm11, %v3268_v31  ;;  %v13303_v39 = vld [vmem:[%s15067_s22 + $0x90] ss:$12 sps:$4 sm:$0xff]   ;;  %v13306_v31 = vld [vmem:[%s15067_s22 + $0x98] ss:$12 sps:$4 sm:$0xff]  }
 0x408   :  { %3723 = vmatprep.mubr.f32.mxu0 %v13985_v1  ;;  %3806 = vmatprep.mubr.f32.mxu1 %v13985_v1 }
 0x409   :  { %4142 = vmatprep.subr.bf16.mxu0 %v13261_v35  ;;  %4185 = vmatprep.subr.bf16.mxu1 %v13983_v0  ;;  %v13309_v35 = vld [vmem:[%s15067_s22 + $0x7c] ss:$12 sps:$4 sm:$0xff]  }
 0x40a   :  { %4143 = vmatpush1.bf16.msra.mxu0 %v13259_v46  ;;  %4186 = vmatpush1.bf16.msra.mxu1 %v13262_v33 }
 0x40b   :  { %11725 = vmatmul.mubr.msk.f32.gmra.mxu0 %vm3646_vm11, %v3267_v2  ;;  %11727 = vmatmul.mubr.msk.f32.gmra.mxu1 %vm3646_vm11, %v3269_v61  ;;  %v13307_v2 = vld [vmem:[%s15067_s22 + $0x78] ss:$12 sps:$4 sm:$0xff]   ;;  %v13310_v61 = vld [vmem:[%s15067_s22 + $0x80] ss:$12 sps:$4 sm:$0xff]  }
 0x40c   :  { %4144 = vmatprep.subr.bf16.mxu0 %v13265_v20  ;;  %4187 = vmatprep.subr.bf16.mxu1 %v13983_v0  ;;  %v13313_v20 = vld [vmem:[%s15067_s22 + $0x64] ss:$12 sps:$4 sm:$0xff]  }
 0x40e   :  { %4145 = vmatpush1.bf16.msra.mxu0 %v13263_v49  ;;  %4188 = vmatpush1.bf16.msra.mxu1 %v13266_v44 }
 0x40f   :  { %4146 = vmatprep.subr.bf16.mxu0 %v13269_v10  ;;  %4189 = vmatprep.subr.bf16.mxu1 %v13983_v0  ;;  %v15167_v10 = vpop.permute.xlu1 %3868 }
 0x412   :  { %4147 = vmatpush1.bf16.msra.mxu0 %v13267_v43  ;;  %4190 = vmatpush1.bf16.msra.mxu1 %v13270_v63  ;;  %v15169_v43 = vpop.permute.xlu0 %3863 }
 0x413   :  { %4148 = vmatprep.subr.bf16.mxu0 %v13273_v59  ;;  %4191 = vmatprep.subr.bf16.mxu1 %v13983_v0 }
 0x416   :  { %4149 = vmatpush1.bf16.msra.mxu0 %v13271_v51  ;;  %4192 = vmatpush1.bf16.msra.mxu1 %v13274_v62  ;;  %v13311_v62 = vld [vmem:[%s15067_s22 + $0x60] ss:$12 sps:$4 sm:$0xff]  }
 0x417   :  { %4150 = vmatprep.subr.bf16.mxu0 %v13277_v11  ;;  %4193 = vmatprep.subr.bf16.mxu1 %v13983_v0  ;;  %v13314_v11 = vld [vmem:[%s15067_s22 + $0x68] ss:$12 sps:$4 sm:$0xff]  }
 0x41a   :  { %4151 = vmatpush1.bf16.msra.mxu0 %v13275_v53  ;;  %4194 = vmatpush1.bf16.msra.mxu1 %v13278_v5  ;;  %v13317_v5 = vld [vmem:[%s15067_s22 + $0x4c] ss:$12 sps:$4 sm:$0xff]  }
 0x41b   :  { %4152 = vmatprep.subr.bf16.mxu0 %v13281_v30  ;;  %4195 = vmatprep.subr.bf16.mxu1 %v13983_v0  ;;  %v13315_v30 = vld [vmem:[%s15067_s22 + $0x48] ss:$12 sps:$4 sm:$0xff]  }
 0x41e   :  { %4153 = vmatpush1.bf16.msra.mxu0 %v13279_v48  ;;  %4196 = vmatpush1.bf16.msra.mxu1 %v13282_v38  ;;  %v13318_v48 = vld [vmem:[%s15067_s22 + $0x50] ss:$12 sps:$4 sm:$0xff]   ;;  %v13321_v38 = vld [vmem:[%s15067_s22 + $0x34] ss:$12 sps:$4 sm:$0xff]  }
 0x41f   :  { %4154 = vmatprep.subr.bf16.mxu0 %v13285_v4  ;;  %4197 = vmatprep.subr.bf16.mxu1 %v13983_v0  ;;  %v13319_v4 = vld [vmem:[%s15067_s22 + $0x30] ss:$12 sps:$4 sm:$0xff]  }
 0x422   :  { %4155 = vmatpush1.bf16.msra.mxu0 %v13283_v16  ;;  %4198 = vmatpush1.bf16.msra.mxu1 %v13286_v25  ;;  %v13322_v16 = vld [vmem:[%s15067_s22 + $0x38] ss:$12 sps:$4 sm:$0xff]   ;;  %v13325_v25 = vld [vmem:[%s15067_s22 + $0x1c] ss:$12 sps:$4 sm:$0xff]  }
 0x423   :  { %4156 = vmatprep.subr.bf16.mxu0 %v13289_v8  ;;  %4199 = vmatprep.subr.bf16.mxu1 %v13983_v0  ;;  %v3882_v8 = vpop.permute.xlu1 %3881 }
 0x426   :  { %4157 = vmatpush1.bf16.msra.mxu0 %v13287_v12  ;;  %4200 = vmatpush1.bf16.msra.mxu1 %v13290_v26  ;;  %v3878_v12 = vpop.permute.xlu0 %3877  ;;  %v13323_v26 = vld [vmem:[%s15067_s22 + $0x18] ss:$12 sps:$4 sm:$0xff]  }
 0x427   :  { %4213 = vmatprep.subr.bf16.mxu1 %v13983_v0  ;;  %4170 = vmatprep.subr.bf16.mxu0 %v13293_v19  ;;  %v13329_v19 = vld [vmem:[%s15067_s22 + $0x4] ss:$12 sps:$4 sm:$0xff]  }
 0x42a   :  { %4171 = vmatpush2.bf16.msra.mxu0 %v13291_v13  ;;  %4214 = vmatpush2.bf16.msra.mxu1 %v13294_v15  ;;  %v13326_v13 = vld [vmem:[%s15067_s22 + $0x20] ss:$12 sps:$4 sm:$0xff]   ;;  %v15194_v15 = vrot.slane %v3882_v8, 6  ;;  %v13371_v8 = vld [vmem:[%s15067_s22 + $0x2b8] ss:$12 sps:$4 sm:$0xff]  }
 0x42b   :  { %4215 = vmatprep.subr.bf16.mxu1 %v13983_v0  ;;  %4172 = vmatprep.subr.bf16.mxu0 %v13297_v42  ;;  %v13327_v42 = vld [vmem:[%s15067_s22] ss:$12 sps:$4 sm:$0xff]  }
 0x42e   :  { %4173 = vmatpush2.bf16.msra.mxu0 %v13295_v14  ;;  %4216 = vmatpush2.bf16.msra.mxu1 %v13298_v32  ;;  %v15196_v14 = vrot.slane %v3878_v12, 6  ;;  %v13330_v32 = vld [vmem:[%s15067_s22 + $0x8] ss:$12 sps:$4 sm:$0xff]  }
 0x42f   :  { %4389 = vmatprep.subr.bf16.mxu0 %v13301_v17  ;;  %4432 = vmatprep.subr.bf16.mxu1 %v13983_v0  ;;  %v13333_v17 = vld [vmem:[%s15067_s22 + $0xdc] ss:$12 sps:$4 sm:$0xff]  }
 0x4c7   :  { %v3719_v18 = vpop.f32.mrf.mxu0  ;;  %v3802_v40 = vpop.f32.mrf.mxu1 }
 0x4c8   :  { %v15131_v56 = vmax.f32 %v3719_v18, %v3802_v40  ;;  %v15205_v18 = vsel %vm288_vm5, %v15196_v14, %v15194_v15 }
 0x4c9   :  { %v3721_v7 = vpop.f32.mrf.mxu0  ;;  %v3804_v54 = vpop.f32.mrf.mxu1 }
 0x4ca   :  { %v3833_v34 = vrot.slane %v15131_v56, 7  ;;  %v3814_v55 = vmax.f32 %v3721_v7, %v3804_v54 }
 0x4cb   :  { %v3725_v29 = vpop.f32.mrf.mxu0  ;;  %v3808_v6 = vpop.f32.mrf.mxu1 }
 0x4cc   :  { %3845 = vst [vmem:[#allocation2] sm:$0xfe] %v3833_v34  ;;  %v3834_v58 = vrot.slane %v3814_v55, 7  ;;  %v15136_v57 = vmax.f32 %v3725_v29, %v3808_v6  ;;  %v13334_v29 = vld [vmem:[%s15067_s22 + $0xe0] ss:$12 sps:$4 sm:$0xff]  }
 0x4cd   :  { %v3727_v41 = vpop.f32.mrf.mxu0  ;;  %v3810_v60 = vpop.f32.mrf.mxu1  ;;  %v13337_v6 = vld [vmem:[%s15067_s22 + $0xc4] ss:$12 sps:$4 sm:$0xff]  }
 0x4ce   :  { %3847 = vst.msk [vmem:[#allocation2 + $0x8] sm:$0xfe] %vm3846_vm12, %v3834_v58  ;;  %v3835_v3 = vrot.slane %v15136_v57, 7  ;;  %v3816_v47 = vmax.f32 %v3727_v41, %v3810_v60  ;;  %v3937_v37 = vpack.c.bf16 %v15136_v57, %v15131_v56 }
 0x4d0   :  { %3850 = vst [vmem:[#allocation2 + $0x30] sm:$0x1] %v3835_v3  ;;  %v3837_v9 = vrot.slane %v3816_v47, 7  ;;  %v3938_v28 = vpack.c.bf16 %v3816_v47, %v3814_v55  ;;  %v13331_v55 = vld [vmem:[%s15067_s22 + $0xd8] ss:$12 sps:$4 sm:$0xff]   ;;  %v15219_v47 = vsel %vm222_vm1, %v3833_v34, %v3835_v3 }
 0x4d1   :  { %v3873_v57 = vmul.f32 %v15167_v10, %v15219_v47  ;;  %v13339_v3 = vld [vmem:[%s15067_s22 + $0x288] ss:$12 sps:$4 sm:$0xff]  }
 0x4d2   :  { %v3838_v36 = vsel %vm222_vm1, %v3834_v58, %v3837_v9  ;;  %3852 = vst.msk [vmem:[#allocation2 + $0x38] sm:$0x1] %vm3851_vm13, %v3837_v9  ;;  %11758 = vmatprep.mubr.msk.bf16.mxu0 %vm3646_vm11, %v3938_v28  ;;  %11759 = vmatprep.mubr.msk.bf16.mxu1 %vm3646_vm11, %v3938_v28  ;;  %v13335_v9 = vld [vmem:[%s15067_s22 + $0xc0] ss:$12 sps:$4 sm:$0xff]   ;;  %v13338_v28 = vld [vmem:[%s15067_s22 + $0xc8] ss:$12 sps:$4 sm:$0xff]  }
 0x4d3   :  { %3849 = vst.msk [vmem:[#allocation2 + $0x20] sm:$0xff] %vm3646_vm11, %v3838_v36  ;;  %4175 = vmatmul.mubr.bf16.vlgmr.msra.gmra.mxu0 %v3937_v37  ;;  %4218 = vmatmul.mubr.bf16.vlgmr.msra.gmra.mxu1 %v3937_v37  ;;  %v15156_v33 = vld [vmem:[#allocation2] sm:$0xff] }
 0x4d4   :  { %4390 = vmatpush1.bf16.msra.mxu0 %v13299_v27  ;;  %4433 = vmatpush1.bf16.msra.mxu1 %v13302_v45  ;;  %v3871_v27 = vmul.f32 %v15169_v43, %v15156_v33  ;;  %v13341_v45 = vld [vmem:[%s15067_s22 + $0x28c] ss:$12 sps:$4 sm:$0xff]   ;;  %v13345_v36 = vld [vmem:[%s15067_s22 + $0x274] ss:$12 sps:$4 sm:$0xff]  }
 0x4d5   :  { %4391 = vmatprep.subr.bf16.mxu0 %v13305_v50  ;;  %4434 = vmatprep.subr.bf16.mxu1 %v13983_v0  ;;  %v3854_v46 = vld [vmem:[#allocation2 + $0x8] sm:$0xff]  ;;  %v13342_v50 = vld [vmem:[%s15067_s22 + $0x290] ss:$12 sps:$4 sm:$0xff]   ;;  %v13347_v33 = vld [vmem:[%s15067_s22 + $0x258] ss:$12 sps:$4 sm:$0xff]  }
 0x4d6   :  { %4814 = vst.msk [vmem:[#allocation2] ss:$8 sm:$0x7] %vm14126_vm4, %v13985_v1  ;;  %v3872_v59 = vmul.f32 %v15169_v43, %v3854_v46  ;;  %v3858_v40 = vld [vmem:[#allocation2 + $0x8] sm:$0xfc]  ;;  %v3895_v37 = vpack.c.bf16 %v3873_v57, %v3871_v27 }
 0x4d7   :  { %v15165_v44 = vld [vmem:[#allocation2 + $0x30] sm:$0x3]  ;;  %v3890_v58 = vmul.f32 %v15196_v14, %v3858_v40  ;;  %v13349_v46 = vld [vmem:[%s15067_s22 + $0x25c] ss:$12 sps:$4 sm:$0xff]   ;;  %v13381_v40 = vld [vmem:[%s15276_s3 + $0x28c] ss:$12 sps:$4 sm:$0xff]  }
 0x4d8   :  { %4392 = vmatpush1.bf16.msra.mxu0 %v13303_v39  ;;  %4435 = vmatpush1.bf16.msra.mxu1 %v13306_v31  ;;  %v13343_v31 = vld [vmem:[%s15067_s22 + $0x270] ss:$12 sps:$4 sm:$0xff]   ;;  %v13355_v43 = vld [vmem:[%s15067_s22 + $0x228] ss:$12 sps:$4 sm:$0xff]   ;;  %v13417_v57 = vld [vmem:[%s15276_s3 + $0x3ac] ss:$12 sps:$4 sm:$0xff]  }
 0x4d9   :  { %4393 = vmatprep.subr.bf16.mxu0 %v13309_v35  ;;  %4436 = vmatprep.subr.bf16.mxu1 %v13983_v0  ;;  %v3860_v49 = vld [vmem:[#allocation2 + $0x38] sm:$0x3]  ;;  %v13399_v27 = vld [vmem:[%s15276_s3 + $0x1fc] ss:$12 sps:$4 sm:$0xff]  }
 0x4da   :  { %v3856_v63 = vld [vmem:[#allocation2 + $0x20] sm:$0xff]  ;;  %4816 = vst.msk [vmem:[#allocation2 + $0x31] ss:$8 sm:$0x7] %vm14126_vm4, %v13985_v1  ;;  %v3894_v54 = vmul.f32 %v15194_v15, %v3860_v49  ;;  %v13354_v49 = vld [vmem:[%s15067_s22 + $0x248] ss:$12 sps:$4 sm:$0xff]  }
 0x4db   :  { %v3874_v51 = vmul.f32 %v15167_v10, %v3856_v63  ;;  %v3892_v7 = vmul.f32 %v15205_v18, %v3856_v63  ;;  %v13346_v35 = vld [vmem:[%s15067_s22 + $0x278] ss:$12 sps:$4 sm:$0xff]   ;;  %v13358_v63 = vld [vmem:[%s15067_s22 + $0x230] ss:$12 sps:$4 sm:$0xff]  }
 0x4dc   :  { %4394 = vmatpush1.bf16.msra.mxu0 %v13307_v2  ;;  %4437 = vmatpush1.bf16.msra.mxu1 %v13310_v61  ;;  %v4476_v60 = vpack.c.bf16 %v3894_v54, %v3894_v54  ;;  %v13350_v2 = vld [vmem:[%s15067_s22 + $0x260] ss:$12 sps:$4 sm:$0xff]   ;;  %v13353_v61 = vld [vmem:[%s15067_s22 + $0x244] ss:$12 sps:$4 sm:$0xff]  }
 0x4dd   :  { %4395 = vmatprep.subr.bf16.mxu0 %v13313_v20  ;;  %4438 = vmatprep.subr.bf16.mxu1 %v13983_v0  ;;  %v3896_v53 = vpack.c.bf16 %v3874_v51, %v3872_v59  ;;  %v4474_v41 = vpack.c.bf16 %v3892_v7, %v3890_v58  ;;  %v13351_v20 = vld [vmem:[%s15067_s22 + $0x240] ss:$12 sps:$4 sm:$0xff]   ;;  %v13359_v51 = vld [vmem:[%s15067_s22 + $0x210] ss:$12 sps:$4 sm:$0xff]  }
 0x4de   :  { %v4525_v34 = vrot.slane %v4476_v60, 1  ;;  %v13357_v10 = vld [vmem:[%s15067_s22 + $0x22c] ss:$12 sps:$4 sm:$0xff]   ;;  %v13361_v59 = vld [vmem:[%s15067_s22 + $0x214] ss:$12 sps:$4 sm:$0xff]  }
 0x4df   :  { %11790 = vmatprep.mubr.msk.bf16.mxu0 %vm3646_vm11, %v3896_v53  ;;  %11791 = vmatprep.mubr.msk.bf16.mxu1 %vm3646_vm11, %v3896_v53  ;;  %v4524_v56 = vrot.slane %v4474_v41, 1  ;;  %v13363_v53 = vld [vmem:[%s15067_s22 + $0x1f8] ss:$12 sps:$4 sm:$0xff]   ;;  %v13384_v54 = vld [vmem:[%s15276_s3 + $0x274] ss:$12 sps:$4 sm:$0xff]  }
 0x4e0   :  { %4396 = vmatpush1.bf16.msra.mxu0 %v13311_v62  ;;  %4439 = vmatpush1.bf16.msra.mxu1 %v13314_v11  ;;  %v13362_v62 = vld [vmem:[%s15067_s22 + $0x218] ss:$12 sps:$4 sm:$0xff]   ;;  %v13365_v11 = vld [vmem:[%s15067_s22 + $0x1fc] ss:$12 sps:$4 sm:$0xff]   ;;  %v13388_v58 = vld [vmem:[%s15276_s3 + $0x240] ss:$12 sps:$4 sm:$0xff]  }
 0x4e1   :  { %4397 = vmatprep.subr.bf16.mxu0 %v13317_v5  ;;  %4440 = vmatprep.subr.bf16.mxu1 %v13983_v0  ;;  %v4526_v39 = vsel %vm752_vm6, %v4524_v56, %v4525_v34  ;;  %v13366_v5 = vld [vmem:[%s15067_s22 + $0x200] ss:$12 sps:$4 sm:$0xff]   ;;  %v13390_v41 = vld [vmem:[%s15276_s3 + $0x244] ss:$12 sps:$4 sm:$0xff]   ;;  %v13391_v60 = vld [vmem:[%s15276_s3 + $0x228] ss:$12 sps:$4 sm:$0xff]  }
 0x4e2   :  { %v13397_v56 = vld [vmem:[%s15276_s3 + $0x1f8] ss:$12 sps:$4 sm:$0xff]  }
 0x4e3   :  { %v13402_v34 = vld [vmem:[%s15276_s3 + $0x1e4] ss:$12 sps:$4 sm:$0xff]  }
 0x4e4   :  { %4398 = vmatpush1.bf16.msra.mxu0 %v13315_v30  ;;  %4441 = vmatpush1.bf16.msra.mxu1 %v13318_v48  ;;  %v13369_v30 = vld [vmem:[%s15067_s22 + $0x1e4] ss:$12 sps:$4 sm:$0xff]   ;;  %v13367_v48 = vld [vmem:[%s15067_s22 + $0x1e0] ss:$12 sps:$4 sm:$0xff]  }
 0x4e5   :  { %4399 = vmatprep.subr.bf16.mxu0 %v13321_v38  ;;  %4442 = vmatprep.subr.bf16.mxu1 %v13983_v0  ;;  %v13370_v38 = vld [vmem:[%s15067_s22 + $0x1e8] ss:$12 sps:$4 sm:$0xff]  }
 0x4e8   :  { %4400 = vmatpush1.bf16.msra.mxu0 %v13319_v4  ;;  %4443 = vmatpush1.bf16.msra.mxu1 %v13322_v16  ;;  %v13373_v4 = vld [vmem:[%s15067_s22 + $0x2bc] ss:$12 sps:$4 sm:$0xff]   ;;  %v3857_v16 = vld [vmem:[#allocation2] sm:$0xfc] }
 0x4e9   :  { %4401 = vmatprep.subr.bf16.mxu0 %v13325_v25  ;;  %4444 = vmatprep.subr.bf16.mxu1 %v13983_v0  ;;  %v3893_v25 = vmul.f32 %v15194_v15, %v15165_v44  ;;  %v3889_v12 = vmul.f32 %v15196_v14, %v3857_v16  ;;  %v13375_v44 = vld [vmem:[%s15067_s22 + $0x2a0] ss:$12 sps:$4 sm:$0xff]   ;;  %v13378_v14 = vld [vmem:[%s15067_s22 + $0x2a8] ss:$12 sps:$4 sm:$0xff]  }
 0x4ec   :  { %4402 = vmatpush1.bf16.msra.mxu0 %v13323_v26  ;;  %4445 = vmatpush1.bf16.msra.mxu1 %v13326_v13  ;;  %v13374_v26 = vld [vmem:[%s15067_s22 + $0x2c0] ss:$12 sps:$4 sm:$0xff]   ;;  %v13377_v13 = vld [vmem:[%s15067_s22 + $0x2a4] ss:$12 sps:$4 sm:$0xff]   ;;  %s11447_s22 = sld [smem:[%s16742_s0 + %s14019_s19]]   ;;  %s14034_s19 = smov 49  }
 0x4ed   :  { %4403 = vmatprep.subr.bf16.mxu0 %v13329_v19  ;;  %4446 = vmatprep.subr.bf16.mxu1 %v13983_v0  ;;  %v3891_v19 = vmul.f32 %v15205_v18, %v15219_v47  ;;  %v13379_v18 = vld [vmem:[%s15276_s3 + $0x288] ss:$12 sps:$4 sm:$0xff]   ;;  %v13393_v47 = vld [vmem:[%s15276_s3 + $0x22c] ss:$12 sps:$4 sm:$0xff]  }
 0x4ef   :  { %v4473_v15 = vpack.c.bf16 %v3891_v19, %v3889_v12 }
 0x4f0   :  { %4404 = vmatpush1.bf16.msra.mxu0 %v13327_v42  ;;  %4447 = vmatpush1.bf16.msra.mxu1 %v13330_v32  ;;  %v4475_v42 = vpack.c.bf16 %v3893_v25, %v3893_v25 }
 0x4f1   :  { %4417 = vmatprep.subr.bf16.mxu0 %v13333_v17  ;;  %4460 = vmatprep.subr.bf16.mxu1 %v13983_v0  ;;  %v4521_v17 = vrot.slane %v4473_v15, 1 }
 0x4f2   :  { %v4522_v32 = vrot.slane %v4475_v42, 1 }
 0x4f4   :  { %4418 = vmatpush2.bf16.msra.mxu0 %v13331_v55  ;;  %4461 = vmatpush2.bf16.msra.mxu1 %v13334_v29  ;;  %v4523_v7 = vsel %vm752_vm6, %v4521_v17, %v4522_v32  ;;  %v13382_v55 = vld [vmem:[%s15276_s3 + $0x270] ss:$12 sps:$4 sm:$0xff]  }
 0x4f5   :  { %4419 = vmatprep.subr.bf16.mxu0 %v13337_v6  ;;  %4462 = vmatprep.subr.bf16.mxu1 %v13983_v0  ;;  %v13387_v29 = vld [vmem:[%s15276_s3 + $0x25c] ss:$12 sps:$4 sm:$0xff]   ;;  %v13385_v6 = vld [vmem:[%s15276_s3 + $0x258] ss:$12 sps:$4 sm:$0xff]  }
 0x4f8   :  { %4420 = vmatpush2.bf16.msra.mxu0 %v13335_v9  ;;  %4463 = vmatpush2.bf16.msra.mxu1 %v13338_v28  ;;  %v13396_v9 = vld [vmem:[%s15276_s3 + $0x214] ss:$12 sps:$4 sm:$0xff]   ;;  %v13394_v28 = vld [vmem:[%s15276_s3 + $0x210] ss:$12 sps:$4 sm:$0xff]  }
 0x4f9   :  { %4691 = vmatprep.subr.bf16.mxu0 %v13341_v45  ;;  %4734 = vmatprep.subr.bf16.mxu1 %v13983_v0  ;;  %v13415_v45 = vld [vmem:[%s15276_s3 + $0x3a8] ss:$12 sps:$4 sm:$0xff]  }
 0x4fb   :  { %4422 = vmatmul.mubr.bf16.vlgmr.msra.gmra.mxu0 %v3895_v37  ;;  %4465 = vmatmul.mubr.bf16.vlgmr.msra.gmra.mxu1 %v3895_v37  ;;  %v13405_v37 = vld [vmem:[%s15276_s3 + $0x34c] ss:$12 sps:$4 sm:$0xff]  }
 0x4fc   :  { %4692 = vmatpush1.bf16.msra.mxu0 %v13339_v3  ;;  %11822 = vmatprep.mubr.msk.bf16.mxu0 %vm3646_vm11, %v4526_v39  ;;  %v13400_v3 = vld [vmem:[%s15276_s3 + $0x1e0] ss:$12 sps:$4 sm:$0xff]  }
 0x4fd   :  { %4735 = vmatpush1.bf16.msra.mxu1 %v13342_v50  ;;  %11823 = vmatprep.mubr.msk.bf16.mxu1 %vm3646_vm11, %v4526_v39  ;;  %v13403_v50 = vld [vmem:[%s15276_s3 + $0x348] ss:$12 sps:$4 sm:$0xff]   ;;  %v13406_v39 = vld [vmem:[%s15276_s3 + $0x330] ss:$12 sps:$4 sm:$0xff]  }
 0x4fe   :  { %4693 = vmatprep.subr.bf16.mxu0 %v13345_v36  ;;  %4736 = vmatprep.subr.bf16.mxu1 %v13983_v0  ;;  %v13408_v36 = vld [vmem:[%s15276_s3 + $0x334] ss:$12 sps:$4 sm:$0xff]  }
 0x500   :  { %4694 = vmatpush1.bf16.msra.mxu0 %v13343_v31  ;;  %v13411_v31 = vld [vmem:[%s15276_s3 + $0x31c] ss:$12 sps:$4 sm:$0xff]  }
 0x501   :  { %4737 = vmatpush1.bf16.msra.mxu1 %v13346_v35  ;;  %4695 = vmatprep.subr.bf16.mxu0 %v13349_v46  ;;  %v13409_v35 = vld [vmem:[%s15276_s3 + $0x318] ss:$12 sps:$4 sm:$0xff]  }
 0x502   :  { %4738 = vmatprep.subr.bf16.mxu1 %v13983_v0  ;;  %v13414_v46 = vld [vmem:[%s15276_s3 + $0x304] ss:$12 sps:$4 sm:$0xff]  }
 0x504   :  { %4696 = vmatpush1.bf16.msra.mxu0 %v13347_v33  ;;  %v13412_v33 = vld [vmem:[%s15276_s3 + $0x300] ss:$12 sps:$4 sm:$0xff]  }
 0x505   :  { %4739 = vmatpush1.bf16.msra.mxu1 %v13350_v2  ;;  %4697 = vmatprep.subr.bf16.mxu0 %v13353_v61  ;;  %v13420_v2 = vld [vmem:[%s15276_s3 + $0x2ec] ss:$12 sps:$4 sm:$0xff]   ;;  %v13418_v61 = vld [vmem:[%s15276_s3 + $0x2e8] ss:$12 sps:$4 sm:$0xff]  }
 0x506   :  { %4740 = vmatprep.subr.bf16.mxu1 %v13983_v0 }
 0x508   :  { %4698 = vmatpush1.bf16.msra.mxu0 %v13351_v20  ;;  %v13423_v20 = vld [vmem:[%s15276_s3 + $0x394] ss:$12 sps:$4 sm:$0xff]  }
 0x509   :  { %4741 = vmatpush1.bf16.msra.mxu1 %v13354_v49  ;;  %4699 = vmatprep.subr.bf16.mxu0 %v13357_v10  ;;  %v13421_v49 = vld [vmem:[%s15276_s3 + $0x390] ss:$12 sps:$4 sm:$0xff]   ;;  %v13426_v10 = vld [vmem:[%s15276_s3 + $0x2d4] ss:$12 sps:$4 sm:$0xff]  }
 0x50a   :  { %4742 = vmatprep.subr.bf16.mxu1 %v13983_v0 }
 0x50c   :  { %4700 = vmatpush1.bf16.msra.mxu0 %v13355_v43  ;;  %v13424_v43 = vld [vmem:[%s15276_s3 + $0x2d0] ss:$12 sps:$4 sm:$0xff]  }
 0x50d   :  { %4743 = vmatpush1.bf16.msra.mxu1 %v13358_v63  ;;  %4701 = vmatprep.subr.bf16.mxu0 %v13361_v59  ;;  %v13429_v63 = vld [vmem:[%s15276_s3 + $0x37c] ss:$12 sps:$4 sm:$0xff]   ;;  %v13427_v59 = vld [vmem:[%s15276_s3 + $0x378] ss:$12 sps:$4 sm:$0xff]  }
 0x50e   :  { %4744 = vmatprep.subr.bf16.mxu1 %v13983_v0 }
 0x510   :  { %4702 = vmatpush1.bf16.msra.mxu0 %v13359_v51  ;;  %v13432_v51 = vld [vmem:[%s15276_s3 + $0x2bc] ss:$12 sps:$4 sm:$0xff]  }
 0x511   :  { %4745 = vmatpush1.bf16.msra.mxu1 %v13362_v62  ;;  %4703 = vmatprep.subr.bf16.mxu0 %v13365_v11  ;;  %v13430_v62 = vld [vmem:[%s15276_s3 + $0x2b8] ss:$12 sps:$4 sm:$0xff]  }
 0x512   :  { %4746 = vmatprep.subr.bf16.mxu1 %v13983_v0  ;;  %v13435_v11 = vld [vmem:[%s15276_s3 + $0x364] ss:$12 sps:$4 sm:$0xff]  }
 0x514   :  { %4704 = vmatpush1.bf16.msra.mxu0 %v13363_v53  ;;  %v13433_v53 = vld [vmem:[%s15276_s3 + $0x360] ss:$12 sps:$4 sm:$0xff]  }
 0x515   :  { %4747 = vmatpush1.bf16.msra.mxu1 %v13366_v5  ;;  %4705 = vmatprep.subr.bf16.mxu0 %v13369_v30  ;;  %v13438_v5 = vld [vmem:[%s15276_s3 + $0x2a4] ss:$12 sps:$4 sm:$0xff]   ;;  %v13436_v30 = vld [vmem:[%s15276_s3 + $0x2a0] ss:$12 sps:$4 sm:$0xff]  }
 0x516   :  { %4748 = vmatprep.subr.bf16.mxu1 %v13983_v0 }
 0x518   :  { %4706 = vmatpush1.bf16.msra.mxu0 %v13367_v48  ;;  %v13439_v48 = vld [vmem:[%s15276_s3 + $0x350] ss:$12 sps:$4 sm:$0xff]  }
 0x519   :  { %4749 = vmatpush1.bf16.msra.mxu1 %v13370_v38  ;;  %4719 = vmatprep.subr.bf16.mxu0 %v13373_v4  ;;  %v13443_v38 = vld [vmem:[%s15276_s3 + $0xac] ss:$12 sps:$4 sm:$0xff]  }
 0x51a   :  { %4762 = vmatprep.subr.bf16.mxu1 %v13983_v0 }
 0x51c   :  { %4720 = vmatpush2.bf16.msra.mxu0 %v13371_v8 }
 0x51d   :  { %4763 = vmatpush2.bf16.msra.mxu1 %v13374_v26  ;;  %4721 = vmatprep.subr.bf16.mxu0 %v13377_v13 }
 0x51e   :  { %4764 = vmatprep.subr.bf16.mxu1 %v13983_v0 }
 0x520   :  { %4722 = vmatpush2.bf16.msra.mxu0 %v13375_v44 }
 0x521   :  { %4765 = vmatpush2.bf16.msra.mxu1 %v13378_v14  ;;  %5391 = vmatprep.subr.bf16.mxu0 %v13381_v40  ;;  %v3817_v40 = vld [vmem:[%s11431_s7] sm:$0x7]  ;;  %s16510_s7 = sld [smem:[%s16742_s0 + %s14023_s4]]  }
 0x522   :  { %5442 = vmatprep.subr.bf16.mxu1 %v13417_v57 }
 0x523   :  { %4724 = vmatmul.mubr.bf16.vlgmr.msra.gmra.mxu0 %v4523_v7 }
 0x524   :  { %4767 = vmatmul.mubr.bf16.vlgmr.msra.gmra.mxu1 %v4523_v7  ;;  %5392 = vmatpush1.bf16.msra.mxu0 %v13379_v18 }
 0x525   :  { %5393 = vmatprep.subr.bf16.mxu0 %v13384_v54  ;;  %5466 = vmatprep.mubr.bf16.mxu1 %v13983_v0  ;;  %v15328_v54 = vpop.permute.xlu1 %4870 }
 0x526   :  { %5443 = vmatpush1.bf16.msra.mxu1 %v13415_v45 }
 0x527   :  { %5444 = vmatprep.subr.bf16.mxu1 %v13423_v20 }
 0x528   :  { %5394 = vmatpush1.bf16.msra.mxu0 %v13382_v55 }
 0x529   :  { %5395 = vmatprep.subr.bf16.mxu0 %v13387_v29  ;;  %v4785_v29 = vrot.slane %v3817_v40, %v14298_v21 }
 0x52a   :  { %5445 = vmatpush1.bf16.msra.mxu1 %v13421_v49 }
 0x52b   :  { %5446 = vmatprep.subr.bf16.mxu1 %v13429_v63 }
 0x52c   :  { %5396 = vmatpush1.bf16.msra.mxu0 %v13385_v6  ;;  %v15331_v6 = vpop.permute.xlu0 %4865 }
 0x52d   :  { %5397 = vmatprep.subr.bf16.mxu0 %v13390_v41 }
 0x52e   :  { %5447 = vmatpush1.bf16.msra.mxu1 %v13427_v59 }
 0x52f   :  { %5448 = vmatprep.subr.bf16.mxu1 %v13435_v11 }
 0x530   :  { %5398 = vmatpush1.bf16.msra.mxu0 %v13388_v58  ;;  %v4882_v20 = vpop.permute.xlu0 %4881 }
 0x531   :  { %5399 = vmatprep.subr.bf16.mxu0 %v13393_v47 }
 0x532   :  { %5449 = vmatpush1.bf16.msra.mxu1 %v13433_v53 }
 0x533   :  { %12438 = vmatprep.subr.bf16.mxu1 %v13439_v48  ;;  %v15337_v48 = vrot.slane %v4882_v20, 6 }
 0x534   :  { %5400 = vmatpush1.bf16.msra.mxu0 %v13391_v60  ;;  %v4793_v60 = vrot.slane %v3817_v40, %v14300_v23 }
 0x535   :  { %5401 = vmatprep.subr.bf16.mxu0 %v13396_v9 }
 0x538   :  { %5402 = vmatpush1.bf16.msra.mxu0 %v13394_v28 }
 0x539   :  { %5403 = vmatprep.subr.bf16.mxu0 %v13399_v27  ;;  %v4789_v27 = vrot.slane %v3817_v40, %v14302_v24 }
 0x53c   :  { %5404 = vmatpush1.bf16.msra.mxu0 %v13397_v56 }
 0x53d   :  { %5405 = vmatprep.subr.bf16.mxu0 %v13402_v34 }
 0x540   :  { %5406 = vmatpush1.bf16.msra.mxu0 %v13400_v3 }
 0x541   :  { %5407 = vmatprep.subr.bf16.mxu0 %v13405_v37 }
 0x544   :  { %5408 = vmatpush2.bf16.msra.mxu0 %v13403_v50 }
 0x545   :  { %5409 = vmatprep.subr.bf16.mxu0 %v13408_v36 }
 0x548   :  { %5410 = vmatpush2.bf16.msra.mxu0 %v13406_v39 }
 0x549   :  { %5411 = vmatprep.subr.bf16.mxu0 %v13411_v31  ;;  %v4886_v31 = vpop.permute.xlu1 %4885 }
 0x54a   :  { %v15335_v53 = vrot.slane %v4886_v31, 6 }
 0x54c   :  { %5412 = vmatpush2.bf16.msra.mxu0 %v13409_v35 }
 0x54d   :  { %5413 = vmatprep.subr.bf16.mxu0 %v13414_v46 }
 0x550   :  { %5414 = vmatpush2.bf16.msra.mxu0 %v13412_v33 }
 0x551   :  { %5415 = vmatprep.subr.bf16.mxu0 %v13420_v2 }
 0x554   :  { %5416 = vmatpush2.bf16.msra.mxu0 %v13418_v61 }
 0x555   :  { %5417 = vmatprep.subr.bf16.mxu0 %v13426_v10 }
 0x558   :  { %5418 = vmatpush2.bf16.msra.mxu0 %v13424_v43 }
 0x559   :  { %5419 = vmatprep.subr.bf16.mxu0 %v13432_v51 }
 0x55c   :  { %5420 = vmatpush2.bf16.msra.mxu0 %v13430_v62 }
 0x55d   :  { %5421 = vmatprep.subr.bf16.mxu0 %v13438_v5 }
 0x560   :  { %5422 = vmatpush2.bf16.msra.mxu0 %v13436_v30 }
 0x561   :  { %5882 = vmatprep.subr.bf16.mxu0 %v13443_v38 }
 0x593   :  { %v4219_v4 = vpop.f32.mrf.mxu1  ;;  %v4176_v42 = vpop.f32.mrf.mxu0 }
 0x595   :  { %v4221_v16 = vpop.f32.mrf.mxu1  ;;  %v4178_v44 = vpop.f32.mrf.mxu0 }
 0x597   :  { %v4222_v25 = vpop.f32.mrf.mxu1  ;;  %v4180_v15 = vpop.f32.mrf.mxu0 }
 0x599   :  { %v4224_v8 = vpop.f32.mrf.mxu1  ;;  %v4182_v14 = vpop.f32.mrf.mxu0 }
 0x5bb   :  { %v4466_v12 = vpop.f32.mrf.mxu1  ;;  %v4423_v32 = vpop.f32.mrf.mxu0 }
 0x5bc   :  { %v4424_v55 = vadd.f32 %v4423_v32, %v4176_v42  ;;  %v4467_v58 = vadd.f32 %v4466_v12, %v4219_v4  ;;  %v15346_v42 = vsel %vm288_vm5, %v15337_v48, %v15335_v53  ;;  %v13441_v32 = vld [vmem:[%s15276_s3 + $0xa8] ss:$12 sps:$4 sm:$0xff]  }
 0x5bd   :  { %v4468_v26 = vpop.f32.mrf.mxu1  ;;  %v4425_v17 = vpop.f32.mrf.mxu0 }
 0x5be   :  { %v4426_v47 = vadd.f32 %v4425_v17, %v4178_v44  ;;  %v13440_v26 = vld [vmem:[%s15276_s3 + $0x290] ss:$12 sps:$4 sm:$0xff]   ;;  %v13444_v17 = vld [vmem:[%s15276_s3 + $0x338] ss:$12 sps:$4 sm:$0xff]  }
 0x5bf   :  { %v4469_v13 = vpop.f32.mrf.mxu1  ;;  %v4427_v18 = vpop.f32.mrf.mxu0 }
 0x5c0   :  { %v4428_v56 = vadd.f32 %v4427_v18, %v4180_v15  ;;  %v4470_v50 = vadd.f32 %v4469_v13, %v4222_v25 }
 0x5c1   :  { %v4471_v19 = vpop.f32.mrf.mxu1  ;;  %v4429_v7 = vpop.f32.mrf.mxu0 }
 0x5c2   :  { %v4430_v35 = vadd.f32 %v4429_v7, %v4182_v14  ;;  %v13448_v7 = vld [vmem:[%s15276_s3 + $0x94] ss:$12 sps:$4 sm:$0xff]  }
 0x5e3   :  { %v4725_v41 = vpop.f32.mrf.mxu0 }
 0x5e4   :  { %v4775_v9 = vadd.f32 %v4725_v41, %v4424_v55  ;;  %v4768_v28 = vpop.f32.mrf.mxu1  ;;  %v13449_v41 = vld [vmem:[%s15276_s3 + $0x320] ss:$12 sps:$4 sm:$0xff]  }
 0x5e5   :  { %v4777_v45 = vadd.f32 %v4768_v28, %v4467_v58  ;;  %v4727_v57 = vpop.f32.mrf.mxu0  ;;  %v13445_v58 = vld [vmem:[%s15276_s3 + $0x278] ss:$12 sps:$4 sm:$0xff]   ;;  %v13453_v28 = vld [vmem:[%s15276_s3 + $0x7c] ss:$12 sps:$4 sm:$0xff]  }
 0x5e6   :  { %v4797_v34 = vadd.f32 %v4785_v29, %v4775_v9  ;;  %v4776_v3 = vadd.f32 %v4727_v57, %v4426_v47  ;;  %v4770_v37 = vpop.f32.mrf.mxu1  ;;  %v13446_v47 = vld [vmem:[%s15276_s3 + $0x90] ss:$12 sps:$4 sm:$0xff]   ;;  %v13450_v57 = vld [vmem:[%s15276_s3 + $0x260] ss:$12 sps:$4 sm:$0xff]  }
 0x5e7   :  { %v4799_v36 = vadd.f32 %v4793_v60, %v4777_v45  ;;  %v4729_v39 = vpop.f32.mrf.mxu0  ;;  %v13454_v37 = vld [vmem:[%s15276_s3 + $0x308] ss:$12 sps:$4 sm:$0xff]  }
 0x5e8   :  { %v4803_v46 = vmax.f32 %v4797_v34, 0.0  ;;  %v4798_v33 = vadd.f32 %v4789_v27, %v4776_v3  ;;  %v4778_v2 = vadd.f32 %v4729_v39, %v4428_v56  ;;  %v4771_v61 = vpop.f32.mrf.mxu1 }
 0x5e9   :  { %v4805_v49 = vmax.f32 %v4799_v36, 0.0  ;;  %v4780_v10 = vadd.f32 %v4771_v61, %v4470_v50  ;;  %v4731_v43 = vpop.f32.mrf.mxu0  ;;  %v13451_v36 = vld [vmem:[%s15276_s3 + $0x78] ss:$12 sps:$4 sm:$0xff]  }
 0x5ea   :  { %v4824_v63 = vrot.slane %v4803_v46, 7  ;;  %v4804_v59 = vmax.f32 %v4798_v33, 0.0  ;;  %v4800_v51 = vadd.f32 %v4785_v29, %v4778_v2  ;;  %v4779_v62 = vadd.f32 %v4731_v43, %v4430_v35  ;;  %v4773_v11 = vpop.f32.mrf.mxu1  ;;  %v13458_v35 = vld [vmem:[%s15276_s3 + $0x64] ss:$12 sps:$4 sm:$0xff]   ;;  %v13456_v2 = vld [vmem:[%s15276_s3 + $0x60] ss:$12 sps:$4 sm:$0xff]  }
 0x5eb   :  { %v4826_v5 = vrot.slane %v4805_v49, 7  ;;  %v4802_v30 = vadd.f32 %v4793_v60, %v4780_v10  ;;  %v13463_v61 = vld [vmem:[%s15276_s3 + $0x4c] ss:$12 sps:$4 sm:$0xff]   ;;  %v13460_v10 = vld [vmem:[%s15276_s3 + $0x230] ss:$12 sps:$4 sm:$0xff]  }
 0x5ec   :  { %4842 = vst [vmem:[#allocation2] sm:$0xfe] %v4824_v63  ;;  %v4825_v38 = vrot.slane %v4804_v59, 7  ;;  %v4806_v4 = vmax.f32 %v4800_v51, 0.0  ;;  %v4801_v16 = vadd.f32 %v4789_v27, %v4779_v62  ;;  %v13464_v43 = vld [vmem:[%s15276_s3 + $0x2d8] ss:$12 sps:$4 sm:$0xff]  }
 0x5ed   :  { %4844 = vst.msk [vmem:[#allocation2 + $0x10] sm:$0xfe] %vm1066_vm7, %v4826_v5  ;;  %v4808_v25 = vmax.f32 %v4802_v30, 0.0  ;;  %v13468_v51 = vld [vmem:[%s15276_s3 + $0x34] ss:$12 sps:$4 sm:$0xff]  }
 0x5ee   :  { %4843 = vst [vmem:[#allocation2 + $0x8] sm:$0xfe] %v4825_v38  ;;  %v4827_v8 = vrot.slane %v4806_v4, 7  ;;  %v4807_v12 = vmax.f32 %v4801_v16, 0.0  ;;  %v15354_v18 = vpack.c.bf16 %v4806_v4, %v4803_v46  ;;  %v13459_v46 = vld [vmem:[%s15276_s3 + $0x2f0] ss:$12 sps:$4 sm:$0xff]  }
 0x5ef   :  { %v4831_v13 = vrot.slane %v4808_v25, 7  ;;  %v15341_v19 = vpack.c.bf16 %v4808_v25, %v4805_v49  ;;  %v13465_v62 = vld [vmem:[%s15276_s3 + $0x218] ss:$12 sps:$4 sm:$0xff]   ;;  %v13469_v11 = vld [vmem:[%s15276_s3 + $0x2c0] ss:$12 sps:$4 sm:$0xff]  }
 0x5f0   :  { %v15349_v44 = vsel %vm222_vm1, %v4824_v63, %v4827_v8  ;;  %4848 = vst [vmem:[#allocation2 + $0x30] sm:$0x1] %v4827_v8  ;;  %v4829_v15 = vrot.slane %v4807_v12, 7  ;;  %v4986_v14 = vpack.c.bf16 %v4807_v12, %v4804_v59  ;;  %v13461_v59 = vld [vmem:[%s15276_s3 + $0x48] ss:$12 sps:$4 sm:$0xff]  }
 0x5f1   :  { %4845 = vst [vmem:[#allocation2 + $0x18] sm:$0xff] %v15349_v44  ;;  %v4832_v40 = vsel %vm222_vm1, %v4826_v5, %v4831_v13  ;;  %4850 = vst.msk [vmem:[#allocation2 + $0x40] sm:$0x1] %vm1080_vm8, %v4831_v13  ;;  %11884 = vmatmul.mubr.msk.bf16.vlgmr.msra.gmra.mxu1 %vm1070_vm9, %v15341_v19  ;;  %v4896_v55 = vmul.f32 %v15346_v42, %v15349_v44  ;;  %v13466_v5 = vld [vmem:[%s15276_s3 + $0x30] ss:$12 sps:$4 sm:$0xff]  }
 0x5f2   :  { %4847 = vst.msk [vmem:[#allocation2 + $0x28] sm:$0xff] %vm1070_vm9, %v4832_v40  ;;  %v15365_v29 = vsel %vm222_vm1, %v4825_v38, %v4829_v15  ;;  %4849 = vst [vmem:[#allocation2 + $0x38] sm:$0x1] %v4829_v15  ;;  %12439 = vmatpush3.bf16.msra.mxu1 %v13440_v26  ;;  %5423 = vmatprep.mubr.bf16.mxu0 %v4986_v14  ;;  %v13473_v30 = vld [vmem:[%s15276_s3 + $0x1c] ss:$12 sps:$4 sm:$0xff]   ;;  %vm10746_vm1 = vcmask 1043456  }
 0x5f3   :  { %4846 = vst [vmem:[#allocation2 + $0x20] sm:$0xff] %v15365_v29  ;;  %5509 = vmatprep.mubr.bf16.mxu1 %v4986_v14  ;;  %5424 = vmatmul.mubr.bf16.vlgmr.msra.gmra.mxu0 %v15354_v18  ;;  %v4857_v60 = vld [vmem:[#allocation2] sm:$0xfc]  ;;  %v4877_v34 = vmul.f32 %v15328_v54, %v15365_v29  ;;  %v13474_v4 = vld [vmem:[%s15276_s3 + $0x2a8] ss:$12 sps:$4 sm:$0xff]   ;;  %vm10748_vm3 = vmor %vm10747_vm2, %vm10746_vm1 }
 0x5f4   :  { %12440 = vmatprep.subr.bf16.mxu1 %v13444_v17  ;;  %5883 = vmatpush1.bf16.msra.mxu0 %v13441_v32  ;;  %7315 = vst.msk [vmem:[#allocation2 + $0x19] ss:$8 sm:$0x3] %vm14334_vm10, %v13985_v1  ;;  %v4893_v9 = vmul.f32 %v15337_v48, %v4857_v60  ;;  %v15377_v45 = vld [vmem:[#allocation2] sm:$0xff]  ;;  %v13475_v8 = vld [vmem:[%s15276_s3 + $0x1e8] ss:$12 sps:$4 sm:$0xff]  }
 0x5f5   :  { %5884 = vmatprep.subr.bf16.mxu0 %v13448_v7  ;;  %v4852_v27 = vld [vmem:[#allocation2 + $0x8] sm:$0xff]  ;;  %v13471_v16 = vld [vmem:[%s15276_s3 + $0x18] ss:$12 sps:$4 sm:$0xff]   ;;  %v13479_v13 = vld [vmem:[%s15276_s3 + $0x3b0] ss:$12 sps:$4 sm:$0xff]  }
 0x5f6   :  { %12441 = vmatpush3.bf16.msra.mxu1 %v13445_v58  ;;  %v4874_v56 = vmul.f32 %v15331_v6, %v4852_v27  ;;  %7312 = vst.msk [vmem:[#allocation2] ss:$8 sm:$0x3] %vm14334_vm10, %v13985_v1  ;;  %v6050_v3 = vpack.c.bf16 %v4896_v55, %v4893_v9  ;;  %v13470_v38 = vld [vmem:[%s15276_s3 + $0x200] ss:$12 sps:$4 sm:$0xff]  }
 0x5f7   :  { %12442 = vmatprep.subr.bf16.mxu1 %v13449_v41  ;;  %v4860_v50 = vld [vmem:[#allocation2 + $0x30] sm:$0x3]  ;;  %v13476_v12 = vld [vmem:[%s15276_s3] ss:$12 sps:$4 sm:$0xff]   ;;  %v13480_v15 = vld [vmem:[%s15276_s3 + $0x168] ss:$12 sps:$4 sm:$0xff]  }
 0x5f8   :  { %5885 = vmatpush1.bf16.msra.mxu0 %v13446_v47  ;;  %v15388_v39 = vpack.c.bf16 %v4877_v34, %v4874_v56  ;;  %v4899_v31 = vmul.f32 %v15335_v53, %v4860_v50  ;;  %v6142_v20 = vrot.slane %v6050_v3, 1  ;;  %v13478_v25 = vld [vmem:[%s15276_s3 + $0x4] ss:$12 sps:$4 sm:$0xff]   ;;  %v13482_v26 = vld [vmem:[%s15276_s3 + $0x16c] ss:$12 sps:$4 sm:$0xff]  }
 0x5f9   :  { %5886 = vmatprep.subr.bf16.mxu0 %v13453_v28  ;;  %v13486_v14 = vld [vmem:[%s15276_s3 + $0x154] ss:$12 sps:$4 sm:$0xff]   ;;  %v13483_v32 = vld [vmem:[%s15276_s3 + $0x398] ss:$12 sps:$4 sm:$0xff]   ;;  %v13484_v17 = vld [vmem:[%s15276_s3 + $0x150] ss:$12 sps:$4 sm:$0xff]  }
 0x5fa   :  { %12443 = vmatpush3.bf16.msra.mxu1 %v13450_v57  ;;  %5914 = vmatprep.mubr.bf16.mxu0 %v15388_v39  ;;  %v6053_v33 = vpack.c.bf16 %v4899_v31, %v4899_v31  ;;  %v13487_v40 = vld [vmem:[%s15276_s3 + $0x380] ss:$12 sps:$4 sm:$0xff]   ;;  %v13488_v7 = vld [vmem:[%s15276_s3 + $0x138] ss:$12 sps:$4 sm:$0xff]   ;;  %v13491_v58 = vld [vmem:[%s15276_s3 + $0x368] ss:$12 sps:$4 sm:$0xff]  }
 0x5fb   :  { %12444 = vmatprep.subr.bf16.mxu1 %v13454_v37  ;;  %v13494_v55 = vld [vmem:[%s15276_s3 + $0x124] ss:$12 sps:$4 sm:$0xff]   ;;  %v13497_v41 = vld [vmem:[%s15276_s3 + $0x1cc] ss:$12 sps:$4 sm:$0xff]   ;;  %v13495_v9 = vld [vmem:[%s15276_s3 + $0x1c8] ss:$12 sps:$4 sm:$0xff]  }
 0x5fc   :  { %5887 = vmatpush1.bf16.msra.mxu0 %v13451_v36  ;;  %v6143_v49 = vrot.slane %v6053_v33, 1  ;;  %v13492_v60 = vld [vmem:[%s15276_s3 + $0x120] ss:$12 sps:$4 sm:$0xff]   ;;  %v13498_v27 = vld [vmem:[%s15276_s3 + $0x108] ss:$12 sps:$4 sm:$0xff]  }
 0x5fd   :  { %5888 = vmatprep.subr.bf16.mxu0 %v13458_v35  ;;  %v13500_v47 = vld [vmem:[%s15276_s3 + $0x10c] ss:$12 sps:$4 sm:$0xff]   ;;  %v13503_v28 = vld [vmem:[%s15276_s3 + $0x1b4] ss:$12 sps:$4 sm:$0xff]   ;;  %v13501_v56 = vld [vmem:[%s15276_s3 + $0x1b0] ss:$12 sps:$4 sm:$0xff]  }
 0x5fe   :  { %12445 = vmatpush3.bf16.msra.mxu1 %v13455_v22  ;;  %v15400_v63 = vsel %vm752_vm6, %v6142_v20, %v6143_v49  ;;  %v13506_v57 = vld [vmem:[%s15276_s3 + $0xf4] ss:$12 sps:$4 sm:$0xff]   ;;  %v13509_v34 = vld [vmem:[%s15276_s3 + $0x19c] ss:$12 sps:$4 sm:$0xff]   ;;  %v4861_v37 = vld [vmem:[#allocation2 + $0x38] sm:$0x3] }
 0x5ff   :  { %12446 = vmatprep.subr.bf16.mxu1 %v13459_v46  ;;  %v13504_v3 = vld [vmem:[%s15276_s3 + $0xf0] ss:$12 sps:$4 sm:$0xff]   ;;  %v13507_v36 = vld [vmem:[%s15276_s3 + $0x198] ss:$12 sps:$4 sm:$0xff]   ;;  %v4900_v35 = vmul.f32 %v15335_v53, %v4861_v37  ;;  %v15450_v46 = vld [vmem:[#allocation2 + $0x28] sm:$0xff] }
 0x600   :  { %5889 = vmatpush1.bf16.msra.mxu0 %v13456_v2  ;;  %v13512_v50 = vld [vmem:[%s15276_s3 + $0xdc] ss:$12 sps:$4 sm:$0xff]   ;;  %v13515_v31 = vld [vmem:[%s15276_s3 + $0x184] ss:$12 sps:$4 sm:$0xff]   ;;  %v4878_v49 = vmul.f32 %v15328_v54, %v15450_v46 }
 0x601   :  { %5890 = vmatprep.subr.bf16.mxu0 %v13463_v61  ;;  %v13510_v22 = vld [vmem:[%s15276_s3 + $0xd8] ss:$12 sps:$4 sm:$0xff]   ;;  %v13513_v61 = vld [vmem:[%s15276_s3 + $0x180] ss:$12 sps:$4 sm:$0xff]   ;;  %v4853_v20 = vld [vmem:[#allocation2 + $0x10] sm:$0xff] }
 0x602   :  { %12447 = vmatpush3.bf16.msra.mxu1 %v13460_v10  ;;  %v13518_v33 = vld [vmem:[%s15276_s3 + $0xc4] ss:$12 sps:$4 sm:$0xff]  }
 0x603   :  { %12448 = vmatprep.subr.bf16.mxu1 %v13464_v43  ;;  %v13519_v10 = vld [vmem:[%s15276_s3 + $0x170] ss:$12 sps:$4 sm:$0xff]   ;;  %v4897_v43 = vmul.f32 %v15346_v42, %v15365_v29  ;;  %v4876_v29 = vmul.f32 %v15328_v54, %v15349_v44  ;;  %v13525_v54 = vld [vmem:[%s15276_s3 + $0x98] ss:$12 sps:$4 sm:$0xff]  }
 0x604   :  { %5891 = vmatpush1.bf16.msra.mxu0 %v13461_v59  ;;  %v6054_v59 = vpack.c.bf16 %v4900_v35, %v4900_v35  ;;  %v13558_v37 = vld [vmem:[%s15276_s3 + $0x3c4] ss:$12 sps:$4 sm:$0xff]   ;;  %v13560_v35 = vld [vmem:[%s15276_s3 + $0x528] ss:$12 sps:$4 sm:$0xff]  }
 0x605   :  { %5892 = vmatprep.subr.bf16.mxu0 %v13468_v51  ;;  %v13516_v51 = vld [vmem:[%s15276_s3 + $0xc0] ss:$12 sps:$4 sm:$0xff]  }
 0x606   :  { %12449 = vmatpush3.bf16.msra.mxu1 %v13465_v62  ;;  %v4875_v62 = vmul.f32 %v15331_v6, %v4853_v20  ;;  %v13567_v20 = vld [vmem:[%s15276_s3 + $0x1a0] ss:$12 sps:$4 sm:$0xff]  }
 0x607   :  { %12450 = vmatprep.subr.bf16.mxu1 %v13469_v11  ;;  %v4873_v11 = vmul.f32 %v15331_v6, %v15377_v45 }
 0x608   :  { %5893 = vmatpush1.bf16.msra.mxu0 %v13466_v5  ;;  %v13523_v5 = vld [vmem:[%s15276_s3 + $0x46c] ss:$12 sps:$4 sm:$0xff]  }
 0x609   :  { %5894 = vmatprep.subr.bf16.mxu0 %v13473_v30  ;;  %v15474_v6 = vpack.c.bf16 %v4876_v29, %v4873_v11  ;;  %v13575_v11 = vld [vmem:[%s15276_s3 + $0x588] ss:$12 sps:$4 sm:$0xff]   ;;  %v4862_v29 = vld [vmem:[#allocation2 + $0x40] sm:$0x3] }
 0x60a   :  { %12451 = vmatpush3.bf16.msra.mxu1 %v13470_v38  ;;  %v13520_v38 = vld [vmem:[%s15276_s3 + $0xb0] ss:$12 sps:$4 sm:$0xff]  }
 0x60b   :  { %12452 = vmatprep.subr.bf16.mxu1 %v13474_v4  ;;  %v15466_v4 = vpack.c.bf16 %v4878_v49, %v4875_v62  ;;  %v13568_v49 = vld [vmem:[%s15276_s3 + $0x4f8] ss:$12 sps:$4 sm:$0xff]  }
 0x60c   :  { %5895 = vmatpush1.bf16.msra.mxu0 %v13471_v16  ;;  %v13524_v16 = vld [vmem:[%s15276_s3 + $0x158] ss:$12 sps:$4 sm:$0xff]  }
 0x60d   :  { %5896 = vmatprep.subr.bf16.mxu0 %v13478_v25  ;;  %v6146_v25 = vrot.slane %v6054_v59, 1  ;;  %v13577_v59 = vld [vmem:[%s15276_s3 + $0x58c] ss:$12 sps:$4 sm:$0xff]  }
 0x60e   :  { %12453 = vmatpush3.bf16.msra.mxu1 %v13475_v8  ;;  %v13521_v8 = vld [vmem:[%s15276_s3 + $0x468] ss:$12 sps:$4 sm:$0xff]   ;;  %v13580_v62 = vld [vmem:[%s15276_s3 + $0x4cc] ss:$12 sps:$4 sm:$0xff]  }
 0x60f   :  { %12729 = vmatprep.subr.bf16.mxu1 %v13985_v1 }
 0x610   :  { %5897 = vmatpush1.bf16.msra.mxu0 %v13476_v12  ;;  %v13528_v12 = vld [vmem:[%s15276_s3 + $0x454] ss:$12 sps:$4 sm:$0xff]  }
 0x611   :  { %5510 = vmatmul.mubr.bf16.vlgmr.msra.gmra.mxu1 %v15354_v18  ;;  %5898 = vmatprep.subr.bf16.mxu0 %v13482_v26  ;;  %v13490_v18 = vld [vmem:[%s15276_s3 + $0x13c] ss:$12 sps:$4 sm:$0xff]   ;;  %v13529_v26 = vld [vmem:[%s15276_s3 + $0x140] ss:$12 sps:$4 sm:$0xff]  }
 0x612   :  { %12730 = vmatpush3.bf16.msra.mxu1 %v13479_v13  ;;  %12737 = vmatprep.mubr.msk.bf16.mxu1 %vm14008_vm14, %v13985_v1  ;;  %v13526_v13 = vld [vmem:[%s15276_s3 + $0x450] ss:$12 sps:$4 sm:$0xff]  }
 0x613   :  { %12731 = vmatprep.subr.bf16.mxu1 %v13985_v1 }
 0x614   :  { %5899 = vmatpush2.bf16.msra.mxu0 %v13480_v15  ;;  %v13533_v15 = vld [vmem:[%s15276_s3 + $0x43c] ss:$12 sps:$4 sm:$0xff]  }
 0x615   :  { %5900 = vmatprep.subr.bf16.mxu0 %v13486_v14  ;;  %v13534_v14 = vld [vmem:[%s15276_s3 + $0x128] ss:$12 sps:$4 sm:$0xff]  }
 0x616   :  { %12732 = vmatpush3.bf16.msra.mxu1 %v13483_v32  ;;  %v13531_v32 = vld [vmem:[%s15276_s3 + $0x438] ss:$12 sps:$4 sm:$0xff]  }
 0x617   :  { %12733 = vmatprep.subr.bf16.mxu1 %v13985_v1 }
 0x618   :  { %5901 = vmatpush2.bf16.msra.mxu0 %v13484_v17  ;;  %v13538_v17 = vld [vmem:[%s15276_s3 + $0x424] ss:$12 sps:$4 sm:$0xff]  }
 0x619   :  { %5902 = vmatprep.subr.bf16.mxu0 %v13490_v18  ;;  %v13535_v18 = vld [vmem:[%s15276_s3 + $0x68] ss:$12 sps:$4 sm:$0xff]  }
 0x61a   :  { %12734 = vmatpush3.bf16.msra.mxu1 %v13487_v40  ;;  %v13539_v40 = vld [vmem:[%s15276_s3 + $0x110] ss:$12 sps:$4 sm:$0xff]  }
 0x61b   :  { %12735 = vmatprep.subr.bf16.mxu1 %v13985_v1 }
 0x61c   :  { %5903 = vmatpush2.bf16.msra.mxu0 %v13488_v7  ;;  %v13536_v7 = vld [vmem:[%s15276_s3 + $0x420] ss:$12 sps:$4 sm:$0xff]  }
 0x61d   :  { %5904 = vmatprep.subr.bf16.mxu0 %v13494_v55  ;;  %v13543_v55 = vld [vmem:[%s15276_s3 + $0x40c] ss:$12 sps:$4 sm:$0xff]  }
 0x61e   :  { %12736 = vmatpush3.bf16.msra.mxu1 %v13491_v58  ;;  %v13540_v58 = vld [vmem:[%s15276_s3 + $0x50] ss:$12 sps:$4 sm:$0xff]  }
 0x61f   :  { %5933 = vmatprep.subr.bf16.mxu1 %v13497_v41  ;;  %v13544_v41 = vld [vmem:[%s15276_s3 + $0xf8] ss:$12 sps:$4 sm:$0xff]  }
 0x620   :  { %5905 = vmatpush2.bf16.msra.mxu0 %v13492_v60  ;;  %v13541_v60 = vld [vmem:[%s15276_s3 + $0x408] ss:$12 sps:$4 sm:$0xff]  }
 0x621   :  { %12738 = vmatmul.mubr.msk.bf16.vlgmr.msra.gmra.mxu1 %vm1070_vm9, %v15341_v19  ;;  %5906 = vmatprep.subr.bf16.mxu0 %v13500_v47  ;;  %v4858_v19 = vld [vmem:[#allocation2 + $0x8] sm:$0xfc]  ;;  %v13548_v47 = vld [vmem:[%s15276_s3 + $0x3f4] ss:$12 sps:$4 sm:$0xff]  }
 0x622   :  { %5934 = vmatpush1.bf16.msra.mxu1 %v13495_v9  ;;  %5957 = vmatprep.mubr.bf16.mxu1 %v13983_v0  ;;  %v4894_v2 = vmul.f32 %v15337_v48, %v4858_v19  ;;  %v13545_v9 = vld [vmem:[%s15276_s3 + $0x38] ss:$12 sps:$4 sm:$0xff]  }
 0x623   :  { %5935 = vmatprep.subr.bf16.mxu1 %v13503_v28  ;;  %v13549_v28 = vld [vmem:[%s15276_s3 + $0xe0] ss:$12 sps:$4 sm:$0xff]  }
 0x624   :  { %5907 = vmatpush2.bf16.msra.mxu0 %v13498_v27  ;;  %v6051_v30 = vpack.c.bf16 %v4897_v43, %v4894_v2  ;;  %v13546_v27 = vld [vmem:[%s15276_s3 + $0x3f0] ss:$12 sps:$4 sm:$0xff]   ;;  %v13562_v19 = vld [vmem:[%s15276_s3 + $0x52c] ss:$12 sps:$4 sm:$0xff]   ;;  %v13571_v43 = vld [vmem:[%s15276_s3 + $0x188] ss:$12 sps:$4 sm:$0xff]  }
 0x625   :  { %5908 = vmatprep.subr.bf16.mxu0 %v13506_v57  ;;  %v13553_v57 = vld [vmem:[%s15276_s3 + $0x3dc] ss:$12 sps:$4 sm:$0xff]  }
 0x626   :  { %5936 = vmatpush1.bf16.msra.mxu1 %v13501_v56  ;;  %v6145_v45 = vrot.slane %v6051_v30, 1  ;;  %v13550_v56 = vld [vmem:[%s15276_s3 + $0x20] ss:$12 sps:$4 sm:$0xff]   ;;  %v13564_v2 = vld [vmem:[%s15276_s3 + $0x510] ss:$12 sps:$4 sm:$0xff]  }
 0x627   :  { %5937 = vmatprep.subr.bf16.mxu1 %v13509_v34  ;;  %v13554_v34 = vld [vmem:[%s15276_s3 + $0xc8] ss:$12 sps:$4 sm:$0xff]  }
 0x628   :  { %5909 = vmatpush2.bf16.msra.mxu0 %v13504_v3  ;;  %v15481_v44 = vsel %vm752_vm6, %v6145_v45, %v6146_v25  ;;  %v13551_v3 = vld [vmem:[%s15276_s3 + $0x3d8] ss:$12 sps:$4 sm:$0xff]   ;;  %v13578_v30 = vld [vmem:[%s15276_s3 + $0x4c8] ss:$12 sps:$4 sm:$0xff]   ;;  %v4898_v45 = vmul.f32 %v15346_v42, %v15450_v46  ;;  %v13599_v46 = vld [vmem:[%s15276_s3 + $0x530] ss:$12 sps:$4 sm:$0xff]  }
 0x629   :  { %5910 = vmatprep.subr.bf16.mxu0 %v13512_v50  ;;  %v13555_v50 = vld [vmem:[%s15276_s3 + $0x8] ss:$12 sps:$4 sm:$0xff]   ;;  %v13598_v42 = vld [vmem:[%s15276_s3 + $0x484] ss:$12 sps:$4 sm:$0xff]  }
 0x62a   :  { %5938 = vmatpush1.bf16.msra.mxu1 %v13507_v36  ;;  %v13556_v36 = vld [vmem:[%s15276_s3 + $0x3c0] ss:$12 sps:$4 sm:$0xff]   ;;  %v13589_v25 = vld [vmem:[%s15276_s3 + $0x55c] ss:$12 sps:$4 sm:$0xff]  }
 0x62b   :  { %5939 = vmatprep.subr.bf16.mxu1 %v13515_v31  ;;  %v13559_v31 = vld [vmem:[%s15276_s3 + $0x1d0] ss:$12 sps:$4 sm:$0xff]  }
 0x62c   :  { %5911 = vmatpush2.bf16.msra.mxu0 %v13510_v22  ;;  %v13566_v22 = vld [vmem:[%s15276_s3 + $0x514] ss:$12 sps:$4 sm:$0xff]  }
 0x62d   :  { %5912 = vmatprep.subr.bf16.mxu0 %v13518_v33  ;;  %v13563_v33 = vld [vmem:[%s15276_s3 + $0x1b8] ss:$12 sps:$4 sm:$0xff]  }
 0x62e   :  { %5940 = vmatpush1.bf16.msra.mxu1 %v13513_v61  ;;  %v13570_v61 = vld [vmem:[%s15276_s3 + $0x4fc] ss:$12 sps:$4 sm:$0xff]  }
 0x62f   :  { %12465 = vmatprep.subr.bf16.mxu1 %v13519_v10  ;;  %v13574_v10 = vld [vmem:[%s15276_s3 + $0x4e4] ss:$12 sps:$4 sm:$0xff]  }
 0x630   :  { %5913 = vmatpush2.bf16.msra.mxu0 %v13516_v51  ;;  %v13572_v51 = vld [vmem:[%s15276_s3 + $0x4e0] ss:$12 sps:$4 sm:$0xff]  }
 0x631   :  { %11946 = vmatmul.mubr.msk.bf16.vlgmr.msra.gmra.mxu1 %vm1070_vm9, %v15466_v4  ;;  %6476 = vmatprep.subr.bf16.mxu0 %v13523_v5  ;;  %v13583_v5 = vld [vmem:[%s15276_s3 + $0x574] ss:$12 sps:$4 sm:$0xff]  }
 0x632   :  { %12466 = vmatpush3.bf16.msra.mxu1 %v13520_v38  ;;  %6000 = vmatprep.mubr.bf16.mxu1 %v15388_v39  ;;  %v13530_v39 = vld [vmem:[%s15276_s3 + $0x80] ss:$12 sps:$4 sm:$0xff]  }
 0x633   :  { %5915 = vmatmul.mubr.bf16.vlgmr.msra.gmra.mxu0 %v15474_v6  ;;  %12467 = vmatprep.subr.bf16.mxu1 %v13524_v16  ;;  %v13586_v38 = vld [vmem:[%s15276_s3 + $0x4b4] ss:$12 sps:$4 sm:$0xff]   ;;  %v13581_v16 = vld [vmem:[%s15276_s3 + $0x570] ss:$12 sps:$4 sm:$0xff]  }
 0x634   :  { %6477 = vmatpush1.bf16.msra.mxu0 %v13521_v8  ;;  %6508 = vmatprep.mubr.bf16.mxu0 %v15481_v44  ;;  %v4859_v8 = vld [vmem:[#allocation2 + $0x10] sm:$0xfc] }
 0x635   :  { %6478 = vmatprep.subr.bf16.mxu0 %v13528_v12  ;;  %v13592_v12 = vld [vmem:[%s15276_s3 + $0x49c] ss:$12 sps:$4 sm:$0xff]  }
 0x636   :  { %12468 = vmatpush3.bf16.msra.mxu1 %v13525_v54  ;;  %v13587_v54 = vld [vmem:[%s15276_s3 + $0x558] ss:$12 sps:$4 sm:$0xff]  }
 0x637   :  { %12469 = vmatprep.subr.bf16.mxu1 %v13529_v26  ;;  %v4895_v26 = vmul.f32 %v15337_v48, %v4859_v8  ;;  %v6687_v8 = vld [vmem:[%s15570_s11 + $0x48] sm:$0xff] }
 0x638   :  { %6479 = vmatpush1.bf16.msra.mxu0 %v13526_v13  ;;  %v13595_v13 = vld [vmem:[%s15276_s3 + $0x544] ss:$12 sps:$4 sm:$0xff]  }
 0x639   :  { %6480 = vmatprep.subr.bf16.mxu0 %v13533_v15  ;;  %v13590_v15 = vld [vmem:[%s15276_s3 + $0x498] ss:$12 sps:$4 sm:$0xff]  }
 0x63a   :  { %12470 = vmatpush3.bf16.msra.mxu1 %v13530_v39  ;;  %v6052_v39 = vpack.c.bf16 %v4898_v45, %v4895_v26  ;;  %v13618_v45 = vld [vmem:[%s15276_s3 + $0x548] ss:$12 sps:$4 sm:$0xff]   ;;  %v6682_v26 = vld [vmem:[%s15570_s11 + $0x20] sm:$0xff] }
 0x63b   :  { %12471 = vmatprep.subr.bf16.mxu1 %v13534_v14 }
 0x63c   :  { %6481 = vmatpush1.bf16.msra.mxu0 %v13531_v32  ;;  %v13596_v32 = vld [vmem:[%s15276_s3 + $0x480] ss:$12 sps:$4 sm:$0xff]  }
 0x63d   :  { %6482 = vmatprep.subr.bf16.mxu0 %v13538_v17  ;;  %v6148_v17 = vrot.slane %v6052_v39, 1  ;;  %v6679_v39 = vld [vmem:[%s15570_s11 + $0x8] sm:$0xff] }
 0x63e   :  { %12472 = vmatpush3.bf16.msra.mxu1 %v13535_v18  ;;  %v13600_v18 = vld [vmem:[%s15276_s3 + $0x470] ss:$12 sps:$4 sm:$0xff]  }
 0x63f   :  { %12473 = vmatprep.subr.bf16.mxu1 %v13539_v40  ;;  %v13601_v40 = vld [vmem:[%s15276_s3 + $0x518] ss:$12 sps:$4 sm:$0xff]  }
 0x640   :  { %6483 = vmatpush1.bf16.msra.mxu0 %v13536_v7 }
 0x641   :  { %6484 = vmatprep.subr.bf16.mxu0 %v13543_v55  ;;  %v13602_v55 = vld [vmem:[%s15276_s3 + $0x458] ss:$12 sps:$4 sm:$0xff]  }
 0x642   :  { %12474 = vmatpush3.bf16.msra.mxu1 %v13540_v58  ;;  %v13603_v58 = vld [vmem:[%s15276_s3 + $0x500] ss:$12 sps:$4 sm:$0xff]  }
 0x643   :  { %12475 = vmatprep.subr.bf16.mxu1 %v13544_v41  ;;  %v13604_v41 = vld [vmem:[%s15276_s3 + $0x440] ss:$12 sps:$4 sm:$0xff]  }
 0x644   :  { %6485 = vmatpush1.bf16.msra.mxu0 %v13541_v60  ;;  %v13605_v60 = vld [vmem:[%s15276_s3 + $0x4e8] ss:$12 sps:$4 sm:$0xff]  }
 0x645   :  { %6486 = vmatprep.subr.bf16.mxu0 %v13548_v47  ;;  %v13606_v47 = vld [vmem:[%s15276_s3 + $0x428] ss:$12 sps:$4 sm:$0xff]  }
 0x646   :  { %12476 = vmatpush3.bf16.msra.mxu1 %v13545_v9  ;;  %v13607_v9 = vld [vmem:[%s15276_s3 + $0x4d0] ss:$12 sps:$4 sm:$0xff]  }
 0x647   :  { %12477 = vmatprep.subr.bf16.mxu1 %v13549_v28  ;;  %v13609_v28 = vld [vmem:[%s15276_s3 + $0x4b8] ss:$12 sps:$4 sm:$0xff]  }
 0x648   :  { %6487 = vmatpush1.bf16.msra.mxu0 %v13546_v27  ;;  %v13610_v27 = vld [vmem:[%s15276_s3 + $0x3f8] ss:$12 sps:$4 sm:$0xff]  }
 0x649   :  { %6488 = vmatprep.subr.bf16.mxu0 %v13553_v57  ;;  %v13611_v57 = vld [vmem:[%s15276_s3 + $0x4a0] ss:$12 sps:$4 sm:$0xff]  }
 0x64a   :  { %12478 = vmatpush3.bf16.msra.mxu1 %v13550_v56  ;;  %v6709_v56 = vld [vmem:[%s15570_s11 + $0xf8] sm:$0xff] }
 0x64b   :  { %12479 = vmatprep.subr.bf16.mxu1 %v13554_v34  ;;  %v6708_v34 = vld [vmem:[%s15570_s11 + $0xf0] sm:$0xff] }
 0x64c   :  { %6489 = vmatpush1.bf16.msra.mxu0 %v13551_v3  ;;  %v6707_v3 = vld [vmem:[%s15570_s11 + $0xe8] sm:$0xff] }
 0x64d   :  { %6490 = vmatprep.subr.bf16.mxu0 %v13558_v37  ;;  %v6706_v37 = vld [vmem:[%s15570_s11 + $0xe0] sm:$0xff] }
 0x64e   :  { %12480 = vmatpush3.bf16.msra.mxu1 %v13555_v50  ;;  %v6705_v50 = vld [vmem:[%s15570_s11 + $0xd8] sm:$0xff] }
 0x64f   :  { %12741 = vmatprep.subr.bf16.mxu1 %v13985_v1 }
 0x650   :  { %6491 = vmatpush1.bf16.msra.mxu0 %v13556_v36  ;;  %v13612_v36 = vld [vmem:[%s15276_s3 + $0x3e0] ss:$12 sps:$4 sm:$0xff]  }
 0x651   :  { %6001 = vmatmul.mubr.bf16.vlgmr.msra.gmra.mxu1 %v15474_v6  ;;  %6492 = vmatprep.subr.bf16.mxu0 %v13562_v19  ;;  %v13584_v6 = vld [vmem:[%s15276_s3 + $0x4b0] ss:$12 sps:$4 sm:$0xff]  }
 0x652   :  { %12742 = vmatpush3.bf16.msra.mxu1 %v13559_v31  ;;  %12749 = vmatprep.mubr.msk.bf16.mxu1 %vm14008_vm14, %v13985_v1  ;;  %v6704_v19 = vld [vmem:[%s15570_s11 + $0xd0] sm:$0xff] }
 0x653   :  { %12743 = vmatprep.subr.bf16.mxu1 %v13985_v1  ;;  %v13613_v31 = vld [vmem:[%s15276_s3 + $0x488] ss:$12 sps:$4 sm:$0xff]  }
 0x654   :  { %6493 = vmatpush2.bf16.msra.mxu0 %v13560_v35  ;;  %v6703_v35 = vld [vmem:[%s15570_s11 + $0xc8] sm:$0xff] }
 0x655   :  { %6494 = vmatprep.subr.bf16.mxu0 %v13566_v22  ;;  %v6702_v22 = vld [vmem:[%s15570_s11 + $0xc0] sm:$0xff] }
 0x656   :  { %12744 = vmatpush3.bf16.msra.mxu1 %v13563_v33  ;;  %v6701_v33 = vld [vmem:[%s15570_s11 + $0xb8] sm:$0xff] }
 0x657   :  { %12745 = vmatprep.subr.bf16.mxu1 %v13985_v1 }
 0x658   :  { %6495 = vmatpush2.bf16.msra.mxu0 %v13564_v2  ;;  %v13614_v2 = vld [vmem:[%s15276_s3 + $0x3c8] ss:$12 sps:$4 sm:$0xff]  }
 0x659   :  { %6496 = vmatprep.subr.bf16.mxu0 %v13570_v61  ;;  %v6700_v61 = vld [vmem:[%s15570_s11 + $0xb0] sm:$0xff] }
 0x65a   :  { %12746 = vmatpush3.bf16.msra.mxu1 %v13567_v20  ;;  %v6699_v20 = vld [vmem:[%s15570_s11 + $0xa8] sm:$0xff] }
 0x65b   :  { %12747 = vmatprep.subr.bf16.mxu1 %v13985_v1 }
 0x65c   :  { %6497 = vmatpush2.bf16.msra.mxu0 %v13568_v49  ;;  %v6698_v49 = vld [vmem:[%s15570_s11 + $0xa0] sm:$0xff] }
 0x65d   :  { %6498 = vmatprep.subr.bf16.mxu0 %v13574_v10  ;;  %v6697_v10 = vld [vmem:[%s15570_s11 + $0x98] sm:$0xff] }
 0x65e   :  { %12748 = vmatpush3.bf16.msra.mxu1 %v13571_v43  ;;  %v13615_v43 = vld [vmem:[%s15276_s3 + $0x590] ss:$12 sps:$4 sm:$0xff]  }
 0x65f   :  { %6527 = vmatprep.subr.bf16.mxu1 %v13577_v59  ;;  %v6696_v59 = vld [vmem:[%s15570_s11 + $0x90] sm:$0xff] }
 0x660   :  { %6499 = vmatpush2.bf16.msra.mxu0 %v13572_v51  ;;  %v6695_v51 = vld [vmem:[%s15570_s11 + $0x88] sm:$0xff] }
 0x661   :  { %12750 = vmatmul.mubr.msk.bf16.vlgmr.msra.gmra.mxu1 %vm1070_vm9, %v15466_v4  ;;  %6500 = vmatprep.subr.bf16.mxu0 %v13580_v62  ;;  %v4901_v4 = vmul.f32 %v15335_v53, %v4862_v29  ;;  %v13593_v53 = vld [vmem:[%s15276_s3 + $0x540] ss:$12 sps:$4 sm:$0xff]  }
 0x662   :  { %6528 = vmatpush1.bf16.msra.mxu1 %v13575_v11  ;;  %6551 = vmatprep.mubr.bf16.mxu1 %v13983_v0  ;;  %v6694_v62 = vld [vmem:[%s15570_s11 + $0x80] sm:$0xff] }
 0x663   :  { %6529 = vmatprep.subr.bf16.mxu1 %v13583_v5  ;;  %v6055_v14 = vpack.c.bf16 %v4901_v4, %v4901_v4  ;;  %v13616_v11 = vld [vmem:[%s15276_s3 + $0x578] ss:$12 sps:$4 sm:$0xff]   ;;  %v13617_v29 = vld [vmem:[%s15276_s3 + $0x560] ss:$12 sps:$4 sm:$0xff]  }
 0x664   :  { %6501 = vmatpush2.bf16.msra.mxu0 %v13578_v30  ;;  %v6693_v5 = vld [vmem:[%s15570_s11 + $0x78] sm:$0xff]  ;;  %v6692_v30 = vld [vmem:[%s15570_s11 + $0x70] sm:$0xff] }
 0x665   :  { %6502 = vmatprep.subr.bf16.mxu0 %v13586_v38  ;;  %v6149_v48 = vrot.slane %v6055_v14, 1  ;;  %v6691_v38 = vld [vmem:[%s15570_s11 + $0x68] sm:$0xff]  ;;  %v6685_v4 = vld [vmem:[%s15570_s11 + $0x38] sm:$0xff]  ;;  %v6678_v14 = vld [vmem:[%s15570_s11] sm:$0xff] }
 0x666   :  { %6530 = vmatpush1.bf16.msra.mxu1 %v13581_v16  ;;  %v6689_v16 = vld [vmem:[%s15570_s11 + $0x58] sm:$0xff] }
 0x667   :  { %6531 = vmatprep.subr.bf16.mxu1 %v13589_v25  ;;  %v15555_v7 = vsel %vm752_vm6, %v6148_v17, %v6149_v48  ;;  %v6688_v25 = vld [vmem:[%s15570_s11 + $0x50] sm:$0xff]  ;;  %v6737_v17 = vld [vmem:[%s15570_s11 + $0x1d8] sm:$0xff] }
 0x668   :  { %6503 = vmatpush2.bf16.msra.mxu0 %v13584_v6  ;;  %v6686_v6 = vld [vmem:[%s15570_s11 + $0x40] sm:$0xff]  ;;  %v6736_v48 = vld [vmem:[%s15570_s11 + $0x1d0] sm:$0xff] }
 0x669   :  { %6504 = vmatprep.subr.bf16.mxu0 %v13592_v12  ;;  %v6684_v12 = vld [vmem:[%s15570_s11 + $0x30] sm:$0xff] }
 0x66a   :  { %6532 = vmatpush1.bf16.msra.mxu1 %v13587_v54  ;;  %v6683_v54 = vld [vmem:[%s15570_s11 + $0x28] sm:$0xff] }
 0x66b   :  { %6533 = vmatprep.subr.bf16.mxu1 %v13595_v13  ;;  %v6681_v13 = vld [vmem:[%s15570_s11 + $0x18] sm:$0xff] }
 0x66c   :  { %6505 = vmatpush2.bf16.msra.mxu0 %v13590_v15  ;;  %v6680_v15 = vld [vmem:[%s15570_s11 + $0x10] sm:$0xff] }
 0x66d   :  { %6506 = vmatprep.subr.bf16.mxu0 %v13598_v42  ;;  %v6741_v42 = vld [vmem:[%s15570_s11 + $0x1f8] sm:$0xff] }
 0x66e   :  { %6534 = vmatpush1.bf16.msra.mxu1 %v13593_v53  ;;  %v6740_v53 = vld [vmem:[%s15570_s11 + $0x1f0] sm:$0xff] }
 0x66f   :  { %12492 = vmatprep.subr.bf16.mxu1 %v13599_v46  ;;  %v6739_v46 = vld [vmem:[%s15570_s11 + $0x1e8] sm:$0xff] }
 0x670   :  { %6507 = vmatpush2.bf16.msra.mxu0 %v13596_v32  ;;  %v6738_v32 = vld [vmem:[%s15570_s11 + $0x1e0] sm:$0xff] }
 0x671   :  { %12008 = vmatmul.mubr.msk.bf16.vlgmr.msra.gmra.mxu1 %vm1070_vm9, %v15555_v7  ;;  %6846 = vmatprep.subr.mxu0 %v6709_v56  ;;  %v6722_v56 = vld [vmem:[%s15570_s11 + $0x160] sm:$0xff] }
 0x672   :  { %12493 = vmatpush3.bf16.msra.mxu1 %v13600_v18  ;;  %6594 = vmatprep.mubr.bf16.mxu1 %v15481_v44  ;;  %v13608_v44 = vld [vmem:[%s15276_s3 + $0x410] ss:$12 sps:$4 sm:$0xff]   ;;  %v6735_v18 = vld [vmem:[%s15570_s11 + $0x1c8] sm:$0xff]  ;;  %s16462_s3 = sld [smem:[%s16742_s0 + %s14022_s1]]  }
 0x673   :  { %6509 = vmatmul.mubr.bf16.vlgmr.msra.gmra.mxu0 %v15400_v63  ;;  %12494 = vmatprep.subr.bf16.mxu1 %v13601_v40  ;;  %v6734_v40 = vld [vmem:[%s15570_s11 + $0x1c0] sm:$0xff] }
 0x674   :  { %6847 = vmatpush1.msra.mxu0 %v6708_v34  ;;  %v6721_v34 = vld [vmem:[%s15570_s11 + $0x158] sm:$0xff] }
 0x675   :  { %6848 = vmatprep.subr.mxu0 %v6707_v3  ;;  %v6720_v3 = vld [vmem:[%s15570_s11 + $0x150] sm:$0xff] }
 0x676   :  { %12495 = vmatpush3.bf16.msra.mxu1 %v13602_v55  ;;  %6849 = vmatpush1.msra.mxu0 %v6706_v37  ;;  %v6732_v55 = vld [vmem:[%s15570_s11 + $0x1b0] sm:$0xff]  ;;  %v6719_v37 = vld [vmem:[%s15570_s11 + $0x148] sm:$0xff] }
 0x677   :  { %12496 = vmatprep.subr.bf16.mxu1 %v13603_v58  ;;  %6850 = vmatprep.subr.mxu0 %v6705_v50  ;;  %v6731_v58 = vld [vmem:[%s15570_s11 + $0x1a8] sm:$0xff]  ;;  %v6718_v50 = vld [vmem:[%s15570_s11 + $0x140] sm:$0xff] }
 0x678   :  { %6851 = vmatpush1.msra.mxu0 %v6704_v19  ;;  %v6716_v19 = vld [vmem:[%s15570_s11 + $0x130] sm:$0xff] }
 0x679   :  { %6852 = vmatprep.subr.mxu0 %v6703_v35  ;;  %v6714_v35 = vld [vmem:[%s15570_s11 + $0x120] sm:$0xff] }
 0x67a   :  { %12497 = vmatpush3.bf16.msra.mxu1 %v13604_v41  ;;  %6853 = vmatpush1.msra.mxu0 %v6702_v22  ;;  %v6730_v41 = vld [vmem:[%s15570_s11 + $0x1a0] sm:$0xff]  ;;  %v6713_v22 = vld [vmem:[%s15570_s11 + $0x118] sm:$0xff] }
 0x67b   :  { %12498 = vmatprep.subr.bf16.mxu1 %v13605_v60  ;;  %6854 = vmatprep.subr.mxu0 %v6701_v33  ;;  %v6729_v60 = vld [vmem:[%s15570_s11 + $0x198] sm:$0xff]  ;;  %v6712_v33 = vld [vmem:[%s15570_s11 + $0x110] sm:$0xff] }
 0x67c   :  { %6855 = vmatpush1.msra.mxu0 %v6700_v61 }
 0x67d   :  { %6856 = vmatprep.subr.mxu0 %v6699_v20  ;;  %v6710_v20 = vld [vmem:[%s15570_s11 + $0x100] sm:$0xff] }
 0x67e   :  { %12499 = vmatpush3.bf16.msra.mxu1 %v13606_v47  ;;  %6857 = vmatpush1.msra.mxu0 %v6698_v49  ;;  %v6728_v47 = vld [vmem:[%s15570_s11 + $0x190] sm:$0xff] }
 0x67f   :  { %12500 = vmatprep.subr.bf16.mxu1 %v13607_v9  ;;  %6858 = vmatprep.subr.mxu0 %v6697_v10  ;;  %v6727_v9 = vld [vmem:[%s15570_s11 + $0x188] sm:$0xff] }
 0x680   :  { %6859 = vmatpush1.msra.mxu0 %v6696_v59 }
 0x681   :  { %6860 = vmatprep.subr.mxu0 %v6695_v51 }
 0x682   :  { %12501 = vmatpush3.bf16.msra.mxu1 %v13608_v44  ;;  %6861 = vmatpush1.msra.mxu0 %v6694_v62  ;;  %v6726_v44 = vld [vmem:[%s15570_s11 + $0x180] sm:$0xff] }
 0x683   :  { %12502 = vmatprep.subr.bf16.mxu1 %v13609_v28  ;;  %6862 = vmatprep.subr.mxu0 %v6693_v5  ;;  %v6725_v28 = vld [vmem:[%s15570_s11 + $0x178] sm:$0xff] }
 0x684   :  { %6863 = vmatpush1.msra.mxu0 %v6692_v30 }
 0x685   :  { %6864 = vmatprep.subr.mxu0 %v6691_v38  ;;  %v6757_v38 = vld [vmem:[%s15570_s11 + $0x278] sm:$0xff] }
 0x686   :  { %12503 = vmatpush3.bf16.msra.mxu1 %v13610_v27  ;;  %v6724_v27 = vld [vmem:[%s15570_s11 + $0x170] sm:$0xff] }
 0x687   :  { %12504 = vmatprep.subr.bf16.mxu1 %v13611_v57  ;;  %v6723_v57 = vld [vmem:[%s15570_s11 + $0x168] sm:$0xff] }
 0x68a   :  { %12505 = vmatpush3.bf16.msra.mxu1 %v13612_v36  ;;  %v6717_v36 = vld [vmem:[%s15570_s11 + $0x138] sm:$0xff] }
 0x68b   :  { %12506 = vmatprep.subr.bf16.mxu1 %v13613_v31  ;;  %v6715_v31 = vld [vmem:[%s15570_s11 + $0x128] sm:$0xff] }
 0x68e   :  { %12507 = vmatpush3.bf16.msra.mxu1 %v13614_v2  ;;  %v6711_v2 = vld [vmem:[%s15570_s11 + $0x108] sm:$0xff] }
 0x68f   :  { %12753 = vmatprep.subr.bf16.mxu1 %v13985_v1 }
 0x691   :  { %6595 = vmatmul.mubr.bf16.vlgmr.msra.gmra.mxu1 %v15400_v63  ;;  %v6690_v63 = vld [vmem:[%s15570_s11 + $0x60] sm:$0xff] }
 0x692   :  { %12754 = vmatpush3.bf16.msra.mxu1 %v13615_v43  ;;  %12761 = vmatprep.mubr.msk.bf16.mxu1 %vm14008_vm14, %v13985_v1 }
 0x693   :  { %12755 = vmatprep.subr.bf16.mxu1 %v13985_v1  ;;  %6865 = vmatpush1.msra.mxu0 %v6690_v63  ;;  %v6756_v63 = vld [vmem:[%s15570_s11 + $0x270] sm:$0xff] }
 0x694   :  { %6866 = vmatprep.subr.mxu0 %v6689_v16  ;;  %v6754_v16 = vld [vmem:[%s15570_s11 + $0x260] sm:$0xff] }
 0x695   :  { %6867 = vmatpush1.msra.mxu0 %v6688_v25  ;;  %v6753_v25 = vld [vmem:[%s15570_s11 + $0x258] sm:$0xff] }
 0x696   :  { %12756 = vmatpush3.bf16.msra.mxu1 %v13616_v11  ;;  %6868 = vmatprep.subr.mxu0 %v6687_v8  ;;  %v6752_v8 = vld [vmem:[%s15570_s11 + $0x250] sm:$0xff] }
 0x697   :  { %12757 = vmatprep.subr.bf16.mxu1 %v13985_v1  ;;  %6869 = vmatpush1.msra.mxu0 %v6686_v6  ;;  %v6751_v6 = vld [vmem:[%s15570_s11 + $0x248] sm:$0xff] }
 0x698   :  { %6870 = vmatprep.subr.mxu0 %v6685_v4  ;;  %v6837_v4 = vld [vmem:[%s15671_s15 + $0x278] sm:$0xff] }
 0x699   :  { %6871 = vmatpush1.msra.mxu0 %v6684_v12 }
 0x69a   :  { %12758 = vmatpush3.bf16.msra.mxu1 %v13617_v29  ;;  %6872 = vmatprep.subr.mxu0 %v6683_v54  ;;  %v6755_v29 = vld [vmem:[%s15570_s11 + $0x268] sm:$0xff] }
 0x69b   :  { %12759 = vmatprep.subr.bf16.mxu1 %v13985_v1  ;;  %6873 = vmatpush1.msra.mxu0 %v6682_v26 }
 0x69c   :  { %6874 = vmatprep.subr.mxu0 %v6681_v13 }
 0x69d   :  { %6875 = vmatpush1.msra.mxu0 %v6680_v15 }
 0x69e   :  { %12760 = vmatpush3.bf16.msra.mxu1 %v13618_v45  ;;  %6876 = vmatprep.subr.mxu0 %v6679_v39  ;;  %v6750_v45 = vld [vmem:[%s15570_s11 + $0x240] sm:$0xff] }
 0x69f   :  { %6877 = vmatpush1.msra.mxu0 %v6678_v14  ;;  %6939 = vmatprep.subr.mxu1 %v6757_v38  ;;  %v6749_v14 = vld [vmem:[%s15570_s11 + $0x238] sm:$0xff] }
 0x6a0   :  { %6878 = vmatprep.subr.mxu0 %v6741_v42  ;;  %v6748_v42 = vld [vmem:[%s15570_s11 + $0x230] sm:$0xff] }
 0x6a1   :  { %12762 = vmatmul.mubr.msk.bf16.vlgmr.msra.gmra.mxu1 %vm1070_vm9, %v15555_v7  ;;  %6879 = vmatpush2.msra.mxu0 %v6740_v53  ;;  %v6733_v7 = vld [vmem:[%s15570_s11 + $0x1b8] sm:$0xff]  ;;  %v6747_v53 = vld [vmem:[%s15570_s11 + $0x228] sm:$0xff] }
 0x6a2   :  { %6987 = vmatprep.mubr.f32.mxu1 %v13985_v1  ;;  %6880 = vmatprep.subr.mxu0 %v6739_v46  ;;  %v6746_v46 = vld [vmem:[%s15570_s11 + $0x220] sm:$0xff] }
 0x6a3   :  { %6881 = vmatpush2.msra.mxu0 %v6738_v32  ;;  %6940 = vmatpush1.msra.mxu1 %v6756_v63  ;;  %v6745_v32 = vld [vmem:[%s15570_s11 + $0x218] sm:$0xff] }
 0x6a4   :  { %6882 = vmatprep.subr.mxu0 %v6737_v17  ;;  %6941 = vmatprep.subr.mxu1 %v6755_v29  ;;  %v6744_v17 = vld [vmem:[%s15570_s11 + $0x210] sm:$0xff]  ;;  %v15698_v29 = vld [vmem:[%s11435_s20] sm:$0x7]  ;;  %s16551_s20 = sld [smem:[%s16742_s0 + %s14026_s16]]  }
 0x6a5   :  { %6883 = vmatpush2.msra.mxu0 %v6736_v48  ;;  %6942 = vmatpush1.msra.mxu1 %v6754_v16  ;;  %v6743_v48 = vld [vmem:[%s15570_s11 + $0x208] sm:$0xff] }
 0x6a6   :  { %6884 = vmatprep.subr.mxu0 %v6735_v18  ;;  %6943 = vmatprep.subr.mxu1 %v6753_v25  ;;  %v6742_v18 = vld [vmem:[%s15570_s11 + $0x200] sm:$0xff]  ;;  %s11455_s11 = sld [smem:[%s16742_s0 + %s14024_s8]]  }
 0x6a7   :  { %6885 = vmatpush2.msra.mxu0 %v6734_v40  ;;  %6944 = vmatpush1.msra.mxu1 %v6752_v8  ;;  %v6789_v40 = vld [vmem:[%s15671_s15 + $0xf8] sm:$0xff] }
 0x6a8   :  { %6886 = vmatprep.subr.mxu0 %v6733_v7  ;;  %6945 = vmatprep.subr.mxu1 %v6751_v6 }
 0x6a9   :  { %6887 = vmatpush2.msra.mxu0 %v6732_v55  ;;  %6946 = vmatpush1.msra.mxu1 %v6750_v45 }
 0x6aa   :  { %6888 = vmatprep.subr.mxu0 %v6731_v58  ;;  %6947 = vmatprep.subr.mxu1 %v6749_v14 }
 0x6ab   :  { %6889 = vmatpush2.msra.mxu0 %v6730_v41  ;;  %6948 = vmatpush1.msra.mxu1 %v6748_v42 }
 0x6ac   :  { %6890 = vmatprep.subr.mxu0 %v6729_v60  ;;  %6949 = vmatprep.subr.mxu1 %v6747_v53 }
 0x6ad   :  { %6891 = vmatpush2.msra.mxu0 %v6728_v47  ;;  %6950 = vmatpush1.msra.mxu1 %v6746_v46 }
 0x6ae   :  { %6892 = vmatprep.subr.mxu0 %v6727_v9  ;;  %6951 = vmatprep.subr.mxu1 %v6745_v32 }
 0x6af   :  { %6893 = vmatpush2.msra.mxu0 %v6726_v44  ;;  %6952 = vmatpush1.msra.mxu1 %v6744_v17 }
 0x6b0   :  { %6894 = vmatprep.subr.mxu0 %v6725_v28  ;;  %6953 = vmatprep.subr.mxu1 %v6743_v48 }
 0x6b1   :  { %6895 = vmatpush2.msra.mxu0 %v6724_v27  ;;  %v15656_v61 = vpop.f32.mrf.mxu1  ;;  %6954 = vmatpush1.msra.mxu1 %v6742_v18 }
 0x6b2   :  { %6896 = vmatprep.subr.mxu0 %v6723_v57  ;;  %7000 = vmatprep.subr.mxu1 %v6789_v40 }
 0x6b3   :  { %6897 = vmatpush2.msra.mxu0 %v6722_v56  ;;  %v15659_v49 = vpop.f32.mrf.mxu1  ;;  %v5425_v27 = vpop.f32.mrf.mxu0 }
 0x6b4   :  { %6898 = vmatprep.subr.mxu0 %v6721_v34 }
 0x6b5   :  { %6899 = vmatpush2.msra.mxu0 %v6720_v3  ;;  %v15661_v10 = vpop.f32.mrf.mxu1  ;;  %v5427_v3 = vpop.f32.mrf.mxu0 }
 0x6b6   :  { %6900 = vmatprep.subr.mxu0 %v6719_v37 }
 0x6b7   :  { %6901 = vmatpush2.msra.mxu0 %v6718_v50  ;;  %v15663_v43 = vpop.f32.mrf.mxu1  ;;  %v5429_v37 = vpop.f32.mrf.mxu0 }
 0x6b8   :  { %6902 = vmatprep.subr.mxu0 %v6717_v36  ;;  %v5473_v38 = vadd.f32 %v15661_v10, %v5429_v37  ;;  %v6829_v37 = vld [vmem:[%s15671_s15 + $0x238] sm:$0xff] }
 0x6b9   :  { %6903 = vmatpush2.msra.mxu0 %v6716_v19  ;;  %v5431_v19 = vpop.f32.mrf.mxu0 }
 0x6ba   :  { %6904 = vmatprep.subr.mxu0 %v6715_v31  ;;  %v5475_v8 = vadd.f32 %v15663_v43, %v5431_v19  ;;  %v6827_v19 = vld [vmem:[%s15671_s15 + $0x228] sm:$0xff] }
 0x6bb   :  { %6905 = vmatpush2.msra.mxu0 %v6714_v35 }
 0x6bc   :  { %6906 = vmatprep.subr.mxu0 %v6713_v22 }
 0x6bd   :  { %6907 = vmatpush2.msra.mxu0 %v6712_v33 }
 0x6be   :  { %6908 = vmatprep.subr.mxu0 %v6711_v2 }
 0x6bf   :  { %6909 = vmatpush2.msra.mxu0 %v6710_v20 }
 0x6c0   :  { %7093 = vmatprep.subr.mxu0 %v6837_v4 }
 0x6d1   :  { %v12454_v59 = vpop.f32.mrf.mxu1 }
 0x6d3   :  { %v12455_v51 = vpop.f32.mrf.mxu1 }
 0x6d4   :  { %v12456_v62 = vadd.f32 %v12455_v51, %v12454_v59  ;;  %v5469_v51 = vadd.f32 %v15656_v61, %v5425_v27  ;;  %v6654_v61 = vrot.slane %v15698_v29, %v14298_v21  ;;  %v6833_v27 = vld [vmem:[%s15671_s15 + $0x258] sm:$0xff] }
 0x6d5   :  { %v12457_v11 = vpop.f32.mrf.mxu1 }
 0x6d7   :  { %v12458_v5 = vpop.f32.mrf.mxu1 }
 0x6d8   :  { %v12459_v30 = vadd.f32 %v12458_v5, %v12457_v11 }
 0x6e1   :  { %v5552_v12 = vpop.f32.mrf.mxu1 }
 0x6e2   :  { %v5553_v54 = vadd.f32 %v12456_v62, %v5552_v12  ;;  %v5471_v62 = vadd.f32 %v15659_v49, %v5427_v3  ;;  %v6830_v3 = vld [vmem:[%s15671_s15 + $0x240] sm:$0xff] }
 0x6e3   :  { %v12739_v26 = vpop.f32.mrf.mxu1 }
 0x6e5   :  { %v5555_v13 = vpop.f32.mrf.mxu1 }
 0x6e6   :  { %v5556_v15 = vadd.f32 %v12459_v30, %v5555_v13 }
 0x6e7   :  { %v12740_v39 = vpop.f32.mrf.mxu1 }
 0x6f1   :  { %v5959_v7 = vpop.f32.mrf.mxu1 }
 0x6f3   :  { %v5961_v55 = vpop.f32.mrf.mxu1  ;;  %v5916_v35 = vpop.f32.mrf.mxu0 }
 0x6f4   :  { %v5917_v11 = vadd.f32 %v5916_v35, %v5469_v51  ;;  %v6825_v35 = vld [vmem:[%s15671_s15 + $0x218] sm:$0xff] }
 0x6f5   :  { %v5963_v58 = vpop.f32.mrf.mxu1  ;;  %v5918_v20 = vpop.f32.mrf.mxu0 }
 0x6f6   :  { %v5919_v63 = vadd.f32 %v5918_v20, %v5471_v62  ;;  %v5960_v6 = vadd.f32 %v5959_v7, %v5917_v11  ;;  %v6822_v20 = vld [vmem:[%s15671_s15 + $0x200] sm:$0xff] }
 0x6f7   :  { %v5965_v41 = vpop.f32.mrf.mxu1  ;;  %v5920_v59 = vpop.f32.mrf.mxu0 }
 0x6f8   :  { %v5921_v45 = vadd.f32 %v5920_v59, %v5473_v38  ;;  %v5962_v26 = vadd.f32 %v5961_v55, %v5919_v63  ;;  %v6662_v63 = vrot.slane %v15698_v29, %v14300_v23 }
 0x6f9   :  { %v5922_v5 = vpop.f32.mrf.mxu0 }
 0x6fa   :  { %v5923_v10 = vadd.f32 %v5922_v5, %v5475_v8  ;;  %v5964_v14 = vadd.f32 %v5963_v58, %v5921_v45 }
 0x6fc   :  { %v5966_v17 = vadd.f32 %v5965_v41, %v5923_v10 }
 0x711   :  { %v12481_v60 = vpop.f32.mrf.mxu1 }
 0x713   :  { %v12482_v47 = vpop.f32.mrf.mxu1 }
 0x714   :  { %v12483_v9 = vadd.f32 %v12482_v47, %v12481_v60  ;;  %v6836_v47 = vld [vmem:[%s15671_s15 + $0x270] sm:$0xff] }
 0x715   :  { %v12484_v44 = vpop.f32.mrf.mxu1 }
 0x716   :  { %v6003_v28 = vadd.f32 %v12483_v9, %v5553_v54  ;;  %v6658_v54 = vrot.slane %v15698_v29, %v14302_v24  ;;  %v6835_v9 = vld [vmem:[%s15671_s15 + $0x268] sm:$0xff]  ;;  %v6786_v29 = vld [vmem:[%s15671_s15 + $0xe0] sm:$0xff] }
 0x717   :  { %v12485_v57 = vpop.f32.mrf.mxu1 }
 0x718   :  { %v12486_v56 = vadd.f32 %v12485_v57, %v12484_v44  ;;  %v6834_v44 = vld [vmem:[%s15671_s15 + $0x260] sm:$0xff] }
 0x71a   :  { %v6006_v34 = vadd.f32 %v12486_v56, %v5556_v15  ;;  %v6832_v56 = vld [vmem:[%s15671_s15 + $0x250] sm:$0xff] }
 0x721   :  { %v6043_v50 = vpop.f32.mrf.mxu1 }
 0x722   :  { %v15688_v36 = vadd.f32 %v6043_v50, %v6003_v28  ;;  %v6828_v50 = vld [vmem:[%s15671_s15 + $0x230] sm:$0xff] }
 0x723   :  { %v12751_v31 = vpop.f32.mrf.mxu1 }
 0x724   :  { %v6826_v31 = vld [vmem:[%s15671_s15 + $0x220] sm:$0xff] }
 0x725   :  { %v6046_v22 = vpop.f32.mrf.mxu1 }
 0x726   :  { %v15690_v33 = vadd.f32 %v6046_v22, %v6006_v34  ;;  %v6831_v34 = vld [vmem:[%s15671_s15 + $0x248] sm:$0xff]  ;;  %v6824_v22 = vld [vmem:[%s15671_s15 + $0x210] sm:$0xff] }
 0x727   :  { %v12752_v2 = vpop.f32.mrf.mxu1 }
 0x728   :  { %v6823_v2 = vld [vmem:[%s15671_s15 + $0x208] sm:$0xff] }
 0x731   :  { %v6553_v30 = vpop.f32.mrf.mxu1 }
 0x733   :  { %v6555_v16 = vpop.f32.mrf.mxu1  ;;  %v6510_v25 = vpop.f32.mrf.mxu0 }
 0x734   :  { %v6554_v4 = vadd.f32 %v6553_v30, %v6510_v25 }
 0x735   :  { %v6557_v12 = vpop.f32.mrf.mxu1  ;;  %v6512_v49 = vpop.f32.mrf.mxu0 }
 0x736   :  { %v6644_v13 = vadd.f32 %v6554_v4, %v5960_v6  ;;  %v6556_v15 = vadd.f32 %v6555_v16, %v6512_v49 }
 0x737   :  { %v6514_v39 = vpop.f32.mrf.mxu0  ;;  %v6559_v46 = vpop.f32.mrf.mxu1 }
 0x738   :  { %v6645_v42 = vadd.f32 %v6556_v15, %v5962_v26  ;;  %v6558_v43 = vadd.f32 %v6557_v12, %v6514_v39  ;;  %v15705_v53 = vadd.f32 %v6654_v61, %v6644_v13  ;;  %v6787_v26 = vld [vmem:[%s15671_s15 + $0xe8] sm:$0xff]  ;;  %v6782_v39 = vld [vmem:[%s15671_s15 + $0xc0] sm:$0xff] }
 0x739   :  { %v6516_v32 = vpop.f32.mrf.mxu0  ;;  %v6783_v15 = vld [vmem:[%s15671_s15 + $0xc8] sm:$0xff] }
 0x73a   :  { %v6647_v48 = vadd.f32 %v6558_v43, %v5964_v14  ;;  %v6560_v18 = vadd.f32 %v6559_v46, %v6516_v32  ;;  %v15707_v40 = vadd.f32 %v6658_v54, %v6645_v42  ;;  %v6672_v58 = vmax.f32 %v15705_v53, 0.0  ;;  %v6781_v14 = vld [vmem:[%s15671_s15 + $0xb8] sm:$0xff]  ;;  %v6780_v42 = vld [vmem:[%s15671_s15 + $0xb0] sm:$0xff]  ;;  %v6779_v43 = vld [vmem:[%s15671_s15 + $0xa8] sm:$0xff] }
 0x73b   :  { %v6778_v46 = vld [vmem:[%s15671_s15 + $0xa0] sm:$0xff]  ;;  %v6777_v32 = vld [vmem:[%s15671_s15 + $0x98] sm:$0xff] }
 0x73c   :  { %v6648_v7 = vadd.f32 %v6560_v18, %v5966_v17  ;;  %v6673_v55 = vmax.f32 %v15707_v40, 0.0  ;;  %v15711_v60 = vadd.f32 %v6654_v61, %v6647_v48  ;;  %v6776_v17 = vld [vmem:[%s15671_s15 + $0x90] sm:$0xff]  ;;  %v6775_v48 = vld [vmem:[%s15671_s15 + $0x88] sm:$0xff]  ;;  %v6774_v18 = vld [vmem:[%s15671_s15 + $0x80] sm:$0xff] }
 0x73d   :  { %v6773_v40 = vld [vmem:[%s15671_s15 + $0x78] sm:$0xff] }
 0x73e   :  { %6910 = vmatprep.mubr.f32.mxu0 %v6673_v55  ;;  %v15716_v41 = vadd.f32 %v6658_v54, %v6648_v7  ;;  %v6675_v57 = vmax.f32 %v15711_v60, 0.0  ;;  %v6788_v54 = vld [vmem:[%s15671_s15 + $0xf0] sm:$0xff] }
 0x73f   :  { %6911 = vmatmul.mubr.f32.vlgmr.msra.gmra.mxu0 %v6672_v58  ;;  %v6772_v7 = vld [vmem:[%s15671_s15 + $0x70] sm:$0xff] }
 0x740   :  { %v6676_v28 = vmax.f32 %v15716_v41, 0.0  ;;  %7094 = vmatpush1.msra.mxu0 %v6836_v47  ;;  %v6770_v47 = vld [vmem:[%s15671_s15 + $0x60] sm:$0xff] }
 0x741   :  { %7095 = vmatprep.subr.mxu0 %v6835_v9  ;;  %v6769_v9 = vld [vmem:[%s15671_s15 + $0x58] sm:$0xff] }
 0x742   :  { %6916 = vmatprep.mubr.f32.mxu0 %v6676_v28  ;;  %7096 = vmatpush1.msra.mxu0 %v6834_v44  ;;  %v6768_v44 = vld [vmem:[%s15671_s15 + $0x50] sm:$0xff] }
 0x743   :  { %6917 = vmatmul.mubr.f32.gmra.mxu0 %v6675_v57  ;;  %7097 = vmatprep.subr.mxu0 %v6833_v27  ;;  %v6767_v27 = vld [vmem:[%s15671_s15 + $0x48] sm:$0xff] }
 0x744   :  { %7098 = vmatpush1.msra.mxu0 %v6832_v56  ;;  %7141 = vmatprep.mubr.f32.mxu0 %v13985_v1  ;;  %v6766_v56 = vld [vmem:[%s15671_s15 + $0x40] sm:$0xff] }
 0x745   :  { %7099 = vmatprep.subr.mxu0 %v6831_v34  ;;  %v6765_v34 = vld [vmem:[%s15671_s15 + $0x38] sm:$0xff] }
 0x746   :  { %7100 = vmatpush1.msra.mxu0 %v6830_v3  ;;  %v6764_v3 = vld [vmem:[%s15671_s15 + $0x30] sm:$0xff] }
 0x747   :  { %7101 = vmatprep.subr.mxu0 %v6829_v37  ;;  %v6763_v37 = vld [vmem:[%s15671_s15 + $0x28] sm:$0xff] }
 0x748   :  { %7102 = vmatpush1.msra.mxu0 %v6828_v50  ;;  %v6762_v50 = vld [vmem:[%s15671_s15 + $0x20] sm:$0xff] }
 0x749   :  { %7103 = vmatprep.subr.mxu0 %v6827_v19  ;;  %v6761_v19 = vld [vmem:[%s15671_s15 + $0x18] sm:$0xff] }
 0x74a   :  { %7104 = vmatpush1.msra.mxu0 %v6826_v31  ;;  %v6760_v31 = vld [vmem:[%s15671_s15 + $0x10] sm:$0xff] }
 0x74b   :  { %7105 = vmatprep.subr.mxu0 %v6825_v35  ;;  %v6759_v35 = vld [vmem:[%s15671_s15 + $0x8] sm:$0xff] }
 0x74c   :  { %7106 = vmatpush1.msra.mxu0 %v6824_v22  ;;  %v6758_v22 = vld [vmem:[%s15671_s15] sm:$0xff] }
 0x74d   :  { %7107 = vmatprep.subr.mxu0 %v6823_v2  ;;  %v6821_v2 = vld [vmem:[%s15671_s15 + $0x1f8] sm:$0xff] }
 0x74e   :  { %7108 = vmatpush1.msra.mxu0 %v6822_v20  ;;  %v6820_v20 = vld [vmem:[%s15671_s15 + $0x1f0] sm:$0xff] }
 0x751   :  { %v12508_v59 = vpop.f32.mrf.mxu1 }
 0x753   :  { %v12509_v51 = vpop.f32.mrf.mxu1 }
 0x754   :  { %v12510_v5 = vadd.f32 %v12509_v51, %v12508_v59  ;;  %v6819_v59 = vld [vmem:[%s15671_s15 + $0x1e8] sm:$0xff]  ;;  %v6818_v51 = vld [vmem:[%s15671_s15 + $0x1e0] sm:$0xff] }
 0x755   :  { %v12511_v62 = vpop.f32.mrf.mxu1 }
 0x757   :  { %v12512_v11 = vpop.f32.mrf.mxu1 }
 0x758   :  { %v12513_v25 = vadd.f32 %v12512_v11, %v12511_v62  ;;  %v6817_v62 = vld [vmem:[%s15671_s15 + $0x1d8] sm:$0xff]  ;;  %v6816_v11 = vld [vmem:[%s15671_s15 + $0x1d0] sm:$0xff] }
 0x761   :  { %v6637_v30 = vpop.f32.mrf.mxu1 }
 0x762   :  { %v6638_v38 = vadd.f32 %v12510_v5, %v6637_v30  ;;  %v6815_v5 = vld [vmem:[%s15671_s15 + $0x1c8] sm:$0xff]  ;;  %v6814_v30 = vld [vmem:[%s15671_s15 + $0x1c0] sm:$0xff] }
 0x763   :  { %v12763_v16 = vpop.f32.mrf.mxu1 }
 0x764   :  { %v6646_v8 = vadd.f32 %v6638_v38, %v15688_v36  ;;  %v6785_v36 = vld [vmem:[%s15671_s15 + $0xd8] sm:$0xff]  ;;  %v6811_v16 = vld [vmem:[%s15671_s15 + $0x1a8] sm:$0xff] }
 0x765   :  { %v6640_v6 = vpop.f32.mrf.mxu1  ;;  %v6813_v38 = vld [vmem:[%s15671_s15 + $0x1b8] sm:$0xff] }
 0x766   :  { %v6668_v45 = vadd.f32 %v6662_v63, %v6646_v8  ;;  %v6641_v4 = vadd.f32 %v12513_v25, %v6640_v6  ;;  %v6810_v25 = vld [vmem:[%s15671_s15 + $0x1a0] sm:$0xff]  ;;  %v6809_v8 = vld [vmem:[%s15671_s15 + $0x198] sm:$0xff]  ;;  %v6808_v6 = vld [vmem:[%s15671_s15 + $0x190] sm:$0xff] }
 0x767   :  { %v12764_v61 = vpop.f32.mrf.mxu1 }
 0x768   :  { %v6674_v12 = vmax.f32 %v6668_v45, 0.0  ;;  %v6649_v49 = vadd.f32 %v6641_v4, %v15690_v33  ;;  %v6784_v33 = vld [vmem:[%s15671_s15 + $0xd0] sm:$0xff]  ;;  %v6807_v45 = vld [vmem:[%s15671_s15 + $0x188] sm:$0xff]  ;;  %v6806_v4 = vld [vmem:[%s15671_s15 + $0x180] sm:$0xff] }
 0x769   :  { %v6805_v61 = vld [vmem:[%s15671_s15 + $0x178] sm:$0xff] }
 0x76a   :  { %v6671_v10 = vadd.f32 %v6662_v63, %v6649_v49  ;;  %12010 = vmatmul.mubr.msk.f32.vlgmr.msra.gmra.mxu1 %vm1070_vm9, %v6674_v12  ;;  %12012 = vmatmul.mubr.msk.f32.vlgmr.msra.gmra.mxu0 %vm1070_vm9, %v6674_v12  ;;  %v6812_v63 = vld [vmem:[%s15671_s15 + $0x1b0] sm:$0xff]  ;;  %v6803_v49 = vld [vmem:[%s15671_s15 + $0x168] sm:$0xff] }
 0x76b   :  { %7001 = vmatpush1.msra.mxu1 %v6788_v54  ;;  %6993 = vmatprep.mubr.f32.mxu1 %v13985_v1  ;;  %v6804_v12 = vld [vmem:[%s15671_s15 + $0x170] sm:$0xff]  ;;  %v6802_v54 = vld [vmem:[%s15671_s15 + $0x160] sm:$0xff] }
 0x76c   :  { %v6677_v13 = vmax.f32 %v6671_v10, 0.0  ;;  %7002 = vmatprep.subr.mxu1 %v6787_v26  ;;  %7147 = vmatprep.mubr.f32.mxu0 %v13985_v1  ;;  %v6801_v26 = vld [vmem:[%s15671_s15 + $0x158] sm:$0xff]  ;;  %v6800_v10 = vld [vmem:[%s15671_s15 + $0x150] sm:$0xff] }
 0x76d   :  { %7003 = vmatpush1.msra.mxu1 %v6786_v29  ;;  %v6799_v29 = vld [vmem:[%s15671_s15 + $0x148] sm:$0xff] }
 0x76e   :  { %7004 = vmatprep.subr.mxu1 %v6785_v36  ;;  %12011 = vmatmul.mubr.msk.f32.gmra.mxu1 %vm1070_vm9, %v6677_v13  ;;  %v6798_v36 = vld [vmem:[%s15671_s15 + $0x140] sm:$0xff] }
 0x76f   :  { %7005 = vmatpush1.msra.mxu1 %v6784_v33  ;;  %12013 = vmatmul.mubr.msk.f32.gmra.mxu0 %vm1070_vm9, %v6677_v13  ;;  %v6797_v13 = vld [vmem:[%s15671_s15 + $0x138] sm:$0xff]  ;;  %v6796_v33 = vld [vmem:[%s15671_s15 + $0x130] sm:$0xff] }
 0x770   :  { %7006 = vmatprep.subr.mxu1 %v6783_v15  ;;  %7064 = vmatprep.mubr.f32.mxu1 %v6673_v55  ;;  %v6771_v55 = vld [vmem:[%s15671_s15 + $0x68] sm:$0xff] }
 0x771   :  { %7007 = vmatpush1.msra.mxu1 %v6782_v39  ;;  %7226 = vmatprep.mubr.f32.mxu0 %v13985_v1  ;;  %v6795_v15 = vld [vmem:[%s15671_s15 + $0x128] sm:$0xff]  ;;  %v6794_v39 = vld [vmem:[%s15671_s15 + $0x120] sm:$0xff] }
 0x772   :  { %7008 = vmatprep.subr.mxu1 %v6781_v14  ;;  %v6793_v14 = vld [vmem:[%s15671_s15 + $0x118] sm:$0xff] }
 0x773   :  { %7009 = vmatpush1.msra.mxu1 %v6780_v42  ;;  %v6792_v42 = vld [vmem:[%s15671_s15 + $0x110] sm:$0xff] }
 0x774   :  { %7010 = vmatprep.subr.mxu1 %v6779_v43  ;;  %v6791_v43 = vld [vmem:[%s15671_s15 + $0x108] sm:$0xff] }
 0x775   :  { %7011 = vmatpush1.msra.mxu1 %v6778_v46  ;;  %v6790_v46 = vld [vmem:[%s15671_s15 + $0x100] sm:$0xff]  ;;  %s11465_s15 = sld [smem:[%s16742_s0 + %s14025_s12]]  }
 0x776   :  { %7012 = vmatprep.subr.mxu1 %v6777_v32 }
 0x777   :  { %7013 = vmatpush1.msra.mxu1 %v6776_v17 }
 0x778   :  { %7014 = vmatprep.subr.mxu1 %v6775_v48 }
 0x779   :  { %7015 = vmatpush1.msra.mxu1 %v6774_v18 }
 0x77a   :  { %7016 = vmatprep.subr.mxu1 %v6773_v40 }
 0x77b   :  { %7017 = vmatpush1.msra.mxu1 %v6772_v7 }
 0x77c   :  { %7018 = vmatprep.subr.mxu1 %v6771_v55 }
 0x77d   :  { %7019 = vmatpush1.msra.mxu1 %v6770_v47 }
 0x77e   :  { %7020 = vmatprep.subr.mxu1 %v6769_v9 }
 0x77f   :  { %7021 = vmatpush1.msra.mxu1 %v6768_v44 }
 0x780   :  { %7022 = vmatprep.subr.mxu1 %v6767_v27 }
 0x781   :  { %7023 = vmatpush1.msra.mxu1 %v6766_v56 }
 0x782   :  { %7024 = vmatprep.subr.mxu1 %v6765_v34 }
 0x783   :  { %7025 = vmatpush1.msra.mxu1 %v6764_v3 }
 0x784   :  { %7026 = vmatprep.subr.mxu1 %v6763_v37 }
 0x785   :  { %7027 = vmatpush1.msra.mxu1 %v6762_v50 }
 0x786   :  { %7028 = vmatprep.subr.mxu1 %v6761_v19 }
 0x787   :  { %7029 = vmatpush1.msra.mxu1 %v6760_v31 }
 0x788   :  { %7030 = vmatprep.subr.mxu1 %v6759_v35 }
 0x789   :  { %7031 = vmatpush1.msra.mxu1 %v6758_v22 }
 0x78a   :  { %7032 = vmatprep.subr.mxu1 %v6821_v2 }
 0x78b   :  { %7033 = vmatpush2.msra.mxu1 %v6820_v20 }
 0x78c   :  { %7034 = vmatprep.subr.mxu1 %v6819_v59  ;;  %v6838_v59 = vld [vmem:[%s11440_s28] sm:$0xff]  ;;  %s16655_s28 = sld [smem:[%s16742_s0 + %s14028_s25]]  }
 0x78d   :  { %7035 = vmatpush2.msra.mxu1 %v6818_v51  ;;  %v6839_v51 = vld [vmem:[%s11441_s2] sm:$0xff]  ;;  %s11458_s2 = sld [smem:[%s16742_s0 + %s14029_s29]]  }
 0x78e   :  { %7036 = vmatprep.subr.mxu1 %v6817_v62  ;;  %v13621_v62 = vld [vmem:[%s15827_s24 + $0x19c] ss:$12 sps:$4 sm:$0xff]  }
 0x78f   :  { %7037 = vmatpush2.msra.mxu1 %v6816_v11  ;;  %v13619_v11 = vld [vmem:[%s15827_s24 + $0x198] ss:$12 sps:$4 sm:$0xff]  }
 0x790   :  { %7038 = vmatprep.subr.mxu1 %v6815_v5  ;;  %v13622_v5 = vld [vmem:[%s15827_s24 + $0x1a0] ss:$12 sps:$4 sm:$0xff]  }
 0x791   :  { %7039 = vmatpush2.msra.mxu1 %v6814_v30  ;;  %v13625_v30 = vld [vmem:[%s15827_s24 + $0x184] ss:$12 sps:$4 sm:$0xff]  }
 0x792   :  { %7040 = vmatprep.subr.mxu1 %v6813_v38  ;;  %v13623_v38 = vld [vmem:[%s15827_s24 + $0x180] ss:$12 sps:$4 sm:$0xff]  }
 0x793   :  { %7041 = vmatpush2.msra.mxu1 %v6812_v63  ;;  %v13626_v63 = vld [vmem:[%s15827_s24 + $0x188] ss:$12 sps:$4 sm:$0xff]  }
 0x794   :  { %7042 = vmatprep.subr.mxu1 %v6811_v16  ;;  %v13629_v16 = vld [vmem:[%s15827_s24 + $0x16c] ss:$12 sps:$4 sm:$0xff]  }
 0x795   :  { %7043 = vmatpush2.msra.mxu1 %v6810_v25  ;;  %v13627_v25 = vld [vmem:[%s15827_s24 + $0x168] ss:$12 sps:$4 sm:$0xff]  }
 0x796   :  { %7044 = vmatprep.subr.mxu1 %v6809_v8  ;;  %v13630_v8 = vld [vmem:[%s15827_s24 + $0x170] ss:$12 sps:$4 sm:$0xff]  }
 0x797   :  { %7045 = vmatpush2.msra.mxu1 %v6808_v6  ;;  %v13633_v6 = vld [vmem:[%s15827_s24 + $0x154] ss:$12 sps:$4 sm:$0xff]  }
 0x798   :  { %7046 = vmatprep.subr.mxu1 %v6807_v45  ;;  %v13631_v45 = vld [vmem:[%s15827_s24 + $0x150] ss:$12 sps:$4 sm:$0xff]  }
 0x799   :  { %7047 = vmatpush2.msra.mxu1 %v6806_v4  ;;  %v13634_v4 = vld [vmem:[%s15827_s24 + $0x158] ss:$12 sps:$4 sm:$0xff]  }
 0x79a   :  { %7048 = vmatprep.subr.mxu1 %v6805_v61  ;;  %v13637_v61 = vld [vmem:[%s15827_s24 + $0x13c] ss:$12 sps:$4 sm:$0xff]  }
 0x79b   :  { %7049 = vmatpush2.msra.mxu1 %v6804_v12  ;;  %v13635_v12 = vld [vmem:[%s15827_s24 + $0x138] ss:$12 sps:$4 sm:$0xff]  }
 0x79c   :  { %7050 = vmatprep.subr.mxu1 %v6803_v49  ;;  %v13638_v49 = vld [vmem:[%s15827_s24 + $0x140] ss:$12 sps:$4 sm:$0xff]  }
 0x79d   :  { %7051 = vmatpush2.msra.mxu1 %v6802_v54  ;;  %v13641_v54 = vld [vmem:[%s15827_s24 + $0x124] ss:$12 sps:$4 sm:$0xff]  }
 0x79e   :  { %7052 = vmatprep.subr.mxu1 %v6801_v26  ;;  %v13639_v26 = vld [vmem:[%s15827_s24 + $0x120] ss:$12 sps:$4 sm:$0xff]  }
 0x79f   :  { %7053 = vmatpush2.msra.mxu1 %v6800_v10  ;;  %v13642_v10 = vld [vmem:[%s15827_s24 + $0x128] ss:$12 sps:$4 sm:$0xff]  }
 0x7a0   :  { %7054 = vmatprep.subr.mxu1 %v6799_v29  ;;  %v13645_v29 = vld [vmem:[%s15827_s24 + $0x10c] ss:$12 sps:$4 sm:$0xff]  }
 0x7a1   :  { %7055 = vmatpush2.msra.mxu1 %v6798_v36  ;;  %v13643_v36 = vld [vmem:[%s15827_s24 + $0x108] ss:$12 sps:$4 sm:$0xff]  }
 0x7a2   :  { %7056 = vmatprep.subr.mxu1 %v6797_v13  ;;  %v13646_v13 = vld [vmem:[%s15827_s24 + $0x110] ss:$12 sps:$4 sm:$0xff]  }
 0x7a3   :  { %7057 = vmatpush2.msra.mxu1 %v6796_v33  ;;  %v13649_v33 = vld [vmem:[%s15827_s24 + $0xf4] ss:$12 sps:$4 sm:$0xff]  }
 0x7a4   :  { %7058 = vmatprep.subr.mxu1 %v6795_v15  ;;  %v13647_v15 = vld [vmem:[%s15827_s24 + $0xf0] ss:$12 sps:$4 sm:$0xff]  }
 0x7a5   :  { %7059 = vmatpush2.msra.mxu1 %v6794_v39  ;;  %v13650_v39 = vld [vmem:[%s15827_s24 + $0xf8] ss:$12 sps:$4 sm:$0xff]  }
 0x7a6   :  { %7060 = vmatprep.subr.mxu1 %v6793_v14  ;;  %v13653_v14 = vld [vmem:[%s15827_s24 + $0x1cc] ss:$12 sps:$4 sm:$0xff]  }
 0x7a7   :  { %7061 = vmatpush2.msra.mxu1 %v6792_v42  ;;  %v13651_v42 = vld [vmem:[%s15827_s24 + $0x1c8] ss:$12 sps:$4 sm:$0xff]  }
 0x7a8   :  { %7062 = vmatprep.subr.mxu1 %v6791_v43  ;;  %v13654_v43 = vld [vmem:[%s15827_s24 + $0x1d0] ss:$12 sps:$4 sm:$0xff]  }
 0x7a9   :  { %7063 = vmatpush2.msra.mxu1 %v6790_v46  ;;  %v13655_v46 = vld [vmem:[%s15827_s24 + $0x1b0] ss:$12 sps:$4 sm:$0xff]  }
 0x7aa   :  { %7065 = vmatmul.mubr.f32.vlgmr.msra.gmra.mxu1 %v6672_v58 }
 0x7ab   :  { %7070 = vmatprep.mubr.f32.mxu1 %v6676_v28 }
 0x7ae   :  { %7071 = vmatmul.mubr.f32.gmra.mxu1 %v6675_v57 }
 0x7af   :  { %7300 = vmatprep.mubr.f32.mxu1 %v13985_v1 }
 0x7ff   :  { %v6912_v32 = vpop.f32.mrf.mxu0 }
 0x801   :  { %v6914_v17 = vpop.f32.mrf.mxu0 }
 0x803   :  { %v6918_v18 = vpop.f32.mrf.mxu0 }
 0x805   :  { %v6920_v58 = vpop.f32.mrf.mxu0 }
 0x82a   :  { %v6989_v48 = vpop.f32.mrf.mxu1  ;;  %v7143_v40 = vpop.f32.mrf.mxu0 }
 0x82b   :  { %v6990_v35 = vadd.f32 %v6989_v48, %v6912_v32  ;;  %v13657_v32 = vld [vmem:[%s15827_s24 + $0x1b4] ss:$12 sps:$4 sm:$0xff]   ;;  %v13661_v48 = vld [vmem:[%s15827_s24 + $0xac] ss:$12 sps:$4 sm:$0xff]  }
 0x82c   :  { %v6991_v53 = vpop.f32.mrf.mxu1  ;;  %v7145_v28 = vpop.f32.mrf.mxu0 }
 0x82d   :  { %v6992_v19 = vadd.f32 %v6991_v53, %v6914_v17  ;;  %v13658_v17 = vld [vmem:[%s15827_s24 + $0x1b8] ss:$12 sps:$4 sm:$0xff]  }
 0x82e   :  { %v6995_v41 = vpop.f32.mrf.mxu1 }
 0x82f   :  { %v7149_v57 = vpop.f32.mrf.mxu0  ;;  %v6996_v37 = vadd.f32 %v6995_v41, %v6918_v18 }
 0x830   :  { %v6997_v7 = vpop.f32.mrf.mxu1 }
 0x831   :  { %v7151_v9 = vpop.f32.mrf.mxu0  ;;  %v6998_v56 = vadd.f32 %v6997_v7, %v6920_v58 }
 0x86a   :  { %v7066_v60 = vpop.f32.mrf.mxu1 }
 0x86b   :  { %v7144_v50 = vadd.f32 %v7143_v40, %v7066_v60 }
 0x86c   :  { %v7068_v55 = vpop.f32.mrf.mxu1 }
 0x86d   :  { %v7146_v34 = vadd.f32 %v7145_v28, %v7068_v55  ;;  %v7154_v20 = vmax.f32 %v6990_v35, %v7144_v50  ;;  %v13659_v55 = vld [vmem:[%s15827_s24 + $0xa8] ss:$12 sps:$4 sm:$0xff]   ;;  %v13673_v50 = vld [vmem:[%s15827_s24 + $0x64] ss:$12 sps:$4 sm:$0xff]  }
 0x86e   :  { %v7072_v47 = vpop.f32.mrf.mxu1 }
 0x86f   :  { %v7150_v44 = vadd.f32 %v7149_v57, %v7072_v47  ;;  %v7155_v2 = vmax.f32 %v6992_v19, %v7146_v34  ;;  %v13662_v47 = vld [vmem:[%s15827_s24 + $0xb0] ss:$12 sps:$4 sm:$0xff]  }
 0x870   :  { %v7074_v27 = vpop.f32.mrf.mxu1  ;;  %v13669_v34 = vld [vmem:[%s15827_s24 + $0x7c] ss:$12 sps:$4 sm:$0xff]  }
 0x871   :  { %v7152_v3 = vadd.f32 %v7151_v9, %v7074_v27  ;;  %v7156_v22 = vmax.f32 %v6996_v37, %v7150_v44  ;;  %v13665_v44 = vld [vmem:[%s15827_s24 + $0x94] ss:$12 sps:$4 sm:$0xff]   ;;  %v13663_v27 = vld [vmem:[%s15827_s24 + $0x90] ss:$12 sps:$4 sm:$0xff]  }
 0x872   :  { %v13670_v37 = vld [vmem:[%s15827_s24 + $0x80] ss:$12 sps:$4 sm:$0xff]  }
 0x873   :  { %v7157_v31 = vmax.f32 %v6998_v56, %v7152_v3  ;;  %v13666_v56 = vld [vmem:[%s15827_s24 + $0x98] ss:$12 sps:$4 sm:$0xff]  }
 0x874   :  { %v13667_v3 = vld [vmem:[%s15827_s24 + $0x78] ss:$12 sps:$4 sm:$0xff]  }
 0x875   :  { %7190 = vmatprep.subr.mxu0 %v7157_v31  ;;  %7264 = vmatprep.subr.mxu1 %v7157_v31  ;;  %v15893_v31 = vpop.permute.xlu0 %7335 }
 0x876   :  { %7191 = vmatpush1.msra.mxu0 %v7156_v22  ;;  %7265 = vmatpush1.msra.mxu1 %v7156_v22 }
 0x877   :  { %7192 = vmatprep.subr.mxu0 %v7155_v2  ;;  %7266 = vmatprep.subr.mxu1 %v7155_v2 }
 0x878   :  { %7193 = vmatpush1.msra.mxu0 %v7154_v20  ;;  %7267 = vmatpush1.msra.mxu1 %v7154_v20 }
 0x879   :  { %12014 = vmatmul.mubr.msk.f32.vlgmr.msra.gmra.mxu0 %vm7158_vm15, %v6838_v59  ;;  %12015 = vmatmul.mubr.msk.f32.vlgmr.msra.gmra.mxu1 %vm7158_vm15, %v6839_v51  ;;  %v13671_v59 = vld [vmem:[%s15827_s24 + $0x60] ss:$12 sps:$4 sm:$0xff]  }
 0x87a   :  { %7597 = vmatprep.subr.bf16.mxu0 %v13621_v62  ;;  %7638 = vmatprep.subr.bf16.mxu1 %v13983_v0  ;;  %v13674_v62 = vld [vmem:[%s15827_s24 + $0x68] ss:$12 sps:$4 sm:$0xff]  }
 0x87b   :  { %7598 = vmatpush1.bf16.msra.mxu0 %v13619_v11  ;;  %7639 = vmatpush1.bf16.msra.mxu1 %v13622_v5  ;;  %v13677_v11 = vld [vmem:[%s15827_s24 + $0x4c] ss:$12 sps:$4 sm:$0xff]   ;;  %v13678_v5 = vld [vmem:[%s15827_s24 + $0x50] ss:$12 sps:$4 sm:$0xff]  }
 0x87c   :  { %7599 = vmatprep.subr.bf16.mxu0 %v13625_v30  ;;  %7640 = vmatprep.subr.bf16.mxu1 %v13983_v0  ;;  %v13681_v30 = vld [vmem:[%s15827_s24 + $0x34] ss:$12 sps:$4 sm:$0xff]  }
 0x87f   :  { %7600 = vmatpush1.bf16.msra.mxu0 %v13623_v38  ;;  %7641 = vmatpush1.bf16.msra.mxu1 %v13626_v63  ;;  %v13679_v38 = vld [vmem:[%s15827_s24 + $0x30] ss:$12 sps:$4 sm:$0xff]   ;;  %v13682_v63 = vld [vmem:[%s15827_s24 + $0x38] ss:$12 sps:$4 sm:$0xff]  }
 0x880   :  { %7601 = vmatprep.subr.bf16.mxu0 %v13629_v16  ;;  %7642 = vmatprep.subr.bf16.mxu1 %v13983_v0  ;;  %v13685_v16 = vld [vmem:[%s15827_s24 + $0x1c] ss:$12 sps:$4 sm:$0xff]  }
 0x883   :  { %7602 = vmatpush1.bf16.msra.mxu0 %v13627_v25  ;;  %7643 = vmatpush1.bf16.msra.mxu1 %v13630_v8  ;;  %v13683_v25 = vld [vmem:[%s15827_s24 + $0x18] ss:$12 sps:$4 sm:$0xff]   ;;  %v13686_v8 = vld [vmem:[%s15827_s24 + $0x20] ss:$12 sps:$4 sm:$0xff]  }
 0x884   :  { %7603 = vmatprep.subr.bf16.mxu0 %v13633_v6  ;;  %7644 = vmatprep.subr.bf16.mxu1 %v13983_v0  ;;  %v13689_v6 = vld [vmem:[%s15827_s24 + $0x4] ss:$12 sps:$4 sm:$0xff]  }
 0x887   :  { %7604 = vmatpush1.bf16.msra.mxu0 %v13631_v45  ;;  %7645 = vmatpush1.bf16.msra.mxu1 %v13634_v4  ;;  %v13687_v45 = vld [vmem:[%s15827_s24] ss:$12 sps:$4 sm:$0xff]   ;;  %v13690_v4 = vld [vmem:[%s15827_s24 + $0x8] ss:$12 sps:$4 sm:$0xff]  }
 0x888   :  { %7605 = vmatprep.subr.bf16.mxu0 %v13637_v61  ;;  %7646 = vmatprep.subr.bf16.mxu1 %v13983_v0  ;;  %v7343_v61 = vpop.permute.xlu1 %7342 }
 0x88b   :  { %7606 = vmatpush1.bf16.msra.mxu0 %v13635_v12  ;;  %7647 = vmatpush1.bf16.msra.mxu1 %v13638_v49  ;;  %v13693_v12 = vld [vmem:[%s15827_s24 + $0xdc] ss:$12 sps:$4 sm:$0xff]  }
 0x88c   :  { %7607 = vmatprep.subr.bf16.mxu0 %v13641_v54  ;;  %7648 = vmatprep.subr.bf16.mxu1 %v13983_v0  ;;  %v15927_v54 = vrot.slane %v7343_v61, 6  ;;  %v13753_v61 = vld [vmem:[%s15985_s5 + $0x22c] ss:$12 sps:$4 sm:$0xff]  }
 0x88f   :  { %7608 = vmatpush1.bf16.msra.mxu0 %v13639_v26  ;;  %7649 = vmatpush1.bf16.msra.mxu1 %v13642_v10  ;;  %v13691_v26 = vld [vmem:[%s15827_s24 + $0xd8] ss:$12 sps:$4 sm:$0xff]   ;;  %v13694_v10 = vld [vmem:[%s15827_s24 + $0xe0] ss:$12 sps:$4 sm:$0xff]  }
 0x890   :  { %7609 = vmatprep.subr.bf16.mxu0 %v13645_v29  ;;  %7650 = vmatprep.subr.bf16.mxu1 %v13983_v0  ;;  %v13697_v29 = vld [vmem:[%s15827_s24 + $0xc4] ss:$12 sps:$4 sm:$0xff]  }
 0x893   :  { %7610 = vmatpush1.bf16.msra.mxu0 %v13643_v36  ;;  %7651 = vmatpush1.bf16.msra.mxu1 %v13646_v13 }
 0x894   :  { %7611 = vmatprep.subr.bf16.mxu0 %v13649_v33  ;;  %7652 = vmatprep.subr.bf16.mxu1 %v13983_v0  ;;  %v13695_v33 = vld [vmem:[%s15827_s24 + $0xc0] ss:$12 sps:$4 sm:$0xff]  }
 0x897   :  { %7612 = vmatpush1.bf16.msra.mxu0 %v13647_v15  ;;  %7653 = vmatpush1.bf16.msra.mxu1 %v13650_v39  ;;  %v13698_v15 = vld [vmem:[%s15827_s24 + $0xc8] ss:$12 sps:$4 sm:$0xff]  }
 0x898   :  { %7625 = vmatprep.subr.bf16.mxu0 %v13653_v14  ;;  %7666 = vmatprep.subr.bf16.mxu1 %v13983_v0  ;;  %v13701_v14 = vld [vmem:[%s15827_s24 + $0x28c] ss:$12 sps:$4 sm:$0xff]  }
 0x89b   :  { %7626 = vmatpush2.bf16.msra.mxu0 %v13651_v42  ;;  %7667 = vmatpush2.bf16.msra.mxu1 %v13654_v43  ;;  %v13699_v43 = vld [vmem:[%s15827_s24 + $0x288] ss:$12 sps:$4 sm:$0xff]  }
 0x89c   :  { %7668 = vmatprep.subr.bf16.mxu1 %v13983_v0  ;;  %7627 = vmatprep.subr.bf16.mxu0 %v13657_v32  ;;  %v13702_v32 = vld [vmem:[%s15827_s24 + $0x290] ss:$12 sps:$4 sm:$0xff]  }
 0x89f   :  { %7628 = vmatpush2.bf16.msra.mxu0 %v13655_v46  ;;  %7669 = vmatpush2.bf16.msra.mxu1 %v13658_v17 }
 0x8a0   :  { %7841 = vmatprep.subr.bf16.mxu0 %v13661_v48  ;;  %7882 = vmatprep.subr.bf16.mxu1 %v13983_v0  ;;  %v13705_v48 = vld [vmem:[%s15827_s24 + $0x274] ss:$12 sps:$4 sm:$0xff]  }
 0x939   :  { %v7228_v18 = vpop.f32.mrf.mxu0  ;;  %v7302_v53 = vpop.f32.mrf.mxu1 }
 0x93a   :  { %v7307_v58 = vmax.f32 %v7228_v18, %v7302_v53  ;;  %v13703_v18 = vld [vmem:[%s15827_s24 + $0x270] ss:$12 sps:$4 sm:$0xff]   ;;  %v13706_v53 = vld [vmem:[%s15827_s24 + $0x278] ss:$12 sps:$4 sm:$0xff]  }
 0x93b   :  { %v7230_v40 = vpop.f32.mrf.mxu0  ;;  %v7304_v41 = vpop.f32.mrf.mxu1 }
 0x93c   :  { %v7319_v28 = vrot.slane %v7307_v58, 7  ;;  %v7308_v7 = vmax.f32 %v7230_v40, %v7304_v41  ;;  %v7392_v9 = vpack.c.bf16 %v7307_v58, %v7307_v58  ;;  %v13709_v58 = vld [vmem:[%s15827_s24 + $0x25c] ss:$12 sps:$4 sm:$0xff]   ;;  %v13707_v40 = vld [vmem:[%s15827_s24 + $0x258] ss:$12 sps:$4 sm:$0xff]  }
 0x93d   :  { %v13710_v41 = vld [vmem:[%s15827_s24 + $0x260] ss:$12 sps:$4 sm:$0xff]  }
 0x93e   :  { %7325 = vst [vmem:[#allocation2 + $0x18] sm:$0x1] %v7319_v28  ;;  %7323 = vst [vmem:[#allocation2] sm:$0xfe] %v7319_v28  ;;  %v7320_v60 = vrot.slane %v7308_v7, 7  ;;  %v7393_v57 = vpack.c.bf16 %v7308_v7, %v7308_v7 }
 0x93f   :  { %v13713_v28 = vld [vmem:[%s15827_s24 + $0x244] ss:$12 sps:$4 sm:$0xff]   ;;  %v13711_v7 = vld [vmem:[%s15827_s24 + $0x240] ss:$12 sps:$4 sm:$0xff]  }
 0x940   :  { %7326 = vst.msk [vmem:[#allocation2 + $0x20] sm:$0x1] %vm3851_vm13, %v7320_v60  ;;  %12046 = vmatprep.mubr.msk.bf16.mxu0 %vm3646_vm11, %v7393_v57  ;;  %12047 = vmatprep.mubr.msk.bf16.mxu1 %vm3646_vm11, %v7393_v57  ;;  %v13717_v57 = vld [vmem:[%s15827_s24 + $0x22c] ss:$12 sps:$4 sm:$0xff]  }
 0x941   :  { %7324 = vst.msk [vmem:[#allocation2 + $0x8] sm:$0xfe] %vm3846_vm12, %v7320_v60  ;;  %7630 = vmatmul.mubr.bf16.vlgmr.msra.gmra.mxu0 %v7392_v9  ;;  %7671 = vmatmul.mubr.bf16.vlgmr.msra.gmra.mxu1 %v7392_v9  ;;  %v13714_v60 = vld [vmem:[%s15827_s24 + $0x248] ss:$12 sps:$4 sm:$0xff]  }
 0x942   :  { %7842 = vmatpush1.bf16.msra.mxu0 %v13659_v55  ;;  %7883 = vmatpush1.bf16.msra.mxu1 %v13662_v47  ;;  %v13715_v55 = vld [vmem:[%s15827_s24 + $0x228] ss:$12 sps:$4 sm:$0xff]   ;;  %v13718_v47 = vld [vmem:[%s15827_s24 + $0x230] ss:$12 sps:$4 sm:$0xff]  }
 0x943   :  { %7843 = vmatprep.subr.bf16.mxu0 %v13665_v44  ;;  %7884 = vmatprep.subr.bf16.mxu1 %v13983_v0  ;;  %v13721_v9 = vld [vmem:[%s15827_s24 + $0x214] ss:$12 sps:$4 sm:$0xff]   ;;  %v13719_v44 = vld [vmem:[%s15827_s24 + $0x210] ss:$12 sps:$4 sm:$0xff]  }
 0x945   :  { %v15891_v19 = vld [vmem:[#allocation2] sm:$0xff]  ;;  %v15896_v2 = vld [vmem:[#allocation2 + $0x18] sm:$0x3] }
 0x946   :  { %7844 = vmatpush1.bf16.msra.mxu0 %v13663_v27  ;;  %7885 = vmatpush1.bf16.msra.mxu1 %v13666_v56  ;;  %v7338_v39 = vmul.f32 %v15893_v31, %v15891_v19  ;;  %v13722_v27 = vld [vmem:[%s15827_s24 + $0x218] ss:$12 sps:$4 sm:$0xff]   ;;  %v13725_v56 = vld [vmem:[%s15827_s24 + $0x1fc] ss:$12 sps:$4 sm:$0xff]  }
 0x947   :  { %7845 = vmatprep.subr.bf16.mxu0 %v13669_v34  ;;  %7886 = vmatprep.subr.bf16.mxu1 %v13983_v0  ;;  %v7332_v22 = vld [vmem:[#allocation2 + $0x20] sm:$0x3]  ;;  %v13723_v34 = vld [vmem:[%s15827_s24 + $0x1f8] ss:$12 sps:$4 sm:$0xff]   ;;  %v13730_v19 = vld [vmem:[%s15827_s24 + $0x1e8] ss:$12 sps:$4 sm:$0xff]  }
 0x948   :  { %v7328_v35 = vld [vmem:[#allocation2 + $0x8] sm:$0xff]  ;;  %8243 = vst.msk [vmem:[#allocation2 + $0x19] ss:$8 sm:$0x7] %vm14126_vm4, %v13985_v1  ;;  %v7349_v13 = vmul.f32 %v15927_v54, %v7332_v22  ;;  %v7350_v46 = vpack.c.bf16 %v7338_v39, %v7338_v39  ;;  %v13731_v22 = vld [vmem:[%s15827_s24 + $0x2b8] ss:$12 sps:$4 sm:$0xff]  }
 0x949   :  { %v7339_v20 = vmul.f32 %v15893_v31, %v7328_v35  ;;  %8241 = vst.msk [vmem:[#allocation2] ss:$8 sm:$0x7] %vm14126_vm4, %v13985_v1  ;;  %v7330_v49 = vld [vmem:[#allocation2 + $0x8] sm:$0xfc]  ;;  %vm10751_vm4 = vcmask 31744  }
 0x94a   :  { %7846 = vmatpush1.bf16.msra.mxu0 %v13667_v3  ;;  %7887 = vmatpush1.bf16.msra.mxu1 %v13670_v37  ;;  %v7347_v36 = vmul.f32 %v15927_v54, %v7330_v49  ;;  %v13726_v3 = vld [vmem:[%s15827_s24 + $0x200] ss:$12 sps:$4 sm:$0xff]   ;;  %v13729_v37 = vld [vmem:[%s15827_s24 + $0x1e4] ss:$12 sps:$4 sm:$0xff]   ;;  %v13733_v31 = vld [vmem:[%s15827_s24 + $0x2bc] ss:$12 sps:$4 sm:$0xff]  }
 0x94b   :  { %v7351_v51 = vpack.c.bf16 %v7339_v20, %v7339_v20  ;;  %7847 = vmatprep.subr.bf16.mxu0 %v13673_v50  ;;  %7888 = vmatprep.subr.bf16.mxu1 %v13983_v0  ;;  %v13727_v50 = vld [vmem:[%s15827_s24 + $0x1e0] ss:$12 sps:$4 sm:$0xff]   ;;  %v13781_v39 = vld [vmem:[%s15985_s5 + $0x390] ss:$12 sps:$4 sm:$0xff]  }
 0x94c   :  { %v7923_v42 = vpack.c.bf16 %v7349_v13, %v7347_v36  ;;  %v7329_v35 = vld [vmem:[#allocation2] sm:$0xfc]  ;;  %v13777_v36 = vld [vmem:[%s15985_s5 + $0x3ac] ss:$12 sps:$4 sm:$0xff]  }
 0x94d   :  { %12078 = vmatprep.mubr.msk.bf16.mxu0 %vm3646_vm11, %v7351_v51  ;;  %12079 = vmatprep.mubr.msk.bf16.mxu1 %vm3646_vm11, %v7351_v51  ;;  %v13734_v20 = vld [vmem:[%s15827_s24 + $0x2c0] ss:$12 sps:$4 sm:$0xff]   ;;  %v7346_v51 = vmul.f32 %v15927_v54, %v7329_v35 }
 0x94e   :  { %7848 = vmatpush1.bf16.msra.mxu0 %v13671_v59  ;;  %7889 = vmatpush1.bf16.msra.mxu1 %v13674_v62  ;;  %v7967_v17 = vrot.slane %v7923_v42, 1  ;;  %v13737_v59 = vld [vmem:[%s15827_s24 + $0x2a4] ss:$12 sps:$4 sm:$0xff]   ;;  %v7348_v62 = vmul.f32 %v15927_v54, %v15896_v2  ;;  %v13739_v2 = vld [vmem:[%s15985_s5 + $0x288] ss:$12 sps:$4 sm:$0xff]  }
 0x94f   :  { %7849 = vmatprep.subr.bf16.mxu0 %v13677_v11  ;;  %7890 = vmatprep.subr.bf16.mxu1 %v13983_v0  ;;  %v13735_v11 = vld [vmem:[%s15827_s24 + $0x2a0] ss:$12 sps:$4 sm:$0xff]   ;;  %v13759_v54 = vld [vmem:[%s15985_s5 + $0x1fc] ss:$12 sps:$4 sm:$0xff]  }
 0x950   :  { %v13756_v49 = vld [vmem:[%s15985_s5 + $0x214] ss:$12 sps:$4 sm:$0xff]  }
 0x951   :  { %v13760_v13 = vld [vmem:[%s15985_s5 + $0x1e0] ss:$12 sps:$4 sm:$0xff]  }
 0x952   :  { %7850 = vmatpush1.bf16.msra.mxu0 %v13675_v52  ;;  %7891 = vmatpush1.bf16.msra.mxu1 %v13678_v5  ;;  %v13738_v52 = vld [vmem:[%s15827_s24 + $0x2a8] ss:$12 sps:$4 sm:$0xff]   ;;  %v7922_v5 = vpack.c.bf16 %v7348_v62, %v7346_v51  ;;  %s16616_s24 = sld [smem:[%s16742_s0 + %s14027_s21]]  }
 0x953   :  { %7851 = vmatprep.subr.bf16.mxu0 %v13681_v30  ;;  %7892 = vmatprep.subr.bf16.mxu1 %v13983_v0  ;;  %v13768_v42 = vld [vmem:[%s15985_s5 + $0x334] ss:$12 sps:$4 sm:$0xff]  }
 0x954   :  { %v7966_v30 = vrot.slane %v7922_v5, 1 }
 0x956   :  { %7852 = vmatpush1.bf16.msra.mxu0 %v13679_v38  ;;  %7893 = vmatpush1.bf16.msra.mxu1 %v13682_v63  ;;  %v13741_v38 = vld [vmem:[%s15985_s5 + $0x28c] ss:$12 sps:$4 sm:$0xff]   ;;  %v13744_v63 = vld [vmem:[%s15985_s5 + $0x274] ss:$12 sps:$4 sm:$0xff]  }
 0x957   :  { %7853 = vmatprep.subr.bf16.mxu0 %v13685_v16  ;;  %7894 = vmatprep.subr.bf16.mxu1 %v13983_v0  ;;  %v13742_v16 = vld [vmem:[%s15985_s5 + $0x270] ss:$12 sps:$4 sm:$0xff]  }
 0x95a   :  { %7854 = vmatpush1.bf16.msra.mxu0 %v13683_v25  ;;  %7895 = vmatpush1.bf16.msra.mxu1 %v13686_v8  ;;  %v13747_v25 = vld [vmem:[%s15985_s5 + $0x25c] ss:$12 sps:$4 sm:$0xff]   ;;  %v13745_v8 = vld [vmem:[%s15985_s5 + $0x258] ss:$12 sps:$4 sm:$0xff]  }
 0x95b   :  { %7855 = vmatprep.subr.bf16.mxu0 %v13689_v6  ;;  %7896 = vmatprep.subr.bf16.mxu1 %v13983_v0  ;;  %v13750_v6 = vld [vmem:[%s15985_s5 + $0x244] ss:$12 sps:$4 sm:$0xff]  }
 0x95e   :  { %7856 = vmatpush1.bf16.msra.mxu0 %v13687_v45  ;;  %7897 = vmatpush1.bf16.msra.mxu1 %v13690_v4  ;;  %v13748_v45 = vld [vmem:[%s15985_s5 + $0x240] ss:$12 sps:$4 sm:$0xff]   ;;  %v13751_v4 = vld [vmem:[%s15985_s5 + $0x228] ss:$12 sps:$4 sm:$0xff]  }
 0x95f   :  { %7869 = vmatprep.subr.bf16.mxu0 %v13693_v12  ;;  %7910 = vmatprep.subr.bf16.mxu1 %v13983_v0  ;;  %v13754_v12 = vld [vmem:[%s15985_s5 + $0x210] ss:$12 sps:$4 sm:$0xff]  }
 0x962   :  { %7870 = vmatpush2.bf16.msra.mxu0 %v13691_v26  ;;  %7911 = vmatpush2.bf16.msra.mxu1 %v13694_v10  ;;  %v13757_v26 = vld [vmem:[%s15985_s5 + $0x1f8] ss:$12 sps:$4 sm:$0xff]   ;;  %v13775_v10 = vld [vmem:[%s15985_s5 + $0x3a8] ss:$12 sps:$4 sm:$0xff]  }
 0x963   :  { %7871 = vmatprep.subr.bf16.mxu0 %v13697_v29  ;;  %7912 = vmatprep.subr.bf16.mxu1 %v13983_v0  ;;  %v13762_v29 = vld [vmem:[%s15985_s5 + $0x1e4] ss:$12 sps:$4 sm:$0xff]  }
 0x966   :  { %7872 = vmatpush2.bf16.msra.mxu0 %v13695_v33  ;;  %7913 = vmatpush2.bf16.msra.mxu1 %v13698_v15  ;;  %v13783_v33 = vld [vmem:[%s15985_s5 + $0x394] ss:$12 sps:$4 sm:$0xff]   ;;  %v13765_v15 = vld [vmem:[%s15985_s5 + $0x34c] ss:$12 sps:$4 sm:$0xff]  }
 0x967   :  { %8132 = vmatprep.subr.bf16.mxu0 %v13701_v14  ;;  %8173 = vmatprep.subr.bf16.mxu1 %v13983_v0  ;;  %v13763_v14 = vld [vmem:[%s15985_s5 + $0x348] ss:$12 sps:$4 sm:$0xff]  }
 0x969   :  { %7874 = vmatmul.mubr.bf16.vlgmr.msra.gmra.mxu0 %v7350_v46  ;;  %7915 = vmatmul.mubr.bf16.vlgmr.msra.gmra.mxu1 %v7350_v46  ;;  %v13771_v46 = vld [vmem:[%s15985_s5 + $0x31c] ss:$12 sps:$4 sm:$0xff]  }
 0x96a   :  { %8133 = vmatpush1.bf16.msra.mxu0 %v13699_v43  ;;  %12110 = vmatprep.mubr.msk.bf16.mxu0 %vm3646_vm11, %v7967_v17  ;;  %v13766_v43 = vld [vmem:[%s15985_s5 + $0x330] ss:$12 sps:$4 sm:$0xff]  }
 0x96b   :  { %8174 = vmatpush1.bf16.msra.mxu1 %v13702_v32  ;;  %12111 = vmatprep.mubr.msk.bf16.mxu1 %vm3646_vm11, %v7967_v17  ;;  %v13769_v32 = vld [vmem:[%s15985_s5 + $0x318] ss:$12 sps:$4 sm:$0xff]  }
 0x96c   :  { %8134 = vmatprep.subr.bf16.mxu0 %v13705_v48  ;;  %8175 = vmatprep.subr.bf16.mxu1 %v13983_v0  ;;  %v13774_v17 = vld [vmem:[%s15985_s5 + $0x304] ss:$12 sps:$4 sm:$0xff]   ;;  %v13772_v48 = vld [vmem:[%s15985_s5 + $0x300] ss:$12 sps:$4 sm:$0xff]  }
 0x96e   :  { %8135 = vmatpush1.bf16.msra.mxu0 %v13703_v18  ;;  %v13780_v18 = vld [vmem:[%s15985_s5 + $0x2ec] ss:$12 sps:$4 sm:$0xff]  }
 0x96f   :  { %8176 = vmatpush1.bf16.msra.mxu1 %v13706_v53  ;;  %8136 = vmatprep.subr.bf16.mxu0 %v13709_v58  ;;  %v13778_v53 = vld [vmem:[%s15985_s5 + $0x2e8] ss:$12 sps:$4 sm:$0xff]  }
 0x970   :  { %8177 = vmatprep.subr.bf16.mxu1 %v13983_v0  ;;  %v13786_v58 = vld [vmem:[%s15985_s5 + $0x2d4] ss:$12 sps:$4 sm:$0xff]  }
 0x972   :  { %8137 = vmatpush1.bf16.msra.mxu0 %v13707_v40  ;;  %v13784_v40 = vld [vmem:[%s15985_s5 + $0x2d0] ss:$12 sps:$4 sm:$0xff]  }
 0x973   :  { %8178 = vmatpush1.bf16.msra.mxu1 %v13710_v41  ;;  %8138 = vmatprep.subr.bf16.mxu0 %v13713_v28  ;;  %v13789_v41 = vld [vmem:[%s15985_s5 + $0x37c] ss:$12 sps:$4 sm:$0xff]   ;;  %v13787_v28 = vld [vmem:[%s15985_s5 + $0x378] ss:$12 sps:$4 sm:$0xff]  }
 0x974   :  { %8179 = vmatprep.subr.bf16.mxu1 %v13983_v0 }
 0x976   :  { %8139 = vmatpush1.bf16.msra.mxu0 %v13711_v7  ;;  %v13792_v7 = vld [vmem:[%s15985_s5 + $0x2bc] ss:$12 sps:$4 sm:$0xff]  }
 0x977   :  { %8180 = vmatpush1.bf16.msra.mxu1 %v13714_v60  ;;  %8140 = vmatprep.subr.bf16.mxu0 %v13717_v57  ;;  %v13790_v60 = vld [vmem:[%s15985_s5 + $0x2b8] ss:$12 sps:$4 sm:$0xff]  }
 0x978   :  { %8181 = vmatprep.subr.bf16.mxu1 %v13983_v0  ;;  %v13795_v57 = vld [vmem:[%s15985_s5 + $0x364] ss:$12 sps:$4 sm:$0xff]  }
 0x97a   :  { %8141 = vmatpush1.bf16.msra.mxu0 %v13715_v55  ;;  %v13793_v55 = vld [vmem:[%s15985_s5 + $0x360] ss:$12 sps:$4 sm:$0xff]  }
 0x97b   :  { %8182 = vmatpush1.bf16.msra.mxu1 %v13718_v47  ;;  %8142 = vmatprep.subr.bf16.mxu0 %v13721_v9  ;;  %v13798_v47 = vld [vmem:[%s15985_s5 + $0x2a4] ss:$12 sps:$4 sm:$0xff]   ;;  %v13796_v9 = vld [vmem:[%s15985_s5 + $0x2a0] ss:$12 sps:$4 sm:$0xff]  }
 0x97c   :  { %8183 = vmatprep.subr.bf16.mxu1 %v13983_v0 }
 0x97e   :  { %8143 = vmatpush1.bf16.msra.mxu0 %v13719_v44  ;;  %v13799_v44 = vld [vmem:[%s15985_s5 + $0x350] ss:$12 sps:$4 sm:$0xff]  }
 0x97f   :  { %8184 = vmatpush1.bf16.msra.mxu1 %v13722_v27  ;;  %8144 = vmatprep.subr.bf16.mxu0 %v13725_v56  ;;  %v13803_v27 = vld [vmem:[%s15985_s5 + $0xac] ss:$12 sps:$4 sm:$0xff]  }
 0x980   :  { %8185 = vmatprep.subr.bf16.mxu1 %v13983_v0 }
 0x982   :  { %8145 = vmatpush1.bf16.msra.mxu0 %v13723_v34 }
 0x983   :  { %8186 = vmatpush1.bf16.msra.mxu1 %v13726_v3  ;;  %8146 = vmatprep.subr.bf16.mxu0 %v13729_v37 }
 0x984   :  { %8187 = vmatprep.subr.bf16.mxu1 %v13983_v0 }
 0x986   :  { %8147 = vmatpush1.bf16.msra.mxu0 %v13727_v50 }
 0x987   :  { %8188 = vmatpush1.bf16.msra.mxu1 %v13730_v19  ;;  %8160 = vmatprep.subr.bf16.mxu0 %v13733_v31 }
 0x988   :  { %8201 = vmatprep.subr.bf16.mxu1 %v13983_v0 }
 0x98a   :  { %8161 = vmatpush2.bf16.msra.mxu0 %v13731_v22 }
 0x98b   :  { %8202 = vmatpush2.bf16.msra.mxu1 %v13734_v20  ;;  %8162 = vmatprep.subr.bf16.mxu0 %v13737_v59 }
 0x98c   :  { %8203 = vmatprep.subr.bf16.mxu1 %v13983_v0 }
 0x98e   :  { %8163 = vmatpush2.bf16.msra.mxu0 %v13735_v11 }
 0x98f   :  { %8204 = vmatpush2.bf16.msra.mxu1 %v13738_v52  ;;  %8778 = vmatprep.subr.bf16.mxu0 %v13741_v38 }
 0x990   :  { %8827 = vmatprep.subr.bf16.mxu1 %v13777_v36 }
 0x991   :  { %8165 = vmatmul.mubr.bf16.vlgmr.msra.gmra.mxu0 %v7966_v30 }
 0x992   :  { %8206 = vmatmul.mubr.bf16.vlgmr.msra.gmra.mxu1 %v7966_v30  ;;  %8779 = vmatpush1.bf16.msra.mxu0 %v13739_v2  ;;  %v7309_v2 = vld [vmem:[%s11443_s9] sm:$0x7]  ;;  %s11460_s9 = sld [smem:[%s16742_s0 + %s14031_s6]]  }
 0x993   :  { %8780 = vmatprep.subr.bf16.mxu0 %v13744_v63  ;;  %8851 = vmatprep.mubr.bf16.mxu1 %v13983_v0  ;;  %v8220_v38 = vrot.slane %v7309_v2, %v14298_v21 }
 0x994   :  { %8828 = vmatpush1.bf16.msra.mxu1 %v13775_v10 }
 0x995   :  { %8829 = vmatprep.subr.bf16.mxu1 %v13783_v33 }
 0x996   :  { %8781 = vmatpush1.bf16.msra.mxu0 %v13742_v16 }
 0x997   :  { %8782 = vmatprep.subr.bf16.mxu0 %v13747_v25  ;;  %v8228_v25 = vrot.slane %v7309_v2, %v14300_v23 }
 0x998   :  { %8830 = vmatpush1.bf16.msra.mxu1 %v13781_v39 }
 0x999   :  { %8831 = vmatprep.subr.bf16.mxu1 %v13789_v41  ;;  %v13808_v41 = vld [vmem:[%s15985_s5 + $0x94] ss:$12 sps:$4 sm:$0xff]  }
 0x99a   :  { %8783 = vmatpush1.bf16.msra.mxu0 %v13745_v8 }
 0x99b   :  { %8784 = vmatprep.subr.bf16.mxu0 %v13750_v6 }
 0x99c   :  { %8832 = vmatpush1.bf16.msra.mxu1 %v13787_v28  ;;  %v13805_v28 = vld [vmem:[%s15985_s5 + $0x278] ss:$12 sps:$4 sm:$0xff]  }
 0x99d   :  { %8833 = vmatprep.subr.bf16.mxu1 %v13795_v57  ;;  %v13813_v57 = vld [vmem:[%s15985_s5 + $0x7c] ss:$12 sps:$4 sm:$0xff]  }
 0x99e   :  { %8785 = vmatpush1.bf16.msra.mxu0 %v13748_v45 }
 0x99f   :  { %8786 = vmatprep.subr.bf16.mxu0 %v13753_v61 }
 0x9a0   :  { %8834 = vmatpush1.bf16.msra.mxu1 %v13793_v55  ;;  %v13810_v55 = vld [vmem:[%s15985_s5 + $0x260] ss:$12 sps:$4 sm:$0xff]  }
 0x9a1   :  { %12519 = vmatprep.subr.bf16.mxu1 %v13799_v44  ;;  %v16059_v44 = vpop.permute.xlu0 %8271 }
 0x9a2   :  { %8787 = vmatpush1.bf16.msra.mxu0 %v13751_v4  ;;  %v8224_v4 = vrot.slane %v7309_v2, %v14302_v24  ;;  %v13834_v2 = vld [vmem:[%s15985_s5 + $0x2a8] ss:$12 sps:$4 sm:$0xff]  }
 0x9a3   :  { %8788 = vmatprep.subr.bf16.mxu0 %v13756_v49 }
 0x9a6   :  { %8789 = vmatpush1.bf16.msra.mxu0 %v13754_v12 }
 0x9a7   :  { %8790 = vmatprep.subr.bf16.mxu0 %v13759_v54 }
 0x9aa   :  { %8791 = vmatpush1.bf16.msra.mxu0 %v13757_v26 }
 0x9ab   :  { %8792 = vmatprep.subr.bf16.mxu0 %v13762_v29 }
 0x9ae   :  { %8793 = vmatpush1.bf16.msra.mxu0 %v13760_v13 }
 0x9af   :  { %8794 = vmatprep.subr.bf16.mxu0 %v13765_v15 }
 0x9b2   :  { %8795 = vmatpush2.bf16.msra.mxu0 %v13763_v14 }
 0x9b3   :  { %8796 = vmatprep.subr.bf16.mxu0 %v13768_v42 }
 0x9b6   :  { %8797 = vmatpush2.bf16.msra.mxu0 %v13766_v43 }
 0x9b7   :  { %8798 = vmatprep.subr.bf16.mxu0 %v13771_v46  ;;  %v13800_v46 = vld [vmem:[%s15985_s5 + $0x290] ss:$12 sps:$4 sm:$0xff]  }
 0x9ba   :  { %8799 = vmatpush2.bf16.msra.mxu0 %v13769_v32 }
 0x9bb   :  { %8800 = vmatprep.subr.bf16.mxu0 %v13774_v17 }
 0x9be   :  { %8801 = vmatpush2.bf16.msra.mxu0 %v13772_v48 }
 0x9bf   :  { %8802 = vmatprep.subr.bf16.mxu0 %v13780_v18 }
 0x9c2   :  { %8803 = vmatpush2.bf16.msra.mxu0 %v13778_v53  ;;  %v13801_v53 = vld [vmem:[%s15985_s5 + $0xa8] ss:$12 sps:$4 sm:$0xff]  }
 0x9c3   :  { %8804 = vmatprep.subr.bf16.mxu0 %v13786_v58  ;;  %v13804_v58 = vld [vmem:[%s15985_s5 + $0x338] ss:$12 sps:$4 sm:$0xff]  }
 0x9c6   :  { %8805 = vmatpush2.bf16.msra.mxu0 %v13784_v40 }
 0x9c7   :  { %8806 = vmatprep.subr.bf16.mxu0 %v13792_v7  ;;  %v13809_v7 = vld [vmem:[%s15985_s5 + $0x320] ss:$12 sps:$4 sm:$0xff]  }
 0x9ca   :  { %8807 = vmatpush2.bf16.msra.mxu0 %v13790_v60  ;;  %v13806_v60 = vld [vmem:[%s15985_s5 + $0x90] ss:$12 sps:$4 sm:$0xff]  }
 0x9cb   :  { %8808 = vmatprep.subr.bf16.mxu0 %v13798_v47  ;;  %v13814_v47 = vld [vmem:[%s15985_s5 + $0x308] ss:$12 sps:$4 sm:$0xff]  }
 0x9ce   :  { %8809 = vmatpush2.bf16.msra.mxu0 %v13796_v9  ;;  %v13811_v9 = vld [vmem:[%s15985_s5 + $0x78] ss:$12 sps:$4 sm:$0xff]  }
 0x9cf   :  { %9263 = vmatprep.subr.bf16.mxu0 %v13803_v27  ;;  %v13818_v27 = vld [vmem:[%s15985_s5 + $0x64] ss:$12 sps:$4 sm:$0xff]  }
 0xa01   :  { %v7631_v56 = vpop.f32.mrf.mxu0  ;;  %v7672_v34 = vpop.f32.mrf.mxu1 }
 0xa03   :  { %v7633_v3 = vpop.f32.mrf.mxu0  ;;  %v7674_v37 = vpop.f32.mrf.mxu1 }
 0xa04   :  { %v13819_v37 = vld [vmem:[%s15985_s5 + $0x2f0] ss:$12 sps:$4 sm:$0xff]  }
 0xa05   :  { %v7635_v50 = vpop.f32.mrf.mxu0  ;;  %v7675_v19 = vpop.f32.mrf.mxu1 }
 0xa06   :  { %v13816_v50 = vld [vmem:[%s15985_s5 + $0x60] ss:$12 sps:$4 sm:$0xff]  }
 0xa07   :  { %v7636_v31 = vpop.f32.mrf.mxu0  ;;  %v7676_v35 = vpop.f32.mrf.mxu1 }
 0xa08   :  { %v13823_v31 = vld [vmem:[%s15985_s5 + $0x4c] ss:$12 sps:$4 sm:$0xff]   ;;  %v13820_v35 = vld [vmem:[%s15985_s5 + $0x230] ss:$12 sps:$4 sm:$0xff]  }
 0xa29   :  { %v7875_v22 = vpop.f32.mrf.mxu0  ;;  %v7916_v20 = vpop.f32.mrf.mxu1 }
 0xa2a   :  { %v7876_v30 = vadd.f32 %v7875_v22, %v7631_v56  ;;  %v7917_v63 = vadd.f32 %v7916_v20, %v7672_v34  ;;  %v13815_v34 = vld [vmem:[%s15985_s5 + $0x248] ss:$12 sps:$4 sm:$0xff]   ;;  %v13824_v22 = vld [vmem:[%s15985_s5 + $0x2d8] ss:$12 sps:$4 sm:$0xff]  }
 0xa2b   :  { %v7877_v59 = vpop.f32.mrf.mxu0  ;;  %v7918_v51 = vpop.f32.mrf.mxu1  ;;  %v13821_v20 = vld [vmem:[%s15985_s5 + $0x48] ss:$12 sps:$4 sm:$0xff]  }
 0xa2c   :  { %v7878_v8 = vadd.f32 %v7877_v59, %v7633_v3  ;;  %v13828_v59 = vld [vmem:[%s15985_s5 + $0x34] ss:$12 sps:$4 sm:$0xff]   ;;  %v13825_v51 = vld [vmem:[%s15985_s5 + $0x218] ss:$12 sps:$4 sm:$0xff]  }
 0xa2d   :  { %v7879_v62 = vpop.f32.mrf.mxu0  ;;  %v7919_v11 = vpop.f32.mrf.mxu1 }
 0xa2e   :  { %v13829_v62 = vld [vmem:[%s15985_s5 + $0x2c0] ss:$12 sps:$4 sm:$0xff]   ;;  %v13826_v11 = vld [vmem:[%s15985_s5 + $0x30] ss:$12 sps:$4 sm:$0xff]  }
 0xa2f   :  { %v7880_v52 = vpop.f32.mrf.mxu0  ;;  %v7920_v5 = vpop.f32.mrf.mxu1 }
 0xa30   :  { %v13833_v52 = vld [vmem:[%s15985_s5 + $0x1c] ss:$12 sps:$4 sm:$0xff]   ;;  %v13830_v5 = vld [vmem:[%s15985_s5 + $0x200] ss:$12 sps:$4 sm:$0xff]  }
 0xa51   :  { %v8166_v16 = vpop.f32.mrf.mxu0 }
 0xa52   :  { %v8213_v6 = vadd.f32 %v8166_v16, %v7876_v30  ;;  %v8207_v45 = vpop.f32.mrf.mxu1  ;;  %v13831_v30 = vld [vmem:[%s15985_s5 + $0x18] ss:$12 sps:$4 sm:$0xff]   ;;  %v13836_v16 = vld [vmem:[%s15985_s5] ss:$12 sps:$4 sm:$0xff]  }
 0xa53   :  { %v8215_v61 = vadd.f32 %v8207_v45, %v7917_v63  ;;  %v8168_v12 = vpop.f32.mrf.mxu0  ;;  %v13835_v63 = vld [vmem:[%s15985_s5 + $0x1e8] ss:$12 sps:$4 sm:$0xff]  }
 0xa54   :  { %v8232_v49 = vadd.f32 %v8220_v38, %v8213_v6  ;;  %v8214_v54 = vadd.f32 %v8168_v12, %v7878_v8  ;;  %v8209_v26 = vpop.f32.mrf.mxu1  ;;  %v13838_v38 = vld [vmem:[%s15985_s5 + $0x4] ss:$12 sps:$4 sm:$0xff]   ;;  %v13840_v6 = vld [vmem:[%s15985_s5 + $0x168] ss:$12 sps:$4 sm:$0xff]  }
 0xa55   :  { %v8234_v10 = vadd.f32 %v8228_v25, %v8215_v61  ;;  %v8170_v29 = vpop.f32.mrf.mxu0  ;;  %v13842_v25 = vld [vmem:[%s15985_s5 + $0x16c] ss:$12 sps:$4 sm:$0xff]   ;;  %v13839_v8 = vld [vmem:[%s15985_s5 + $0x3b0] ss:$12 sps:$4 sm:$0xff]   ;;  %v13846_v45 = vld [vmem:[%s15985_s5 + $0x154] ss:$12 sps:$4 sm:$0xff]  }
 0xa56   :  { %v8235_v36 = vmax.f32 %v8232_v49, 0.0  ;;  %v8233_v13 = vadd.f32 %v8224_v4, %v8214_v54  ;;  %v8210_v33 = vpop.f32.mrf.mxu1  ;;  %v13843_v4 = vld [vmem:[%s15985_s5 + $0x398] ss:$12 sps:$4 sm:$0xff]   ;;  %v13844_v61 = vld [vmem:[%s15985_s5 + $0x150] ss:$12 sps:$4 sm:$0xff]  }
 0xa57   :  { %v8237_v15 = vmax.f32 %v8234_v10, 0.0  ;;  %v8171_v39 = vpop.f32.mrf.mxu0  ;;  %v13850_v12 = vld [vmem:[%s15985_s5 + $0x13c] ss:$12 sps:$4 sm:$0xff]   ;;  %v13847_v49 = vld [vmem:[%s15985_s5 + $0x380] ss:$12 sps:$4 sm:$0xff]  }
 0xa58   :  { %v8248_v14 = vrot.slane %v8235_v36, 7  ;;  %v8236_v42 = vmax.f32 %v8233_v13, 0.0  ;;  %v8211_v43 = vpop.f32.mrf.mxu1  ;;  %v16044_v40 = vpack.c.bf16 %v8235_v36, %v8235_v36  ;;  %v13848_v54 = vld [vmem:[%s15985_s5 + $0x138] ss:$12 sps:$4 sm:$0xff]   ;;  %v13851_v10 = vld [vmem:[%s15985_s5 + $0x368] ss:$12 sps:$4 sm:$0xff]  }
 0xa59   :  { %v8250_v32 = vrot.slane %v8237_v15, 7  ;;  %v16040_v17 = vpack.c.bf16 %v8237_v15, %v8237_v15  ;;  %v13854_v26 = vld [vmem:[%s15985_s5 + $0x124] ss:$12 sps:$4 sm:$0xff]   ;;  %v13857_v29 = vld [vmem:[%s15985_s5 + $0x1cc] ss:$12 sps:$4 sm:$0xff]  }
 0xa5a   :  { %8257 = vst [vmem:[#allocation2 + $0x18] sm:$0x1] %v8248_v14  ;;  %8254 = vst [vmem:[#allocation2] sm:$0xfe] %v8248_v14  ;;  %v8249_v48 = vrot.slane %v8236_v42, 7  ;;  %v8373_v18 = vpack.c.bf16 %v8236_v42, %v8236_v42 }
 0xa5b   :  { %8256 = vst.msk [vmem:[#allocation2 + $0x10] sm:$0xfe] %vm1066_vm7, %v8250_v32  ;;  %12172 = vmatmul.mubr.msk.bf16.vlgmr.msra.gmra.mxu1 %vm1070_vm9, %v16040_v17  ;;  %v13852_v36 = vld [vmem:[%s15985_s5 + $0x120] ss:$12 sps:$4 sm:$0xff]   ;;  %v13855_v33 = vld [vmem:[%s15985_s5 + $0x1c8] ss:$12 sps:$4 sm:$0xff]  }
 0xa5c   :  { %8259 = vst.msk [vmem:[#allocation2 + $0x28] sm:$0x1] %vm1080_vm8, %v8250_v32  ;;  %8258 = vst [vmem:[#allocation2 + $0x20] sm:$0x1] %v8249_v48  ;;  %12520 = vmatpush3.bf16.msra.mxu1 %v13800_v46  ;;  %8810 = vmatprep.mubr.bf16.mxu0 %v8373_v18  ;;  %v13860_v13 = vld [vmem:[%s15985_s5 + $0x10c] ss:$12 sps:$4 sm:$0xff]   ;;  %v8280_v32 = vpop.permute.xlu1 %8279 }
 0xa5d   :  { %8255 = vst [vmem:[#allocation2 + $0x8] sm:$0xfe] %v8249_v48  ;;  %8892 = vmatprep.mubr.bf16.mxu1 %v8373_v18  ;;  %8811 = vmatmul.mubr.bf16.vlgmr.msra.gmra.mxu0 %v16044_v40  ;;  %v13863_v15 = vld [vmem:[%s15985_s5 + $0x1b4] ss:$12 sps:$4 sm:$0xff]   ;;  %v13861_v42 = vld [vmem:[%s15985_s5 + $0x1b0] ss:$12 sps:$4 sm:$0xff]  }
 0xa5e   :  { %12521 = vmatprep.subr.bf16.mxu1 %v13804_v58  ;;  %9264 = vmatpush1.bf16.msra.mxu0 %v13801_v53  ;;  %v13858_v39 = vld [vmem:[%s15985_s5 + $0x108] ss:$12 sps:$4 sm:$0xff]   ;;  %v13864_v46 = vld [vmem:[%s15985_s5 + $0xf0] ss:$12 sps:$4 sm:$0xff]   ;;  %v13867_v18 = vld [vmem:[%s15985_s5 + $0x198] ss:$12 sps:$4 sm:$0xff]  }
 0xa5f   :  { %9265 = vmatprep.subr.bf16.mxu0 %v13808_v41  ;;  %v13866_v14 = vld [vmem:[%s15985_s5 + $0xf4] ss:$12 sps:$4 sm:$0xff]   ;;  %v13869_v43 = vld [vmem:[%s15985_s5 + $0x19c] ss:$12 sps:$4 sm:$0xff]   ;;  %v13870_v41 = vld [vmem:[%s15985_s5 + $0xd8] ss:$12 sps:$4 sm:$0xff]  }
 0xa60   :  { %12522 = vmatpush3.bf16.msra.mxu1 %v13805_v28  ;;  %v13872_v48 = vld [vmem:[%s15985_s5 + $0xdc] ss:$12 sps:$4 sm:$0xff]  }
 0xa61   :  { %12523 = vmatprep.subr.bf16.mxu1 %v13809_v7  ;;  %v13878_v7 = vld [vmem:[%s15985_s5 + $0xc4] ss:$12 sps:$4 sm:$0xff]  }
 0xa62   :  { %9266 = vmatpush1.bf16.msra.mxu0 %v13806_v60  ;;  %v8262_v28 = vld [vmem:[#allocation2 + $0x10] sm:$0xff]  ;;  %v13873_v60 = vld [vmem:[%s15985_s5 + $0x180] ss:$12 sps:$4 sm:$0xff]  }
 0xa63   :  { %9267 = vmatprep.subr.bf16.mxu0 %v13813_v57  ;;  %v8267_v58 = vld [vmem:[#allocation2 + $0x20] sm:$0x3] }
 0xa64   :  { %v8261_v56 = vld [vmem:[#allocation2 + $0x8] sm:$0xff]  ;;  %12524 = vmatpush3.bf16.msra.mxu1 %v13810_v55  ;;  %v8260_v57 = vld [vmem:[#allocation2] sm:$0xff] }
 0xa65   :  { %v8275_v3 = vmul.f32 %v16059_v44, %v8261_v56  ;;  %12525 = vmatprep.subr.bf16.mxu1 %v13814_v47  ;;  %v8264_v53 = vld [vmem:[#allocation2 + $0x8] sm:$0xfc] }
 0xa66   :  { %9268 = vmatpush1.bf16.msra.mxu0 %v13811_v9  ;;  %v8276_v9 = vmul.f32 %v16059_v44, %v8262_v28  ;;  %v13876_v56 = vld [vmem:[%s15985_s5 + $0xc0] ss:$12 sps:$4 sm:$0xff]  }
 0xa67   :  { %v16066_v19 = vpack.c.bf16 %v8275_v3, %v8275_v3  ;;  %9269 = vmatprep.subr.bf16.mxu0 %v13818_v27  ;;  %v13879_v27 = vld [vmem:[%s15985_s5 + $0x170] ss:$12 sps:$4 sm:$0xff]   ;;  %v13883_v3 = vld [vmem:[%s15985_s5 + $0x46c] ss:$12 sps:$4 sm:$0xff]  }
 0xa68   :  { %12526 = vmatpush3.bf16.msra.mxu1 %v13815_v34  ;;  %v8274_v34 = vmul.f32 %v16059_v44, %v8260_v57  ;;  %v13888_v44 = vld [vmem:[%s15985_s5 + $0x454] ss:$12 sps:$4 sm:$0xff]   ;;  %v13940_v28 = vld [vmem:[%s15985_s5 + $0x4cc] ss:$12 sps:$4 sm:$0xff]  }
 0xa69   :  { %9295 = vmatprep.mubr.bf16.mxu0 %v16066_v19  ;;  %12527 = vmatprep.subr.bf16.mxu1 %v13819_v37  ;;  %v13880_v37 = vld [vmem:[%s15985_s5 + $0xb0] ss:$12 sps:$4 sm:$0xff]   ;;  %v13938_v57 = vld [vmem:[%s15985_s5 + $0x4c8] ss:$12 sps:$4 sm:$0xff]  }
 0xa6a   :  { %9270 = vmatpush1.bf16.msra.mxu0 %v13816_v50 }
 0xa6b   :  { %9271 = vmatprep.subr.bf16.mxu0 %v13823_v31  ;;  %v16131_v31 = vpack.c.bf16 %v8276_v9, %v8276_v9  ;;  %v13949_v9 = vld [vmem:[%s15985_s5 + $0x55c] ss:$12 sps:$4 sm:$0xff]  }
 0xa6c   :  { %12528 = vmatpush3.bf16.msra.mxu1 %v13820_v35  ;;  %v13884_v35 = vld [vmem:[%s15985_s5 + $0x158] ss:$12 sps:$4 sm:$0xff]  }
 0xa6d   :  { %12529 = vmatprep.subr.bf16.mxu1 %v13824_v22  ;;  %v13881_v22 = vld [vmem:[%s15985_s5 + $0x468] ss:$12 sps:$4 sm:$0xff]  }
 0xa6e   :  { %9272 = vmatpush1.bf16.msra.mxu0 %v13821_v20  ;;  %v16137_v20 = vpack.c.bf16 %v8274_v34, %v8274_v34  ;;  %v8268_v34 = vld [vmem:[#allocation2 + $0x28] sm:$0x3] }
 0xa6f   :  { %9273 = vmatprep.subr.bf16.mxu0 %v13828_v59 }
 0xa70   :  { %12530 = vmatpush3.bf16.msra.mxu1 %v13825_v51  ;;  %v13885_v51 = vld [vmem:[%s15985_s5 + $0x98] ss:$12 sps:$4 sm:$0xff]  }
 0xa71   :  { %12531 = vmatprep.subr.bf16.mxu1 %v13829_v62  ;;  %v13889_v62 = vld [vmem:[%s15985_s5 + $0x140] ss:$12 sps:$4 sm:$0xff]  }
 0xa72   :  { %9274 = vmatpush1.bf16.msra.mxu0 %v13826_v11  ;;  %v13886_v11 = vld [vmem:[%s15985_s5 + $0x450] ss:$12 sps:$4 sm:$0xff]  }
 0xa73   :  { %9275 = vmatprep.subr.bf16.mxu0 %v13833_v52  ;;  %v13893_v52 = vld [vmem:[%s15985_s5 + $0x43c] ss:$12 sps:$4 sm:$0xff]  }
 0xa74   :  { %12532 = vmatpush3.bf16.msra.mxu1 %v13830_v5  ;;  %v13894_v5 = vld [vmem:[%s15985_s5 + $0x128] ss:$12 sps:$4 sm:$0xff]  }
 0xa75   :  { %12533 = vmatprep.subr.bf16.mxu1 %v13834_v2  ;;  %v13891_v2 = vld [vmem:[%s15985_s5 + $0x438] ss:$12 sps:$4 sm:$0xff]  }
 0xa76   :  { %9276 = vmatpush1.bf16.msra.mxu0 %v13831_v30  ;;  %v13898_v30 = vld [vmem:[%s15985_s5 + $0x424] ss:$12 sps:$4 sm:$0xff]  }
 0xa77   :  { %9277 = vmatprep.subr.bf16.mxu0 %v13838_v38  ;;  %v13895_v38 = vld [vmem:[%s15985_s5 + $0x68] ss:$12 sps:$4 sm:$0xff]  }
 0xa78   :  { %12534 = vmatpush3.bf16.msra.mxu1 %v13835_v63  ;;  %v13899_v63 = vld [vmem:[%s15985_s5 + $0x110] ss:$12 sps:$4 sm:$0xff]  }
 0xa79   :  { %12765 = vmatprep.subr.bf16.mxu1 %v13985_v1 }
 0xa7a   :  { %9278 = vmatpush1.bf16.msra.mxu0 %v13836_v16  ;;  %v13896_v16 = vld [vmem:[%s15985_s5 + $0x420] ss:$12 sps:$4 sm:$0xff]  }
 0xa7b   :  { %8893 = vmatmul.mubr.bf16.vlgmr.msra.gmra.mxu1 %v16044_v40  ;;  %9279 = vmatprep.subr.bf16.mxu0 %v13842_v25  ;;  %v16118_v40 = vrot.slane %v8280_v32, 6  ;;  %v13903_v25 = vld [vmem:[%s15985_s5 + $0x40c] ss:$12 sps:$4 sm:$0xff]   ;;  %v13930_v32 = vld [vmem:[%s15985_s5 + $0x4fc] ss:$12 sps:$4 sm:$0xff]  }
 0xa7c   :  { %12766 = vmatpush3.bf16.msra.mxu1 %v13839_v8  ;;  %12773 = vmatprep.mubr.msk.bf16.mxu1 %vm14008_vm14, %v13985_v1  ;;  %v13900_v8 = vld [vmem:[%s15985_s5 + $0x50] ss:$12 sps:$4 sm:$0xff]  }
 0xa7d   :  { %12767 = vmatprep.subr.bf16.mxu1 %v13985_v1  ;;  %v8284_v55 = vmul.f32 %v16118_v40, %v8264_v53  ;;  %v8287_v47 = vmul.f32 %v16118_v40, %v8267_v58  ;;  %v13931_v53 = vld [vmem:[%s15985_s5 + $0x188] ss:$12 sps:$4 sm:$0xff]   ;;  %v13937_v58 = vld [vmem:[%s15985_s5 + $0x58c] ss:$12 sps:$4 sm:$0xff]  }
 0xa7e   :  { %9280 = vmatpush2.bf16.msra.mxu0 %v13840_v6  ;;  %v13904_v6 = vld [vmem:[%s15985_s5 + $0xf8] ss:$12 sps:$4 sm:$0xff]  }
 0xa7f   :  { %9281 = vmatprep.subr.bf16.mxu0 %v13846_v45  ;;  %v9426_v50 = vpack.c.bf16 %v8287_v47, %v8284_v55  ;;  %v13901_v45 = vld [vmem:[%s15985_s5 + $0x408] ss:$12 sps:$4 sm:$0xff]   ;;  %v13941_v47 = vld [vmem:[%s15985_s5 + $0x570] ss:$12 sps:$4 sm:$0xff]  }
 0xa80   :  { %12768 = vmatpush3.bf16.msra.mxu1 %v13843_v4  ;;  %v13908_v4 = vld [vmem:[%s15985_s5 + $0x3f4] ss:$12 sps:$4 sm:$0xff]  }
 0xa81   :  { %12769 = vmatprep.subr.bf16.mxu1 %v13985_v1  ;;  %v16141_v59 = vrot.slane %v9426_v50, 1  ;;  %v13946_v55 = vld [vmem:[%s15985_s5 + $0x4b4] ss:$12 sps:$4 sm:$0xff]  }
 0xa82   :  { %9282 = vmatpush2.bf16.msra.mxu0 %v13844_v61  ;;  %v13905_v61 = vld [vmem:[%s15985_s5 + $0x38] ss:$12 sps:$4 sm:$0xff]  }
 0xa83   :  { %9283 = vmatprep.subr.bf16.mxu0 %v13850_v12  ;;  %v13909_v12 = vld [vmem:[%s15985_s5 + $0xe0] ss:$12 sps:$4 sm:$0xff]  }
 0xa84   :  { %12770 = vmatpush3.bf16.msra.mxu1 %v13847_v49  ;;  %v13906_v49 = vld [vmem:[%s15985_s5 + $0x3f0] ss:$12 sps:$4 sm:$0xff]   ;;  %v8263_v50 = vld [vmem:[#allocation2] sm:$0xfc] }
 0xa85   :  { %12771 = vmatprep.subr.bf16.mxu1 %v13985_v1 }
 0xa86   :  { %9284 = vmatpush2.bf16.msra.mxu0 %v13848_v54  ;;  %v13913_v54 = vld [vmem:[%s15985_s5 + $0x3dc] ss:$12 sps:$4 sm:$0xff]  }
 0xa87   :  { %9285 = vmatprep.subr.bf16.mxu0 %v13854_v26  ;;  %v13910_v26 = vld [vmem:[%s15985_s5 + $0x20] ss:$12 sps:$4 sm:$0xff]  }
 0xa88   :  { %12772 = vmatpush3.bf16.msra.mxu1 %v13851_v10  ;;  %v13914_v10 = vld [vmem:[%s15985_s5 + $0xc8] ss:$12 sps:$4 sm:$0xff]  }
 0xa89   :  { %9312 = vmatprep.subr.bf16.mxu1 %v13857_v29  ;;  %v13911_v29 = vld [vmem:[%s15985_s5 + $0x3d8] ss:$12 sps:$4 sm:$0xff]  }
 0xa8a   :  { %9286 = vmatpush2.bf16.msra.mxu0 %v13852_v36  ;;  %v13918_v36 = vld [vmem:[%s15985_s5 + $0x3c4] ss:$12 sps:$4 sm:$0xff]  }
 0xa8b   :  { %12774 = vmatmul.mubr.msk.bf16.vlgmr.msra.gmra.mxu1 %vm1070_vm9, %v16040_v17  ;;  %9287 = vmatprep.subr.bf16.mxu0 %v13860_v13  ;;  %v13875_v17 = vld [vmem:[%s15985_s5 + $0x184] ss:$12 sps:$4 sm:$0xff]   ;;  %v13915_v13 = vld [vmem:[%s15985_s5 + $0x8] ss:$12 sps:$4 sm:$0xff]  }
 0xa8c   :  { %9313 = vmatpush1.bf16.msra.mxu1 %v13855_v33  ;;  %9336 = vmatprep.mubr.bf16.mxu1 %v13983_v0  ;;  %v13916_v33 = vld [vmem:[%s15985_s5 + $0x3c0] ss:$12 sps:$4 sm:$0xff]  }
 0xa8d   :  { %9314 = vmatprep.subr.bf16.mxu1 %v13863_v15  ;;  %v13922_v15 = vld [vmem:[%s15985_s5 + $0x52c] ss:$12 sps:$4 sm:$0xff]  }
 0xa8e   :  { %9288 = vmatpush2.bf16.msra.mxu0 %v13858_v39  ;;  %v13919_v39 = vld [vmem:[%s15985_s5 + $0x1d0] ss:$12 sps:$4 sm:$0xff]  }
 0xa8f   :  { %9289 = vmatprep.subr.bf16.mxu0 %v13866_v14  ;;  %v13920_v14 = vld [vmem:[%s15985_s5 + $0x528] ss:$12 sps:$4 sm:$0xff]  }
 0xa90   :  { %9315 = vmatpush1.bf16.msra.mxu1 %v13861_v42  ;;  %v13926_v42 = vld [vmem:[%s15985_s5 + $0x514] ss:$12 sps:$4 sm:$0xff]  }
 0xa91   :  { %9316 = vmatprep.subr.bf16.mxu1 %v13869_v43  ;;  %v13923_v43 = vld [vmem:[%s15985_s5 + $0x1b8] ss:$12 sps:$4 sm:$0xff]  }
 0xa92   :  { %9290 = vmatpush2.bf16.msra.mxu0 %v13864_v46  ;;  %v13924_v46 = vld [vmem:[%s15985_s5 + $0x510] ss:$12 sps:$4 sm:$0xff]  }
 0xa93   :  { %9291 = vmatprep.subr.bf16.mxu0 %v13872_v48  ;;  %v13927_v48 = vld [vmem:[%s15985_s5 + $0x1a0] ss:$12 sps:$4 sm:$0xff]  }
 0xa94   :  { %9317 = vmatpush1.bf16.msra.mxu1 %v13867_v18  ;;  %v13928_v18 = vld [vmem:[%s15985_s5 + $0x4f8] ss:$12 sps:$4 sm:$0xff]  }
 0xa95   :  { %9318 = vmatprep.subr.bf16.mxu1 %v13875_v17  ;;  %v13934_v17 = vld [vmem:[%s15985_s5 + $0x4e4] ss:$12 sps:$4 sm:$0xff]  }
 0xa96   :  { %9292 = vmatpush2.bf16.msra.mxu0 %v13870_v41  ;;  %v13932_v41 = vld [vmem:[%s15985_s5 + $0x4e0] ss:$12 sps:$4 sm:$0xff]  }
 0xa97   :  { %9293 = vmatprep.subr.bf16.mxu0 %v13878_v7  ;;  %v13935_v7 = vld [vmem:[%s15985_s5 + $0x588] ss:$12 sps:$4 sm:$0xff]  }
 0xa98   :  { %9319 = vmatpush1.bf16.msra.mxu1 %v13873_v60  ;;  %v13943_v60 = vld [vmem:[%s15985_s5 + $0x574] ss:$12 sps:$4 sm:$0xff]  }
 0xa99   :  { %12546 = vmatprep.subr.bf16.mxu1 %v13879_v27  ;;  %v13944_v27 = vld [vmem:[%s15985_s5 + $0x4b0] ss:$12 sps:$4 sm:$0xff]  }
 0xa9a   :  { %9294 = vmatpush2.bf16.msra.mxu0 %v13876_v56  ;;  %v8265_v56 = vld [vmem:[#allocation2 + $0x10] sm:$0xfc] }
 0xa9b   :  { %12234 = vmatmul.mubr.msk.bf16.vlgmr.msra.gmra.mxu1 %vm1070_vm9, %v16131_v31  ;;  %9839 = vmatprep.subr.bf16.mxu0 %v13883_v3  ;;  %v13952_v3 = vld [vmem:[%s15985_s5 + $0x49c] ss:$12 sps:$4 sm:$0xff]  }
 0xa9c   :  { %12547 = vmatpush3.bf16.msra.mxu1 %v13880_v37  ;;  %9377 = vmatprep.mubr.bf16.mxu1 %v16066_v19  ;;  %v13890_v19 = vld [vmem:[%s15985_s5 + $0x80] ss:$12 sps:$4 sm:$0xff]   ;;  %v13947_v37 = vld [vmem:[%s15985_s5 + $0x558] ss:$12 sps:$4 sm:$0xff]  }
 0xa9d   :  { %9296 = vmatmul.mubr.bf16.vlgmr.msra.gmra.mxu0 %v16137_v20  ;;  %12548 = vmatprep.subr.bf16.mxu1 %v13884_v35  ;;  %v13955_v35 = vld [vmem:[%s15985_s5 + $0x544] ss:$12 sps:$4 sm:$0xff]  }
 0xa9e   :  { %9840 = vmatpush1.bf16.msra.mxu0 %v13881_v22  ;;  %9871 = vmatprep.mubr.bf16.mxu0 %v16141_v59  ;;  %v8288_v22 = vmul.f32 %v16118_v40, %v8268_v34  ;;  %v10034_v34 = vld [vmem:[%s16232_s13 + $0x40] sm:$0xff] }
 0xa9f   :  { %9841 = vmatprep.subr.bf16.mxu0 %v13888_v44  ;;  %v13958_v44 = vld [vmem:[%s15985_s5 + $0x484] ss:$12 sps:$4 sm:$0xff]  }
 0xaa0   :  { %12549 = vmatpush3.bf16.msra.mxu1 %v13885_v51  ;;  %v8283_v51 = vmul.f32 %v16118_v40, %v8263_v50  ;;  %v10031_v50 = vld [vmem:[%s16232_s13 + $0x28] sm:$0xff] }
 0xaa1   :  { %12550 = vmatprep.subr.bf16.mxu1 %v13889_v62 }
 0xaa2   :  { %9842 = vmatpush1.bf16.msra.mxu0 %v13886_v11  ;;  %v13953_v11 = vld [vmem:[%s15985_s5 + $0x540] ss:$12 sps:$4 sm:$0xff]  }
 0xaa3   :  { %9843 = vmatprep.subr.bf16.mxu0 %v13893_v52 }
 0xaa4   :  { %12551 = vmatpush3.bf16.msra.mxu1 %v13890_v19  ;;  %v13959_v19 = vld [vmem:[%s15985_s5 + $0x530] ss:$12 sps:$4 sm:$0xff]  }
 0xaa5   :  { %12552 = vmatprep.subr.bf16.mxu1 %v13894_v5  ;;  %v13956_v5 = vld [vmem:[%s15985_s5 + $0x480] ss:$12 sps:$4 sm:$0xff]  }
 0xaa6   :  { %9844 = vmatpush1.bf16.msra.mxu0 %v13891_v2 }
 0xaa7   :  { %9845 = vmatprep.subr.bf16.mxu0 %v13898_v30  ;;  %v13960_v30 = vld [vmem:[%s15985_s5 + $0x470] ss:$12 sps:$4 sm:$0xff]  }
 0xaa8   :  { %12553 = vmatpush3.bf16.msra.mxu1 %v13895_v38 }
 0xaa9   :  { %12554 = vmatprep.subr.bf16.mxu1 %v13899_v63 }
 0xaaa   :  { %9846 = vmatpush1.bf16.msra.mxu0 %v13896_v16  ;;  %v13962_v16 = vld [vmem:[%s15985_s5 + $0x458] ss:$12 sps:$4 sm:$0xff]  }
 0xaab   :  { %9847 = vmatprep.subr.bf16.mxu0 %v13903_v25  ;;  %v13963_v25 = vld [vmem:[%s15985_s5 + $0x500] ss:$12 sps:$4 sm:$0xff]  }
 0xaac   :  { %12555 = vmatpush3.bf16.msra.mxu1 %v13900_v8  ;;  %v13964_v8 = vld [vmem:[%s15985_s5 + $0x440] ss:$12 sps:$4 sm:$0xff]  }
 0xaad   :  { %12556 = vmatprep.subr.bf16.mxu1 %v13904_v6  ;;  %v13965_v6 = vld [vmem:[%s15985_s5 + $0x4e8] ss:$12 sps:$4 sm:$0xff]  }
 0xaae   :  { %9848 = vmatpush1.bf16.msra.mxu0 %v13901_v45  ;;  %v13966_v45 = vld [vmem:[%s15985_s5 + $0x428] ss:$12 sps:$4 sm:$0xff]  }
 0xaaf   :  { %9849 = vmatprep.subr.bf16.mxu0 %v13908_v4  ;;  %v13968_v4 = vld [vmem:[%s15985_s5 + $0x410] ss:$12 sps:$4 sm:$0xff]  }
 0xab0   :  { %12557 = vmatpush3.bf16.msra.mxu1 %v13905_v61  ;;  %v13969_v61 = vld [vmem:[%s15985_s5 + $0x4b8] ss:$12 sps:$4 sm:$0xff]  }
 0xab1   :  { %12558 = vmatprep.subr.bf16.mxu1 %v13909_v12  ;;  %v10057_v12 = vld [vmem:[%s16232_s13 + $0xf8] sm:$0xff] }
 0xab2   :  { %9850 = vmatpush1.bf16.msra.mxu0 %v13906_v49  ;;  %v10056_v49 = vld [vmem:[%s16232_s13 + $0xf0] sm:$0xff] }
 0xab3   :  { %9851 = vmatprep.subr.bf16.mxu0 %v13913_v54  ;;  %v10055_v54 = vld [vmem:[%s16232_s13 + $0xe8] sm:$0xff] }
 0xab4   :  { %12559 = vmatpush3.bf16.msra.mxu1 %v13910_v26  ;;  %v10054_v26 = vld [vmem:[%s16232_s13 + $0xe0] sm:$0xff] }
 0xab5   :  { %12560 = vmatprep.subr.bf16.mxu1 %v13914_v10  ;;  %v13970_v10 = vld [vmem:[%s15985_s5 + $0x3f8] ss:$12 sps:$4 sm:$0xff]  }
 0xab6   :  { %9852 = vmatpush1.bf16.msra.mxu0 %v13911_v29  ;;  %v10053_v29 = vld [vmem:[%s16232_s13 + $0xd8] sm:$0xff] }
 0xab7   :  { %9853 = vmatprep.subr.bf16.mxu0 %v13918_v36  ;;  %v13971_v36 = vld [vmem:[%s15985_s5 + $0x4a0] ss:$12 sps:$4 sm:$0xff]  }
 0xab8   :  { %12561 = vmatpush3.bf16.msra.mxu1 %v13915_v13  ;;  %v10052_v13 = vld [vmem:[%s16232_s13 + $0xd0] sm:$0xff] }
 0xab9   :  { %12777 = vmatprep.subr.bf16.mxu1 %v13985_v1 }
 0xaba   :  { %9854 = vmatpush1.bf16.msra.mxu0 %v13916_v33  ;;  %v10051_v33 = vld [vmem:[%s16232_s13 + $0xc8] sm:$0xff] }
 0xabb   :  { %9378 = vmatmul.mubr.bf16.vlgmr.msra.gmra.mxu1 %v16137_v20  ;;  %9855 = vmatprep.subr.bf16.mxu0 %v13922_v15  ;;  %v13950_v20 = vld [vmem:[%s15985_s5 + $0x498] ss:$12 sps:$4 sm:$0xff]  }
 0xabc   :  { %12778 = vmatpush3.bf16.msra.mxu1 %v13919_v39  ;;  %12785 = vmatprep.mubr.msk.bf16.mxu1 %vm14008_vm14, %v13985_v1  ;;  %v10050_v15 = vld [vmem:[%s16232_s13 + $0xc0] sm:$0xff] }
 0xabd   :  { %12779 = vmatprep.subr.bf16.mxu1 %v13985_v1  ;;  %v13972_v39 = vld [vmem:[%s15985_s5 + $0x3e0] ss:$12 sps:$4 sm:$0xff]  }
 0xabe   :  { %9856 = vmatpush2.bf16.msra.mxu0 %v13920_v14  ;;  %v10049_v14 = vld [vmem:[%s16232_s13 + $0xb8] sm:$0xff] }
 0xabf   :  { %9857 = vmatprep.subr.bf16.mxu0 %v13926_v42  ;;  %v13973_v42 = vld [vmem:[%s15985_s5 + $0x488] ss:$12 sps:$4 sm:$0xff]  }
 0xac0   :  { %12780 = vmatpush3.bf16.msra.mxu1 %v13923_v43  ;;  %v10048_v43 = vld [vmem:[%s16232_s13 + $0xb0] sm:$0xff] }
 0xac1   :  { %12781 = vmatprep.subr.bf16.mxu1 %v13985_v1 }
 0xac2   :  { %9858 = vmatpush2.bf16.msra.mxu0 %v13924_v46  ;;  %v10047_v46 = vld [vmem:[%s16232_s13 + $0xa8] sm:$0xff] }
 0xac3   :  { %9859 = vmatprep.subr.bf16.mxu0 %v13930_v32  ;;  %v10046_v32 = vld [vmem:[%s16232_s13 + $0xa0] sm:$0xff] }
 0xac4   :  { %12782 = vmatpush3.bf16.msra.mxu1 %v13927_v48  ;;  %v13974_v48 = vld [vmem:[%s15985_s5 + $0x3c8] ss:$12 sps:$4 sm:$0xff]  }
 0xac5   :  { %12783 = vmatprep.subr.bf16.mxu1 %v13985_v1 }
 0xac6   :  { %9860 = vmatpush2.bf16.msra.mxu0 %v13928_v18  ;;  %v10045_v18 = vld [vmem:[%s16232_s13 + $0x98] sm:$0xff] }
 0xac7   :  { %9861 = vmatprep.subr.bf16.mxu0 %v13934_v17  ;;  %v10044_v17 = vld [vmem:[%s16232_s13 + $0x90] sm:$0xff] }
 0xac8   :  { %12784 = vmatpush3.bf16.msra.mxu1 %v13931_v53  ;;  %v10043_v53 = vld [vmem:[%s16232_s13 + $0x88] sm:$0xff] }
 0xac9   :  { %9888 = vmatprep.subr.bf16.mxu1 %v13937_v58  ;;  %v10042_v58 = vld [vmem:[%s16232_s13 + $0x80] sm:$0xff] }
 0xaca   :  { %9862 = vmatpush2.bf16.msra.mxu0 %v13932_v41  ;;  %v13975_v41 = vld [vmem:[%s15985_s5 + $0x590] ss:$12 sps:$4 sm:$0xff]  }
 0xacb   :  { %12786 = vmatmul.mubr.msk.bf16.vlgmr.msra.gmra.mxu1 %vm1070_vm9, %v16131_v31  ;;  %9863 = vmatprep.subr.bf16.mxu0 %v13940_v28  ;;  %v8266_v31 = vld [vmem:[#allocation2 + $0x18] sm:$0x3] }
 0xacc   :  { %9889 = vmatpush1.bf16.msra.mxu1 %v13935_v7  ;;  %9912 = vmatprep.mubr.bf16.mxu1 %v13983_v0  ;;  %v8285_v0 = vmul.f32 %v16118_v40, %v8265_v56  ;;  %v8286_v62 = vmul.f32 %v16118_v40, %v8266_v31  ;;  %v13961_v40 = vld [vmem:[%s15985_s5 + $0x518] ss:$12 sps:$4 sm:$0xff]   ;;  %v10040_v7 = vld [vmem:[%s16232_s13 + $0x70] sm:$0xff]  ;;  %v13977_v56 = vld [vmem:[%s15985_s5 + $0x560] ss:$12 sps:$4 sm:$0xff]  }
 0xacd   :  { %9890 = vmatprep.subr.bf16.mxu1 %v13943_v60  ;;  %v10041_v28 = vld [vmem:[%s16232_s13 + $0x78] sm:$0xff]  ;;  %v10039_v60 = vld [vmem:[%s16232_s13 + $0x68] sm:$0xff] }
 0xace   :  { %9864 = vmatpush2.bf16.msra.mxu0 %v13938_v57  ;;  %v9427_v52 = vpack.c.bf16 %v8288_v22, %v8285_v0  ;;  %v9425_v2 = vpack.c.bf16 %v8286_v62, %v8283_v51  ;;  %v13976_v57 = vld [vmem:[%s15985_s5 + $0x578] ss:$12 sps:$4 sm:$0xff]   ;;  %v13978_v31 = vld [vmem:[%s15985_s5 + $0x548] ss:$12 sps:$4 sm:$0xff]  }
 0xacf   :  { %9865 = vmatprep.subr.bf16.mxu0 %v13946_v55  ;;  %v10038_v55 = vld [vmem:[%s16232_s13 + $0x60] sm:$0xff]  ;;  %v10029_v0 = vld [vmem:[%s16232_s13 + $0x18] sm:$0xff]  ;;  %v10028_v22 = vld [vmem:[%s16232_s13 + $0x10] sm:$0xff] }
 0xad0   :  { %9891 = vmatpush1.bf16.msra.mxu1 %v13941_v47  ;;  %v16215_v38 = vrot.slane %v9427_v52, 1  ;;  %v16220_v63 = vrot.slane %v9425_v2, 1  ;;  %v10037_v47 = vld [vmem:[%s16232_s13 + $0x58] sm:$0xff]  ;;  %v10088_v62 = vld [vmem:[%s16232_s13 + $0x1f0] sm:$0xff]  ;;  %v10086_v52 = vld [vmem:[%s16232_s13 + $0x1e0] sm:$0xff] }
 0xad1   :  { %9892 = vmatprep.subr.bf16.mxu1 %v13949_v9  ;;  %v10036_v9 = vld [vmem:[%s16232_s13 + $0x50] sm:$0xff]  ;;  %v10089_v51 = vld [vmem:[%s16232_s13 + $0x1f8] sm:$0xff]  ;;  %v10083_v2 = vld [vmem:[%s16232_s13 + $0x1c8] sm:$0xff] }
 0xad2   :  { %9866 = vmatpush2.bf16.msra.mxu0 %v13944_v27  ;;  %v10035_v27 = vld [vmem:[%s16232_s13 + $0x48] sm:$0xff] }
 0xad3   :  { %9867 = vmatprep.subr.bf16.mxu0 %v13952_v3  ;;  %v10033_v3 = vld [vmem:[%s16232_s13 + $0x38] sm:$0xff] }
 0xad4   :  { %9893 = vmatpush1.bf16.msra.mxu1 %v13947_v37  ;;  %v10032_v37 = vld [vmem:[%s16232_s13 + $0x30] sm:$0xff] }
 0xad5   :  { %9894 = vmatprep.subr.bf16.mxu1 %v13955_v35  ;;  %v10030_v35 = vld [vmem:[%s16232_s13 + $0x20] sm:$0xff] }
 0xad6   :  { %9868 = vmatpush2.bf16.msra.mxu0 %v13950_v20  ;;  %v10027_v20 = vld [vmem:[%s16232_s13 + $0x8] sm:$0xff] }
 0xad7   :  { %9869 = vmatprep.subr.bf16.mxu0 %v13958_v44  ;;  %v10026_v44 = vld [vmem:[%s16232_s13] sm:$0xff] }
 0xad8   :  { %9895 = vmatpush1.bf16.msra.mxu1 %v13953_v11  ;;  %v10087_v11 = vld [vmem:[%s16232_s13 + $0x1e8] sm:$0xff] }
 0xad9   :  { %12573 = vmatprep.subr.bf16.mxu1 %v13959_v19  ;;  %v10085_v19 = vld [vmem:[%s16232_s13 + $0x1d8] sm:$0xff] }
 0xada   :  { %9870 = vmatpush2.bf16.msra.mxu0 %v13956_v5  ;;  %v10084_v5 = vld [vmem:[%s16232_s13 + $0x1d0] sm:$0xff] }
 0xadb   :  { %12296 = vmatmul.mubr.msk.bf16.vlgmr.msra.gmra.mxu1 %vm1070_vm9, %v16215_v38  ;;  %10191 = vmatprep.subr.mxu0 %v10057_v12  ;;  %v10071_v12 = vld [vmem:[%s16232_s13 + $0x168] sm:$0xff] }
 0xadc   :  { %12574 = vmatpush3.bf16.msra.mxu1 %v13960_v30  ;;  %9953 = vmatprep.mubr.bf16.mxu1 %v16141_v59  ;;  %v13967_v59 = vld [vmem:[%s15985_s5 + $0x4d0] ss:$12 sps:$4 sm:$0xff]   ;;  %v10082_v30 = vld [vmem:[%s16232_s13 + $0x1c0] sm:$0xff]  ;;  %s16697_s5 = sld [smem:[%s16742_s0 + %s14030_s18]]  }
 0xadd   :  { %9872 = vmatmul.mubr.bf16.vlgmr.msra.gmra.mxu0 %v16220_v63  ;;  %12575 = vmatprep.subr.bf16.mxu1 %v13961_v40  ;;  %v10080_v40 = vld [vmem:[%s16232_s13 + $0x1b0] sm:$0xff] }
 0xade   :  { %10192 = vmatpush1.msra.mxu0 %v10056_v49 }
 0xadf   :  { %10193 = vmatprep.subr.mxu0 %v10055_v54 }
 0xae0   :  { %12576 = vmatpush3.bf16.msra.mxu1 %v13962_v16  ;;  %10194 = vmatpush1.msra.mxu0 %v10054_v26  ;;  %v10078_v16 = vld [vmem:[%s16232_s13 + $0x1a0] sm:$0xff] }
 0xae1   :  { %12577 = vmatprep.subr.bf16.mxu1 %v13963_v25  ;;  %10195 = vmatprep.subr.mxu0 %v10053_v29  ;;  %v10077_v25 = vld [vmem:[%s16232_s13 + $0x198] sm:$0xff]  ;;  %v10070_v26 = vld [vmem:[%s16232_s13 + $0x160] sm:$0xff] }
 0xae2   :  { %10196 = vmatpush1.msra.mxu0 %v10052_v13 }
 0xae3   :  { %10197 = vmatprep.subr.mxu0 %v10051_v33  ;;  %v10069_v33 = vld [vmem:[%s16232_s13 + $0x158] sm:$0xff] }
 0xae4   :  { %12578 = vmatpush3.bf16.msra.mxu1 %v13964_v8  ;;  %10198 = vmatpush1.msra.mxu0 %v10050_v15  ;;  %v10076_v8 = vld [vmem:[%s16232_s13 + $0x190] sm:$0xff] }
 0xae5   :  { %12579 = vmatprep.subr.bf16.mxu1 %v13965_v6  ;;  %10199 = vmatprep.subr.mxu0 %v10049_v14  ;;  %v10075_v6 = vld [vmem:[%s16232_s13 + $0x188] sm:$0xff]  ;;  %v10068_v14 = vld [vmem:[%s16232_s13 + $0x150] sm:$0xff] }
 0xae6   :  { %10200 = vmatpush1.msra.mxu0 %v10048_v43 }
 0xae7   :  { %10201 = vmatprep.subr.mxu0 %v10047_v46  ;;  %v10066_v46 = vld [vmem:[%s16232_s13 + $0x140] sm:$0xff] }
 0xae8   :  { %12580 = vmatpush3.bf16.msra.mxu1 %v13966_v45  ;;  %10202 = vmatpush1.msra.mxu0 %v10046_v32  ;;  %v10074_v45 = vld [vmem:[%s16232_s13 + $0x180] sm:$0xff]  ;;  %v10065_v32 = vld [vmem:[%s16232_s13 + $0x138] sm:$0xff] }
 0xae9   :  { %12581 = vmatprep.subr.bf16.mxu1 %v13967_v59  ;;  %10203 = vmatprep.subr.mxu0 %v10045_v18  ;;  %v10073_v59 = vld [vmem:[%s16232_s13 + $0x178] sm:$0xff]  ;;  %v10063_v18 = vld [vmem:[%s16232_s13 + $0x128] sm:$0xff] }
 0xaea   :  { %10204 = vmatpush1.msra.mxu0 %v10044_v17  ;;  %v10062_v17 = vld [vmem:[%s16232_s13 + $0x120] sm:$0xff] }
 0xaeb   :  { %10205 = vmatprep.subr.mxu0 %v10043_v53  ;;  %v10061_v53 = vld [vmem:[%s16232_s13 + $0x118] sm:$0xff] }
 0xaec   :  { %12582 = vmatpush3.bf16.msra.mxu1 %v13968_v4  ;;  %10206 = vmatpush1.msra.mxu0 %v10042_v58  ;;  %v10060_v58 = vld [vmem:[%s16232_s13 + $0x110] sm:$0xff] }
 0xaed   :  { %12583 = vmatprep.subr.bf16.mxu1 %v13969_v61  ;;  %10207 = vmatprep.subr.mxu0 %v10041_v28  ;;  %v10072_v61 = vld [vmem:[%s16232_s13 + $0x170] sm:$0xff]  ;;  %v10058_v28 = vld [vmem:[%s16232_s13 + $0x100] sm:$0xff] }
 0xaee   :  { %10208 = vmatpush1.msra.mxu0 %v10040_v7 }
 0xaef   :  { %10209 = vmatprep.subr.mxu0 %v10039_v60 }
 0xaf0   :  { %12584 = vmatpush3.bf16.msra.mxu1 %v13970_v10  ;;  %10210 = vmatpush1.msra.mxu0 %v10038_v55 }
 0xaf1   :  { %12585 = vmatprep.subr.bf16.mxu1 %v13971_v36  ;;  %10211 = vmatprep.subr.mxu0 %v10037_v47 }
 0xaf2   :  { %10212 = vmatpush1.msra.mxu0 %v10036_v9  ;;  %v10105_v9 = vld [vmem:[%s16232_s13 + $0x278] sm:$0xff] }
 0xaf3   :  { %10213 = vmatprep.subr.mxu0 %v10035_v27  ;;  %v10104_v27 = vld [vmem:[%s16232_s13 + $0x270] sm:$0xff] }
 0xaf4   :  { %12586 = vmatpush3.bf16.msra.mxu1 %v13972_v39  ;;  %10214 = vmatpush1.msra.mxu0 %v10034_v34  ;;  %v10102_v34 = vld [vmem:[%s16232_s13 + $0x260] sm:$0xff] }
 0xaf5   :  { %12587 = vmatprep.subr.bf16.mxu1 %v13973_v42  ;;  %10215 = vmatprep.subr.mxu0 %v10033_v3  ;;  %v10067_v42 = vld [vmem:[%s16232_s13 + $0x148] sm:$0xff]  ;;  %v10101_v3 = vld [vmem:[%s16232_s13 + $0x258] sm:$0xff] }
 0xaf6   :  { %10216 = vmatpush1.msra.mxu0 %v10032_v37  ;;  %v10100_v37 = vld [vmem:[%s16232_s13 + $0x250] sm:$0xff] }
 0xaf7   :  { %10217 = vmatprep.subr.mxu0 %v10031_v50  ;;  %v10099_v50 = vld [vmem:[%s16232_s13 + $0x248] sm:$0xff] }
 0xaf8   :  { %12588 = vmatpush3.bf16.msra.mxu1 %v13974_v48  ;;  %10218 = vmatpush1.msra.mxu0 %v10030_v35  ;;  %v10064_v48 = vld [vmem:[%s16232_s13 + $0x130] sm:$0xff]  ;;  %v10098_v35 = vld [vmem:[%s16232_s13 + $0x240] sm:$0xff] }
 0xaf9   :  { %12789 = vmatprep.subr.bf16.mxu1 %v13985_v1  ;;  %10219 = vmatprep.subr.mxu0 %v10029_v0 }
 0xafa   :  { %10220 = vmatpush1.msra.mxu0 %v10028_v22 }
 0xafb   :  { %9954 = vmatmul.mubr.bf16.vlgmr.msra.gmra.mxu1 %v16220_v63  ;;  %10221 = vmatprep.subr.mxu0 %v10027_v20  ;;  %v10079_v63 = vld [vmem:[%s16232_s13 + $0x1a8] sm:$0xff] }
 0xafc   :  { %12790 = vmatpush3.bf16.msra.mxu1 %v13975_v41  ;;  %12797 = vmatprep.mubr.msk.bf16.mxu1 %vm14008_vm14, %v13985_v1  ;;  %v10059_v41 = vld [vmem:[%s16232_s13 + $0x108] sm:$0xff] }
 0xafd   :  { %12791 = vmatprep.subr.bf16.mxu1 %v13985_v1  ;;  %10222 = vmatpush1.msra.mxu0 %v10026_v44  ;;  %v10097_v44 = vld [vmem:[%s16232_s13 + $0x238] sm:$0xff] }
 0xafe   :  { %10223 = vmatprep.subr.mxu0 %v10089_v51  ;;  %v10096_v51 = vld [vmem:[%s16232_s13 + $0x230] sm:$0xff] }
 0xaff   :  { %10224 = vmatpush2.msra.mxu0 %v10088_v62 }
 0xb00   :  { %12792 = vmatpush3.bf16.msra.mxu1 %v13976_v57  ;;  %10225 = vmatprep.subr.mxu0 %v10087_v11  ;;  %v10095_v11 = vld [vmem:[%s16232_s13 + $0x228] sm:$0xff] }
 0xb01   :  { %12793 = vmatprep.subr.bf16.mxu1 %v13985_v1  ;;  %10226 = vmatpush2.msra.mxu0 %v10086_v52  ;;  %v10094_v52 = vld [vmem:[%s16232_s13 + $0x220] sm:$0xff] }
 0xb02   :  { %10227 = vmatprep.subr.mxu0 %v10085_v19 }
 0xb03   :  { %10228 = vmatpush2.msra.mxu0 %v10084_v5  ;;  %v10093_v5 = vld [vmem:[%s16232_s13 + $0x218] sm:$0xff] }
 0xb04   :  { %12794 = vmatpush3.bf16.msra.mxu1 %v13977_v56  ;;  %10229 = vmatprep.subr.mxu0 %v10083_v2  ;;  %v10103_v56 = vld [vmem:[%s16232_s13 + $0x268] sm:$0xff]  ;;  %v10092_v2 = vld [vmem:[%s16232_s13 + $0x210] sm:$0xff] }
 0xb05   :  { %12795 = vmatprep.subr.bf16.mxu1 %v13985_v1  ;;  %10230 = vmatpush2.msra.mxu0 %v10082_v30  ;;  %v10091_v30 = vld [vmem:[%s16232_s13 + $0x208] sm:$0xff] }
 0xb08   :  { %12796 = vmatpush3.bf16.msra.mxu1 %v13978_v31  ;;  %v10185_v31 = vld [vmem:[%s16327_s17 + $0x278] sm:$0xff] }
 0xb09   :  { %10278 = vmatprep.subr.mxu1 %v10105_v9 }
 0xb0b   :  { %12798 = vmatmul.mubr.msk.bf16.vlgmr.msra.gmra.mxu1 %vm1070_vm9, %v16215_v38  ;;  %v10081_v38 = vld [vmem:[%s16232_s13 + $0x1b8] sm:$0xff] }
 0xb0c   :  { %10326 = vmatprep.mubr.f32.mxu1 %v13985_v1  ;;  %10231 = vmatprep.subr.mxu0 %v10081_v38  ;;  %v10090_v38 = vld [vmem:[%s16232_s13 + $0x200] sm:$0xff]  ;;  %s11462_s13 = sld [smem:[%s16742_s0 + %s14032_s10]]  }
 0xb0d   :  { %10232 = vmatpush2.msra.mxu0 %v10080_v40  ;;  %10279 = vmatpush1.msra.mxu1 %v10104_v27  ;;  %v10137_v40 = vld [vmem:[%s16327_s17 + $0xf8] sm:$0xff] }
 0xb0e   :  { %10233 = vmatprep.subr.mxu0 %v10079_v63  ;;  %10280 = vmatprep.subr.mxu1 %v10103_v56 }
 0xb0f   :  { %10234 = vmatpush2.msra.mxu0 %v10078_v16  ;;  %10281 = vmatpush1.msra.mxu1 %v10102_v34 }
 0xb10   :  { %10235 = vmatprep.subr.mxu0 %v10077_v25  ;;  %10282 = vmatprep.subr.mxu1 %v10101_v3  ;;  %v10184_v3 = vld [vmem:[%s16327_s17 + $0x270] sm:$0xff] }
 0xb11   :  { %10236 = vmatpush2.msra.mxu0 %v10076_v8  ;;  %10283 = vmatpush1.msra.mxu1 %v10100_v37  ;;  %v10183_v37 = vld [vmem:[%s16327_s17 + $0x268] sm:$0xff] }
 0xb12   :  { %10237 = vmatprep.subr.mxu0 %v10075_v6  ;;  %10284 = vmatprep.subr.mxu1 %v10099_v50  ;;  %v10181_v50 = vld [vmem:[%s16327_s17 + $0x258] sm:$0xff] }
 0xb13   :  { %10238 = vmatpush2.msra.mxu0 %v10074_v45  ;;  %10285 = vmatpush1.msra.mxu1 %v10098_v35  ;;  %v10179_v35 = vld [vmem:[%s16327_s17 + $0x248] sm:$0xff] }
 0xb14   :  { %10239 = vmatprep.subr.mxu0 %v10073_v59  ;;  %10286 = vmatprep.subr.mxu1 %v10097_v44  ;;  %v10175_v44 = vld [vmem:[%s16327_s17 + $0x228] sm:$0xff] }
 0xb15   :  { %10240 = vmatpush2.msra.mxu0 %v10072_v61  ;;  %10287 = vmatpush1.msra.mxu1 %v10096_v51  ;;  %v10174_v51 = vld [vmem:[%s16327_s17 + $0x220] sm:$0xff] }
 0xb16   :  { %10241 = vmatprep.subr.mxu0 %v10071_v12  ;;  %10288 = vmatprep.subr.mxu1 %v10095_v11  ;;  %v10172_v11 = vld [vmem:[%s16327_s17 + $0x210] sm:$0xff] }
 0xb17   :  { %10242 = vmatpush2.msra.mxu0 %v10070_v26  ;;  %10289 = vmatpush1.msra.mxu1 %v10094_v52  ;;  %v10171_v52 = vld [vmem:[%s16327_s17 + $0x208] sm:$0xff] }
 0xb18   :  { %10243 = vmatprep.subr.mxu0 %v10069_v33  ;;  %10290 = vmatprep.subr.mxu1 %v10093_v5 }
 0xb19   :  { %10244 = vmatpush2.msra.mxu0 %v10068_v14  ;;  %10291 = vmatpush1.msra.mxu1 %v10092_v2 }
 0xb1a   :  { %10245 = vmatprep.subr.mxu0 %v10067_v42  ;;  %10292 = vmatprep.subr.mxu1 %v10091_v30 }
 0xb1b   :  { %v8853_v4 = vpop.f32.mrf.mxu1  ;;  %10246 = vmatpush2.msra.mxu0 %v10066_v46  ;;  %10293 = vmatpush1.msra.mxu1 %v10090_v38 }
 0xb1c   :  { %10247 = vmatprep.subr.mxu0 %v10065_v32  ;;  %10333 = vmatprep.subr.mxu1 %v10137_v40  ;;  %v16354_v32 = vld [vmem:[%s11447_s22] sm:$0x7]  ;;  %s11466_s22 = sld [smem:[%s16742_s0 + %s14034_s19]]  }
 0xb1d   :  { %v8855_v49 = vpop.f32.mrf.mxu1  ;;  %v8812_v54 = vpop.f32.mrf.mxu0  ;;  %10248 = vmatpush2.msra.mxu0 %v10064_v48 }
 0xb1e   :  { %v16308_v10 = vadd.f32 %v8853_v4, %v8812_v54  ;;  %10249 = vmatprep.subr.mxu0 %v10063_v18 }
 0xb1f   :  { %v8857_v29 = vpop.f32.mrf.mxu1  ;;  %v8814_v36 = vpop.f32.mrf.mxu0  ;;  %10250 = vmatpush2.msra.mxu0 %v10062_v17 }
 0xb20   :  { %v16310_v13 = vadd.f32 %v8855_v49, %v8814_v36  ;;  %10251 = vmatprep.subr.mxu0 %v10061_v53  ;;  %v10008_v53 = vrot.slane %v16354_v32, %v14298_v21 }
 0xb21   :  { %v8858_v15 = vpop.f32.mrf.mxu1  ;;  %v8816_v39 = vpop.f32.mrf.mxu0  ;;  %10252 = vmatpush2.msra.mxu0 %v10060_v58 }
 0xb22   :  { %10253 = vmatprep.subr.mxu0 %v10059_v41 }
 0xb23   :  { %v8817_v43 = vpop.f32.mrf.mxu0  ;;  %10254 = vmatpush2.msra.mxu0 %v10058_v28 }
 0xb24   :  { %10420 = vmatprep.subr.mxu0 %v10185_v31  ;;  %v10180_v31 = vld [vmem:[%s16327_s17 + $0x250] sm:$0xff] }
 0xb3b   :  { %v12535_v7 = vpop.f32.mrf.mxu1 }
 0xb3d   :  { %v12536_v60 = vpop.f32.mrf.mxu1 }
 0xb3e   :  { %v12537_v57 = vadd.f32 %v12536_v60, %v12535_v7  ;;  %v10012_v60 = vrot.slane %v16354_v32, %v14302_v24  ;;  %v10182_v24 = vld [vmem:[%s16327_s17 + $0x260] sm:$0xff] }
 0xb3f   :  { %v12538_v55 = vpop.f32.mrf.mxu1 }
 0xb41   :  { %v12539_v47 = vpop.f32.mrf.mxu1 }
 0xb4b   :  { %v8934_v0 = vpop.f32.mrf.mxu1 }
 0xb4c   :  { %v8935_v22 = vadd.f32 %v12537_v57, %v8934_v0  ;;  %v10178_v0 = vld [vmem:[%s16327_s17 + $0x240] sm:$0xff] }
 0xb4d   :  { %v12775_v20 = vpop.f32.mrf.mxu1 }
 0xb4e   :  { %v10176_v20 = vld [vmem:[%s16327_s17 + $0x230] sm:$0xff] }
 0xb4f   :  { %v8937_v62 = vpop.f32.mrf.mxu1 }
 0xb50   :  { %v10173_v62 = vld [vmem:[%s16327_s17 + $0x218] sm:$0xff] }
 0xb51   :  { %v12776_v19 = vpop.f32.mrf.mxu1 }
 0xb52   :  { %v10170_v19 = vld [vmem:[%s16327_s17 + $0x200] sm:$0xff] }
 0xb5b   :  { %v9338_v63 = vpop.f32.mrf.mxu1 }
 0xb5d   :  { %v9340_v16 = vpop.f32.mrf.mxu1  ;;  %v9297_v25 = vpop.f32.mrf.mxu0 }
 0xb5e   :  { %v9298_v8 = vadd.f32 %v9297_v25, %v16308_v10  ;;  %v10016_v25 = vrot.slane %v16354_v32, %v14300_v23  ;;  %v10133_v23 = vld [vmem:[%s16327_s17 + $0xd8] sm:$0xff]  ;;  %v10120_v32 = vld [vmem:[%s16327_s17 + $0x70] sm:$0xff] }
 0xb5f   :  { %v9342_v6 = vpop.f32.mrf.mxu1  ;;  %v9299_v45 = vpop.f32.mrf.mxu0 }
 0xb60   :  { %v9339_v59 = vadd.f32 %v9338_v63, %v9298_v8  ;;  %v9300_v4 = vadd.f32 %v9299_v45, %v16310_v13 }
 0xb61   :  { %v9343_v61 = vpop.f32.mrf.mxu1  ;;  %v9301_v12 = vpop.f32.mrf.mxu0 }
 0xb62   :  { %v9341_v49 = vadd.f32 %v9340_v16, %v9300_v4  ;;  %v10136_v12 = vld [vmem:[%s16327_s17 + $0xf0] sm:$0xff] }
 0xb63   :  { %v9302_v54 = vpop.f32.mrf.mxu0 }
 0xb64   :  { %v10134_v54 = vld [vmem:[%s16327_s17 + $0xe0] sm:$0xff] }
 0xb7b   :  { %v12562_v26 = vpop.f32.mrf.mxu1 }
 0xb7d   :  { %v12563_v29 = vpop.f32.mrf.mxu1 }
 0xb7e   :  { %v12564_v36 = vadd.f32 %v12563_v29, %v12562_v26  ;;  %v10132_v26 = vld [vmem:[%s16327_s17 + $0xd0] sm:$0xff]  ;;  %v10131_v29 = vld [vmem:[%s16327_s17 + $0xc8] sm:$0xff] }
 0xb7f   :  { %v12565_v33 = vpop.f32.mrf.mxu1 }
 0xb80   :  { %v9380_v15 = vadd.f32 %v12564_v36, %v8935_v22  ;;  %v10177_v22 = vld [vmem:[%s16327_s17 + $0x238] sm:$0xff]  ;;  %v10130_v36 = vld [vmem:[%s16327_s17 + $0xc0] sm:$0xff] }
 0xb81   :  { %v12566_v39 = vpop.f32.mrf.mxu1  ;;  %v10129_v33 = vld [vmem:[%s16327_s17 + $0xb8] sm:$0xff] }
 0xb82   :  { %v10127_v39 = vld [vmem:[%s16327_s17 + $0xa8] sm:$0xff] }
 0xb8b   :  { %v9419_v14 = vpop.f32.mrf.mxu1 }
 0xb8c   :  { %v16349_v42 = vadd.f32 %v9419_v14, %v9380_v15  ;;  %v10128_v15 = vld [vmem:[%s16327_s17 + $0xb0] sm:$0xff]  ;;  %v10126_v14 = vld [vmem:[%s16327_s17 + $0xa0] sm:$0xff] }
 0xb8d   :  { %v12787_v43 = vpop.f32.mrf.mxu1 }
 0xb8e   :  { %v10124_v43 = vld [vmem:[%s16327_s17 + $0x90] sm:$0xff] }
 0xb8f   :  { %v9422_v10 = vpop.f32.mrf.mxu1 }
 0xb90   :  { %v10123_v10 = vld [vmem:[%s16327_s17 + $0x88] sm:$0xff] }
 0xb91   :  { %v12788_v46 = vpop.f32.mrf.mxu1 }
 0xb92   :  { %v10122_v46 = vld [vmem:[%s16327_s17 + $0x80] sm:$0xff] }
 0xb9b   :  { %v9914_v13 = vpop.f32.mrf.mxu1 }
 0xb9d   :  { %v9916_v48 = vpop.f32.mrf.mxu1  ;;  %v9873_v18 = vpop.f32.mrf.mxu0 }
 0xb9e   :  { %v9915_v17 = vadd.f32 %v9914_v13, %v9873_v18  ;;  %v10121_v13 = vld [vmem:[%s16327_s17 + $0x78] sm:$0xff]  ;;  %v10118_v18 = vld [vmem:[%s16327_s17 + $0x60] sm:$0xff] }
 0xb9f   :  { %v9918_v58 = vpop.f32.mrf.mxu1  ;;  %v9875_v41 = vpop.f32.mrf.mxu0 }
 0xba0   :  { %v10001_v28 = vadd.f32 %v9915_v17, %v9339_v59  ;;  %v9917_v7 = vadd.f32 %v9916_v48, %v9875_v41  ;;  %v10119_v48 = vld [vmem:[%s16327_s17 + $0x68] sm:$0xff]  ;;  %v10117_v17 = vld [vmem:[%s16327_s17 + $0x58] sm:$0xff]  ;;  %v10114_v41 = vld [vmem:[%s16327_s17 + $0x40] sm:$0xff] }
 0xba1   :  { %v9919_v57 = vpop.f32.mrf.mxu1  ;;  %v9877_v55 = vpop.f32.mrf.mxu0  ;;  %v10115_v58 = vld [vmem:[%s16327_s17 + $0x48] sm:$0xff] }
 0xba2   :  { %v10002_v47 = vadd.f32 %v9917_v7, %v9341_v49  ;;  %v16360_v9 = vadd.f32 %v10008_v53, %v10001_v28  ;;  %v10135_v49 = vld [vmem:[%s16327_s17 + $0xe8] sm:$0xff]  ;;  %v10116_v53 = vld [vmem:[%s16327_s17 + $0x50] sm:$0xff]  ;;  %v10113_v28 = vld [vmem:[%s16327_s17 + $0x38] sm:$0xff] }
 0xba3   :  { %v9878_v27 = vpop.f32.mrf.mxu0  ;;  %v10112_v7 = vld [vmem:[%s16327_s17 + $0x30] sm:$0xff]  ;;  %v10110_v57 = vld [vmem:[%s16327_s17 + $0x20] sm:$0xff]  ;;  %v10109_v55 = vld [vmem:[%s16327_s17 + $0x18] sm:$0xff] }
 0xba4   :  { %v10021_v56 = vadd.f32 %v10012_v60, %v10002_v47  ;;  %v10023_v34 = vmax.f32 %v16360_v9, 0.0  ;;  %v10111_v60 = vld [vmem:[%s16327_s17 + $0x28] sm:$0xff]  ;;  %v10108_v47 = vld [vmem:[%s16327_s17 + $0x10] sm:$0xff] }
 0xba5   :  { %v10107_v27 = vld [vmem:[%s16327_s17 + $0x8] sm:$0xff] }
 0xba6   :  { %v10024_v21 = vmax.f32 %v10021_v56, 0.0  ;;  %v10106_v56 = vld [vmem:[%s16327_s17] sm:$0xff] }
 0xba8   :  { %10255 = vmatprep.mubr.f32.mxu0 %v10024_v21 }
 0xba9   :  { %10256 = vmatmul.mubr.f32.vlgmr.msra.gmra.mxu0 %v10023_v34 }
 0xbaa   :  { %10421 = vmatpush1.msra.mxu0 %v10184_v3  ;;  %10468 = vmatprep.mubr.f32.mxu0 %v13985_v1  ;;  %v10168_v3 = vld [vmem:[%s16327_s17 + $0x1f0] sm:$0xff] }
 0xbab   :  { %10422 = vmatprep.subr.mxu0 %v10183_v37  ;;  %v10167_v37 = vld [vmem:[%s16327_s17 + $0x1e8] sm:$0xff] }
 0xbac   :  { %10423 = vmatpush1.msra.mxu0 %v10182_v24  ;;  %v10166_v24 = vld [vmem:[%s16327_s17 + $0x1e0] sm:$0xff] }
 0xbad   :  { %10424 = vmatprep.subr.mxu0 %v10181_v50  ;;  %v10165_v50 = vld [vmem:[%s16327_s17 + $0x1d8] sm:$0xff] }
 0xbae   :  { %10425 = vmatpush1.msra.mxu0 %v10180_v31  ;;  %v10164_v31 = vld [vmem:[%s16327_s17 + $0x1d0] sm:$0xff] }
 0xbaf   :  { %10426 = vmatprep.subr.mxu0 %v10179_v35  ;;  %v10163_v35 = vld [vmem:[%s16327_s17 + $0x1c8] sm:$0xff] }
 0xbb0   :  { %10427 = vmatpush1.msra.mxu0 %v10178_v0  ;;  %v10162_v0 = vld [vmem:[%s16327_s17 + $0x1c0] sm:$0xff] }
 0xbb1   :  { %10428 = vmatprep.subr.mxu0 %v10177_v22  ;;  %v10161_v22 = vld [vmem:[%s16327_s17 + $0x1b8] sm:$0xff] }
 0xbb2   :  { %10429 = vmatpush1.msra.mxu0 %v10176_v20  ;;  %v10160_v20 = vld [vmem:[%s16327_s17 + $0x1b0] sm:$0xff] }
 0xbb3   :  { %10430 = vmatprep.subr.mxu0 %v10175_v44  ;;  %v10159_v44 = vld [vmem:[%s16327_s17 + $0x1a8] sm:$0xff] }
 0xbb4   :  { %10431 = vmatpush1.msra.mxu0 %v10174_v51  ;;  %v10158_v51 = vld [vmem:[%s16327_s17 + $0x1a0] sm:$0xff] }
 0xbb5   :  { %10432 = vmatprep.subr.mxu0 %v10173_v62  ;;  %v10157_v62 = vld [vmem:[%s16327_s17 + $0x198] sm:$0xff] }
 0xbb6   :  { %10433 = vmatpush1.msra.mxu0 %v10172_v11  ;;  %v10156_v11 = vld [vmem:[%s16327_s17 + $0x190] sm:$0xff] }
 0xbb7   :  { %10434 = vmatprep.subr.mxu0 %v10171_v52  ;;  %v10155_v52 = vld [vmem:[%s16327_s17 + $0x188] sm:$0xff] }
 0xbb8   :  { %10435 = vmatpush1.msra.mxu0 %v10170_v19  ;;  %v10154_v19 = vld [vmem:[%s16327_s17 + $0x180] sm:$0xff] }
 0xbbb   :  { %v12589_v5 = vpop.f32.mrf.mxu1 }
 0xbbd   :  { %v12590_v2 = vpop.f32.mrf.mxu1 }
 0xbbe   :  { %v12591_v40 = vadd.f32 %v12590_v2, %v12589_v5  ;;  %v10153_v5 = vld [vmem:[%s16327_s17 + $0x178] sm:$0xff]  ;;  %v10152_v2 = vld [vmem:[%s16327_s17 + $0x170] sm:$0xff] }
 0xbbf   :  { %v12592_v30 = vpop.f32.mrf.mxu1 }
 0xbc0   :  { %v10151_v30 = vld [vmem:[%s16327_s17 + $0x168] sm:$0xff] }
 0xbc1   :  { %v12593_v38 = vpop.f32.mrf.mxu1 }
 0xbc2   :  { %v10150_v38 = vld [vmem:[%s16327_s17 + $0x160] sm:$0xff] }
 0xbcb   :  { %v9995_v63 = vpop.f32.mrf.mxu1 }
 0xbcc   :  { %v9996_v16 = vadd.f32 %v12591_v40, %v9995_v63  ;;  %v10149_v40 = vld [vmem:[%s16327_s17 + $0x158] sm:$0xff]  ;;  %v10148_v63 = vld [vmem:[%s16327_s17 + $0x150] sm:$0xff] }
 0xbcd   :  { %v12799_v8 = vpop.f32.mrf.mxu1 }
 0xbce   :  { %v10003_v6 = vadd.f32 %v9996_v16, %v16349_v42  ;;  %v10125_v42 = vld [vmem:[%s16327_s17 + $0x98] sm:$0xff]  ;;  %v10147_v16 = vld [vmem:[%s16327_s17 + $0x148] sm:$0xff] }
 0xbcf   :  { %v9998_v45 = vpop.f32.mrf.mxu1  ;;  %v10145_v8 = vld [vmem:[%s16327_s17 + $0x138] sm:$0xff] }
 0xbd0   :  { %v10022_v59 = vadd.f32 %v10016_v25, %v10003_v6  ;;  %v10146_v25 = vld [vmem:[%s16327_s17 + $0x140] sm:$0xff]  ;;  %v10144_v6 = vld [vmem:[%s16327_s17 + $0x130] sm:$0xff]  ;;  %v10143_v45 = vld [vmem:[%s16327_s17 + $0x128] sm:$0xff] }
 0xbd1   :  { %v12800_v4 = vpop.f32.mrf.mxu1 }
 0xbd2   :  { %v10025_v61 = vmax.f32 %v10022_v59, 0.0  ;;  %v10142_v59 = vld [vmem:[%s16327_s17 + $0x120] sm:$0xff]  ;;  %v10141_v4 = vld [vmem:[%s16327_s17 + $0x118] sm:$0xff] }
 0xbd4   :  { %12298 = vmatmul.mubr.msk.f32.vlgmr.msra.gmra.mxu1 %vm1070_vm9, %v10025_v61  ;;  %12299 = vmatmul.mubr.msk.f32.vlgmr.msra.gmra.mxu0 %vm1070_vm9, %v10025_v61  ;;  %v10140_v61 = vld [vmem:[%s16327_s17 + $0x110] sm:$0xff] }
 0xbd5   :  { %10334 = vmatpush1.msra.mxu1 %v10136_v12  ;;  %10397 = vmatprep.mubr.f32.mxu1 %v10024_v21  ;;  %v10169_v21 = vld [vmem:[%s16327_s17 + $0x1f8] sm:$0xff]  ;;  %v10139_v12 = vld [vmem:[%s16327_s17 + $0x108] sm:$0xff] }
 0xbd6   :  { %10335 = vmatprep.subr.mxu1 %v10135_v49  ;;  %10545 = vmatprep.mubr.f32.mxu0 %v13985_v1  ;;  %v10138_v49 = vld [vmem:[%s16327_s17 + $0x100] sm:$0xff]  ;;  %s11464_s17 = sld [smem:[%s16742_s0 + %s14033_s14]]  }
 0xbd7   :  { %10336 = vmatpush1.msra.mxu1 %v10134_v54 }
 0xbd8   :  { %10337 = vmatprep.subr.mxu1 %v10133_v23 }
 0xbd9   :  { %10338 = vmatpush1.msra.mxu1 %v10132_v26 }
 0xbda   :  { %10339 = vmatprep.subr.mxu1 %v10131_v29 }
 0xbdb   :  { %10340 = vmatpush1.msra.mxu1 %v10130_v36 }
 0xbdc   :  { %10341 = vmatprep.subr.mxu1 %v10129_v33 }
 0xbdd   :  { %10342 = vmatpush1.msra.mxu1 %v10128_v15 }
 0xbde   :  { %10343 = vmatprep.subr.mxu1 %v10127_v39 }
 0xbdf   :  { %10344 = vmatpush1.msra.mxu1 %v10126_v14 }
 0xbe0   :  { %10345 = vmatprep.subr.mxu1 %v10125_v42 }
 0xbe1   :  { %10346 = vmatpush1.msra.mxu1 %v10124_v43 }
 0xbe2   :  { %10347 = vmatprep.subr.mxu1 %v10123_v10 }
 0xbe3   :  { %10348 = vmatpush1.msra.mxu1 %v10122_v46  ;;  %v10186_v46 = vld [vmem:[%s11452_s26] sm:$0xf] }
 0xbe4   :  { %10349 = vmatprep.subr.mxu1 %v10121_v13  ;;  %v10187_v13 = vld [vmem:[%s11453_s30] sm:$0xf] }
 0xbe5   :  { %10350 = vmatpush1.msra.mxu1 %v10120_v32  ;;  %v10659_v32 = vld [vmem:[%s16462_s3 + $0xf8] sm:$0xff] }
 0xbe6   :  { %10351 = vmatprep.subr.mxu1 %v10119_v48  ;;  %v10658_v48 = vld [vmem:[%s16462_s3 + $0xf0] sm:$0xff] }
 0xbe7   :  { %10352 = vmatpush1.msra.mxu1 %v10118_v18  ;;  %v10657_v18 = vld [vmem:[%s16462_s3 + $0xe8] sm:$0xff] }
 0xbe8   :  { %10353 = vmatprep.subr.mxu1 %v10117_v17  ;;  %v10656_v17 = vld [vmem:[%s16462_s3 + $0xe0] sm:$0xff] }
 0xbe9   :  { %10354 = vmatpush1.msra.mxu1 %v10116_v53  ;;  %v10655_v53 = vld [vmem:[%s16462_s3 + $0xd8] sm:$0xff] }
 0xbea   :  { %10355 = vmatprep.subr.mxu1 %v10115_v58  ;;  %v10654_v58 = vld [vmem:[%s16462_s3 + $0xd0] sm:$0xff] }
 0xbeb   :  { %10356 = vmatpush1.msra.mxu1 %v10114_v41  ;;  %v10653_v41 = vld [vmem:[%s16462_s3 + $0xc8] sm:$0xff] }
 0xbec   :  { %10357 = vmatprep.subr.mxu1 %v10113_v28  ;;  %v10652_v28 = vld [vmem:[%s16462_s3 + $0xc0] sm:$0xff] }
 0xbed   :  { %10358 = vmatpush1.msra.mxu1 %v10112_v7  ;;  %v10651_v7 = vld [vmem:[%s16462_s3 + $0xb8] sm:$0xff] }
 0xbee   :  { %10359 = vmatprep.subr.mxu1 %v10111_v60  ;;  %v10650_v60 = vld [vmem:[%s16462_s3 + $0xb0] sm:$0xff] }
 0xbef   :  { %10360 = vmatpush1.msra.mxu1 %v10110_v57  ;;  %v10649_v57 = vld [vmem:[%s16462_s3 + $0xa8] sm:$0xff] }
 0xbf0   :  { %10361 = vmatprep.subr.mxu1 %v10109_v55  ;;  %v10648_v55 = vld [vmem:[%s16462_s3 + $0xa0] sm:$0xff] }
 0xbf1   :  { %10362 = vmatpush1.msra.mxu1 %v10108_v47  ;;  %v10647_v47 = vld [vmem:[%s16462_s3 + $0x98] sm:$0xff] }
 0xbf2   :  { %10363 = vmatprep.subr.mxu1 %v10107_v27  ;;  %v10646_v27 = vld [vmem:[%s16462_s3 + $0x90] sm:$0xff] }
 0xbf3   :  { %10364 = vmatpush1.msra.mxu1 %v10106_v56  ;;  %v10645_v56 = vld [vmem:[%s16462_s3 + $0x88] sm:$0xff] }
 0xbf4   :  { %10365 = vmatprep.subr.mxu1 %v10169_v21  ;;  %v10644_v21 = vld [vmem:[%s16462_s3 + $0x80] sm:$0xff] }
 0xbf5   :  { %10366 = vmatpush2.msra.mxu1 %v10168_v3  ;;  %v10643_v3 = vld [vmem:[%s16462_s3 + $0x78] sm:$0xff] }
 0xbf6   :  { %10367 = vmatprep.subr.mxu1 %v10167_v37  ;;  %v10642_v37 = vld [vmem:[%s16462_s3 + $0x70] sm:$0xff] }
 0xbf7   :  { %10368 = vmatpush2.msra.mxu1 %v10166_v24  ;;  %v10641_v24 = vld [vmem:[%s16462_s3 + $0x68] sm:$0xff] }
 0xbf8   :  { %10369 = vmatprep.subr.mxu1 %v10165_v50  ;;  %v10640_v50 = vld [vmem:[%s16462_s3 + $0x60] sm:$0xff] }
 0xbf9   :  { %10370 = vmatpush2.msra.mxu1 %v10164_v31  ;;  %v10639_v31 = vld [vmem:[%s16462_s3 + $0x58] sm:$0xff] }
 0xbfa   :  { %10371 = vmatprep.subr.mxu1 %v10163_v35  ;;  %v10638_v35 = vld [vmem:[%s16462_s3 + $0x50] sm:$0xff] }
 0xbfb   :  { %10372 = vmatpush2.msra.mxu1 %v10162_v0  ;;  %v10637_v0 = vld [vmem:[%s16462_s3 + $0x48] sm:$0xff] }
 0xbfc   :  { %10373 = vmatprep.subr.mxu1 %v10161_v22  ;;  %v10636_v22 = vld [vmem:[%s16462_s3 + $0x40] sm:$0xff] }
 0xbfd   :  { %10374 = vmatpush2.msra.mxu1 %v10160_v20  ;;  %v10635_v20 = vld [vmem:[%s16462_s3 + $0x38] sm:$0xff] }
 0xbfe   :  { %10375 = vmatprep.subr.mxu1 %v10159_v44  ;;  %v10634_v44 = vld [vmem:[%s16462_s3 + $0x30] sm:$0xff] }
 0xbff   :  { %10376 = vmatpush2.msra.mxu1 %v10158_v51  ;;  %v10633_v51 = vld [vmem:[%s16462_s3 + $0x28] sm:$0xff] }
 0xc00   :  { %10377 = vmatprep.subr.mxu1 %v10157_v62  ;;  %v10632_v62 = vld [vmem:[%s16462_s3 + $0x20] sm:$0xff] }
 0xc01   :  { %10378 = vmatpush2.msra.mxu1 %v10156_v11  ;;  %v10631_v11 = vld [vmem:[%s16462_s3 + $0x18] sm:$0xff] }
 0xc02   :  { %10379 = vmatprep.subr.mxu1 %v10155_v52  ;;  %v10630_v52 = vld [vmem:[%s16462_s3 + $0x10] sm:$0xff] }
 0xc03   :  { %10380 = vmatpush2.msra.mxu1 %v10154_v19  ;;  %v10629_v19 = vld [vmem:[%s16462_s3 + $0x8] sm:$0xff] }
 0xc04   :  { %10381 = vmatprep.subr.mxu1 %v10153_v5  ;;  %v10628_v5 = vld [vmem:[%s16462_s3] sm:$0xff] }
 0xc05   :  { %10382 = vmatpush2.msra.mxu1 %v10152_v2  ;;  %v10667_v2 = vld [vmem:[%s16462_s3 + $0x138] sm:$0xff] }
 0xc06   :  { %10383 = vmatprep.subr.mxu1 %v10151_v30  ;;  %v10666_v30 = vld [vmem:[%s16462_s3 + $0x130] sm:$0xff] }
 0xc07   :  { %10384 = vmatpush2.msra.mxu1 %v10150_v38  ;;  %v10665_v38 = vld [vmem:[%s16462_s3 + $0x128] sm:$0xff] }
 0xc08   :  { %10385 = vmatprep.subr.mxu1 %v10149_v40  ;;  %v10664_v40 = vld [vmem:[%s16462_s3 + $0x120] sm:$0xff] }
 0xc09   :  { %10386 = vmatpush2.msra.mxu1 %v10148_v63  ;;  %v10663_v63 = vld [vmem:[%s16462_s3 + $0x118] sm:$0xff] }
 0xc0a   :  { %10387 = vmatprep.subr.mxu1 %v10147_v16  ;;  %v10662_v16 = vld [vmem:[%s16462_s3 + $0x110] sm:$0xff] }
 0xc0b   :  { %10388 = vmatpush2.msra.mxu1 %v10146_v25  ;;  %v10661_v25 = vld [vmem:[%s16462_s3 + $0x108] sm:$0xff] }
 0xc0c   :  { %10389 = vmatprep.subr.mxu1 %v10145_v8  ;;  %v10660_v8 = vld [vmem:[%s16462_s3 + $0x100] sm:$0xff] }
 0xc0d   :  { %10390 = vmatpush2.msra.mxu1 %v10144_v6 }
 0xc0e   :  { %10391 = vmatprep.subr.mxu1 %v10143_v45 }
 0xc0f   :  { %10392 = vmatpush2.msra.mxu1 %v10142_v59 }
 0xc10   :  { %10393 = vmatprep.subr.mxu1 %v10141_v4 }
 0xc11   :  { %10394 = vmatpush2.msra.mxu1 %v10140_v61 }
 0xc12   :  { %10395 = vmatprep.subr.mxu1 %v10139_v12 }
 0xc13   :  { %10396 = vmatpush2.msra.mxu1 %v10138_v49  ;;  %v10946_v49 = vld [vmem:[%s16510_s7 + $0x78] sm:$0xff] }
 0xc14   :  { %10398 = vmatmul.mubr.f32.vlgmr.msra.gmra.mxu1 %v10023_v34 }
 0xc15   :  { %10619 = vmatprep.mubr.f32.mxu1 %v13985_v1 }
 0xc69   :  { %v10257_v54 = vpop.f32.mrf.mxu0 }
 0xc6b   :  { %v10259_v26 = vpop.f32.mrf.mxu0 }
 0xc94   :  { %v10328_v23 = vpop.f32.mrf.mxu1  ;;  %v10470_v29 = vpop.f32.mrf.mxu0 }
 0xc95   :  { %v10329_v42 = vadd.f32 %v10328_v23, %v10257_v54  ;;  %v10945_v54 = vld [vmem:[%s16510_s7 + $0x70] sm:$0xff]  ;;  %v10944_v23 = vld [vmem:[%s16510_s7 + $0x68] sm:$0xff] }
 0xc96   :  { %v10330_v36 = vpop.f32.mrf.mxu1  ;;  %v10472_v34 = vpop.f32.mrf.mxu0 }
 0xc97   :  { %v10331_v39 = vadd.f32 %v10330_v36, %v10259_v26  ;;  %v10943_v26 = vld [vmem:[%s16510_s7 + $0x60] sm:$0xff]  ;;  %v10941_v36 = vld [vmem:[%s16510_s7 + $0x50] sm:$0xff] }
 0xcd4   :  { %v10399_v9 = vpop.f32.mrf.mxu1 }
 0xcd5   :  { %v10471_v33 = vadd.f32 %v10470_v29, %v10399_v9  ;;  %v10942_v29 = vld [vmem:[%s16510_s7 + $0x58] sm:$0xff]  ;;  %v10940_v9 = vld [vmem:[%s16510_s7 + $0x48] sm:$0xff] }
 0xcd6   :  { %v10401_v15 = vpop.f32.mrf.mxu1 }
 0xcd7   :  { %v10473_v14 = vadd.f32 %v10472_v34, %v10401_v15  ;;  %v10475_v10 = vmax.f32 %v10329_v42, %v10471_v33  ;;  %v10939_v34 = vld [vmem:[%s16510_s7 + $0x40] sm:$0xff]  ;;  %v10938_v33 = vld [vmem:[%s16510_s7 + $0x38] sm:$0xff]  ;;  %v10937_v15 = vld [vmem:[%s16510_s7 + $0x30] sm:$0xff] }
 0xcd8   :  { %v10934_v42 = vld [vmem:[%s16510_s7 + $0x18] sm:$0xff] }
 0xcd9   :  { %v10476_v43 = vmax.f32 %v10331_v39, %v10473_v14  ;;  %v10936_v39 = vld [vmem:[%s16510_s7 + $0x28] sm:$0xff]  ;;  %v10935_v14 = vld [vmem:[%s16510_s7 + $0x20] sm:$0xff] }
 0xcdb   :  { %10511 = vmatprep.subr.mxu0 %v10476_v43  ;;  %10585 = vmatprep.subr.mxu1 %v10476_v43  ;;  %v10933_v43 = vld [vmem:[%s16510_s7 + $0x10] sm:$0xff] }
 0xcdc   :  { %10512 = vmatpush1.msra.mxu0 %v10475_v10  ;;  %10586 = vmatpush1.msra.mxu1 %v10475_v10  ;;  %v10932_v10 = vld [vmem:[%s16510_s7 + $0x8] sm:$0xff] }
 0xcdd   :  { %12300 = vmatmul.mubr.msk.f32.vlgmr.msra.gmra.mxu0 %vm10477_vm0, %v10186_v46  ;;  %12301 = vmatmul.mubr.msk.f32.vlgmr.msra.gmra.mxu1 %vm10477_vm0, %v10187_v13 }
 0xcde   :  { %10671 = vmatprep.subr.mxu0 %v10659_v32  ;;  %10823 = vmatprep.mubr.f32.mxu1 %v13985_v1  ;;  %v10750_v32 = vld [vmem:[%s11455_s11] sm:$0x3] }
 0xcdf   :  { %10672 = vmatpush1.msra.mxu0 %v10658_v48 }
 0xce0   :  { %10673 = vmatprep.subr.mxu0 %v10657_v18 }
 0xce1   :  { %10674 = vmatpush1.msra.mxu0 %v10656_v17 }
 0xce2   :  { %10675 = vmatprep.subr.mxu0 %v10655_v53  ;;  %v10966_v53 = vld [vmem:[%s16551_s20 + $0x78] sm:$0xff] }
 0xce3   :  { %10676 = vmatpush1.msra.mxu0 %v10654_v58  ;;  %v10965_v58 = vld [vmem:[%s16551_s20 + $0x70] sm:$0xff] }
 0xce4   :  { %10677 = vmatprep.subr.mxu0 %v10653_v41  ;;  %v10964_v41 = vld [vmem:[%s16551_s20 + $0x68] sm:$0xff] }
 0xce5   :  { %10678 = vmatpush1.msra.mxu0 %v10652_v28  ;;  %v10963_v28 = vld [vmem:[%s16551_s20 + $0x60] sm:$0xff] }
 0xce6   :  { %10679 = vmatprep.subr.mxu0 %v10651_v7  ;;  %v10962_v7 = vld [vmem:[%s16551_s20 + $0x58] sm:$0xff] }
 0xce7   :  { %10680 = vmatpush1.msra.mxu0 %v10650_v60  ;;  %v10931_v60 = vld [vmem:[%s16510_s7] sm:$0xff] }
 0xce8   :  { %10681 = vmatprep.subr.mxu0 %v10649_v57  ;;  %v10950_v57 = vld [vmem:[%s16510_s7 + $0x98] sm:$0xff] }
 0xce9   :  { %10682 = vmatpush1.msra.mxu0 %v10648_v55  ;;  %v10961_v55 = vld [vmem:[%s16551_s20 + $0x50] sm:$0xff] }
 0xcea   :  { %10683 = vmatprep.subr.mxu0 %v10647_v47  ;;  %v10949_v47 = vld [vmem:[%s16510_s7 + $0x90] sm:$0xff] }
 0xceb   :  { %10684 = vmatpush1.msra.mxu0 %v10646_v27  ;;  %v10960_v27 = vld [vmem:[%s16551_s20 + $0x48] sm:$0xff] }
 0xcec   :  { %10685 = vmatprep.subr.mxu0 %v10645_v56  ;;  %v10948_v56 = vld [vmem:[%s16510_s7 + $0x88] sm:$0xff] }
 0xced   :  { %10686 = vmatpush1.msra.mxu0 %v10644_v21  ;;  %v10959_v21 = vld [vmem:[%s16551_s20 + $0x40] sm:$0xff] }
 0xcee   :  { %10687 = vmatprep.subr.mxu0 %v10643_v3  ;;  %v10947_v3 = vld [vmem:[%s16510_s7 + $0x80] sm:$0xff] }
 0xcef   :  { %10688 = vmatpush1.msra.mxu0 %v10642_v37  ;;  %v10958_v37 = vld [vmem:[%s16551_s20 + $0x38] sm:$0xff] }
 0xcf0   :  { %10689 = vmatprep.subr.mxu0 %v10641_v24  ;;  %v10957_v24 = vld [vmem:[%s16551_s20 + $0x30] sm:$0xff] }
 0xcf1   :  { %10690 = vmatpush1.msra.mxu0 %v10640_v50  ;;  %v10956_v50 = vld [vmem:[%s16551_s20 + $0x28] sm:$0xff] }
 0xcf2   :  { %10691 = vmatprep.subr.mxu0 %v10639_v31  ;;  %v10955_v31 = vld [vmem:[%s16551_s20 + $0x20] sm:$0xff] }
 0xcf3   :  { %10692 = vmatpush1.msra.mxu0 %v10638_v35  ;;  %v10954_v35 = vld [vmem:[%s16551_s20 + $0x18] sm:$0xff] }
 0xcf4   :  { %10693 = vmatprep.subr.mxu0 %v10637_v0  ;;  %v10953_v0 = vld [vmem:[%s16551_s20 + $0x10] sm:$0xff] }
 0xcf5   :  { %10694 = vmatpush1.msra.mxu0 %v10636_v22  ;;  %v10952_v22 = vld [vmem:[%s16551_s20 + $0x8] sm:$0xff] }
 0xcf6   :  { %10695 = vmatprep.subr.mxu0 %v10635_v20  ;;  %v10951_v20 = vld [vmem:[%s16551_s20] sm:$0xff] }
 0xcf7   :  { %10696 = vmatpush1.msra.mxu0 %v10634_v44  ;;  %v10970_v44 = vld [vmem:[%s16551_s20 + $0x98] sm:$0xff] }
 0xcf8   :  { %10697 = vmatprep.subr.mxu0 %v10633_v51  ;;  %v10969_v51 = vld [vmem:[%s16551_s20 + $0x90] sm:$0xff] }
 0xcf9   :  { %10698 = vmatpush1.msra.mxu0 %v10632_v62  ;;  %v10968_v62 = vld [vmem:[%s16551_s20 + $0x88] sm:$0xff] }
 0xcfa   :  { %10699 = vmatprep.subr.mxu0 %v10631_v11  ;;  %v10967_v11 = vld [vmem:[%s16551_s20 + $0x80] sm:$0xff] }
 0xcfb   :  { %10700 = vmatpush1.msra.mxu0 %v10630_v52 }
 0xcfc   :  { %10701 = vmatprep.subr.mxu0 %v10629_v19 }
 0xcfd   :  { %10702 = vmatpush1.msra.mxu0 %v10628_v5 }
 0xcfe   :  { %10727 = vmatprep.subr.mxu0 %v10667_v2 }
 0xcff   :  { %10728 = vmatpush2.msra.mxu0 %v10666_v30 }
 0xd00   :  { %10729 = vmatprep.subr.mxu0 %v10665_v38 }
 0xd01   :  { %10730 = vmatpush2.msra.mxu0 %v10664_v40 }
 0xd02   :  { %10731 = vmatprep.subr.mxu0 %v10663_v63 }
 0xd03   :  { %10732 = vmatpush2.msra.mxu0 %v10662_v16 }
 0xd04   :  { %10733 = vmatprep.subr.mxu0 %v10661_v25 }
 0xd05   :  { %10734 = vmatpush2.msra.mxu0 %v10660_v8 }
 0xd06   :  { %11099 = vmatprep.subr.mxu0 %v13985_v1 }
 0xd9d   :  { %v10547_v6 = vpop.f32.mrf.mxu0  ;;  %v10621_v45 = vpop.f32.mrf.mxu1 }
 0xd9e   :  { %v10626_v12 = vmax.f32 %v10547_v6, %v10621_v45 }
 0xd9f   :  { %v10549_v59 = vpop.f32.mrf.mxu0  ;;  %v10623_v4 = vpop.f32.mrf.mxu1 }
 0xda0   :  { %v10627_v61 = vmax.f32 %v10549_v59, %v10623_v4 }
 0xda2   :  { %12302 = vmatprep.mubr.msk.f32.mxu0 %vm3646_vm11, %v10627_v61 }
 0xda3   :  { %10736 = vmatmul.mubr.f32.vlgmr.msra.gmra.mxu0 %v10626_v12 }
 0xda4   :  { %11100 = vmatpush1.msra.mxu0 %v10946_v49 }
 0xda5   :  { %11101 = vmatprep.subr.mxu0 %v13985_v1 }
 0xda6   :  { %11102 = vmatpush1.msra.mxu0 %v10945_v54 }
 0xda7   :  { %11103 = vmatprep.subr.mxu0 %v13985_v1 }
 0xda8   :  { %11104 = vmatpush1.msra.mxu0 %v10944_v23 }
 0xda9   :  { %11105 = vmatprep.subr.mxu0 %v13985_v1 }
 0xdaa   :  { %11106 = vmatpush1.msra.mxu0 %v10943_v26 }
 0xdab   :  { %11107 = vmatprep.subr.mxu0 %v13985_v1 }
 0xdac   :  { %11108 = vmatpush1.msra.mxu0 %v10942_v29  ;;  %v10987_v29 = vld [vmem:[%s16616_s24 + $0x78] sm:$0xff] }
 0xdad   :  { %11109 = vmatprep.subr.mxu0 %v13985_v1 }
 0xdae   :  { %11110 = vmatpush1.msra.mxu0 %v10941_v36 }
 0xdaf   :  { %11111 = vmatprep.subr.mxu0 %v13985_v1 }
 0xdb0   :  { %11112 = vmatpush1.msra.mxu0 %v10940_v9  ;;  %v10986_v9 = vld [vmem:[%s16616_s24 + $0x70] sm:$0xff] }
 0xdb1   :  { %11113 = vmatprep.subr.mxu0 %v13985_v1 }
 0xdb2   :  { %11114 = vmatpush1.msra.mxu0 %v10939_v34  ;;  %v10985_v34 = vld [vmem:[%s16616_s24 + $0x68] sm:$0xff] }
 0xdb3   :  { %11115 = vmatprep.subr.mxu0 %v13985_v1 }
 0xdb4   :  { %11116 = vmatpush1.msra.mxu0 %v10938_v33  ;;  %v10984_v33 = vld [vmem:[%s16616_s24 + $0x60] sm:$0xff] }
 0xdb5   :  { %11117 = vmatprep.subr.mxu0 %v13985_v1 }
 0xdb6   :  { %11118 = vmatpush1.msra.mxu0 %v10937_v15  ;;  %v10983_v15 = vld [vmem:[%s16616_s24 + $0x58] sm:$0xff] }
 0xdb7   :  { %11119 = vmatprep.subr.mxu0 %v13985_v1 }
 0xdb8   :  { %11120 = vmatpush1.msra.mxu0 %v10936_v39  ;;  %v10982_v39 = vld [vmem:[%s16616_s24 + $0x50] sm:$0xff] }
 0xdb9   :  { %11121 = vmatprep.subr.mxu0 %v13985_v1 }
 0xdba   :  { %11122 = vmatpush1.msra.mxu0 %v10935_v14  ;;  %v10981_v14 = vld [vmem:[%s16616_s24 + $0x48] sm:$0xff] }
 0xdbb   :  { %11123 = vmatprep.subr.mxu0 %v13985_v1 }
 0xdbc   :  { %11124 = vmatpush1.msra.mxu0 %v10934_v42  ;;  %v10980_v42 = vld [vmem:[%s16616_s24 + $0x40] sm:$0xff] }
 0xdbd   :  { %11125 = vmatprep.subr.mxu0 %v13985_v1 }
 0xdbe   :  { %11126 = vmatpush1.msra.mxu0 %v10933_v43  ;;  %v10979_v43 = vld [vmem:[%s16616_s24 + $0x38] sm:$0xff] }
 0xdbf   :  { %11127 = vmatprep.subr.mxu0 %v13985_v1 }
 0xdc0   :  { %11128 = vmatpush1.msra.mxu0 %v10932_v10  ;;  %v10978_v10 = vld [vmem:[%s16616_s24 + $0x30] sm:$0xff] }
 0xdc1   :  { %11129 = vmatprep.subr.mxu0 %v13985_v1 }
 0xdc2   :  { %11130 = vmatpush1.msra.mxu0 %v10931_v60  ;;  %v10999_v60 = vld [vmem:[%s16655_s28 + $0x50] sm:$0xff] }
 0xdc3   :  { %11155 = vmatprep.subr.mxu0 %v13985_v1 }
 0xdc4   :  { %11156 = vmatpush2.msra.mxu0 %v10950_v57  ;;  %v10998_v57 = vld [vmem:[%s16655_s28 + $0x48] sm:$0xff] }
 0xdc5   :  { %11157 = vmatprep.subr.mxu0 %v13985_v1 }
 0xdc6   :  { %11158 = vmatpush2.msra.mxu0 %v10949_v47  ;;  %v10996_v47 = vld [vmem:[%s16655_s28 + $0x38] sm:$0xff] }
 0xdc7   :  { %11159 = vmatprep.subr.mxu0 %v13985_v1 }
 0xdc8   :  { %11160 = vmatpush2.msra.mxu0 %v10948_v56  ;;  %v10994_v56 = vld [vmem:[%s16655_s28 + $0x28] sm:$0xff] }
 0xdc9   :  { %11161 = vmatprep.subr.mxu0 %v13985_v1 }
 0xdca   :  { %11162 = vmatpush2.msra.mxu0 %v10947_v3  ;;  %v10992_v3 = vld [vmem:[%s16655_s28 + $0x18] sm:$0xff] }
 0xdcb   :  { %12836 = vmatprep.subr.mxu0 %v13985_v1 }
 0xe63   :  { %v10737_v46 = vpop.f32.mrf.mxu0 }
 0xe64   :  { %v10830_v17 = vmul.f32 %v10737_v46, %v10737_v46 }
 0xe65   :  { %v10739_v13 = vpop.f32.mrf.mxu0 }
 0xe66   :  { %v10744_v48 = vcombine.low %v10737_v46, %v10739_v13  ;;  %v10831_v18 = vmul.f32 %v10739_v13, %v10739_v13  ;;  %12303 = vmatprep.subr.msk.mxu1 %vm10746_vm1, %v10739_v13  ;;  %v10976_v13 = vld [vmem:[%s16616_s24 + $0x20] sm:$0xff] }
 0xe67   :  { %12304 = vmatpush1.msk.msra.mxu1 %vm10746_vm1, %v10737_v46  ;;  %v10977_v46 = vld [vmem:[%s16616_s24 + $0x28] sm:$0xff] }
 0xe68   :  { %10749 = vst.msk [vmem:[%s11465_s15] sm:$0xff] %vm10748_vm3, %v10744_v48  ;;  %12305 = vmatmul.mubr.msk.f32.vlgmr.msra.gmra.mxu1 %vm10751_vm4, %v10750_v32  ;;  %12306 = vmatprep.subr.msk.mxu1 %vm10746_vm1, %v10831_v18  ;;  %v10974_v48 = vld [vmem:[%s16616_s24 + $0x10] sm:$0xff]  ;;  %v10973_v18 = vld [vmem:[%s16616_s24 + $0x8] sm:$0xff] }
 0xe69   :  { %12307 = vmatpush1.msk.msra.mxu1 %vm10746_vm1, %v10830_v17  ;;  %10902 = vmatprep.mubr.f32.mxu1 %v13985_v1  ;;  %v10972_v17 = vld [vmem:[%s16616_s24] sm:$0xff] }
 0xe6a   :  { %11026 = vmatprep.subr.mxu1 %v13985_v1 }
 0xe6c   :  { %12308 = vmatmul.mubr.msk.f32.vlgmr.msra.gmra.mxu1 %vm10751_vm4, %v10750_v32  ;;  %v10975_v32 = vld [vmem:[%s16616_s24 + $0x18] sm:$0xff] }
 0xe6d   :  { %11027 = vmatpush1.msra.mxu1 %v10966_v53  ;;  %v11004_v53 = vld [vmem:[%s16655_s28 + $0x78] sm:$0xff] }
 0xe6e   :  { %11028 = vmatprep.subr.mxu1 %v13985_v1 }
 0xe6f   :  { %11029 = vmatpush1.msra.mxu1 %v10965_v58  ;;  %v11003_v58 = vld [vmem:[%s16655_s28 + $0x70] sm:$0xff] }
 0xe70   :  { %11030 = vmatprep.subr.mxu1 %v13985_v1 }
 0xe71   :  { %11031 = vmatpush1.msra.mxu1 %v10964_v41  ;;  %v11002_v41 = vld [vmem:[%s16655_s28 + $0x68] sm:$0xff] }
 0xe72   :  { %11032 = vmatprep.subr.mxu1 %v13985_v1 }
 0xe73   :  { %11033 = vmatpush1.msra.mxu1 %v10963_v28  ;;  %v11001_v28 = vld [vmem:[%s16655_s28 + $0x60] sm:$0xff] }
 0xe74   :  { %11034 = vmatprep.subr.mxu1 %v13985_v1 }
 0xe75   :  { %11035 = vmatpush1.msra.mxu1 %v10962_v7  ;;  %v11000_v7 = vld [vmem:[%s16655_s28 + $0x58] sm:$0xff] }
 0xe76   :  { %11036 = vmatprep.subr.mxu1 %v13985_v1 }
 0xe77   :  { %11037 = vmatpush1.msra.mxu1 %v10961_v55  ;;  %v10997_v55 = vld [vmem:[%s16655_s28 + $0x40] sm:$0xff] }
 0xe78   :  { %11038 = vmatprep.subr.mxu1 %v13985_v1 }
 0xe79   :  { %11039 = vmatpush1.msra.mxu1 %v10960_v27  ;;  %v10995_v27 = vld [vmem:[%s16655_s28 + $0x30] sm:$0xff] }
 0xe7a   :  { %11040 = vmatprep.subr.mxu1 %v13985_v1 }
 0xe7b   :  { %11041 = vmatpush1.msra.mxu1 %v10959_v21  ;;  %v10993_v21 = vld [vmem:[%s16655_s28 + $0x20] sm:$0xff] }
 0xe7c   :  { %11042 = vmatprep.subr.mxu1 %v13985_v1 }
 0xe7d   :  { %11043 = vmatpush1.msra.mxu1 %v10958_v37 }
 0xe7e   :  { %11044 = vmatprep.subr.mxu1 %v13985_v1 }
 0xe7f   :  { %11045 = vmatpush1.msra.mxu1 %v10957_v24 }
 0xe80   :  { %11046 = vmatprep.subr.mxu1 %v13985_v1 }
 0xe81   :  { %11047 = vmatpush1.msra.mxu1 %v10956_v50  ;;  %v12311_v50 = vld [vmem:[%s11458_s2] ss:$0 sm:$0xff] }
 0xe82   :  { %11048 = vmatprep.subr.mxu1 %v13985_v1 }
 0xe83   :  { %11049 = vmatpush1.msra.mxu1 %v10955_v31 }
 0xe84   :  { %11050 = vmatprep.subr.mxu1 %v13985_v1 }
 0xe85   :  { %11051 = vmatpush1.msra.mxu1 %v10954_v35 }
 0xe86   :  { %11052 = vmatprep.subr.mxu1 %v13985_v1 }
 0xe87   :  { %11053 = vmatpush1.msra.mxu1 %v10953_v0 }
 0xe88   :  { %11054 = vmatprep.subr.mxu1 %v13985_v1 }
 0xe89   :  { %11055 = vmatpush1.msra.mxu1 %v10952_v22 }
 0xe8a   :  { %11056 = vmatprep.subr.mxu1 %v13985_v1 }
 0xe8b   :  { %11057 = vmatpush1.msra.mxu1 %v10951_v20 }
 0xe8c   :  { %11082 = vmatprep.subr.mxu1 %v13985_v1 }
 0xe8d   :  { %11083 = vmatpush2.msra.mxu1 %v10970_v44  ;;  %v10991_v44 = vld [vmem:[%s16655_s28 + $0x10] sm:$0xff] }
 0xe8e   :  { %11084 = vmatprep.subr.mxu1 %v13985_v1 }
 0xe8f   :  { %11085 = vmatpush2.msra.mxu1 %v10969_v51  ;;  %v10990_v51 = vld [vmem:[%s16655_s28 + $0x8] sm:$0xff] }
 0xe90   :  { %11086 = vmatprep.subr.mxu1 %v13985_v1 }
 0xe91   :  { %11087 = vmatpush2.msra.mxu1 %v10968_v62  ;;  %v10989_v62 = vld [vmem:[%s16655_s28] sm:$0xff] }
 0xe92   :  { %11088 = vmatprep.subr.mxu1 %v13985_v1 }
 0xe93   :  { %11089 = vmatpush2.msra.mxu1 %v10967_v11  ;;  %v11021_v11 = vld [vmem:[%s16697_s5 + $0x78] sm:$0xff] }
 0xe94   :  { %12801 = vmatprep.subr.mxu1 %v13985_v1 }
 0xf28   :  { %v10825_v52 = vpop.f32.mrf.mxu1 }
 0xf29   :  { %v10909_v19 = vmul.f32 0.5, %v10825_v52 }
 0xf2a   :  { %v10827_v5 = vpop.f32.mrf.mxu1 }
 0xf2b   :  { %v10911_v2 = vmul.f32 %v10909_v19, %v10825_v52  ;;  %v10910_v30 = vmul.f32 0.5, %v10827_v5  ;;  %v11020_v52 = vld [vmem:[%s16697_s5 + $0x70] sm:$0xff] }
 0xf2c   :  { %v10904_v38 = vpop.f32.mrf.mxu1 }
 0xf2d   :  { %v10912_v40 = vmul.f32 %v10910_v30, %v10827_v5  ;;  %v10913_v63 = vsub.f32 %v10904_v38, %v10911_v2  ;;  %12310 = vmatprep.mubr.msk.f32.mxu0 %vm3646_vm11, %v10910_v30  ;;  %v11018_v5 = vld [vmem:[%s16697_s5 + $0x60] sm:$0xff]  ;;  %v11017_v2 = vld [vmem:[%s16697_s5 + $0x58] sm:$0xff]  ;;  %v11016_v30 = vld [vmem:[%s16697_s5 + $0x50] sm:$0xff] }
 0xf2e   :  { %v10906_v16 = vpop.f32.mrf.mxu1  ;;  %11164 = vmatmul.mubr.f32.vlgmr.msra.gmra.mxu0 %v10909_v19  ;;  %v11019_v19 = vld [vmem:[%s16697_s5 + $0x68] sm:$0xff] }
 0xf2f   :  { %v10915_v25 = vmax.f32 %v10913_v63, 0.0  ;;  %v10914_v8 = vsub.f32 %v10906_v16, %v10912_v40  ;;  %12868 = vmatprep.mubr.msk.f32.mxu0 %vm14008_vm14, %v13985_v1  ;;  %12837 = vmatpush3.msra.mxu0 %v11004_v53  ;;  %v11015_v38 = vld [vmem:[%s16697_s5 + $0x48] sm:$0xff]  ;;  %v11014_v40 = vld [vmem:[%s16697_s5 + $0x40] sm:$0xff]  ;;  %v11013_v63 = vld [vmem:[%s16697_s5 + $0x38] sm:$0xff] }
 0xf30   :  { %12838 = vmatprep.subr.mxu0 %v13985_v1  ;;  %v11012_v16 = vld [vmem:[%s16697_s5 + $0x30] sm:$0xff] }
 0xf31   :  { %13979 = vrsqrt.f32 %v10915_v25  ;;  %v10916_v6 = vmax.f32 %v10914_v8, 0.0  ;;  %vm10919_vm5 = vcmp.eq.f32.partialorder %v10915_v25, inf  ;;  %v10922_v23 = vand.u32 2147483648, %v10915_v25  ;;  %12839 = vmatpush3.msra.mxu0 %v11003_v58  ;;  %v11010_v8 = vld [vmem:[%s16697_s5 + $0x20] sm:$0xff] }
 0xf32   :  { %vm10921_vm8 = vcmp.eq.f32.partialorder %v10915_v25, 0.0  ;;  %12840 = vmatprep.subr.mxu0 %v13985_v1 }
 0xf33   :  { %13981 = vrsqrt.f32 %v10916_v6  ;;  %vm10926_vm6 = vcmp.eq.f32.partialorder %v10916_v6, inf  ;;  %v10929_v12 = vand.u32 2147483648, %v10916_v6  ;;  %vm10928_vm7 = vcmp.eq.f32.partialorder %v10916_v6, 0.0  ;;  %12841 = vmatpush3.msra.mxu0 %v11002_v41 }
 0xf34   :  { %12842 = vmatprep.subr.mxu0 %v13985_v1 }
 0xf35   :  { %12843 = vmatpush3.msra.mxu0 %v11001_v28 }
 0xf36   :  { %12844 = vmatprep.subr.mxu0 %v13985_v1 }
 0xf37   :  { %12845 = vmatpush3.msra.mxu0 %v11000_v7 }
 0xf38   :  { %12846 = vmatprep.subr.mxu0 %v13985_v1 }
 0xf39   :  { %12847 = vmatpush3.msra.mxu0 %v10999_v60 }
 0xf3a   :  { %12848 = vmatprep.subr.mxu0 %v13985_v1 }
 0xf3b   :  { %12849 = vmatpush3.msra.mxu0 %v10998_v57 }
 0xf3c   :  { %12850 = vmatprep.subr.mxu0 %v13985_v1 }
 0xf3d   :  { %12851 = vmatpush3.msra.mxu0 %v10997_v55 }
 0xf3e   :  { %v13980_v45 = vpop.eup %13979  ;;  %12852 = vmatprep.subr.mxu0 %v13985_v1 }
 0xf3f   :  { %v10918_v59 = vmul.f32 %v13980_v45, %v10915_v25  ;;  %12853 = vmatpush3.msra.mxu0 %v10996_v47  ;;  %v12312_v45 = vld [vmem:[%s11460_s9] ss:$0 sm:$0xff] }
 0xf40   :  { %v13982_v4 = vpop.eup %13981  ;;  %12854 = vmatprep.subr.mxu0 %v13985_v1 }
 0xf41   :  { %v10925_v61 = vmul.f32 %v13982_v4, %v10916_v6  ;;  %v10920_v49 = vsel %vm10919_vm5, %v10915_v25, %v10918_v59  ;;  %12855 = vmatpush3.msra.mxu0 %v10995_v27  ;;  %v11011_v25 = vld [vmem:[%s16697_s5 + $0x28] sm:$0xff] }
 0xf42   :  { %v10923_v36 = vsel %vm10921_vm8, %v10922_v23, %v10920_v49  ;;  %12856 = vmatprep.subr.mxu0 %v13985_v1  ;;  %v11008_v49 = vld [vmem:[%s16697_s5 + $0x10] sm:$0xff]  ;;  %v11006_v23 = vld [vmem:[%s16697_s5] sm:$0xff] }
 0xf43   :  { %v10927_v54 = vsel %vm10926_vm6, %v10916_v6, %v10925_v61  ;;  %12857 = vmatpush3.msra.mxu0 %v10994_v56  ;;  %v11009_v6 = vld [vmem:[%s16697_s5 + $0x18] sm:$0xff] }
 0xf44   :  { %v10930_v26 = vsel %vm10928_vm7, %v10929_v12, %v10927_v54  ;;  %12858 = vmatprep.subr.mxu0 %v13985_v1  ;;  %v11007_v54 = vld [vmem:[%s16697_s5 + $0x8] sm:$0xff] }
 0xf45   :  { %12309 = vmatprep.mubr.msk.f32.mxu1 %vm3646_vm11, %v10930_v26  ;;  %12859 = vmatpush3.msra.mxu0 %v10993_v21  ;;  %v12313_v26 = vld [vmem:[%s11462_s13] ss:$0 sm:$0xff] }
 0xf46   :  { %11091 = vmatmul.mubr.f32.vlgmr.msra.gmra.mxu1 %v10923_v36  ;;  %12860 = vmatprep.subr.mxu0 %v13985_v1 }
 0xf47   :  { %12802 = vmatpush3.msra.mxu1 %v10987_v29  ;;  %12833 = vmatprep.mubr.msk.f32.mxu1 %vm14008_vm14, %v13985_v1 }
 0xf48   :  { %12803 = vmatprep.subr.mxu1 %v13985_v1  ;;  %12861 = vmatpush3.msra.mxu0 %v10992_v3 }
 0xf49   :  { %12804 = vmatpush3.msra.mxu1 %v10986_v9  ;;  %12862 = vmatprep.subr.mxu0 %v13985_v1 }
 0xf4a   :  { %12805 = vmatprep.subr.mxu1 %v13985_v1  ;;  %12863 = vmatpush3.msra.mxu0 %v10991_v44 }
 0xf4b   :  { %12806 = vmatpush3.msra.mxu1 %v10985_v34  ;;  %12864 = vmatprep.subr.mxu0 %v13985_v1 }
 0xf4c   :  { %12807 = vmatprep.subr.mxu1 %v13985_v1  ;;  %12865 = vmatpush3.msra.mxu0 %v10990_v51 }
 0xf4d   :  { %12808 = vmatpush3.msra.mxu1 %v10984_v33  ;;  %12866 = vmatprep.subr.mxu0 %v13985_v1 }
 0xf4e   :  { %12809 = vmatprep.subr.mxu1 %v13985_v1  ;;  %12867 = vmatpush3.msra.mxu0 %v10989_v62 }
 0xf4f   :  { %12810 = vmatpush3.msra.mxu1 %v10983_v15 }
 0xf50   :  { %12811 = vmatprep.subr.mxu1 %v13985_v1 }
 0xf51   :  { %12812 = vmatpush3.msra.mxu1 %v10982_v39 }
 0xf52   :  { %12813 = vmatprep.subr.mxu1 %v13985_v1 }
 0xf53   :  { %12814 = vmatpush3.msra.mxu1 %v10981_v14 }
 0xf54   :  { %12815 = vmatprep.subr.mxu1 %v13985_v1 }
 0xf55   :  { %12816 = vmatpush3.msra.mxu1 %v10980_v42 }
 0xf56   :  { %12817 = vmatprep.subr.mxu1 %v13985_v1 }
 0xf57   :  { %12818 = vmatpush3.msra.mxu1 %v10979_v43 }
 0xf58   :  { %12819 = vmatprep.subr.mxu1 %v13985_v1 }
 0xf59   :  { %12820 = vmatpush3.msra.mxu1 %v10978_v10 }
 0xf5a   :  { %12821 = vmatprep.subr.mxu1 %v13985_v1 }
 0xf5b   :  { %12822 = vmatpush3.msra.mxu1 %v10977_v46 }
 0xf5c   :  { %12823 = vmatprep.subr.mxu1 %v13985_v1 }
 0xf5d   :  { %12824 = vmatpush3.msra.mxu1 %v10976_v13 }
 0xf5e   :  { %12825 = vmatprep.subr.mxu1 %v13985_v1 }
 0xf5f   :  { %12826 = vmatpush3.msra.mxu1 %v10975_v32 }
 0xf60   :  { %12827 = vmatprep.subr.mxu1 %v13985_v1 }
 0xf61   :  { %12828 = vmatpush3.msra.mxu1 %v10974_v48 }
 0xf62   :  { %12829 = vmatprep.subr.mxu1 %v13985_v1 }
 0xf63   :  { %12830 = vmatpush3.msra.mxu1 %v10973_v18 }
 0xf64   :  { %12831 = vmatprep.subr.mxu1 %v13985_v1 }
 0xf65   :  { %12832 = vmatpush3.msra.mxu1 %v10972_v17 }
 0xf66   :  { %12871 = vmatprep.subr.mxu1 %v13985_v1 }
 0xfee   :  { %v11165_v37 = vpop.f32.mrf.mxu0 }
 0xff0   :  { %v11167_v24 = vpop.f32.mrf.mxu0 }
0x1006   :  { %v11092_v31 = vpop.f32.mrf.mxu1 }
0x1007   :  { %v11166_v35 = vadd.f32 %v11165_v37, %v11092_v31 }
0x1008   :  { %v11094_v0 = vpop.f32.mrf.mxu1 }
0x1009   :  { %v11175_v22 = vadd.f32 %v12311_v50, %v11166_v35 }
0x100b   :  { %v11176_v20 = vmax.f32 %v11175_v22, 0.0 }
0x100d   :  { %12834 = vmatmul.mubr.f32.vlgmr.msra.gmra.mxu1 %v11176_v20 }
0x100e   :  { %12903 = vmatprep.mubr.msk.f32.mxu1 %vm14008_vm14, %v13985_v1  ;;  %12872 = vmatpush3.msra.mxu1 %v11021_v11 }
0x100f   :  { %12873 = vmatprep.subr.mxu1 %v13985_v1 }
0x1010   :  { %12874 = vmatpush3.msra.mxu1 %v11020_v52 }
0x1011   :  { %12875 = vmatprep.subr.mxu1 %v13985_v1 }
0x1012   :  { %12876 = vmatpush3.msra.mxu1 %v11019_v19 }
0x1013   :  { %12877 = vmatprep.subr.mxu1 %v13985_v1 }
0x1014   :  { %12878 = vmatpush3.msra.mxu1 %v11018_v5 }
0x1015   :  { %12879 = vmatprep.subr.mxu1 %v13985_v1 }
0x1016   :  { %12880 = vmatpush3.msra.mxu1 %v11017_v2 }
0x1017   :  { %12881 = vmatprep.subr.mxu1 %v13985_v1 }
0x1018   :  { %12882 = vmatpush3.msra.mxu1 %v11016_v30 }
0x1019   :  { %12883 = vmatprep.subr.mxu1 %v13985_v1 }
0x101a   :  { %12884 = vmatpush3.msra.mxu1 %v11015_v38 }
0x101b   :  { %12885 = vmatprep.subr.mxu1 %v13985_v1 }
0x101c   :  { %12886 = vmatpush3.msra.mxu1 %v11014_v40 }
0x101d   :  { %12887 = vmatprep.subr.mxu1 %v13985_v1 }
0x101e   :  { %12888 = vmatpush3.msra.mxu1 %v11013_v63 }
0x101f   :  { %12889 = vmatprep.subr.mxu1 %v13985_v1 }
0x1020   :  { %12890 = vmatpush3.msra.mxu1 %v11012_v16 }
0x1021   :  { %12891 = vmatprep.subr.mxu1 %v13985_v1 }
0x1022   :  { %12892 = vmatpush3.msra.mxu1 %v11011_v25 }
0x1023   :  { %12893 = vmatprep.subr.mxu1 %v13985_v1 }
0x1024   :  { %12894 = vmatpush3.msra.mxu1 %v11010_v8 }
0x1025   :  { %12895 = vmatprep.subr.mxu1 %v13985_v1 }
0x1026   :  { %12896 = vmatpush3.msra.mxu1 %v11009_v6 }
0x1027   :  { %12897 = vmatprep.subr.mxu1 %v13985_v1 }
0x1028   :  { %12898 = vmatpush3.msra.mxu1 %v11008_v49 }
0x1029   :  { %12899 = vmatprep.subr.mxu1 %v13985_v1 }
0x102a   :  { %12900 = vmatpush3.msra.mxu1 %v11007_v54 }
0x102b   :  { %12901 = vmatprep.subr.mxu1 %v13985_v1  ;;  %v12314_v1 = vld [vmem:[%s11464_s17] ss:$0 sm:$0xff] }
0x102c   :  { %12902 = vmatpush3.msra.mxu1 %v11006_v23 }
0x10cd   :  { %v11249_v59 = vpop.f32.mrf.mxu1 }
0x10ce   :  { %v11250_v4 = vadd.f32 %v12312_v45, %v11249_v59 }
0x10cf   :  { %v12835_v61 = vpop.f32.mrf.mxu1 }
0x10d0   :  { %v11253_v12 = vmax.f32 %v11250_v4, 0.0 }
0x10d2   :  { %12869 = vmatmul.mubr.f32.vlgmr.msra.gmra.mxu0 %v11253_v12 }
0x1192   :  { %v11326_v29 = vpop.f32.mrf.mxu0 }
0x1193   :  { %v11327_v36 = vadd.f32 %v12313_v26, %v11326_v29 }
0x1194   :  { %v12870_v9 = vpop.f32.mrf.mxu0 }
0x1195   :  { %v11330_v34 = vmax.f32 %v11327_v36, 0.0 }
0x1197   :  { %12904 = vmatmul.mubr.f32.vlgmr.msra.gmra.mxu1 %v11330_v34 }
0x1257   :  { %v11397_v33 = vpop.f32.mrf.mxu1 }
0x1258   :  { %v11401_v15 = vadd.f32 %v11397_v33, %v11253_v12 }
0x1259   :  { %v12905_v39 = vpop.f32.mrf.mxu1 }
0x125a   :  { %v11408_v14 = vadd.f32 %v12314_v1, %v11401_v15 }
0x125c   :  { %11409 = vst [vmem:[%s11466_s22] sm:$0x3] %v11408_v14 }

</bundles_post_ra>
